<compile_context>
chip_gen: v7x
topology: tpu7x:2x2x1
jax: 0.10.0
libtpu: 0.0.40
codegen_flags: <defaults>
</compile_context>

<pallas_src>
import functools
import numpy as np
import jax
import jax.numpy as jnp
from jax import lax
from jax.experimental import pallas as pl
from jax.experimental.pallas import tpu as pltpu

# ----------------------- deterministic "random" parameters -----------------------
EFFECT_STRENGTH = 1.0
STEAM_OPACITY   = 0.2  * EFFECT_STRENGTH     # random.uniform(0.1, 0.3)
NOISE_SCALE     = 0.5                        # random.uniform(0.3, 0.7)
SIGMA_STEAM     = 5.0                        # random.uniform(5, 20)
WARMTH          = 0.1  * EFFECT_STRENGTH     # random.uniform(0.05, 0.15)
SHADOW_OPACITY  = 0.25 * EFFECT_STRENGTH     # random.uniform(0.15, 0.4)
SHADOW_RAD_FRAC = 1.0                        # random.uniform(0.7, 1.3); corner = 'tl'
SIGMA_SHADOW    = 10.0                       # random.uniform(10, 30)
LIGHT_INTENSITY = 0.15 * EFFECT_STRENGTH     # random.uniform(0.1, 0.25)
LIGHT_X, LIGHT_Y = 0.25, -0.25               # random.uniform(-0.5, 0.5)
LIGHT_RADIUS    = 0.6                        # random.uniform(0.4, 0.8)


# ----------------------- host-side constant construction -------------------------
def _reflect_index(idx, n):
    # torch 'reflect' padding (no edge repeat), period 2*(n-1)
    if n == 1:
        return np.zeros_like(idx)
    idx = np.abs(idx)
    period = 2 * (n - 1)
    idx = idx % period
    return np.where(idx >= n, period - idx, idx)


def _gaussian_kernel_1d(kernel_size, sigma):
    half = (kernel_size - 1) * 0.5
    x = np.linspace(-half, half, kernel_size)
    pdf = np.exp(-0.5 * (x / sigma) ** 2)
    return pdf / pdf.sum()


def _blur_matrix_np(n, sigma, ks_rule):
    """(n, n) matrix encoding torchvision gaussian_blur (reflect pad) along one axis."""
    ks = ks_rule(sigma)
    ks = max(3, int(ks) // 2 * 2 + 1)
    r = ks // 2
    assert r < n, "reflect padding requires blur radius < image extent"
    g = _gaussian_kernel_1d(ks, sigma)
    B = np.zeros((n, n), dtype=np.float32)
    for i in range(n):
        for t in range(ks):
            j = int(_reflect_index(np.array(i - r + t), n))
            B[i, j] += g[t]
    return B


@functools.lru_cache(maxsize=8)
def _constant_inputs(H, W):
    """Everything that depends only on (H, W) + frozen constants, built once per shape."""
    ks_steam  = lambda s: int(s * 3) // 2 * 2 + 1
    ks_shadow = lambda s: int(s * 2) // 2 * 2 + 1

    # steam blur matrices (used in-kernel on the MXU) -> bf16
    bh_s  = _blur_matrix_np(H, SIGMA_STEAM, ks_steam)          # (H, H) row blur
    bw_sT = _blur_matrix_np(W, SIGMA_STEAM, ks_steam).T        # (W, W) col blur, transposed

    # shadow mask (corner 'tl'), blurred host-side (pure constant -> hoisted out of kernel)
    row = np.arange(H, dtype=np.float32)[:, None] * np.ones((1, W), np.float32)
    col = np.ones((H, 1), np.float32) * np.arange(W, dtype=np.float32)[None, :]
    sh_dist = np.sqrt(col * col + row * row)
    sh_radius = SHADOW_RAD_FRAC * float(max(H, W))
    sh_mask = (np.exp(-sh_dist / sh_radius) * SHADOW_OPACITY).astype(np.float32)
    bh_sh = _blur_matrix_np(H, SIGMA_SHADOW, ks_shadow)
    bw_sh = _blur_matrix_np(W, SIGMA_SHADOW, ks_shadow)
    sh_blur = (bh_sh @ sh_mask @ bw_sh.T).astype(np.float32)

    bf16 = jnp.bfloat16
    return (jnp.asarray(bh_s, bf16), jnp.asarray(bw_sT, bf16), jnp.asarray(sh_blur, bf16))


# --------------------------- generation-aware tile sizing --------------------------
def _vmem_capacity_bytes():
    try:
        cap = getattr(pltpu.get_tpu_info(), "vmem_capacity_bytes", None)
        if cap:
            return int(cap)
    except Exception:
        pass
    return 64 * 1024 * 1024          # conservative fallback (v7x per-TC VMEM)


def _pick_tile_and_vmem(H, W, out_itemsize):
    """Largest MXU-friendly row tile that fits a generation-aware VMEM budget, plus a
    vmem_limit_bytes derived from the actual buffer footprint (+ headroom)."""
    vmem_cap = _vmem_capacity_bytes()
    budget = int(vmem_cap * 0.7)     # leave room for compiler temporaries / spills

    def footprint(th, resident_bufs):
        tiles  = 2 * 3 * th * W * 4                 # img tile (f32), double-buffered
        tiles += 2 * 3 * th * W * out_itemsize      # output tile, double-buffered
        tiles += 2 * th * H * 2                     # row-blur rows (bf16), double-buffered
        tiles += 2 * th * W * 2                     # shadow tile (bf16), double-buffered
        resident = resident_bufs * (H * W + W * W) * 2   # steam_base + bw_sT (bf16)
        temps = 12 * th * W * 4                     # in-kernel f32 temporaries
        return tiles + resident + temps

    th = None
    # 256/512 feed the full 256-wide MXU on v6e/v7x; keep >= 2 grid steps for overlap.
    for cand in (512, 256, 128, 64, 32, 16, 8):
        if H % cand == 0 and H // cand >= 2 and footprint(cand, 2) <= budget:
            th = cand
            break
    if th is None:
        th = H                                      # tiny / non-divisible H: single step
    vmem_limit = min(int(vmem_cap * 0.9),
                     max(32 * 1024 * 1024, int(footprint(th, 2) * 1.3)))
    return th, vmem_limit


# ---------------------------------- Pallas kernel ---------------------------------
def oven_kernel(img_ref, bh_ref, steam_ref, bwT_ref, shadow_ref, out_ref, *, H, W, TH):
    f32 = jnp.float32
    bf16 = jnp.bfloat16

    # ---- steam mask: separable Gaussian blur of this row tile on the MXU (bf16) ----
    blur = jnp.dot(bh_ref[...], steam_ref[...], preferred_element_type=f32)   # (TH, W)
    blur = jnp.dot(blur.astype(bf16), bwT_ref[...], preferred_element_type=f32)
    steam_mask = blur * STEAM_OPACITY

    # ---- in-kernel warmth / lighting masks (iota + exp: EUP/VPU slack, no HBM) ----
    base_row = pl.program_id(0) * TH
    row = (lax.broadcasted_iota(jnp.int32, (TH, W), 0) + base_row).astype(f32)
    col = lax.broadcasted_iota(jnp.int32, (TH, W), 1).astype(f32)
    y_n = row * (2.0 / (H - 1)) - 1.0
    x_n = col * (2.0 / (W - 1)) - 1.0
    dist = jnp.sqrt(x_n * x_n + y_n * y_n)
    wf = WARMTH * (jnp.exp(dist * -2.0) * 0.5 + 0.5)
    dlx = x_n - LIGHT_X
    dly = y_n - LIGHT_Y
    lm = LIGHT_INTENSITY * jnp.exp((dlx * dlx + dly * dly) * (-1.0 / (2.0 * LIGHT_RADIUS ** 2)))

    r = img_ref[0].astype(f32)
    g = img_ref[1].astype(f32)
    b = img_ref[2].astype(f32)

    # ---- steam:  a*(1-m) + c*m == a + m*(c-a)   (steam color = (1, 1, 1.05)) ----
    r = r + steam_mask * (1.00 - r)
    g = g + steam_mask * (1.00 - g)
    b = b + steam_mask * (1.05 - b)

    # ---- warmth (all values stay >= 0, so only the upper clamp is needed) ----
    r = jnp.minimum(r * (1.0 + wf), 1.0)
    g = jnp.minimum(g * (1.0 + wf * 0.3), 1.0)
    b = jnp.minimum(b * (1.0 - wf * 0.2), 1.0)

    # ---- shadow (pre-blurred mask, includes opacity) ----
    one_minus_sh = 1.0 - shadow_ref[...].astype(f32)
    r = r * one_minus_sh
    g = g * one_minus_sh
    b = b * one_minus_sh

    # ---- lighting (torch: a*(1-m) + min(color*a*(1+m), 1)) ----
    one_plus_lm = 1.0 + lm
    one_minus_lm = 1.0 - lm
    r = r * one_minus_lm + jnp.minimum(1.05 * (r * one_plus_lm), 1.0)
    g = g * one_minus_lm + jnp.minimum(1.03 * (g * one_plus_lm), 1.0)
    b = b * one_minus_lm + jnp.minimum(b * one_plus_lm, 1.0)

    # ---- final clamp: intermediates are >= 0, so only the upper bound is needed ----
    od = out_ref.dtype
    out_ref[0] = jnp.minimum(r, 1.0).astype(od)
    out_ref[1] = jnp.minimum(g, 1.0).astype(od)
    out_ref[2] = jnp.minimum(b, 1.0).astype(od)


# ------------------------------------ wrapper -------------------------------------
def oven_effect(img, noise_key, *, out_dtype=jnp.float32):
    """img: (3, H, W) float in [0, 1].  Returns (out, aux); aux feeds the pure-JAX ref.
    # TODO(synk): module returns float; pass out_dtype=jnp.bfloat16 to halve write
    # traffic on mem-bound v5e/v6e if downstream tolerates bf16."""
    C, H, W = img.shape
    assert C == 3 and min(H, W) >= 16, "shadow blur radius (10) requires H, W >= 16"
    bf16 = jnp.bfloat16

    # Noise-dependent steam base, fused with the PRNG draw in one XLA pass; this is the
    # single full-resident bf16 input (no in-kernel step-0 build, no VMEM scratch).
    noise = jax.random.uniform(noise_key, (H, W), dtype=jnp.float32)
    y_lin = jnp.linspace(1.0, 0.0, H, dtype=jnp.float32)[:, None]
    steam_base = (y_lin * (noise * NOISE_SCALE)).astype(bf16)

    bh_s, bw_sT, shadow = _constant_inputs(H, W)

    TH, vmem_limit = _pick_tile_and_vmem(H, W, jnp.dtype(out_dtype).itemsize)
    grid = (H // TH,)

    def build(resident_mode):
        grid_spec = pltpu.PrefetchScalarGridSpec(
            num_scalar_prefetch=0,
            grid=grid,
            in_specs=[
                pl.BlockSpec((3, TH, W), lambda i: (0, i, 0)),                    # image tile
                pl.BlockSpec((TH, H), lambda i: (i, 0)),                          # row-blur rows
                pl.BlockSpec((H, W), lambda i: (0, 0),
                             pipeline_mode=resident_mode),                        # steam base (resident)
                pl.BlockSpec((W, W), lambda i: (0, 0),
                             pipeline_mode=resident_mode),                        # col-blur^T (resident)
                pl.BlockSpec((TH, W), lambda i: (i, 0)),                          # shadow tile
            ],
            out_specs=pl.BlockSpec((3, TH, W), lambda i: (0, i, 0)),
        )
        return pl.pallas_call(
            functools.partial(oven_kernel, H=H, W=W, TH=TH),
            out_shape=jax.ShapeDtypeStruct((3, H, W), out_dtype),
            grid_spec=grid_spec,
            compiler_params=pltpu.CompilerParams(
                # no cross-step state -> row tiles are independent (2 TCs on v7x)
                dimension_semantics=("parallel",),
                vmem_limit_bytes=vmem_limit,
            ),
        )

    args = (img, bh_s, steam_base, bw_sT, shadow)
    try:
        # single-buffer the block-invariant full-resident inputs (constant index_map)
        out = build(pl.Buffered(1))(*args)
    except Exception:
        out = build(None)(*args)     # fallback: default double buffering

    return out, (steam_base, bh_s, bw_sT, shadow)


# ----------------------------- pure-JAX reference ----------------------------------
def oven_effect_ref(img, steam_base, bh_s, bw_sT, shadow):
    f32 = jnp.float32
    bf16 = jnp.bfloat16
    _, H, W = img.shape

    blur = jnp.dot(bh_s, steam_base, preferred_element_type=f32)
    blur = jnp.dot(blur.astype(bf16), bw_sT, preferred_element_type=f32)
    steam_mask = blur * STEAM_OPACITY

    row = jnp.arange(H, dtype=f32)[:, None] * jnp.ones((1, W), f32)
    col = jnp.ones((H, 1), f32) * jnp.arange(W, dtype=f32)[None, :]
    y_n = row * (2.0 / (H - 1)) - 1.0
    x_n = col * (2.0 / (W - 1)) - 1.0
    dist = jnp.sqrt(x_n * x_n + y_n * y_n)
    wf = WARMTH * (jnp.exp(dist * -2.0) * 0.5 + 0.5)
    lm = LIGHT_INTENSITY * jnp.exp(((x_n - LIGHT_X) ** 2 + (y_n - LIGHT_Y) ** 2)
                                   * (-1.0 / (2.0 * LIGHT_RADIUS ** 2)))

    r = img[0].astype(f32); g = img[1].astype(f32); b = img[2].astype(f32)
    r = r + steam_mask * (1.00 - r)
    g = g + steam_mask * (1.00 - g)
    b = b + steam_mask * (1.05 - b)

    r = jnp.minimum(r * (1.0 + wf), 1.0)
    g = jnp.minimum(g * (1.0 + wf * 0.3), 1.0)
    b = jnp.minimum(b * (1.0 - wf * 0.2), 1.0)

    one_minus_sh = 1.0 - shadow.astype(f32)
    r = r * one_minus_sh; g = g * one_minus_sh; b = b * one_minus_sh

    r = r * (1.0 - lm) + jnp.minimum(1.05 * (r * (1.0 + lm)), 1.0)
    g = g * (1.0 - lm) + jnp.minimum(1.03 * (g * (1.0 + lm)), 1.0)
    b = b * (1.0 - lm) + jnp.minimum(b * (1.0 + lm), 1.0)

    return jnp.stack([jnp.minimum(r, 1.0),
                      jnp.minimum(g, 1.0),
                      jnp.minimum(b, 1.0)])


if __name__ == "__main__":
    key = jax.random.PRNGKey(0)
    k_img, k_noise = jax.random.split(key)
    H = W = 256   # small but lane-dense (W % 128 == 0), > blur radii, 2-step grid
    img = jax.random.uniform(k_img, (3, H, W), dtype=jnp.float32)  # CHW image in [0, 1]

    out, aux = oven_effect(img, k_noise)
    out = jax.block_until_ready(out)

    ref = oven_effect_ref(img, *aux)
    np.testing.assert_allclose(np.asarray(out), np.asarray(ref), rtol=2e-3, atol=2e-3)
    print("KERNEL_OK")
</pallas_src>

<mosaic_0001>
module attributes {stable_mosaic.version = 11 : i64} {
  func.func @oven_kernel(%arg0: i32, %arg1: memref<3x128x256xf32, #tpu.memory_space<vmem>>, %arg2: memref<128x256xbf16, #tpu.memory_space<vmem>>, %arg3: memref<256x256xbf16, #tpu.memory_space<vmem>>, %arg4: memref<256x256xbf16, #tpu.memory_space<vmem>>, %arg5: memref<128x256xbf16, #tpu.memory_space<vmem>>, %arg6: memref<3x128x256xf32, #tpu.memory_space<vmem>>) attributes {dimension_semantics = [#tpu.dimension_semantics<parallel>], iteration_bounds = array<i64: 2>, scalar_prefetch = 0 : i64, scratch_operands = 0 : i64, tpu.core_type = #tpu.core_type<tc>, window_params = [{transform_indices = @transform_0, window_bounds = array<i64: 3, 128, 256>}, {transform_indices = @transform_1, window_bounds = array<i64: 128, 256>}, {pipeline_mode = #tpu.pipeline_mode<synchronous>, transform_indices = @transform_2, window_bounds = array<i64: 256, 256>}, {pipeline_mode = #tpu.pipeline_mode<synchronous>, transform_indices = @transform_3, window_bounds = array<i64: 256, 256>}, {transform_indices = @transform_4, window_bounds = array<i64: 128, 256>}, {transform_indices = @transform_5, window_bounds = array<i64: 3, 128, 256>}]} {
    %c0 = arith.constant 0 : index
    %c0_0 = arith.constant 0 : index
    %0 = vector.load %arg2[%c0, %c0_0] : memref<128x256xbf16, #tpu.memory_space<vmem>>, vector<128x256xbf16>
    %c0_1 = arith.constant 0 : index
    %c0_2 = arith.constant 0 : index
    %1 = vector.load %arg3[%c0_1, %c0_2] : memref<256x256xbf16, #tpu.memory_space<vmem>>, vector<256x256xbf16>
    %cst = arith.constant dense<0.000000e+00> : vector<128x256xf32>
    %2 = tpu.matmul %0, %1, %cst {dimension_numbers = #tpu.dot_dimension_numbers<[1], [0], [0], [1], [0, 0, 1, 1], [], []>} : vector<128x256xbf16>, vector<256x256xbf16>, vector<128x256xf32> -> vector<128x256xf32>
    %3 = arith.truncf %2 : vector<128x256xf32> to vector<128x256xbf16>
    %c0_3 = arith.constant 0 : index
    %c0_4 = arith.constant 0 : index
    %4 = vector.load %arg4[%c0_3, %c0_4] : memref<256x256xbf16, #tpu.memory_space<vmem>>, vector<256x256xbf16>
    %cst_5 = arith.constant dense<0.000000e+00> : vector<128x256xf32>
    %5 = tpu.matmul %3, %4, %cst_5 {dimension_numbers = #tpu.dot_dimension_numbers<[1], [0], [0], [1], [0, 0, 1, 1], [], []>} : vector<128x256xbf16>, vector<256x256xbf16>, vector<128x256xf32> -> vector<128x256xf32>
    %cst_6 = arith.constant 2.000000e-01 : f32
    %6 = vector.broadcast %cst_6 : f32 to vector<128x256xf32>
    %7 = arith.mulf %5, %6 : vector<128x256xf32>
    %c128_i32 = arith.constant 128 : i32
    %8 = arith.muli %arg0, %c128_i32 : i32
    %9 = tpu.iota {dimensions = array<i32: 0>} : vector<128x256xi32>
    %10 = vector.broadcast %8 : i32 to vector<128x256xi32>
    %11 = arith.addi %9, %10 : vector<128x256xi32>
    %12 = arith.sitofp %11 : vector<128x256xi32> to vector<128x256xf32>
    %13 = tpu.iota {dimensions = array<i32: 1>} : vector<128x256xi32>
    %14 = arith.sitofp %13 : vector<128x256xi32> to vector<128x256xf32>
    %cst_7 = arith.constant 0.00784313772 : f32
    %15 = vector.broadcast %cst_7 : f32 to vector<128x256xf32>
    %16 = arith.mulf %12, %15 : vector<128x256xf32>
    %cst_8 = arith.constant 1.000000e+00 : f32
    %17 = vector.broadcast %cst_8 : f32 to vector<128x256xf32>
    %18 = arith.subf %16, %17 : vector<128x256xf32>
    %cst_9 = arith.constant 0.00784313772 : f32
    %19 = vector.broadcast %cst_9 : f32 to vector<128x256xf32>
    %20 = arith.mulf %14, %19 : vector<128x256xf32>
    %cst_10 = arith.constant 1.000000e+00 : f32
    %21 = vector.broadcast %cst_10 : f32 to vector<128x256xf32>
    %22 = arith.subf %20, %21 : vector<128x256xf32>
    %23 = arith.mulf %22, %22 : vector<128x256xf32>
    %24 = arith.mulf %18, %18 : vector<128x256xf32>
    %25 = arith.addf %23, %24 : vector<128x256xf32>
    %26 = math.sqrt %25 : vector<128x256xf32>
    %cst_11 = arith.constant -2.000000e+00 : f32
    %27 = vector.broadcast %cst_11 : f32 to vector<128x256xf32>
    %28 = arith.mulf %26, %27 : vector<128x256xf32>
    %29 = math.exp %28 : vector<128x256xf32>
    %cst_12 = arith.constant 5.000000e-01 : f32
    %30 = vector.broadcast %cst_12 : f32 to vector<128x256xf32>
    %31 = arith.mulf %29, %30 : vector<128x256xf32>
    %cst_13 = arith.constant 5.000000e-01 : f32
    %32 = vector.broadcast %cst_13 : f32 to vector<128x256xf32>
    %33 = arith.addf %31, %32 : vector<128x256xf32>
    %cst_14 = arith.constant 1.000000e-01 : f32
    %34 = vector.broadcast %cst_14 : f32 to vector<128x256xf32>
    %35 = arith.mulf %34, %33 : vector<128x256xf32>
    %cst_15 = arith.constant 2.500000e-01 : f32
    %36 = vector.broadcast %cst_15 : f32 to vector<128x256xf32>
    %37 = arith.subf %22, %36 : vector<128x256xf32>
    %cst_16 = arith.constant -2.500000e-01 : f32
    %38 = vector.broadcast %cst_16 : f32 to vector<128x256xf32>
    %39 = arith.subf %18, %38 : vector<128x256xf32>
    %40 = arith.mulf %37, %37 : vector<128x256xf32>
    %41 = arith.mulf %39, %39 : vector<128x256xf32>
    %42 = arith.addf %40, %41 : vector<128x256xf32>
    %cst_17 = arith.constant -1.38888884 : f32
    %43 = vector.broadcast %cst_17 : f32 to vector<128x256xf32>
    %44 = arith.mulf %42, %43 : vector<128x256xf32>
    %45 = math.exp %44 : vector<128x256xf32>
    %cst_18 = arith.constant 1.500000e-01 : f32
    %46 = vector.broadcast %cst_18 : f32 to vector<128x256xf32>
    %47 = arith.mulf %46, %45 : vector<128x256xf32>
    %c0_19 = arith.constant 0 : index
    %c0_20 = arith.constant 0 : index
    %c0_21 = arith.constant 0 : index
    %48 = vector.load %arg1[%c0_19, %c0_20, %c0_21] : memref<3x128x256xf32, #tpu.memory_space<vmem>>, vector<1x128x256xf32>
    %49 = vector.shape_cast %48 : vector<1x128x256xf32> to vector<128x256xf32>
    %c1 = arith.constant 1 : index
    %c0_22 = arith.constant 0 : index
    %c0_23 = arith.constant 0 : index
    %50 = vector.load %arg1[%c1, %c0_22, %c0_23] : memref<3x128x256xf32, #tpu.memory_space<vmem>>, vector<1x128x256xf32>
    %51 = vector.shape_cast %50 : vector<1x128x256xf32> to vector<128x256xf32>
    %c2 = arith.constant 2 : index
    %c0_24 = arith.constant 0 : index
    %c0_25 = arith.constant 0 : index
    %52 = vector.load %arg1[%c2, %c0_24, %c0_25] : memref<3x128x256xf32, #tpu.memory_space<vmem>>, vector<1x128x256xf32>
    %53 = vector.shape_cast %52 : vector<1x128x256xf32> to vector<128x256xf32>
    %cst_26 = arith.constant 1.000000e+00 : f32
    %54 = vector.broadcast %cst_26 : f32 to vector<128x256xf32>
    %55 = arith.subf %54, %49 : vector<128x256xf32>
    %56 = arith.mulf %7, %55 : vector<128x256xf32>
    %57 = arith.addf %49, %56 : vector<128x256xf32>
    %cst_27 = arith.constant 1.000000e+00 : f32
    %58 = vector.broadcast %cst_27 : f32 to vector<128x256xf32>
    %59 = arith.subf %58, %51 : vector<128x256xf32>
    %60 = arith.mulf %7, %59 : vector<128x256xf32>
    %61 = arith.addf %51, %60 : vector<128x256xf32>
    %cst_28 = arith.constant 1.050000e+00 : f32
    %62 = vector.broadcast %cst_28 : f32 to vector<128x256xf32>
    %63 = arith.subf %62, %53 : vector<128x256xf32>
    %64 = arith.mulf %7, %63 : vector<128x256xf32>
    %65 = arith.addf %53, %64 : vector<128x256xf32>
    %cst_29 = arith.constant 1.000000e+00 : f32
    %66 = vector.broadcast %cst_29 : f32 to vector<128x256xf32>
    %67 = arith.addf %66, %35 : vector<128x256xf32>
    %68 = arith.mulf %57, %67 : vector<128x256xf32>
    %cst_30 = arith.constant 1.000000e+00 : f32
    %69 = vector.broadcast %cst_30 : f32 to vector<128x256xf32>
    %70 = arith.minimumf %68, %69 : vector<128x256xf32>
    %cst_31 = arith.constant 3.000000e-01 : f32
    %71 = vector.broadcast %cst_31 : f32 to vector<128x256xf32>
    %72 = arith.mulf %35, %71 : vector<128x256xf32>
    %cst_32 = arith.constant 1.000000e+00 : f32
    %73 = vector.broadcast %cst_32 : f32 to vector<128x256xf32>
    %74 = arith.addf %73, %72 : vector<128x256xf32>
    %75 = arith.mulf %61, %74 : vector<128x256xf32>
    %cst_33 = arith.constant 1.000000e+00 : f32
    %76 = vector.broadcast %cst_33 : f32 to vector<128x256xf32>
    %77 = arith.minimumf %75, %76 : vector<128x256xf32>
    %cst_34 = arith.constant 2.000000e-01 : f32
    %78 = vector.broadcast %cst_34 : f32 to vector<128x256xf32>
    %79 = arith.mulf %35, %78 : vector<128x256xf32>
    %cst_35 = arith.constant 1.000000e+00 : f32
    %80 = vector.broadcast %cst_35 : f32 to vector<128x256xf32>
    %81 = arith.subf %80, %79 : vector<128x256xf32>
    %82 = arith.mulf %65, %81 : vector<128x256xf32>
    %cst_36 = arith.constant 1.000000e+00 : f32
    %83 = vector.broadcast %cst_36 : f32 to vector<128x256xf32>
    %84 = arith.minimumf %82, %83 : vector<128x256xf32>
    %c0_37 = arith.constant 0 : index
    %c0_38 = arith.constant 0 : index
    %85 = vector.load %arg5[%c0_37, %c0_38] : memref<128x256xbf16, #tpu.memory_space<vmem>>, vector<128x256xbf16>
    %86 = arith.extf %85 : vector<128x256xbf16> to vector<128x256xf32>
    %cst_39 = arith.constant 1.000000e+00 : f32
    %87 = vector.broadcast %cst_39 : f32 to vector<128x256xf32>
    %88 = arith.subf %87, %86 : vector<128x256xf32>
    %89 = arith.mulf %70, %88 : vector<128x256xf32>
    %90 = arith.mulf %77, %88 : vector<128x256xf32>
    %91 = arith.mulf %84, %88 : vector<128x256xf32>
    %cst_40 = arith.constant 1.000000e+00 : f32
    %92 = vector.broadcast %cst_40 : f32 to vector<128x256xf32>
    %93 = arith.addf %92, %47 : vector<128x256xf32>
    %cst_41 = arith.constant 1.000000e+00 : f32
    %94 = vector.broadcast %cst_41 : f32 to vector<128x256xf32>
    %95 = arith.subf %94, %47 : vector<128x256xf32>
    %96 = arith.mulf %89, %95 : vector<128x256xf32>
    %97 = arith.mulf %89, %93 : vector<128x256xf32>
    %cst_42 = arith.constant 1.050000e+00 : f32
    %98 = vector.broadcast %cst_42 : f32 to vector<128x256xf32>
    %99 = arith.mulf %98, %97 : vector<128x256xf32>
    %cst_43 = arith.constant 1.000000e+00 : f32
    %100 = vector.broadcast %cst_43 : f32 to vector<128x256xf32>
    %101 = arith.minimumf %99, %100 : vector<128x256xf32>
    %102 = arith.addf %96, %101 : vector<128x256xf32>
    %103 = arith.mulf %90, %95 : vector<128x256xf32>
    %104 = arith.mulf %90, %93 : vector<128x256xf32>
    %cst_44 = arith.constant 1.030000e+00 : f32
    %105 = vector.broadcast %cst_44 : f32 to vector<128x256xf32>
    %106 = arith.mulf %105, %104 : vector<128x256xf32>
    %cst_45 = arith.constant 1.000000e+00 : f32
    %107 = vector.broadcast %cst_45 : f32 to vector<128x256xf32>
    %108 = arith.minimumf %106, %107 : vector<128x256xf32>
    %109 = arith.addf %103, %108 : vector<128x256xf32>
    %110 = arith.mulf %91, %95 : vector<128x256xf32>
    %111 = arith.mulf %91, %93 : vector<128x256xf32>
    %cst_46 = arith.constant 1.000000e+00 : f32
    %112 = vector.broadcast %cst_46 : f32 to vector<128x256xf32>
    %113 = arith.minimumf %111, %112 : vector<128x256xf32>
    %114 = arith.addf %110, %113 : vector<128x256xf32>
    %cst_47 = arith.constant 1.000000e+00 : f32
    %115 = vector.broadcast %cst_47 : f32 to vector<128x256xf32>
    %116 = arith.minimumf %102, %115 : vector<128x256xf32>
    %c0_48 = arith.constant 0 : index
    %c0_49 = arith.constant 0 : index
    %c0_50 = arith.constant 0 : index
    %117 = vector.load %arg6[%c0_48, %c0_49, %c0_50] : memref<3x128x256xf32, #tpu.memory_space<vmem>>, vector<1x128x256xf32>
    %118 = vector.shape_cast %117 : vector<1x128x256xf32> to vector<128x256xf32>
    %119 = vector.shape_cast %116 : vector<128x256xf32> to vector<1x128x256xf32>
    tpu.vector_store %arg6[%c0_48, %c0_49, %c0_50], %119 {strides = array<i32>} : memref<3x128x256xf32, #tpu.memory_space<vmem>>, vector<1x128x256xf32>,
    %cst_51 = arith.constant 1.000000e+00 : f32
    %120 = vector.broadcast %cst_51 : f32 to vector<128x256xf32>
    %121 = arith.minimumf %109, %120 : vector<128x256xf32>
    %c1_52 = arith.constant 1 : index
    %c0_53 = arith.constant 0 : index
    %c0_54 = arith.constant 0 : index
    %122 = vector.load %arg6[%c1_52, %c0_53, %c0_54] : memref<3x128x256xf32, #tpu.memory_space<vmem>>, vector<1x128x256xf32>
    %123 = vector.shape_cast %122 : vector<1x128x256xf32> to vector<128x256xf32>
    %124 = vector.shape_cast %121 : vector<128x256xf32> to vector<1x128x256xf32>
    tpu.vector_store %arg6[%c1_52, %c0_53, %c0_54], %124 {strides = array<i32>} : memref<3x128x256xf32, #tpu.memory_space<vmem>>, vector<1x128x256xf32>,
    %cst_55 = arith.constant 1.000000e+00 : f32
    %125 = vector.broadcast %cst_55 : f32 to vector<128x256xf32>
    %126 = arith.minimumf %114, %125 : vector<128x256xf32>
    %c2_56 = arith.constant 2 : index
    %c0_57 = arith.constant 0 : index
    %c0_58 = arith.constant 0 : index
    %127 = vector.load %arg6[%c2_56, %c0_57, %c0_58] : memref<3x128x256xf32, #tpu.memory_space<vmem>>, vector<1x128x256xf32>
    %128 = vector.shape_cast %127 : vector<1x128x256xf32> to vector<128x256xf32>
    %129 = vector.shape_cast %126 : vector<128x256xf32> to vector<1x128x256xf32>
    tpu.vector_store %arg6[%c2_56, %c0_57, %c0_58], %129 {strides = array<i32>} : memref<3x128x256xf32, #tpu.memory_space<vmem>>, vector<1x128x256xf32>,
    return
  }
  func.func @transform_0(%arg0: i32) -> (i32, i32, i32) {
    %c0_i32 = arith.constant 0 : i32
    %c0_i32_0 = arith.constant 0 : i32
    %c0_i32_1 = arith.constant 0 : i32
    return %c0_i32, %arg0, %c0_i32_0 : i32, i32, i32
  }
  func.func @transform_1(%arg0: i32) -> (i32, i32) {
    %c0_i32 = arith.constant 0 : i32
    %c0_i32_0 = arith.constant 0 : i32
    return %arg0, %c0_i32 : i32, i32
  }
  func.func @transform_2(%arg0: i32) -> (i32, i32) {
    %c0_i32 = arith.constant 0 : i32
    %c0_i32_0 = arith.constant 0 : i32
    %c0_i32_1 = arith.constant 0 : i32
    return %c0_i32, %c0_i32_0 : i32, i32
  }
  func.func @transform_3(%arg0: i32) -> (i32, i32) {
    %c0_i32 = arith.constant 0 : i32
    %c0_i32_0 = arith.constant 0 : i32
    %c0_i32_1 = arith.constant 0 : i32
    return %c0_i32, %c0_i32_0 : i32, i32
  }
  func.func @transform_4(%arg0: i32) -> (i32, i32) {
    %c0_i32 = arith.constant 0 : i32
    %c0_i32_0 = arith.constant 0 : i32
    return %arg0, %c0_i32 : i32, i32
  }
  func.func @transform_5(%arg0: i32) -> (i32, i32, i32) {
    %c0_i32 = arith.constant 0 : i32
    %c0_i32_0 = arith.constant 0 : i32
    %c0_i32_1 = arith.constant 0 : i32
    return %c0_i32, %arg0, %c0_i32_0 : i32, i32, i32
  }
}

module attributes {stable_mosaic.version = 11 : i64} {
  func.func @oven_kernel(%arg0: i32, %arg1: memref<3x128x256xf32, #tpu.memory_space<vmem>>, %arg2: memref<128x256xbf16, #tpu.memory_space<vmem>>, %arg3: memref<256x256xbf16, #tpu.memory_space<vmem>>, %arg4: memref<256x256xbf16, #tpu.memory_space<vmem>>, %arg5: memref<128x256xbf16, #tpu.memory_space<vmem>>, %arg6: memref<3x128x256xf32, #tpu.memory_space<vmem>>) attributes {dimension_semantics = [#tpu.dimension_semantics<parallel>], iteration_bounds = array<i64: 2>, scalar_prefetch = 0 : i64, scratch_operands = 0 : i64, tpu.core_type = #tpu.core_type<tc>, window_params = [{transform_indices = @transform_0, window_bounds = array<i64: 3, 128, 256>}, {transform_indices = @transform_1, window_bounds = array<i64: 128, 256>}, {pipeline_mode = #tpu.pipeline_mode<synchronous>, transform_indices = @transform_2, window_bounds = array<i64: 256, 256>}, {pipeline_mode = #tpu.pipeline_mode<synchronous>, transform_indices = @transform_3, window_bounds = array<i64: 256, 256>}, {transform_indices = @transform_4, window_bounds = array<i64: 128, 256>}, {transform_indices = @transform_5, window_bounds = array<i64: 3, 128, 256>}]} {
    %c0 = arith.constant 0 : index
    %c0_0 = arith.constant 0 : index
    %0 = vector.load %arg2[%c0, %c0_0] : memref<128x256xbf16, #tpu.memory_space<vmem>>, vector<128x256xbf16>
    %c0_1 = arith.constant 0 : index
    %c0_2 = arith.constant 0 : index
    %1 = vector.load %arg3[%c0_1, %c0_2] : memref<256x256xbf16, #tpu.memory_space<vmem>>, vector<256x256xbf16>
    %cst = arith.constant dense<0.000000e+00> : vector<128x256xf32>
    %2 = tpu.matmul %0, %1, %cst {dimension_numbers = #tpu.dot_dimension_numbers<[1], [0], [0], [1], [0, 0, 1, 1], [], []>} : vector<128x256xbf16>, vector<256x256xbf16>, vector<128x256xf32> -> vector<128x256xf32>
    %3 = arith.truncf %2 : vector<128x256xf32> to vector<128x256xbf16>
    %c0_3 = arith.constant 0 : index
    %c0_4 = arith.constant 0 : index
    %4 = vector.load %arg4[%c0_3, %c0_4] : memref<256x256xbf16, #tpu.memory_space<vmem>>, vector<256x256xbf16>
    %cst_5 = arith.constant dense<0.000000e+00> : vector<128x256xf32>
    %5 = tpu.matmul %3, %4, %cst_5 {dimension_numbers = #tpu.dot_dimension_numbers<[1], [0], [0], [1], [0, 0, 1, 1], [], []>} : vector<128x256xbf16>, vector<256x256xbf16>, vector<128x256xf32> -> vector<128x256xf32>
    %cst_6 = arith.constant 2.000000e-01 : f32
    %6 = vector.broadcast %cst_6 : f32 to vector<128x256xf32>
    %7 = arith.mulf %5, %6 : vector<128x256xf32>
    %c128_i32 = arith.constant 128 : i32
    %8 = arith.muli %arg0, %c128_i32 : i32
    %9 = tpu.iota {dimensions = array<i32: 0>} : vector<128x256xi32>
    %10 = vector.broadcast %8 : i32 to vector<128x256xi32>
    %11 = arith.addi %9, %10 : vector<128x256xi32>
    %12 = arith.sitofp %11 : vector<128x256xi32> to vector<128x256xf32>
    %13 = tpu.iota {dimensions = array<i32: 1>} : vector<128x256xi32>
    %14 = arith.sitofp %13 : vector<128x256xi32> to vector<128x256xf32>
    %cst_7 = arith.constant 0.00784313772 : f32
    %15 = vector.broadcast %cst_7 : f32 to vector<128x256xf32>
    %16 = arith.mulf %12, %15 : vector<128x256xf32>
    %cst_8 = arith.constant 1.000000e+00 : f32
    %17 = vector.broadcast %cst_8 : f32 to vector<128x256xf32>
    %18 = arith.subf %16, %17 : vector<128x256xf32>
    %cst_9 = arith.constant 0.00784313772 : f32
    %19 = vector.broadcast %cst_9 : f32 to vector<128x256xf32>
    %20 = arith.mulf %14, %19 : vector<128x256xf32>
    %cst_10 = arith.constant 1.000000e+00 : f32
    %21 = vector.broadcast %cst_10 : f32 to vector<128x256xf32>
    %22 = arith.subf %20, %21 : vector<128x256xf32>
    %23 = arith.mulf %22, %22 : vector<128x256xf32>
    %24 = arith.mulf %18, %18 : vector<128x256xf32>
    %25 = arith.addf %23, %24 : vector<128x256xf32>
    %26 = math.sqrt %25 : vector<128x256xf32>
    %cst_11 = arith.constant -2.000000e+00 : f32
    %27 = vector.broadcast %cst_11 : f32 to vector<128x256xf32>
    %28 = arith.mulf %26, %27 : vector<128x256xf32>
    %29 = math.exp %28 : vector<128x256xf32>
    %cst_12 = arith.constant 5.000000e-01 : f32
    %30 = vector.broadcast %cst_12 : f32 to vector<128x256xf32>
    %31 = arith.mulf %29, %30 : vector<128x256xf32>
    %cst_13 = arith.constant 5.000000e-01 : f32
    %32 = vector.broadcast %cst_13 : f32 to vector<128x256xf32>
    %33 = arith.addf %31, %32 : vector<128x256xf32>
    %cst_14 = arith.constant 1.000000e-01 : f32
    %34 = vector.broadcast %cst_14 : f32 to vector<128x256xf32>
    %35 = arith.mulf %34, %33 : vector<128x256xf32>
    %cst_15 = arith.constant 2.500000e-01 : f32
    %36 = vector.broadcast %cst_15 : f32 to vector<128x256xf32>
    %37 = arith.subf %22, %36 : vector<128x256xf32>
    %cst_16 = arith.constant -2.500000e-01 : f32
    %38 = vector.broadcast %cst_16 : f32 to vector<128x256xf32>
    %39 = arith.subf %18, %38 : vector<128x256xf32>
    %40 = arith.mulf %37, %37 : vector<128x256xf32>
    %41 = arith.mulf %39, %39 : vector<128x256xf32>
    %42 = arith.addf %40, %41 : vector<128x256xf32>
    %cst_17 = arith.constant -1.38888884 : f32
    %43 = vector.broadcast %cst_17 : f32 to vector<128x256xf32>
    %44 = arith.mulf %42, %43 : vector<128x256xf32>
    %45 = math.exp %44 : vector<128x256xf32>
    %cst_18 = arith.constant 1.500000e-01 : f32
    %46 = vector.broadcast %cst_18 : f32 to vector<128x256xf32>
    %47 = arith.mulf %46, %45 : vector<128x256xf32>
    %c0_19 = arith.constant 0 : index
    %c0_20 = arith.constant 0 : index
    %c0_21 = arith.constant 0 : index
    %48 = vector.load %arg1[%c0_19, %c0_20, %c0_21] : memref<3x128x256xf32, #tpu.memory_space<vmem>>, vector<1x128x256xf32>
    %49 = vector.shape_cast %48 : vector<1x128x256xf32> to vector<128x256xf32>
    %c1 = arith.constant 1 : index
    %c0_22 = arith.constant 0 : index
    %c0_23 = arith.constant 0 : index
    %50 = vector.load %arg1[%c1, %c0_22, %c0_23] : memref<3x128x256xf32, #tpu.memory_space<vmem>>, vector<1x128x256xf32>
    %51 = vector.shape_cast %50 : vector<1x128x256xf32> to vector<128x256xf32>
    %c2 = arith.constant 2 : index
    %c0_24 = arith.constant 0 : index
    %c0_25 = arith.constant 0 : index
    %52 = vector.load %arg1[%c2, %c0_24, %c0_25] : memref<3x128x256xf32, #tpu.memory_space<vmem>>, vector<1x128x256xf32>
    %53 = vector.shape_cast %52 : vector<1x128x256xf32> to vector<128x256xf32>
    %cst_26 = arith.constant 1.000000e+00 : f32
    %54 = vector.broadcast %cst_26 : f32 to vector<128x256xf32>
    %55 = arith.subf %54, %49 : vector<128x256xf32>
    %56 = arith.mulf %7, %55 : vector<128x256xf32>
    %57 = arith.addf %49, %56 : vector<128x256xf32>
    %cst_27 = arith.constant 1.000000e+00 : f32
    %58 = vector.broadcast %cst_27 : f32 to vector<128x256xf32>
    %59 = arith.subf %58, %51 : vector<128x256xf32>
    %60 = arith.mulf %7, %59 : vector<128x256xf32>
    %61 = arith.addf %51, %60 : vector<128x256xf32>
    %cst_28 = arith.constant 1.050000e+00 : f32
    %62 = vector.broadcast %cst_28 : f32 to vector<128x256xf32>
    %63 = arith.subf %62, %53 : vector<128x256xf32>
    %64 = arith.mulf %7, %63 : vector<128x256xf32>
    %65 = arith.addf %53, %64 : vector<128x256xf32>
    %cst_29 = arith.constant 1.000000e+00 : f32
    %66 = vector.broadcast %cst_29 : f32 to vector<128x256xf32>
    %67 = arith.addf %66, %35 : vector<128x256xf32>
    %68 = arith.mulf %57, %67 : vector<128x256xf32>
    %cst_30 = arith.constant 1.000000e+00 : f32
    %69 = vector.broadcast %cst_30 : f32 to vector<128x256xf32>
    %70 = arith.minimumf %68, %69 : vector<128x256xf32>
    %cst_31 = arith.constant 3.000000e-01 : f32
    %71 = vector.broadcast %cst_31 : f32 to vector<128x256xf32>
    %72 = arith.mulf %35, %71 : vector<128x256xf32>
    %cst_32 = arith.constant 1.000000e+00 : f32
    %73 = vector.broadcast %cst_32 : f32 to vector<128x256xf32>
    %74 = arith.addf %73, %72 : vector<128x256xf32>
    %75 = arith.mulf %61, %74 : vector<128x256xf32>
    %cst_33 = arith.constant 1.000000e+00 : f32
    %76 = vector.broadcast %cst_33 : f32 to vector<128x256xf32>
    %77 = arith.minimumf %75, %76 : vector<128x256xf32>
    %cst_34 = arith.constant 2.000000e-01 : f32
    %78 = vector.broadcast %cst_34 : f32 to vector<128x256xf32>
    %79 = arith.mulf %35, %78 : vector<128x256xf32>
    %cst_35 = arith.constant 1.000000e+00 : f32
    %80 = vector.broadcast %cst_35 : f32 to vector<128x256xf32>
    %81 = arith.subf %80, %79 : vector<128x256xf32>
    %82 = arith.mulf %65, %81 : vector<128x256xf32>
    %cst_36 = arith.constant 1.000000e+00 : f32
    %83 = vector.broadcast %cst_36 : f32 to vector<128x256xf32>
    %84 = arith.minimumf %82, %83 : vector<128x256xf32>
    %c0_37 = arith.constant 0 : index
    %c0_38 = arith.constant 0 : index
    %85 = vector.load %arg5[%c0_37, %c0_38] : memref<128x256xbf16, #tpu.memory_space<vmem>>, vector<128x256xbf16>
    %86 = arith.extf %85 : vector<128x256xbf16> to vector<128x256xf32>
    %cst_39 = arith.constant 1.000000e+00 : f32
    %87 = vector.broadcast %cst_39 : f32 to vector<128x256xf32>
    %88 = arith.subf %87, %86 : vector<128x256xf32>
    %89 = arith.mulf %70, %88 : vector<128x256xf32>
    %90 = arith.mulf %77, %88 : vector<128x256xf32>
    %91 = arith.mulf %84, %88 : vector<128x256xf32>
    %cst_40 = arith.constant 1.000000e+00 : f32
    %92 = vector.broadcast %cst_40 : f32 to vector<128x256xf32>
    %93 = arith.addf %92, %47 : vector<128x256xf32>
    %cst_41 = arith.constant 1.000000e+00 : f32
    %94 = vector.broadcast %cst_41 : f32 to vector<128x256xf32>
    %95 = arith.subf %94, %47 : vector<128x256xf32>
    %96 = arith.mulf %89, %95 : vector<128x256xf32>
    %97 = arith.mulf %89, %93 : vector<128x256xf32>
    %cst_42 = arith.constant 1.050000e+00 : f32
    %98 = vector.broadcast %cst_42 : f32 to vector<128x256xf32>
    %99 = arith.mulf %98, %97 : vector<128x256xf32>
    %cst_43 = arith.constant 1.000000e+00 : f32
    %100 = vector.broadcast %cst_43 : f32 to vector<128x256xf32>
    %101 = arith.minimumf %99, %100 : vector<128x256xf32>
    %102 = arith.addf %96, %101 : vector<128x256xf32>
    %103 = arith.mulf %90, %95 : vector<128x256xf32>
    %104 = arith.mulf %90, %93 : vector<128x256xf32>
    %cst_44 = arith.constant 1.030000e+00 : f32
    %105 = vector.broadcast %cst_44 : f32 to vector<128x256xf32>
    %106 = arith.mulf %105, %104 : vector<128x256xf32>
    %cst_45 = arith.constant 1.000000e+00 : f32
    %107 = vector.broadcast %cst_45 : f32 to vector<128x256xf32>
    %108 = arith.minimumf %106, %107 : vector<128x256xf32>
    %109 = arith.addf %103, %108 : vector<128x256xf32>
    %110 = arith.mulf %91, %95 : vector<128x256xf32>
    %111 = arith.mulf %91, %93 : vector<128x256xf32>
    %cst_46 = arith.constant 1.000000e+00 : f32
    %112 = vector.broadcast %cst_46 : f32 to vector<128x256xf32>
    %113 = arith.minimumf %111, %112 : vector<128x256xf32>
    %114 = arith.addf %110, %113 : vector<128x256xf32>
    %cst_47 = arith.constant 1.000000e+00 : f32
    %115 = vector.broadcast %cst_47 : f32 to vector<128x256xf32>
    %116 = arith.minimumf %102, %115 : vector<128x256xf32>
    %c0_48 = arith.constant 0 : index
    %c0_49 = arith.constant 0 : index
    %c0_50 = arith.constant 0 : index
    %117 = vector.load %arg6[%c0_48, %c0_49, %c0_50] : memref<3x128x256xf32, #tpu.memory_space<vmem>>, vector<1x128x256xf32>
    %118 = vector.shape_cast %117 : vector<1x128x256xf32> to vector<128x256xf32>
    %119 = vector.shape_cast %116 : vector<128x256xf32> to vector<1x128x256xf32>
    tpu.vector_store %arg6[%c0_48, %c0_49, %c0_50], %119 {strides = array<i32>} : memref<3x128x256xf32, #tpu.memory_space<vmem>>, vector<1x128x256xf32>,
    %cst_51 = arith.constant 1.000000e+00 : f32
    %120 = vector.broadcast %cst_51 : f32 to vector<128x256xf32>
    %121 = arith.minimumf %109, %120 : vector<128x256xf32>
    %c1_52 = arith.constant 1 : index
    %c0_53 = arith.constant 0 : index
    %c0_54 = arith.constant 0 : index
    %122 = vector.load %arg6[%c1_52, %c0_53, %c0_54] : memref<3x128x256xf32, #tpu.memory_space<vmem>>, vector<1x128x256xf32>
    %123 = vector.shape_cast %122 : vector<1x128x256xf32> to vector<128x256xf32>
    %124 = vector.shape_cast %121 : vector<128x256xf32> to vector<1x128x256xf32>
    tpu.vector_store %arg6[%c1_52, %c0_53, %c0_54], %124 {strides = array<i32>} : memref<3x128x256xf32, #tpu.memory_space<vmem>>, vector<1x128x256xf32>,
    %cst_55 = arith.constant 1.000000e+00 : f32
    %125 = vector.broadcast %cst_55 : f32 to vector<128x256xf32>
    %126 = arith.minimumf %114, %125 : vector<128x256xf32>
    %c2_56 = arith.constant 2 : index
    %c0_57 = arith.constant 0 : index
    %c0_58 = arith.constant 0 : index
    %127 = vector.load %arg6[%c2_56, %c0_57, %c0_58] : memref<3x128x256xf32, #tpu.memory_space<vmem>>, vector<1x128x256xf32>
    %128 = vector.shape_cast %127 : vector<1x128x256xf32> to vector<128x256xf32>
    %129 = vector.shape_cast %126 : vector<128x256xf32> to vector<1x128x256xf32>
    tpu.vector_store %arg6[%c2_56, %c0_57, %c0_58], %129 {strides = array<i32>} : memref<3x128x256xf32, #tpu.memory_space<vmem>>, vector<1x128x256xf32>,
    return
  }
  func.func @transform_0(%arg0: i32) -> (i32, i32, i32) {
    %c0_i32 = arith.constant 0 : i32
    %c0_i32_0 = arith.constant 0 : i32
    %c0_i32_1 = arith.constant 0 : i32
    return %c0_i32, %arg0, %c0_i32_0 : i32, i32, i32
  }
  func.func @transform_1(%arg0: i32) -> (i32, i32) {
    %c0_i32 = arith.constant 0 : i32
    %c0_i32_0 = arith.constant 0 : i32
    return %arg0, %c0_i32 : i32, i32
  }
  func.func @transform_2(%arg0: i32) -> (i32, i32) {
    %c0_i32 = arith.constant 0 : i32
    %c0_i32_0 = arith.constant 0 : i32
    %c0_i32_1 = arith.constant 0 : i32
    return %c0_i32, %c0_i32_0 : i32, i32
  }
  func.func @transform_3(%arg0: i32) -> (i32, i32) {
    %c0_i32 = arith.constant 0 : i32
    %c0_i32_0 = arith.constant 0 : i32
    %c0_i32_1 = arith.constant 0 : i32
    return %c0_i32, %c0_i32_0 : i32, i32
  }
  func.func @transform_4(%arg0: i32) -> (i32, i32) {
    %c0_i32 = arith.constant 0 : i32
    %c0_i32_0 = arith.constant 0 : i32
    return %arg0, %c0_i32 : i32, i32
  }
  func.func @transform_5(%arg0: i32) -> (i32, i32, i32) {
    %c0_i32 = arith.constant 0 : i32
    %c0_i32_0 = arith.constant 0 : i32
    %c0_i32_1 = arith.constant 0 : i32
    return %c0_i32, %arg0, %c0_i32_0 : i32, i32, i32
  }
}

</mosaic_0001>

<bundles_post_ra>
// kernel: tpu_custom_call.1
= control target key start
LH: loop header
LB: loop body
LE: loop exit
PB: predicated region body
PF: predicated region fallthrough
CT: control target
= control target key end

     0   :  { %10 = vsyncpa [#allocation3], 0  ;;  %s6779_s0 = inlined_call_operand.hbm [shape: f32[3,256,256], index: 0, kind: input, shape index: {}]   ;;  %s6780_s1 = inlined_call_operand.hbm [shape: bf16[256,256], index: 1, kind: input, shape index: {}]   ;;  %s6781_s2 = inlined_call_operand.hbm [shape: bf16[256,256], index: 2, kind: input, shape index: {}]   ;;  %s6782_s3 = inlined_call_operand.hbm [shape: bf16[256,256], index: 3, kind: input, shape index: {}]   ;;  %s6783_s4 = inlined_call_operand.hbm [shape: bf16[256,256], index: 4, kind: input, shape index: {}]   ;;  %s6784_s5 = inlined_call_operand.hbm [shape: f32[3,256,256], index: 5, kind: output, shape index: {}]  }
   0x1   :  { %12 = vsyncpa [#allocation3 + $0x1], 0 }
   0x2   :  { %13 = vsyncpa [#allocation6], 0 }
   0x3   :  { %15 = vsyncpa [#allocation6 + $0x1], 0 }
   0x4   :  { %16 = vsyncpa [#allocation9], 0 }
   0x5   :  { %17 = vsyncpa [#allocation4], 0 }
   0x6   :  { %19 = vsyncpa [#allocation4 + $0x1], 0  ;;  %s4643_s18 = smov 0   ;;  %s4645_s19 = smov 0  }
   0x7   :  { %s4647_s20 = smov 0   ;;  %s4649_s21 = smov 0  }
   0x8 LB: > { %s4664_s22 = sadd.s32 4294967295, %s4592_s21   ;;  %s3688_s23 = sadd.s32 4294967294, %s4592_s21   ;;  %s4592_s21 = sphi %s4649_s21, %s7165_s21   ;;  %s4588_s20 = sphi %s4647_s20, %s7164_s20   ;;  %s4584_s19 = sphi %s4645_s19, %s7163_s19   ;;  %s4580_s18 = sphi %s4643_s18, %s7162_s18  }
   0x9   : > { %s4668_s24 = sadd.s32 1, %s4592_s21   ;;  %s32_s25 = sadd.s32 1, %s4588_s20 }
   0xa   : > { %s29_s26 = ssub.s32 %s4592_s21, %s4668_s24  ;;  %p39_p0 = scmp.ne.s32.totalorder %s4588_s20, %s4584_s19 }
   0xb   : > { %p30_p1 = scmp.eq.s32.totalorder %s29_s26, 0  ;;  %p40_p2 = scmp.eq.s32.totalorder %s4592_s21, 0 }
   0xc   : > { %p45_p3 = scmp.ne.s32.totalorder %s4584_s19, %s4580_s18  ;;  %p6785_p4 = scmp.eq.s32.totalorder %s4664_s22, 0 }
   0xd   : > { %s4680_s27 = scalar_select %p30_p1, %s4588_s20, %s32_s25  }
   0xe   : > { %p4682_p5 = por %p40_p2, %p39_p0  ;;  %p4688_p6 = por %p6785_p4, %p45_p3 }
   0xf   : > { %6883 = sst [smem:[#allocation23_spill]] %s4680_s27  ;;  %p163_p7 = scmp.eq.s32.totalorder %s4664_s22, 1 }
  0x10   : > { %s6884_s28 = scalar_select %p4682_p5, 1, 0 }
  0x11   : > { %s6885_s29 = scalar_select %p4688_p6, 1, 0 }
  0x12   : > { %p169_p8 = scmp.eq.s32.totalorder %s3688_s23, 1  ;;  %p3689_p9 = scmp.ge.s32.totalorder %s4592_s21, 1 }
  0x13   : > { %p176_p10 = scmp.lt.s32.totalorder %s4592_s21, 3  ;;  %p4695_p11 = por %p163_p7, %p39_p0 }
  0x14   : > { %p4699_p12 = por %p169_p8, %p45_p3  ;;  %s4594_s8 = smov [#allocation7]  }
  0x15   : > { %s6886_s30 = scalar_select %p4695_p11, 1, 0 }
  0x16   : > { %s6887_s6 = scalar_select %p4699_p12, 1, 0 }
  0x17   : > { %p4703_p13 = pnand %p3689_p9, %p176_p10  ;;  %s188_s9 = sshll.u32 %s4594_s8, 4  ;;  %s189_s9 = int_to_ptr.vmem [resolvable:$true] %s188_s9 }
  0x18   : > { %s4595_s11 = smov [#allocation8]   ;;  %s4426_s15 = scalar_lea.hbm %s6781_s2, 4096 }
  0x19   : > { %s6888_s7 = scalar_select %p4703_p13, 1, 0 }
  0x1a   : > { %p4000_p1 = pneg %p4703_p13  ;;  %s201_s12 = sshll.u32 %s4595_s11, 4  ;;  %s4715_s12 = int_to_ptr.vmem [resolvable:$true] %s201_s12 }
  0x1b   : > { %p4427_p0 = scmp.ne.s32.totalorder %s6781_s2, %s4426_s15  ;;  %p4433_p9 = scmp.lt.u32.totalorder %s4426_s15, %s6781_s2 }
  0x1c   : > { %p4711_p2 = pnand %p4000_p1, %p6785_p4 }
  0x1e   : > { %p4428_p3 = pneg %p4711_p2 }
  0x20   : > { %p4429_p7 = pnand %p4428_p3, %p4427_p0 }
  0x22   : > { %p4430_p8 = pneg %p4429_p7 }
  0x24   : > { %p4435_p10 = pnand %p4433_p9, %p4430_p8 }
  0x26   : > { %4438 = shalt.err (!%p4435_p10)
}
  0x27   : > { %s4439_s26 = scalar_lea.vmem %s189_s9, 4096  ;;  %p4447_p11 = scmp.lt.s32.totalorder %s189_s9, %s189_s9 }
  0x28   : > { %p4440_p1 = scmp.ne.s32.totalorder %s189_s9, %s4439_s26  ;;  %p4448_p6 = scmp.lt.s32.totalorder %s4439_s26, %s4439_s26 }
  0x2a   : > { %p4442_p4 = pnand %p4440_p1, %p4428_p3  ;;  %p4449_p13 = por %p4448_p6, %p4447_p11 }
  0x2c   : > { %p4443_p12 = pneg %p4442_p4 }
  0x2e   : > { %p4450_p5 = pnand %p4449_p13, %p4443_p12 }
  0x30   : > { %4453 = shalt.err (!%p4450_p5)
}
  0x31   : > { %s4596_s8 = smov 128   ;;  %s4597_s11 = smov 8  }
  0x32   : > { %4003 = dma.hbm_to_vmem [thread:$0]  (!%p4711_p2), %s6781_s2, 4096, %s189_s9, [#allocation6], %s4596_s8, %s4596_s8, %s4597_s11  }
  0x33   : > { %s4454_s17 = scalar_lea.hbm %s6782_s3, 4096 }
  0x34   : > { %p4455_p4 = scmp.ne.s32.totalorder %s6782_s3, %s4454_s17  ;;  %p4461_p11 = scmp.lt.u32.totalorder %s4454_s17, %s6782_s3 }
  0x36   : > { %p4457_p5 = pnand %p4455_p4, %p4428_p3 }
  0x38   : > { %p4458_p6 = pneg %p4457_p5 }
  0x3a   : > { %p4463_p12 = pnand %p4461_p11, %p4458_p6 }
  0x3c   : > { %4466 = shalt.err (!%p4463_p12)
}
  0x3d   : > { %s4467_s9 = scalar_lea.vmem %s4715_s12, 4096  ;;  %p4475_p8 = scmp.lt.s32.totalorder %s4715_s12, %s4715_s12 }
  0x3e   : > { %p4468_p13 = scmp.ne.s32.totalorder %s4715_s12, %s4467_s9  ;;  %p4476_p9 = scmp.lt.s32.totalorder %s4467_s9, %s4467_s9 }
  0x40   : > { %p4470_p0 = pnand %p4468_p13, %p4428_p3  ;;  %p4477_p10 = por %p4476_p9, %p4475_p8 }
  0x42   : > { %p4471_p7 = pneg %p4470_p0 }
  0x44   : > { %p4478_p1 = pnand %p4477_p10, %p4471_p7 }
  0x46   : > { %4481 = shalt.err (!%p4478_p1)
}
  0x47   : > { %4006 = dma.hbm_to_vmem [thread:$0]  (!%p4711_p2), %s6782_s3, 4096, %s4715_s12, [#allocation9], %s4596_s8, %s4596_s8, %s4597_s11  }
  0x48   : > { %p3692_p4 = scmp.ge.s32.totalorder %s4592_s21, 2 }
  0x4a   : > { %211 = sbr.rel (%p3692_p4) target bundleno = 144 (0x90), region = 24 }
  0x51   : > { %s217_s15 = sand.u32 1, %s4588_s20   ;;  %p6890_p3 = scmp.ne.s32.totalorder %s6884_s28, 0 }
  0x52   : > { %s3969_s10 = smul.u32 768, %s217_s15  ;;  %s3962_s12 = sshll.u32 %s4592_s21, 12 }
  0x53   : > { %s3975_s16 = scalar_select %p6890_p3, [#allocation0], [#allocation16] }
  0x54   : > { %s4598_s8 = smov 8192   ;;  %s219_s17 = scalar_lea.vmem [#allocation2], %s3969_s10 }
  0x55   : > { %3976 = sst [smem:[#allocation13]] (%p6890_p3), %s4598_s8  ;;  %s239_s23 = sshll.u32 %s219_s17, 4  ;;  %s240_s23 = int_to_ptr.vmem [resolvable:$true] %s239_s23 }
  0x56   : > { %s231_s11 = sld [smem:[%s3975_s16]]   ;;  %s4599_s25 = smov 4096  }
  0x57   : > { %3977 = sst [smem:[#allocation13 + $0x1]] (%p6890_p3), %s4599_s25  ;;  %s226_s27 = scalar_lea.hbm %s6779_s0, %s3962_s12 }
  0x58   : > { %s4600_s13 = smov 16   ;;  %s4601_s14 = smov 256  }
  0x59   : > { %3978 = sst [smem:[#allocation13 + $0x2]] (%p6890_p3), %s4600_s13  ;;  %s6891_s8 = sand.u32 1, %s4592_s21  }
  0x5a   : > { %3979 = sst [smem:[#allocation13 + $0x3]] (%p6890_p3), %s4601_s14  ;;  %s4789_s17 = scalar_lea.sflag [#allocation3], %s6891_s8 }
  0x5b   : > { %3980 = sst [smem:[#allocation13 + $0x4]] (%p6890_p3), %s4601_s14  ;;  %s4602_s25 = smov [#allocation12]  }
  0x5c   : > { %s3696_s16 = sshll.u32 %s231_s11, 26  ;;  %3981 = sst [smem:[#allocation13 + $0x5]] (%p6890_p3), %s4600_s13 }
  0x5d   : > { %s3697_s10 = sadd.s32 134217728, %s3696_s16  ;;  %s4794_s12 = sshll.u32 %s217_s15, 7 }
  0x5e   : > { %3982 = dma.general (%p6890_p3), %s226_s27, 12288, %s240_s23, %s4789_s17, %s4602_s25, [#allocation13], %s3697_s10, 0  }
  0x5f   : > { %s3964_s26 = sshll.u32 %s4592_s21, 11  ;;  %s266_s13 = scalar_lea.vmem [#allocation5], %s4794_s12 }
  0x60   : > { %s4802_s9 = scalar_lea.hbm %s6780_s1, %s3964_s26  ;;  %s274_s23 = sshll.u32 %s266_s13, 4  ;;  %s4805_s23 = int_to_ptr.vmem [resolvable:$true] %s274_s23 }
  0x61   : > { %s6892_s15 = smov %s6891_s8  ;;  %s4482_s16 = scalar_lea.hbm %s4802_s9, 2048 }
  0x62   : > { %s4809_s27 = scalar_lea.sflag [#allocation6], %s6892_s15  ;;  %p4483_p2 = scmp.ne.s32.totalorder %s4802_s9, %s4482_s16 }
  0x63   : > { %s4486_s25 = scalar_lea.hbm %s6780_s1, 4096  ;;  %p4487_p11 = scmp.lt.u32.totalorder %s4802_s9, %s6780_s1 }
  0x64   : > { %p4484_p5 = pnand %p4483_p2, %p6890_p3  ;;  %p4488_p12 = scmp.lt.u32.totalorder %s4486_s25, %s4482_s16 }
  0x65   : > { %p4490_p0 = scmp.lt.u32.totalorder %s4482_s16, %s4802_s9 }
  0x66   : > { %p4485_p6 = pneg %p4484_p5  ;;  %p4489_p13 = por %p4488_p12, %p4487_p11 }
  0x68   : > { %p4491_p7 = por %p4490_p0, %p4489_p13 }
  0x6a   : > { %p4492_p8 = pnand %p4491_p7, %p4485_p6 }
  0x6c   : > { %4495 = shalt.err (!%p4492_p8)
}
  0x6d   : > { %s4496_s13 = scalar_lea.vmem %s4805_s23, 2048  ;;  %s4603_s15 = smov [#allocation5]  }
  0x6e   : > { %p4497_p9 = scmp.ne.s32.totalorder %s4805_s23, %s4496_s13  ;;  %s4500_s10 = sshll.u32 %s4603_s15, 4  ;;  %s4501_s10 = int_to_ptr.vmem [resolvable:$false] %s4500_s10 }
  0x6f   : > { %s4502_s8 = scalar_lea.vmem %s4501_s10, 4096  ;;  %p4503_p2 = scmp.lt.s32.totalorder %s4805_s23, %s4501_s10 }
  0x70   : > { %p4498_p10 = pnand %p4497_p9, %p6890_p3  ;;  %p4504_p5 = scmp.lt.s32.totalorder %s4502_s8, %s4496_s13 }
  0x72   : > { %p4499_p1 = pneg %p4498_p10  ;;  %p4505_p11 = por %p4504_p5, %p4503_p2 }
  0x74   : > { %p4506_p12 = pnand %p4505_p11, %p4499_p1 }
  0x76   : > { %4509 = shalt.err (!%p4506_p12)
}
  0x77   : > { %s4604_s16 = smov 128   ;;  %s4605_s25 = smov 8  }
  0x78   : > { %3983 = dma.hbm_to_vmem [thread:$0]  (%p6890_p3), %s4802_s9, 2048, %s4805_s23, %s4809_s27, %s4604_s16, %s4604_s16, %s4605_s25  }
  0x79   : > { %s4841_s13 = scalar_lea.hbm %s6783_s4, %s3964_s26  ;;  %s288_s15 = scalar_lea.vmem [#allocation10], %s4794_s12 }
  0x7a   : > { %s296_s10 = sshll.u32 %s288_s15, 4  ;;  %s4510_s8 = scalar_lea.hbm %s4841_s13, 2048  ;;  %s4844_s10 = int_to_ptr.vmem [resolvable:$true] %s296_s10 }
  0x7b   : > { %p4511_p6 = scmp.ne.s32.totalorder %s4841_s13, %s4510_s8  ;;  %s4514_s27 = scalar_lea.hbm %s6783_s4, 4096 }
  0x7c   : > { %p4515_p7 = scmp.lt.u32.totalorder %s4841_s13, %s6783_s4  ;;  %p4516_p8 = scmp.lt.u32.totalorder %s4514_s27, %s4510_s8 }
  0x7d   : > { %p4512_p13 = pnand %p4511_p6, %p6890_p3  ;;  %p4518_p10 = scmp.lt.u32.totalorder %s4510_s8, %s4841_s13 }
  0x7e   : > { %p4517_p9 = por %p4516_p8, %p4515_p7 }
  0x7f   : > { %p4513_p0 = pneg %p4512_p13 }
  0x80   : > { %p4519_p1 = por %p4518_p10, %p4517_p9 }
  0x82   : > { %p4520_p2 = pnand %p4519_p1, %p4513_p0 }
  0x84   : > { %4523 = shalt.err (!%p4520_p2)
}
  0x85   : > { %s4524_s12 = scalar_lea.vmem %s4844_s10, 2048  ;;  %s4606_s11 = smov [#allocation10]  }
  0x86   : > { %p4525_p5 = scmp.ne.s32.totalorder %s4844_s10, %s4524_s12  ;;  %s4528_s15 = sshll.u32 %s4606_s11, 4  ;;  %s4529_s15 = int_to_ptr.vmem [resolvable:$false] %s4528_s15 }
  0x87   : > { %s4530_s9 = scalar_lea.vmem %s4529_s15, 4096  ;;  %p4531_p6 = scmp.lt.s32.totalorder %s4844_s10, %s4529_s15 }
  0x88   : > { %p4526_p11 = pnand %p4525_p5, %p6890_p3  ;;  %p4532_p13 = scmp.lt.s32.totalorder %s4530_s9, %s4524_s12 }
  0x8a   : > { %p4527_p12 = pneg %p4526_p11  ;;  %p4533_p7 = por %p4532_p13, %p4531_p6 }
  0x8c   : > { %p4534_p8 = pnand %p4533_p7, %p4527_p12 }
  0x8e   : > { %4537 = shalt.err (!%p4534_p8)
}
  0x8f   : > { %3984 = dma.hbm_to_vmem [thread:$0]  (%p6890_p3), %s4841_s13, 2048, %s4844_s10, %s4789_s17, %s4604_s16, %s4604_s16, %s4605_s25  }
  0x90 PF: > { %p6893_p0 = scmp.ne.s32.totalorder %s6888_s7, 0 }
  0x92   : > { %308 = sbr.rel (%p6893_p0) target bundleno = 1114 (0x45a), region = 40 }
  0x99   : > { %s310_s8 = sand.u32 1, %s4664_s22   ;;  %s4875_s23 = sand.u32 1, %s4584_s19  }
  0x9a   : > { %s3970_s28 = smul.u32 768, %s4875_s23  ;;  %s311_s27 = scalar_lea.sflag [#allocation3], %s310_s8 }
  0x9b   : > { %p6894_p9 = scmp.ne.s32.totalorder %s6885_s29, 0 }
  0x9c   : > { %s4880_s14 = scalar_lea.vmem [#allocation2], %s3970_s28 }
  0x9d   : > { %4555 = dma.done.wait (%p6894_p9), %s311_s27, 12288  }
  0x9e   : > { %4557 = vsyncadd (%p6894_p9), %s311_s27, 4294955008  ;;  %s3707_s7 = sshll.u32 %s4875_s23, 7  ;;  %s320_s17 = scalar_lea.sflag [#allocation6], %s310_s8 }
  0x9f   : > { %s4887_s16 = scalar_lea.vmem [#allocation5], %s3707_s7 }
  0xa0   : > { %4559 = dma.done.wait (%p6894_p9), %s320_s17, 2048  }
  0xa1   : > { %4561 = vsyncadd (%p6894_p9), %s320_s17, 4294965248  ;;  %p6895_p3 = scmp.eq.s32.totalorder %s4664_s22, 0 }
  0xa3   : > { %4563 = dma.done.wait (%p6895_p3), [#allocation6], 4096   ;;  %p6896_p10 = pmov %p6895_p3 }
  0xa4   : > { %p6897_p1 = pmov %p6895_p3 }
  0xa5   : > { %4565 = vsyncadd (%p6896_p10), [#allocation6], 4294963200 }
  0xa6   : > { %4567 = dma.done.wait (%p6897_p1), [#allocation9], 4096   ;;  %p6898_p2 = pmov %p6897_p1 }
  0xa7   : > { %s4901_s25 = scalar_lea.vmem [#allocation10], %s3707_s7 }
  0xa8   : > { %4569 = vsyncadd (%p6898_p2), [#allocation9], 4294963200 }
  0xa9   : > { %4571 = dma.done.wait (%p6894_p9), %s311_s27, 2048  }
  0xaa   : > { %4573 = vsyncadd (%p6894_p9), %s311_s27, 4294965248  ;;  %v4065_v0 = vld [vmem:[#allocation7 + $0x4] ss:$8 sps:$4 sm:$0xff]   ;;  %v4067_v1 = vld [vmem:[#allocation7] ss:$8 sps:$4 sm:$0xff]   ;;  %s3791_s29 = sshll.u32 %s4664_s22, 7 }
  0xab   : > { %669 = vmatprep.subr.bf16.mxu0 %v4065_v0  ;;  %v4068_v2 = vld [vmem:[#allocation7 + $0x14] ss:$8 sps:$4 sm:$0xff]   ;;  %v4070_v3 = vld [vmem:[#allocation7 + $0x10] ss:$8 sps:$4 sm:$0xff]   ;;  %v4071_v4 = vld [vmem:[#allocation7 + $0x24] ss:$8 sps:$4 sm:$0xff]  }
  0xac   : > { %670 = vmatpush1.bf16.msra.mxu0 %v4067_v1  ;;  %v4073_v5 = vld [vmem:[#allocation7 + $0x20] ss:$8 sps:$4 sm:$0xff]   ;;  %v4074_v6 = vld [vmem:[#allocation7 + $0x34] ss:$8 sps:$4 sm:$0xff]   ;;  %v4076_v7 = vld [vmem:[#allocation7 + $0x30] ss:$8 sps:$4 sm:$0xff]  }
  0xad   : > { %671 = vmatprep.subr.bf16.mxu0 %v4068_v2  ;;  %v4077_v8 = vld [vmem:[#allocation7 + $0x44] ss:$8 sps:$4 sm:$0xff]   ;;  %v4079_v9 = vld [vmem:[#allocation7 + $0x40] ss:$8 sps:$4 sm:$0xff]   ;;  %v4080_v10 = vld [vmem:[#allocation7 + $0x54] ss:$8 sps:$4 sm:$0xff]  }
  0xae   : > { %v4082_v11 = vld [vmem:[#allocation7 + $0x50] ss:$8 sps:$4 sm:$0xff]   ;;  %v4083_v12 = vld [vmem:[#allocation7 + $0x64] ss:$8 sps:$4 sm:$0xff]   ;;  %v4085_v14 = vld [vmem:[#allocation7 + $0x60] ss:$8 sps:$4 sm:$0xff]  }
  0xaf   : > { %v4115_v13 = vld [vmem:[%s4887_s16 + $0x4] ss:$8 sps:$4 sm:$0xff]   ;;  %v4086_v15 = vld [vmem:[#allocation7 + $0x74] ss:$8 sps:$4 sm:$0xff]   ;;  %v4088_v16 = vld [vmem:[#allocation7 + $0x70] ss:$8 sps:$4 sm:$0xff]  }
  0xb0   : > { %672 = vmatpush1.bf16.msra.mxu0 %v4070_v3  ;;  %701 = vmatprep.mubr.bf16.mxu0 %v4115_v13  ;;  %v4089_v17 = vld [vmem:[#allocation7 + $0x84] ss:$8 sps:$4 sm:$0xff]   ;;  %v4091_v18 = vld [vmem:[#allocation7 + $0x80] ss:$8 sps:$4 sm:$0xff]   ;;  %v4092_v19 = vld [vmem:[#allocation7 + $0x94] ss:$8 sps:$4 sm:$0xff]  }
  0xb1   : > { %673 = vmatprep.subr.bf16.mxu0 %v4071_v4  ;;  %v4137_v20 = vld [vmem:[#allocation8 + $0x4] ss:$8 sps:$4 sm:$0xff]   ;;  %v4139_v21 = vld [vmem:[#allocation8] ss:$8 sps:$4 sm:$0xff]   ;;  %v4094_v22 = vld [vmem:[#allocation7 + $0x90] ss:$8 sps:$4 sm:$0xff]  }
  0xb2   : > { %990 = vmatprep.subr.bf16.mxu1 %v4137_v20  ;;  %v4140_v23 = vld [vmem:[#allocation8 + $0x14] ss:$8 sps:$4 sm:$0xff]   ;;  %v4095_v24 = vld [vmem:[#allocation7 + $0xa4] ss:$8 sps:$4 sm:$0xff]   ;;  %v4142_v25 = vld [vmem:[#allocation8 + $0x10] ss:$8 sps:$4 sm:$0xff]  }
  0xb3   : > { %991 = vmatpush1.bf16.msra.mxu1 %v4139_v21  ;;  %v4143_v26 = vld [vmem:[#allocation8 + $0x24] ss:$8 sps:$4 sm:$0xff]   ;;  %v4097_v27 = vld [vmem:[#allocation7 + $0xa0] ss:$8 sps:$4 sm:$0xff]   ;;  %v4098_v28 = vld [vmem:[#allocation7 + $0xb4] ss:$8 sps:$4 sm:$0xff]  }
  0xb4   : > { %674 = vmatpush1.bf16.msra.mxu0 %v4073_v5  ;;  %992 = vmatprep.subr.bf16.mxu1 %v4140_v23  ;;  %v4145_v29 = vld [vmem:[#allocation8 + $0x20] ss:$8 sps:$4 sm:$0xff]   ;;  %v4146_v30 = vld [vmem:[#allocation8 + $0x34] ss:$8 sps:$4 sm:$0xff]   ;;  %v4100_v31 = vld [vmem:[#allocation7 + $0xb0] ss:$8 sps:$4 sm:$0xff]  }
  0xb5   : > { %675 = vmatprep.subr.bf16.mxu0 %v4074_v6  ;;  %v4101_v32 = vld [vmem:[#allocation7 + $0xc4] ss:$8 sps:$4 sm:$0xff]   ;;  %v4148_v33 = vld [vmem:[#allocation8 + $0x30] ss:$8 sps:$4 sm:$0xff]   ;;  %v4103_v35 = vld [vmem:[#allocation7 + $0xc0] ss:$8 sps:$4 sm:$0xff]  }
  0xb6   : > { %v4149_v34 = vld [vmem:[#allocation8 + $0x44] ss:$8 sps:$4 sm:$0xff]   ;;  %v4104_v36 = vld [vmem:[#allocation7 + $0xd4] ss:$8 sps:$4 sm:$0xff]   ;;  %v4151_v37 = vld [vmem:[#allocation8 + $0x40] ss:$8 sps:$4 sm:$0xff]  }
  0xb7   : > { %993 = vmatpush1.bf16.msra.mxu1 %v4142_v25  ;;  %v4152_v38 = vld [vmem:[#allocation8 + $0x54] ss:$8 sps:$4 sm:$0xff]   ;;  %v4106_v39 = vld [vmem:[#allocation7 + $0xd0] ss:$8 sps:$4 sm:$0xff]   ;;  %v4107_v41 = vld [vmem:[#allocation7 + $0xe4] ss:$8 sps:$4 sm:$0xff]  }
  0xb8   : > { %676 = vmatpush1.bf16.msra.mxu0 %v4076_v7  ;;  %994 = vmatprep.subr.bf16.mxu1 %v4143_v26  ;;  %v4154_v40 = vld [vmem:[#allocation8 + $0x50] ss:$8 sps:$4 sm:$0xff]   ;;  %v4155_v42 = vld [vmem:[#allocation8 + $0x64] ss:$8 sps:$4 sm:$0xff]   ;;  %v4109_v43 = vld [vmem:[#allocation7 + $0xe0] ss:$8 sps:$4 sm:$0xff]  }
  0xb9   : > { %677 = vmatprep.subr.bf16.mxu0 %v4077_v8  ;;  %v4157_v44 = vld [vmem:[#allocation8 + $0x60] ss:$8 sps:$4 sm:$0xff]   ;;  %v4110_v45 = vld [vmem:[#allocation7 + $0xf4] ss:$8 sps:$4 sm:$0xff]   ;;  %v4112_v47 = vld [vmem:[#allocation7 + $0xf0] ss:$8 sps:$4 sm:$0xff]  }
  0xba   : > { %v4158_v46 = vld [vmem:[#allocation8 + $0x74] ss:$8 sps:$4 sm:$0xff]   ;;  %v4160_v48 = vld [vmem:[#allocation8 + $0x70] ss:$8 sps:$4 sm:$0xff]   ;;  %v4161_v49 = vld [vmem:[#allocation8 + $0x84] ss:$8 sps:$4 sm:$0xff]  }
  0xbb   : > { %995 = vmatpush1.bf16.msra.mxu1 %v4145_v29  ;;  %v4113_v50 = vld [vmem:[%s4887_s16] ss:$8 sps:$4 sm:$0xff]   ;;  %v4116_v51 = vld [vmem:[%s4887_s16 + $0x14] ss:$8 sps:$4 sm:$0xff]   ;;  %v4166_v54 = vld [vmem:[#allocation8 + $0x90] ss:$8 sps:$4 sm:$0xff]  }
  0xbc   : > { %678 = vmatpush1.bf16.msra.mxu0 %v4079_v9  ;;  %996 = vmatprep.subr.bf16.mxu1 %v4146_v30  ;;  %v4163_v52 = vld [vmem:[#allocation8 + $0x80] ss:$8 sps:$4 sm:$0xff]   ;;  %v4164_v53 = vld [vmem:[#allocation8 + $0x94] ss:$8 sps:$4 sm:$0xff]   ;;  %v4167_v55 = vld [vmem:[#allocation8 + $0xa4] ss:$8 sps:$4 sm:$0xff]  }
  0xbd   : > { %679 = vmatprep.subr.bf16.mxu0 %v4080_v10  ;;  %v4118_v56 = vld [vmem:[%s4887_s16 + $0x10] ss:$8 sps:$4 sm:$0xff]   ;;  %v4119_v57 = vld [vmem:[%s4887_s16 + $0x24] ss:$8 sps:$4 sm:$0xff]   ;;  %v4169_v58 = vld [vmem:[#allocation8 + $0xa0] ss:$8 sps:$4 sm:$0xff]  }
  0xbe   : > { %v4170_v59 = vld [vmem:[#allocation8 + $0xb4] ss:$8 sps:$4 sm:$0xff]   ;;  %v4172_v60 = vld [vmem:[#allocation8 + $0xb0] ss:$8 sps:$4 sm:$0xff]   ;;  %v4173_v61 = vld [vmem:[#allocation8 + $0xc4] ss:$8 sps:$4 sm:$0xff]  }
  0xbf   : > { %997 = vmatpush1.bf16.msra.mxu1 %v4148_v33  ;;  %v4121_v62 = vld [vmem:[%s4887_s16 + $0x20] ss:$8 sps:$4 sm:$0xff]   ;;  %v4122_v63 = vld [vmem:[%s4887_s16 + $0x34] ss:$8 sps:$4 sm:$0xff]   ;;  %v4178_v2 = vld [vmem:[#allocation8 + $0xd0] ss:$8 sps:$4 sm:$0xff]  }
  0xc0   : > { %680 = vmatpush1.bf16.msra.mxu0 %v4082_v11  ;;  %998 = vmatprep.subr.bf16.mxu1 %v4149_v34  ;;  %v4175_v0 = vld [vmem:[#allocation8 + $0xc0] ss:$8 sps:$4 sm:$0xff]   ;;  %v4176_v1 = vld [vmem:[#allocation8 + $0xd4] ss:$8 sps:$4 sm:$0xff]   ;;  %v4179_v3 = vld [vmem:[#allocation8 + $0xe4] ss:$8 sps:$4 sm:$0xff]  }
  0xc1   : > { %681 = vmatprep.subr.bf16.mxu0 %v4083_v12  ;;  %v4124_v4 = vld [vmem:[%s4887_s16 + $0x30] ss:$8 sps:$4 sm:$0xff]   ;;  %v4125_v5 = vld [vmem:[%s4887_s16 + $0x44] ss:$8 sps:$4 sm:$0xff]   ;;  %v4127_v6 = vld [vmem:[%s4887_s16 + $0x40] ss:$8 sps:$4 sm:$0xff]  }
  0xc2   : > { %v4128_v7 = vld [vmem:[%s4887_s16 + $0x54] ss:$8 sps:$4 sm:$0xff]   ;;  %v4130_v8 = vld [vmem:[%s4887_s16 + $0x50] ss:$8 sps:$4 sm:$0xff]   ;;  %v4131_v9 = vld [vmem:[%s4887_s16 + $0x64] ss:$8 sps:$4 sm:$0xff]  }
  0xc3   : > { %999 = vmatpush1.bf16.msra.mxu1 %v4151_v37  ;;  %v4133_v10 = vld [vmem:[%s4887_s16 + $0x60] ss:$8 sps:$4 sm:$0xff]   ;;  %v4134_v11 = vld [vmem:[%s4887_s16 + $0x74] ss:$8 sps:$4 sm:$0xff]   ;;  %v4136_v12 = vld [vmem:[%s4887_s16 + $0x70] ss:$8 sps:$4 sm:$0xff]  }
  0xc4   : > { %682 = vmatpush1.bf16.msra.mxu0 %v4085_v14  ;;  %1000 = vmatprep.subr.bf16.mxu1 %v4152_v38  ;;  %v4181_v13 = vld [vmem:[#allocation8 + $0xe0] ss:$8 sps:$4 sm:$0xff]   ;;  %v4182_v14 = vld [vmem:[#allocation8 + $0xf4] ss:$8 sps:$4 sm:$0xff]   ;;  %s5615_s13 = scalar_lea.vmem [#allocation11], %s3970_s28  ;;  %s3510_s10 = scalar_lea.sflag [#allocation4], %s4875_s23 }
  0xc5   : > { %683 = vmatprep.subr.bf16.mxu0 %v4086_v15  ;;  %v4184_v15 = vld [vmem:[#allocation8 + $0xf0] ss:$8 sps:$4 sm:$0xff]  }
  0xc7   : > { %1001 = vmatpush1.bf16.msra.mxu1 %v4154_v40 }
  0xc8   : > { %684 = vmatpush1.bf16.msra.mxu0 %v4088_v16  ;;  %1002 = vmatprep.subr.bf16.mxu1 %v4155_v42 }
  0xc9   : > { %685 = vmatprep.subr.bf16.mxu0 %v4089_v17 }
  0xcb   : > { %1003 = vmatpush1.bf16.msra.mxu1 %v4157_v44 }
  0xcc   : > { %686 = vmatpush1.bf16.msra.mxu0 %v4091_v18  ;;  %1004 = vmatprep.subr.bf16.mxu1 %v4158_v46 }
  0xcd   : > { %687 = vmatprep.subr.bf16.mxu0 %v4092_v19 }
  0xcf   : > { %1005 = vmatpush1.bf16.msra.mxu1 %v4160_v48  ;;  %v1136_v48 = vlaneseq }
  0xd0   : > { %688 = vmatpush1.bf16.msra.mxu0 %v4094_v22  ;;  %1006 = vmatprep.subr.bf16.mxu1 %v4161_v49 }
  0xd1   : > { %689 = vmatprep.subr.bf16.mxu0 %v4095_v24 }
  0xd3   : > { %1007 = vmatpush1.bf16.msra.mxu1 %v4163_v52  ;;  %v4924_v52 = vshrl.u32 %v1136_v48, 7 }
  0xd4   : > { %690 = vmatpush1.bf16.msra.mxu0 %v4097_v27  ;;  %1008 = vmatprep.subr.bf16.mxu1 %v4164_v53 }
  0xd5   : > { %691 = vmatprep.subr.bf16.mxu0 %v4098_v28  ;;  %6899 = vst [vmem:[#allocation24_spill] sm:$0xff] %v4924_v52 }
  0xd7   : > { %1009 = vmatpush1.bf16.msra.mxu1 %v4166_v54  ;;  %v4926_v54 = vstv %s3791_s29 }
  0xd8   : > { %692 = vmatpush1.bf16.msra.mxu0 %v4100_v31  ;;  %1010 = vmatprep.subr.bf16.mxu1 %v4167_v55  ;;  %6900 = vst [vmem:[#allocation25_spill] sm:$0xff] %v4926_v54  ;;  %v1187_v55 = vand.u32 127, %v1136_v48 }
  0xd9   : > { %693 = vmatprep.subr.bf16.mxu0 %v4101_v32 }
  0xdb   : > { %1011 = vmatpush1.bf16.msra.mxu1 %v4169_v58 }
  0xdc   : > { %694 = vmatpush1.bf16.msra.mxu0 %v4103_v35  ;;  %1012 = vmatprep.subr.bf16.mxu1 %v4170_v59  ;;  %v1189_v59 = vcvt.s32.f32 %v1187_v55 }
  0xdd   : > { %695 = vmatprep.subr.bf16.mxu0 %v4104_v36 }
  0xdf   : > { %1013 = vmatpush1.bf16.msra.mxu1 %v4172_v60  ;;  %v1138_v60 = vadd.s32 8, %v4924_v52 }
  0xe0   : > { %696 = vmatpush1.bf16.msra.mxu0 %v4106_v39  ;;  %1014 = vmatprep.subr.bf16.mxu1 %v4173_v61 }
  0xe1   : > { %697 = vmatprep.subr.bf16.mxu0 %v4107_v41 }
  0xe3   : > { %1015 = vmatpush1.bf16.msra.mxu1 %v4175_v0 }
  0xe4   : > { %698 = vmatpush1.bf16.msra.mxu0 %v4109_v43  ;;  %1016 = vmatprep.subr.bf16.mxu1 %v4176_v1  ;;  %v1223_v1 = vmul.f32 0.007843138, %v1189_v59 }
  0xe5   : > { %699 = vmatprep.subr.bf16.mxu0 %v4110_v45 }
  0xe7   : > { %1017 = vmatpush1.bf16.msra.mxu1 %v4178_v2  ;;  %v1155_v2 = vadd.s32 %v4926_v54, %v1138_v60 }
  0xe8   : > { %700 = vmatpush1.bf16.msra.mxu0 %v4112_v47  ;;  %1018 = vmatprep.subr.bf16.mxu1 %v4179_v3 }
  0xeb   : > { %702 = vmatmul.mubr.bf16.vlgmr.msra.gmra.mrb[0].mxu0 %v4113_v50  ;;  %1019 = vmatpush1.bf16.msra.mxu1 %v4181_v13 }
  0xec   : > { %711 = vmatprep.mubr.bf16.mxu0 %v4116_v51  ;;  %1020 = vmatprep.subr.bf16.mxu1 %v4182_v14 }
  0xef   : > { %1021 = vmatpush1.bf16.msra.mxu1 %v4184_v15 }
  0xf3   : > { %712 = vmatmul.mubr.bf16.gmra.mrb[4].mxu0 %v4118_v56  ;;  %v1154_v56 = vadd.s32 %v4926_v54, %v4924_v52 }
  0xf4   : > { %721 = vmatprep.mubr.bf16.mxu0 %v4119_v57  ;;  %v1188_v57 = vadd.s32 128, %v1187_v55 }
  0xf5   : > { %v1170_v58 = vcvt.s32.f32 %v1154_v56 }
  0xf7   : > { %v1191_v0 = vmul.f32 0.007843138, %v1170_v58 }
  0xfb   : > { %722 = vmatmul.mubr.bf16.gmra.mrb[8].mxu0 %v4121_v62  ;;  %v1190_v62 = vcvt.s32.f32 %v1188_v57 }
  0xfc   : > { %731 = vmatprep.mubr.bf16.mxu0 %v4122_v63 }
 0x103   : > { %732 = vmatmul.mubr.bf16.gmra.mrb[12].mxu0 %v4124_v4  ;;  %v1224_v4 = vmul.f32 0.007843138, %v1190_v62 }
 0x104   : > { %741 = vmatprep.mubr.bf16.mxu0 %v4125_v5 }
 0x10b   : > { %742 = vmatmul.mubr.bf16.gmra.mrb[16].mxu0 %v4127_v6 }
 0x10c   : > { %751 = vmatprep.mubr.bf16.mxu0 %v4128_v7  ;;  %v3792_v7 = vadd.f32 -1.0, %v1191_v0 }
 0x10e   : > { %v1229_v13 = vmul.f32 %v3792_v7, %v3792_v7  ;;  %v3812_v55 = vadd.f32 0.25, %v3792_v7 }
 0x110   : > { %v1713_v62 = vmul.f32 %v3812_v55, %v3812_v55 }
 0x113   : > { %752 = vmatmul.mubr.bf16.gmra.mrb[20].mxu0 %v4130_v8  ;;  %v3808_v8 = vadd.f32 -1.0, %v1223_v1 }
 0x114   : > { %761 = vmatprep.mubr.bf16.mxu0 %v4131_v9  ;;  %v1171_v9 = vcvt.s32.f32 %v1155_v2 }
 0x116   : > { %v1192_v14 = vmul.f32 0.007843138, %v1171_v9 }
 0x11b   : > { %762 = vmatmul.mubr.bf16.gmra.mrb[24].mxu0 %v4133_v10 }
 0x11c   : > { %771 = vmatprep.mubr.bf16.mxu0 %v4134_v11  ;;  %v4932_v11 = vadd.f32 -1.0, %v1224_v4 }
 0x11e   : > { %v4938_v15 = vmul.f32 %v4932_v11, %v4932_v11 }
 0x120   : > { %6902 = vst [vmem:[#allocation27_spill] sm:$0xff] %v4938_v15 }
 0x123   : > { %772 = vmatmul.mubr.bf16.gmra.mrb[28].mxu0 %v4136_v12  ;;  %v4934_v12 = vmul.f32 %v3808_v8, %v3808_v8 }
 0x125   : > { %6901 = vst [vmem:[#allocation26_spill] sm:$0xff] %v4934_v12 }
 0x1be   : > { %v703_v16 = vpop.f32.mrb[0].mxu0 }
 0x1bf   : > { %v705_v17 = vpop.f32.mrb[1].mxu0 }
 0x1c0   : > { %v707_v18 = vpop.f32.mrb[2].mxu0 }
 0x1c1   : > { %v782_v19 = vpack.c.bf16 %v707_v18, %v703_v16  ;;  %v709_v20 = vpop.f32.mrb[3].mxu0  ;;  %v1245_v16 = vadd.f32 %v1229_v13, %v4934_v12 }
 0x1c2   : > { %v783_v21 = vpack.c.bf16 %v709_v20, %v705_v17  ;;  %v3793_v17 = vadd.f32 -1.0, %v1192_v14 }
 0x1c3   : > { %4185 = vrsqrt.f32 %v1245_v16  ;;  %vm1279_vm0 = vcmp.eq.f32.partialorder %v1245_v16, inf  ;;  %vm1281_vm1 = vcmp.eq.f32.partialorder %v1245_v16, 0.0 }
 0x1c4   : > { %1022 = vmatprep.mubr.bf16.mxu1 %v783_v21  ;;  %v1230_v21 = vmul.f32 %v3793_v17, %v3793_v17  ;;  %v3813_v0 = vadd.f32 0.25, %v3793_v17 }
 0x1c5   : > { %1023 = vmatmul.mubr.bf16.vlgmr.msra.gmra.mrb[0].mxu1 %v782_v19  ;;  %v1246_v19 = vadd.f32 %v1229_v13, %v4938_v15 }
 0x1c6   : > { %v713_v22 = vpop.f32.mrb[4].mxu0  ;;  %v1714_v7 = vmul.f32 %v3813_v0, %v3813_v0  ;;  %v5099_v0 = vld [vmem:[%s4880_s14 + $0x218] sm:$0xff] }
 0x1c7   : > { %v715_v23 = vpop.f32.mrb[5].mxu0  ;;  %4187 = vrsqrt.f32 %v1246_v19  ;;  %vm1286_vm2 = vcmp.eq.f32.partialorder %v1246_v19, inf  ;;  %vm1288_vm3 = vcmp.eq.f32.partialorder %v1246_v19, 0.0  ;;  %6905 = vst [vmem:[#allocation30_spill] sm:$0xff] %v5099_v0 }
 0x1c8   : > { %v717_v24 = vpop.f32.mrb[6].mxu0 }
 0x1c9   : > { %v784_v25 = vpack.c.bf16 %v717_v24, %v713_v22  ;;  %v719_v26 = vpop.f32.mrb[7].mxu0 }
 0x1ca   : > { %v785_v27 = vpack.c.bf16 %v719_v26, %v715_v23 }
 0x1cc   : > { %1032 = vmatprep.mubr.bf16.mxu1 %v785_v27 }
 0x1cd   : > { %1033 = vmatmul.mubr.bf16.gmra.mrb[4].mxu1 %v784_v25  ;;  %v1247_v25 = vadd.f32 %v1230_v21, %v4934_v12  ;;  %v4186_v27 = vpop.eup %4185 }
 0x1ce   : > { %v723_v28 = vpop.f32.mrb[8].mxu0 }
 0x1cf   : > { %v725_v29 = vpop.f32.mrb[9].mxu0  ;;  %4189 = vrsqrt.f32 %v1247_v25  ;;  %vm1293_vm4 = vcmp.eq.f32.partialorder %v1247_v25, inf  ;;  %vm1295_vm5 = vcmp.eq.f32.partialorder %v1247_v25, 0.0 }
 0x1d0   : > { %v727_v30 = vpop.f32.mrb[10].mxu0 }
 0x1d1   : > { %v786_v31 = vpack.c.bf16 %v727_v30, %v723_v28  ;;  %v729_v32 = vpop.f32.mrb[11].mxu0  ;;  %v1278_v28 = vmul.f32 %v4186_v27, %v1245_v16  ;;  %v4188_v30 = vpop.eup %4187 }
 0x1d2   : > { %v787_v33 = vpack.c.bf16 %v729_v32, %v725_v29  ;;  %v1248_v29 = vadd.f32 %v1230_v21, %v4938_v15 }
 0x1d3   : > { %v1280_v32 = vsel %vm1279_vm0, %v1245_v16, %v1278_v28 }
 0x1d4   : > { %1042 = vmatprep.mubr.bf16.mxu1 %v787_v33  ;;  %v1285_v33 = vmul.f32 %v4188_v30, %v1246_v19  ;;  %4191 = vrsqrt.f32 %v1248_v29  ;;  %vm1300_vm6 = vcmp.eq.f32.partialorder %v1248_v29, inf  ;;  %v1303_v1 = vand.u32 2147483648, %v1248_v29 }
 0x1d5   : > { %1043 = vmatmul.mubr.bf16.gmra.mrb[8].mxu1 %v786_v31  ;;  %v1282_v31 = vand.u32 2147483648, %v1245_v16  ;;  %vm1302_vm7 = vcmp.eq.f32.partialorder %v1248_v29, 0.0 }
 0x1d6   : > { %v733_v34 = vpop.f32.mrb[12].mxu0 }
 0x1d7   : > { %v735_v35 = vpop.f32.mrb[13].mxu0 }
 0x1d8   : > { %v737_v36 = vpop.f32.mrb[14].mxu0 }
 0x1d9   : > { %v788_v37 = vpack.c.bf16 %v737_v36, %v733_v34  ;;  %v739_v38 = vpop.f32.mrb[15].mxu0  ;;  %v1283_v34 = vsel %vm1281_vm1, %v1282_v31, %v1280_v32  ;;  %v4190_v36 = vpop.eup %4189 }
 0x1da   : > { %v789_v39 = vpack.c.bf16 %v739_v38, %v735_v35  ;;  %v1139_v35 = vadd.s32 16, %v4924_v52  ;;  %v1287_v38 = vsel %vm1286_vm2, %v1246_v19, %v1285_v33 }
 0x1dc   : > { %1052 = vmatprep.mubr.bf16.mxu1 %v789_v39  ;;  %v1156_v39 = vadd.s32 %v4926_v54, %v1139_v35 }
 0x1dd   : > { %1053 = vmatmul.mubr.bf16.gmra.mrb[12].mxu1 %v788_v37  ;;  %v1289_v37 = vand.u32 2147483648, %v1246_v19 }
 0x1de   : > { %v743_v40 = vpop.f32.mrb[16].mxu0 }
 0x1df   : > { %v745_v41 = vpop.f32.mrb[17].mxu0 }
 0x1e0   : > { %v747_v42 = vpop.f32.mrb[18].mxu0 }
 0x1e1   : > { %v790_v43 = vpack.c.bf16 %v747_v42, %v743_v40  ;;  %v749_v44 = vpop.f32.mrb[19].mxu0  ;;  %v1501_v40 = vmul.f32 -2.0, %v1283_v34  ;;  %v1172_v42 = vcvt.s32.f32 %v1156_v39  ;;  %v4976_v34 = vld [vmem:[%s4880_s14 + $0x100] sm:$0xff] }
 0x1e2   : > { %v791_v45 = vpack.c.bf16 %v749_v44, %v745_v41  ;;  %v1292_v41 = vmul.f32 %v4190_v36, %v1247_v25 }
 0x1e3   : > { %v1193_v44 = vmul.f32 0.007843138, %v1172_v42  ;;  %v4988_v42 = vld [vmem:[%s4880_s14 + $0x108] sm:$0xff] }
 0x1e4   : > { %1062 = vmatprep.mubr.bf16.mxu1 %v791_v45  ;;  %v1533_v45 = vmul.f32 1.442695, %v1501_v40  ;;  %v1294_v48 = vsel %vm1293_vm4, %v1247_v25, %v1292_v41  ;;  %v4985_v41 = vld [vmem:[%s4880_s14 + $0x8] sm:$0xff] }
 0x1e5   : > { %1063 = vmatmul.mubr.bf16.gmra.mrb[16].mxu1 %v790_v43  ;;  %v1290_v43 = vsel %vm1288_vm3, %v1289_v37, %v1287_v38 }
 0x1e6   : > { %v753_v46 = vpop.f32.mrb[20].mxu0  ;;  %4193 = vpow2.f32 %v1533_v45  ;;  %v1141_v45 = vadd.s32 32, %v4924_v52 }
 0x1e7   : > { %v755_v47 = vpop.f32.mrb[21].mxu0 }
 0x1e8   : > { %v757_v49 = vpop.f32.mrb[22].mxu0 }
 0x1e9   : > { %v792_v50 = vpack.c.bf16 %v757_v49, %v753_v46  ;;  %v759_v51 = vpop.f32.mrb[23].mxu0  ;;  %v1296_v46 = vand.u32 2147483648, %v1247_v25  ;;  %v4946_v49 = vadd.f32 -1.0, %v1193_v44 }
 0x1ea   : > { %v793_v53 = vpack.c.bf16 %v759_v51, %v755_v47  ;;  %v1502_v47 = vmul.f32 -2.0, %v1290_v43  ;;  %v4192_v51 = vpop.eup %4191 }
 0x1eb   : > { %v1297_v56 = vsel %vm1295_vm5, %v1296_v46, %v1294_v48  ;;  %v1299_v60 = vmul.f32 %v4192_v51, %v1248_v29  ;;  %v4998_v51 = vld [vmem:[%s4880_s14 + $0x10] sm:$0xff]  ;;  %v5136_v46 = vld [vmem:[%s4880_s14 + $0x28] sm:$0xff] }
 0x1ec   : > { %1072 = vmatprep.mubr.bf16.mxu1 %v793_v53  ;;  %v3810_v53 = vadd.f32 -0.25, %v3808_v8  ;;  %v1535_v57 = vmul.f32 1.442695, %v1502_v47  ;;  %v1503_v59 = vmul.f32 -2.0, %v1297_v56  ;;  %6912 = vst [vmem:[#allocation37_spill] sm:$0xff] %v5136_v46 }
 0x1ed   : > { %1073 = vmatmul.mubr.bf16.gmra.mrb[20].mxu1 %v792_v50  ;;  %v1231_v50 = vmul.f32 %v4946_v49, %v4946_v49 }
 0x1ee   : > { %v763_v61 = vpop.f32.mrb[24].mxu0  ;;  %4195 = vpow2.f32 %v1535_v57  ;;  %v1537_v2 = vmul.f32 1.442695, %v1503_v59  ;;  %v1158_v57 = vadd.s32 %v4926_v54, %v1141_v45 }
 0x1ef   : > { %v765_v63 = vpop.f32.mrb[25].mxu0  ;;  %v4951_v58 = vadd.f32 %v1231_v50, %v4934_v12  ;;  %v4965_v25 = vadd.f32 %v1231_v50, %v4938_v15  ;;  %v4995_v50 = vld [vmem:[%s4880_s14 + $0x208] sm:$0xff] }
 0x1f0   : > { %v767_v3 = vpop.f32.mrb[26].mxu0 }
 0x1f1   : > { %v794_v5 = vpack.c.bf16 %v767_v3, %v763_v61  ;;  %v769_v6 = vpop.f32.mrb[27].mxu0  ;;  %v4953_v61 = vmul.f32 %v3810_v53, %v3810_v53  ;;  %4197 = vrsqrt.f32 %v4951_v58  ;;  %v1301_v3 = vsel %vm1300_vm6, %v1248_v29, %v1299_v60  ;;  %v4972_v29 = vld [vmem:[%s4880_s14 + $0x200] sm:$0xff] }
 0x1f2   : > { %v795_v10 = vpack.c.bf16 %v769_v6, %v765_v63  ;;  %v3811_v63 = vadd.f32 -0.25, %v4932_v11  ;;  %v4194_v6 = vpop.eup %4193  ;;  %v1304_v8 = vsel %vm1302_vm7, %v1303_v1, %v1301_v3  ;;  %4199 = vpow2.f32 %v1537_v2  ;;  %v5009_v2 = vld [vmem:[%s4880_s14 + $0x110] sm:$0xff] }
 0x1f3   : > { %6903 = vst [vmem:[#allocation28_spill] sm:$0xff] %v4953_v61  ;;  %v1729_v4 = vadd.f32 %v1713_v62, %v4953_v61  ;;  %v1140_v11 = vadd.s32 24, %v4924_v52  ;;  %v1597_v13 = vmul.f32 0.5, %v4194_v6  ;;  %v1504_v14 = vmul.f32 -2.0, %v1304_v8 }
 0x1f4   : > { %1082 = vmatprep.mubr.bf16.mxu1 %v795_v10  ;;  %v1731_v16 = vadd.f32 %v1714_v7, %v4953_v61  ;;  %vm1307_vm8 = vcmp.eq.f32.partialorder %v4951_v58, inf  ;;  %v1310_v37 = vand.u32 2147483648, %v4951_v58  ;;  %vm1309_vm9 = vcmp.eq.f32.partialorder %v4951_v58, 0.0 }
 0x1f5   : > { %1083 = vmatmul.mubr.bf16.gmra.mrb[24].mxu1 %v794_v5  ;;  %v4958_v5 = vmul.f32 %v3811_v63, %v3811_v63  ;;  %v1761_v9 = vmul.f32 -1.3888888, %v1729_v4  ;;  %v1157_v21 = vadd.s32 %v4926_v54, %v1140_v11  ;;  %v2627_v63 = vld [vmem:[%s4901_s25] sm:$0xff]  ;;  %v3814_v11 = vadd.f32 0.25, %v4946_v49 }
 0x1f6   : > { %v773_v18 = vpop.f32.mrb[28].mxu0  ;;  %vm1314_vm10 = vcmp.eq.f32.partialorder %v4965_v25, inf  ;;  %vm1316_vm11 = vcmp.eq.f32.partialorder %v4965_v25, 0.0 }
 0x1f7   : > { %v775_v20 = vpop.f32.mrb[29].mxu0  ;;  %6904 = vst [vmem:[#allocation29_spill] sm:$0xff] %v4958_v5  ;;  %v1730_v10 = vadd.f32 %v1713_v62, %v4958_v5  ;;  %v1793_v19 = vmul.f32 1.442695, %v1761_v9  ;;  %v1173_v31 = vcvt.s32.f32 %v1157_v21  ;;  %v1732_v53 = vadd.f32 %v1714_v7, %v4958_v5 }
 0x1f8   : > { %v777_v22 = vpop.f32.mrb[30].mxu0  ;;  %v4196_v17 = vpop.eup %4195 }
 0x1f9   : > { %v796_v23 = vpack.c.bf16 %v777_v22, %v773_v18  ;;  %v779_v24 = vpop.f32.mrb[31].mxu0  ;;  %v1629_v22 = vadd.f32 0.5, %v1597_v13  ;;  %v1598_v27 = vmul.f32 0.5, %v4196_v17  ;;  %4201 = vpow2.f32 %v1793_v19 }
 0x1fa   : > { %v797_v26 = vpack.c.bf16 %v779_v24, %v775_v20  ;;  %v1762_v20 = vmul.f32 -1.3888888, %v1730_v10  ;;  %v1763_v24 = vmul.f32 -1.3888888, %v1731_v16  ;;  %v1194_v44 = vmul.f32 0.007843138, %v1173_v31 }
 0x1fb   : > { %v4198_v18 = vpop.eup %4197  ;;  %v1661_v33 = vmul.f32 0.1, %v1629_v22  ;;  %v1630_v39 = vadd.f32 0.5, %v1598_v27  ;;  %v1764_v10 = vmul.f32 -1.3888888, %v1732_v53  ;;  %v2643_v17 = vunpack.c.l.bf16 %v2627_v63 }
 0x1fc   : > { %1092 = vmatprep.mubr.bf16.mxu1 %v797_v26  ;;  %v4968_v26 = vld [vmem:[%s4880_s14] sm:$0xff]  ;;  %v1306_v28 = vmul.f32 %v4198_v18, %v4951_v58  ;;  %v1795_v30 = vmul.f32 1.442695, %v1762_v20  ;;  %v4200_v32 = vpop.eup %4199  ;;  %v1797_v36 = vmul.f32 1.442695, %v1763_v24  ;;  %v3795_v56 = vadd.f32 -1.0, %v1194_v44 }
 0x1fd   : > { %1093 = vmatmul.mubr.bf16.gmra.mrb[28].mxu1 %v796_v23  ;;  %v1539_v23 = vmul.f32 1.442695, %v1504_v14  ;;  %v1599_v43 = vmul.f32 0.5, %v4200_v32  ;;  %v2371_v47 = vmul.f32 0.3, %v1661_v33  ;;  %v5004_v62 = vadd.f32 1.0, %v1661_v33 }
 0x1fe   : > { %v1308_v40 = vsel %vm1307_vm8, %v4951_v58, %v1306_v28  ;;  %v4992_v48 = vmul.f32 0.2, %v1661_v33  ;;  %v1662_v58 = vmul.f32 0.1, %v1630_v39  ;;  %v1232_v3 = vmul.f32 %v3795_v56, %v3795_v56 }
 0x1ff   : > { %4203 = vpow2.f32 %v1539_v23  ;;  %v1311_v55 = vsel %vm1309_vm9, %v1310_v37, %v1308_v40  ;;  %v1631_v1 = vadd.f32 0.5, %v1599_v43  ;;  %v5011_v4 = vadd.f32 1.0, %v2371_v47  ;;  %v5023_v23 = vld [vmem:[%s4880_s14 + $0x210] sm:$0xff] }
 0x200   : > { %4205 = vrsqrt.f32 %v4965_v25  ;;  %v1505_v8 = vmul.f32 -2.0, %v1311_v55  ;;  %v5017_v13 = vadd.f32 %v1232_v3, %v4934_v12  ;;  %v1174_v14 = vcvt.s32.f32 %v1158_v57 }
 0x201   : > { %4207 = vpow2.f32 %v1795_v30  ;;  %v2372_v18 = vmul.f32 0.3, %v1662_v58  ;;  %v5019_v19 = vmul.f32 0.2, %v1662_v58  ;;  %v1663_v22 = vmul.f32 0.1, %v1631_v1 }
 0x202   : > { %4209 = vpow2.f32 %v1797_v36  ;;  %v5027_v24 = vadd.f32 %v1232_v3, %v4938_v15  ;;  %v5030_v49 = vadd.f32 1.0, %v1662_v58  ;;  %v1541_v27 = vmul.f32 1.442695, %v1505_v8 }
 0x203   : > { %v4202_v9 = vpop.eup %4201  ;;  %4211 = vrsqrt.f32 %v5017_v13  ;;  %v1317_v30 = vand.u32 2147483648, %v4965_v25  ;;  %v1799_v32 = vmul.f32 1.442695, %v1764_v10  ;;  %v1715_v33 = vmul.f32 %v3814_v11, %v3814_v11 }
 0x204   : > { %v1195_v36 = vmul.f32 0.007843138, %v1174_v14  ;;  %v1857_v37 = vmul.f32 0.15, %v4202_v9  ;;  %v2644_v39 = vunpack.c.h.bf16 %v2627_v63  ;;  %v5037_v44 = vadd.f32 1.0, %v2372_v18 }
 0x205   : > { %v2373_v47 = vmul.f32 0.3, %v1663_v22  ;;  %4213 = vrsqrt.f32 %v5027_v24  ;;  %v5041_v1 = vsub.f32 1.0, %v2643_v17  ;;  %v1733_v63 = vadd.f32 %v1715_v33, %v4953_v61 }
 0x206   : > { %4215 = vpow2.f32 %v1541_v27  ;;  %v5044_v3 = vadd.f32 -1.0, %v1195_v36  ;;  %v5048_v8 = vsub.f32 1.0, %v1857_v37  ;;  %v5050_v9 = vsub.f32 1.0, %v2644_v39 }
 0x207   : > { %4217 = vpow2.f32 %v1799_v32  ;;  %v3815_v10 = vadd.f32 0.25, %v3795_v56  ;;  %v5052_v11 = vadd.f32 1.0, %v1663_v22  ;;  %v5054_v14 = vadd.f32 1.0, %v2373_v47  ;;  %v5068_v56 = vld [vmem:[%s4880_s14 + $0x18] sm:$0xff] }
 0x208   : > { %v1233_v18 = vmul.f32 %v5044_v3, %v5044_v3  ;;  %v5065_v32 = vmul.f32 0.2, %v1663_v22  ;;  %v1765_v36 = vmul.f32 -1.3888888, %v1733_v63  ;;  %vm1321_vm12 = vcmp.eq.f32.partialorder %v5017_v13, inf }
 0x209   : > { %v4204_v16 = vpop.eup %4203  ;;  %v1324_v47 = vand.u32 2147483648, %v5017_v13  ;;  %vm1323_vm13 = vcmp.eq.f32.partialorder %v5017_v13, 0.0  ;;  %v1142_v22 = vadd.s32 40, %v4924_v52  ;;  %v1734_v63 = vadd.f32 %v1715_v33, %v4958_v5 }
 0x20a   : > { %v4206_v21 = vpop.eup %4205  ;;  %v1600_v57 = vmul.f32 0.5, %v4204_v16  ;;  %v5057_v16 = vld [vmem:[%s4901_s25 + $0x8] sm:$0xff]  ;;  %v1801_v6 = vmul.f32 1.442695, %v1765_v36  ;;  %vm1328_vm14 = vcmp.eq.f32.partialorder %v5027_v24, inf  ;;  %vm1330_vm15 = vcmp.eq.f32.partialorder %v5027_v24, 0.0 }
 0x20b   : > { %v1313_v28 = vmul.f32 %v4206_v21, %v4965_v25  ;;  %v4208_v31 = vpop.eup %4207  ;;  %v2645_v39 = vunpack.c.l.bf16 %v5057_v16  ;;  %v5092_v33 = vadd.f32 %v1233_v18, %v4938_v15  ;;  %v1159_v36 = vadd.s32 %v4926_v54, %v1142_v22 }
 0x20c   : > { %v4210_v53 = vpop.eup %4209  ;;  %v1858_v55 = vmul.f32 0.15, %v4208_v31 }
 0x20d   : > { %v1315_v43 = vsel %vm1314_vm10, %v4965_v25, %v1313_v28  ;;  %v5046_v25 = vadd.f32 1.0, %v1857_v37  ;;  %v1859_v28 = vmul.f32 0.15, %v4210_v53  ;;  %v4212_v31 = vpop.eup %4211  ;;  %v5072_v37 = vadd.f32 %v1233_v18, %v4934_v12 }
 0x20e   : > { %v1318_v58 = vsel %vm1316_vm11, %v1317_v30, %v1315_v43  ;;  %v5061_v21 = vadd.f32 1.0, %v1858_v55  ;;  %v5063_v27 = vsub.f32 1.0, %v1858_v55  ;;  %v1632_v30 = vadd.f32 0.5, %v1600_v57 }
 0x20f   : > { %v1506_v17 = vmul.f32 -2.0, %v1318_v58  ;;  %v1320_v43 = vmul.f32 %v4212_v31, %v5017_v13  ;;  %v1716_v53 = vmul.f32 %v3815_v10, %v3815_v10  ;;  %4219 = vrsqrt.f32 %v5072_v37  ;;  %v4214_v45 = vpop.eup %4213  ;;  %v5084_v31 = vld [vmem:[%s4880_s14 + $0x118] sm:$0xff] }
 0x210   : > { %v1664_v57 = vmul.f32 0.1, %v1632_v30  ;;  %v1331_v10 = vand.u32 2147483648, %v5027_v24  ;;  %v1327_v58 = vmul.f32 %v4214_v45, %v5027_v24  ;;  %v5095_v7 = vsub.f32 1.0, %v2645_v39 }
 0x211   : > { %v1543_v55 = vmul.f32 1.442695, %v1506_v17  ;;  %v1322_v40 = vsel %vm1321_vm12, %v5017_v13, %v1320_v43  ;;  %v4216_v17 = vpop.eup %4215  ;;  %v1735_v30 = vadd.f32 %v1716_v53, %v4953_v61  ;;  %v5105_v18 = vadd.f32 1.0, %v1859_v28 }
 0x212   : > { %v1325_v20 = vsel %vm1323_vm13, %v1324_v47, %v1322_v40  ;;  %v4218_v13 = vpop.eup %4217  ;;  %v1766_v40 = vmul.f32 -1.3888888, %v1734_v63  ;;  %v1329_v45 = vsel %vm1328_vm14, %v5027_v24, %v1327_v58  ;;  %v1601_v59 = vmul.f32 0.5, %v4216_v17 }
 0x213   : > { %4221 = vpow2.f32 %v1543_v55  ;;  %v1507_v47 = vmul.f32 -2.0, %v1325_v20  ;;  %v1332_v39 = vsel %vm1330_vm15, %v1331_v10, %v1329_v45  ;;  %v1860_v55 = vmul.f32 0.15, %v4218_v13  ;;  %v5121_v45 = vld [vmem:[%s4880_s14 + $0x20] sm:$0xff] }
 0x214   : > { %4223 = vpow2.f32 %v1801_v6  ;;  %v1767_v22 = vmul.f32 -1.3888888, %v1735_v30  ;;  %v2374_v63 = vmul.f32 0.3, %v1664_v57  ;;  %v1736_v58 = vadd.f32 %v1716_v53, %v4958_v5  ;;  %6908 = vst [vmem:[#allocation33_spill] sm:$0xff] %v5121_v45  ;;  %v5124_v20 = vld [vmem:[%s4880_s14 + $0x120] sm:$0xff] }
 0x215   : > { %v1545_v43 = vmul.f32 1.442695, %v1507_v47  ;;  %4225 = vrsqrt.f32 %v5092_v33  ;;  %v1175_v60 = vcvt.s32.f32 %v1159_v36  ;;  %v5112_v38 = vsub.f32 1.0, %v1859_v28  ;;  %6909 = vst [vmem:[#allocation34_spill] sm:$0xff] %v5124_v20  ;;  %v5127_v53 = vld [vmem:[%s4880_s14 + $0x220] sm:$0xff] }
 0x216   : > { %v5114_v6 = vmul.f32 0.2, %v1664_v57  ;;  %v1803_v24 = vmul.f32 1.442695, %v1766_v40  ;;  %v1508_v10 = vmul.f32 -2.0, %v1332_v39  ;;  %v5116_v13 = vadd.f32 1.0, %v1664_v57 }
 0x217   : > { %v2646_v30 = vunpack.c.h.bf16 %v5057_v16  ;;  %v1633_v47 = vadd.f32 0.5, %v1601_v59  ;;  %vm1335_vm0 = vcmp.eq.f32.partialorder %v5072_v37, inf  ;;  %6910 = vst [vmem:[#allocation35_spill] sm:$0xff] %v5127_v53  ;;  %4227 = vpow2.f32 %v1545_v43 }
 0x218   : > { %6906 = vst [vmem:[#allocation31_spill] sm:$0xff] %v5114_v6  ;;  %6907 = vst [vmem:[#allocation32_spill] sm:$0xff] %v5116_v13  ;;  %v1805_v28 = vmul.f32 1.442695, %v1767_v22  ;;  %v1338_v40 = vand.u32 2147483648, %v5072_v37  ;;  %v5131_v57 = vadd.f32 1.0, %v2374_v63  ;;  %4229 = vpow2.f32 %v1803_v24 }
 0x219   : > { %v4220_v17 = vpop.eup %4219  ;;  %v1768_v39 = vmul.f32 -1.3888888, %v1736_v58  ;;  %vm1337_vm1 = vcmp.eq.f32.partialorder %v5072_v37, 0.0  ;;  %v1196_v59 = vmul.f32 0.007843138, %v1175_v60  ;;  %v5146_v16 = vsub.f32 1.0, %v2646_v30 }
 0x21a   : > { %v1334_v36 = vmul.f32 %v4220_v17, %v5072_v37  ;;  %6911 = vst [vmem:[#allocation36_spill] sm:$0xff] %v5131_v57  ;;  %v1547_v35 = vmul.f32 1.442695, %v1508_v10  ;;  %v5148_v24 = vadd.f32 1.0, %v1860_v55  ;;  %v1665_v6 = vmul.f32 0.1, %v1633_v47 }
 0x21b   : > { %v5144_v17 = vadd.f32 -1.0, %v1196_v59  ;;  %6913 = vst [vmem:[#allocation38_spill] sm:$0xff] %v5146_v16  ;;  %v5150_v13 = vsub.f32 1.0, %v1860_v55  ;;  %4231 = vpow2.f32 %v1805_v28  ;;  %v1807_v58 = vmul.f32 1.442695, %v1768_v39  ;;  %v5158_v59 = vld [vmem:[%s4880_s14 + $0x228] sm:$0xff] }
 0x21c   : > { %v1336_v43 = vsel %vm1335_vm0, %v5072_v37, %v1334_v36  ;;  %6914 = vst [vmem:[#allocation39_spill] sm:$0xff] %v5148_v24  ;;  %v2629_v37 = vld [vmem:[%s4901_s25 + $0x10] sm:$0xff]  ;;  %v5154_v36 = vld [vmem:[%s4880_s14 + $0x128] sm:$0xff]  ;;  %6917 = vst [vmem:[#allocation42_spill] sm:$0xff] %v5158_v59  ;;  %4233 = vpow2.f32 %v1547_v35  ;;  %vm1342_vm2 = vcmp.eq.f32.partialorder %v5092_v33, inf  ;;  %v1345_v30 = vand.u32 2147483648, %v5092_v33 }
 0x21d   : > { %v4222_v22 = vpop.eup %4221  ;;  %v1339_v10 = vsel %vm1337_vm1, %v1338_v40, %v1336_v43  ;;  %6915 = vst [vmem:[#allocation40_spill] sm:$0xff] %v5150_v13  ;;  %6916 = vst [vmem:[#allocation41_spill] sm:$0xff] %v5154_v36  ;;  %v3816_v55 = vadd.f32 0.25, %v5044_v3  ;;  %v1234_v43 = vmul.f32 %v5144_v17, %v5144_v17  ;;  %v2375_v63 = vmul.f32 0.3, %v1665_v6  ;;  %v5185_v59 = vld [vmem:[%s4880_s14 + $0x30] sm:$0xff] }
 0x21e   : > { %v4224_v57 = vpop.eup %4223  ;;  %v1602_v60 = vmul.f32 0.5, %v4222_v22  ;;  %v1509_v47 = vmul.f32 -2.0, %v1339_v10  ;;  %v2647_v28 = vunpack.c.l.bf16 %v2629_v37  ;;  %vm1344_vm3 = vcmp.eq.f32.partialorder %v5092_v33, 0.0  ;;  %6922 = vst [vmem:[#allocation47_spill] sm:$0xff] %v5185_v59  ;;  %v5194_v16 = vld [vmem:[%s4880_s14 + $0x230] sm:$0xff] }
 0x21f   : > { %v4226_v20 = vpop.eup %4225  ;;  %v1861_v22 = vmul.f32 0.15, %v4224_v57  ;;  %v5168_v35 = vmul.f32 0.2, %v1665_v6  ;;  %4235 = vpow2.f32 %v1807_v58  ;;  %v1717_v36 = vmul.f32 %v3816_v55, %v3816_v55  ;;  %6925 = vst [vmem:[#allocation50_spill] sm:$0xff] %v5194_v16 }
 0x220   : > { %v1341_v40 = vmul.f32 %v4226_v20, %v5092_v33  ;;  %v1634_v24 = vadd.f32 0.5, %v1602_v60  ;;  %v1143_v20 = vadd.s32 48, %v4924_v52  ;;  %v1549_v39 = vmul.f32 1.442695, %v1509_v47 }
 0x221   : > { %6918 = vst [vmem:[#allocation43_spill] sm:$0xff] %v5168_v35  ;;  %v4228_v10 = vpop.eup %4227  ;;  %v5176_v57 = vadd.f32 %v1234_v43, %v4934_v12  ;;  %v5178_v46 = vadd.f32 1.0, %v1665_v6  ;;  %v5180_v60 = vadd.f32 1.0, %v2375_v63  ;;  %v5182_v58 = vsub.f32 1.0, %v2647_v28  ;;  %v5199_v28 = vld [vmem:[%s4880_s14 + $0x38] sm:$0xff] }
 0x222   : > { %v1343_v3 = vsel %vm1342_vm2, %v5092_v33, %v1341_v40  ;;  %v4230_v53 = vpop.eup %4229  ;;  %v5188_v47 = vadd.f32 1.0, %v1861_v22  ;;  %v1603_v55 = vmul.f32 0.5, %v4228_v10  ;;  %v5196_v6 = vsub.f32 1.0, %v1861_v22  ;;  %6927 = vst [vmem:[#allocation52_spill] sm:$0xff] %v5199_v28  ;;  %v5205_v10 = vld [vmem:[%s4880_s14 + $0x138] sm:$0xff] }
 0x223   : > { %v1346_v13 = vsel %vm1344_vm3, %v1345_v30, %v1343_v3  ;;  %6919 = vst [vmem:[#allocation44_spill] sm:$0xff] %v5178_v46  ;;  %6920 = vst [vmem:[#allocation45_spill] sm:$0xff] %v5180_v60  ;;  %v2648_v30 = vunpack.c.h.bf16 %v2629_v37  ;;  %v5191_v3 = vld [vmem:[%s4880_s14 + $0x130] sm:$0xff]  ;;  %v1666_v63 = vmul.f32 0.1, %v1634_v24  ;;  %4237 = vrsqrt.f32 %v5176_v57 }
 0x224   : > { %6921 = vst [vmem:[#allocation46_spill] sm:$0xff] %v5182_v58  ;;  %v1510_v33 = vmul.f32 -2.0, %v1346_v13  ;;  %6923 = vst [vmem:[#allocation48_spill] sm:$0xff] %v5188_v47  ;;  %v1160_v13 = vadd.s32 %v4926_v54, %v1143_v20  ;;  %v1862_v40 = vmul.f32 0.15, %v4230_v53  ;;  %4239 = vpow2.f32 %v1549_v39  ;;  %v5220_v39 = vld [vmem:[%s4880_s14 + $0x238] sm:$0xff] }
 0x225   : > { %6924 = vst [vmem:[#allocation49_spill] sm:$0xff] %v5191_v3  ;;  %6926 = vst [vmem:[#allocation51_spill] sm:$0xff] %v5196_v6  ;;  %v4232_v58 = vpop.eup %4231  ;;  %v1737_v47 = vadd.f32 %v1717_v36, %v4953_v61  ;;  %v5211_v6 = vld [vmem:[%s4901_s25 + $0x18] sm:$0xff]  ;;  %v5213_v46 = vsub.f32 1.0, %v2648_v30  ;;  %v1635_v20 = vadd.f32 0.5, %v1603_v55  ;;  %v5217_v37 = vadd.f32 %v1234_v43, %v4938_v15 }
 0x226   : > { %6928 = vst [vmem:[#allocation53_spill] sm:$0xff] %v5205_v10  ;;  %v4234_v35 = vpop.eup %4233  ;;  %v1551_v60 = vmul.f32 1.442695, %v1510_v33  ;;  %v2376_v59 = vmul.f32 0.3, %v1666_v63  ;;  %6930 = vst [vmem:[#allocation55_spill] sm:$0xff] %v5220_v39  ;;  %v1738_v22 = vadd.f32 %v1717_v36, %v4958_v5  ;;  %v1176_v3 = vcvt.s32.f32 %v1160_v13 }
 0x227   : > { %6929 = vst [vmem:[#allocation54_spill] sm:$0xff] %v5213_v46  ;;  %v5224_v24 = vmul.f32 0.2, %v1666_v63  ;;  %v2649_v33 = vunpack.c.l.bf16 %v5211_v6  ;;  %v1604_v30 = vmul.f32 0.5, %v4234_v35  ;;  %v1769_v16 = vmul.f32 -1.3888888, %v1737_v47 }
 0x228   : > { %v5227_v46 = vadd.f32 1.0, %v1666_v63  ;;  %v5229_v53 = vadd.f32 1.0, %v1862_v40  ;;  %v1863_v43 = vmul.f32 0.15, %v4232_v58  ;;  %4241 = vpow2.f32 %v1551_v60  ;;  %v5252_v63 = vld [vmem:[%s4880_s14 + $0x140] sm:$0xff] }
 0x229   : > { %6931 = vst [vmem:[#allocation56_spill] sm:$0xff] %v5224_v24  ;;  %v4236_v55 = vpop.eup %4235  ;;  %v5231_v28 = vsub.f32 1.0, %v1862_v40  ;;  %v1667_v45 = vmul.f32 0.1, %v1635_v20  ;;  %4243 = vrsqrt.f32 %v5217_v37  ;;  %v5235_v13 = vadd.f32 1.0, %v2376_v59  ;;  %v5246_v59 = vld [vmem:[%s4880_s14 + $0x40] sm:$0xff] }
 0x22a   : > { %6932 = vst [vmem:[#allocation57_spill] sm:$0xff] %v5227_v46  ;;  %6933 = vst [vmem:[#allocation58_spill] sm:$0xff] %v5229_v53  ;;  %v1770_v10 = vmul.f32 -1.3888888, %v1738_v22  ;;  %v3817_v35 = vadd.f32 0.25, %v5144_v17  ;;  %v5239_v58 = vsub.f32 1.0, %v2649_v33  ;;  %v2650_v24 = vunpack.c.h.bf16 %v5211_v6 }
 0x22b   : > { %6934 = vst [vmem:[#allocation59_spill] sm:$0xff] %v5231_v28  ;;  %6935 = vst [vmem:[#allocation60_spill] sm:$0xff] %v5235_v13  ;;  %v1197_v47 = vmul.f32 0.007843138, %v1176_v3  ;;  %v1636_v60 = vadd.f32 0.5, %v1604_v30  ;;  %v5241_v20 = vadd.f32 1.0, %v1863_v43 }
 0x22c   : > { %6936 = vst [vmem:[#allocation61_spill] sm:$0xff] %v5239_v58  ;;  %v1809_v40 = vmul.f32 1.442695, %v1769_v16  ;;  %v5243_v36 = vsub.f32 1.0, %v1863_v43  ;;  %v1864_v39 = vmul.f32 0.15, %v4236_v55  ;;  %v1718_v55 = vmul.f32 %v3817_v35, %v3817_v35 }
 0x22d   : > { %v4238_v53 = vpop.eup %4237  ;;  %6937 = vst [vmem:[#allocation62_spill] sm:$0xff] %v5241_v20  ;;  %6939 = vst [vmem:[#allocation64_spill] sm:$0xff] %v5246_v59  ;;  %vm1349_vm4 = vcmp.eq.f32.partialorder %v5176_v57, inf  ;;  %v2377_v17 = vmul.f32 0.3, %v1667_v45  ;;  %v1352_v16 = vand.u32 2147483648, %v5176_v57 }
 0x22e   : > { %6938 = vst [vmem:[#allocation63_spill] sm:$0xff] %v5243_v36  ;;  %v4240_v22 = vpop.eup %4239  ;;  %v5249_v3 = vmul.f32 0.2, %v1667_v45  ;;  %6941 = vst [vmem:[#allocation66_spill] sm:$0xff] %v5252_v63  ;;  %v1348_v33 = vmul.f32 %v4238_v53, %v5176_v57  ;;  %v5257_v30 = vld [vmem:[%s4880_s14 + $0x240] sm:$0xff]  ;;  %vm1351_vm5 = vcmp.eq.f32.partialorder %v5176_v57, 0.0  ;;  %4245 = vpow2.f32 %v1809_v40 }
 0x22f   : > { %6942 = vst [vmem:[#allocation67_spill] sm:$0xff] %v5257_v30  ;;  %v1811_v20 = vmul.f32 1.442695, %v1770_v10  ;;  %v3798_v43 = vadd.f32 -1.0, %v1197_v47  ;;  %v5260_v36 = vadd.f32 1.0, %v1667_v45  ;;  %v1605_v13 = vmul.f32 0.5, %v4240_v22 }
 0x230   : > { %6940 = vst [vmem:[#allocation65_spill] sm:$0xff] %v5249_v3  ;;  %v1668_v58 = vmul.f32 0.1, %v1636_v60  ;;  %v1350_v10 = vsel %vm1349_vm4, %v5176_v57, %v1348_v33  ;;  %v5268_v46 = vadd.f32 1.0, %v2377_v17  ;;  %v5273_v40 = vld [vmem:[%s4880_s14 + $0x48] sm:$0xff]  ;;  %v1739_v22 = vadd.f32 %v1718_v55, %v4953_v61 }
 0x231   : > { %6943 = vst [vmem:[#allocation68_spill] sm:$0xff] %v5260_v36  ;;  %v1353_v47 = vsel %vm1351_vm5, %v1352_v16, %v1350_v10  ;;  %4247 = vpow2.f32 %v1811_v20  ;;  %6945 = vst [vmem:[#allocation70_spill] sm:$0xff] %v5273_v40  ;;  %v1235_v53 = vmul.f32 %v3798_v43, %v3798_v43  ;;  %vm1356_vm6 = vcmp.eq.f32.partialorder %v5217_v37, inf  ;;  %v5282_v35 = vld [vmem:[%s4880_s14 + $0x148] sm:$0xff] }
 0x232   : > { %6944 = vst [vmem:[#allocation69_spill] sm:$0xff] %v5268_v46  ;;  %v4242_v60 = vpop.eup %4241  ;;  %v1511_v6 = vmul.f32 -2.0, %v1353_v47  ;;  %v5276_v63 = vadd.f32 1.0, %v1668_v58  ;;  %v2378_v57 = vmul.f32 0.3, %v1668_v58  ;;  %v1637_v33 = vadd.f32 0.5, %v1605_v13 }
 0x233   : > { %v4244_v28 = vpop.eup %4243  ;;  %v5278_v17 = vmul.f32 0.2, %v1668_v58  ;;  %6948 = vst [vmem:[#allocation73_spill] sm:$0xff] %v5282_v35  ;;  %v1359_v20 = vand.u32 2147483648, %v5217_v37  ;;  %v1144_v10 = vadd.s32 56, %v4924_v52  ;;  %v5286_v47 = vsub.f32 1.0, %v2650_v24 }
 0x234   : > { %6946 = vst [vmem:[#allocation71_spill] sm:$0xff] %v5276_v63  ;;  %v1553_v16 = vmul.f32 1.442695, %v1511_v6  ;;  %v1355_v30 = vmul.f32 %v4244_v28, %v5217_v37  ;;  %vm1358_vm7 = vcmp.eq.f32.partialorder %v5217_v37, 0.0  ;;  %v1606_v58 = vmul.f32 0.5, %v4242_v60  ;;  %v5312_v63 = vld [vmem:[%s4880_s14 + $0x248] sm:$0xff] }
 0x235   : > { %6947 = vst [vmem:[#allocation72_spill] sm:$0xff] %v5278_v17  ;;  %6949 = vst [vmem:[#allocation74_spill] sm:$0xff] %v5286_v47  ;;  %v1771_v59 = vmul.f32 -1.3888888, %v1739_v22  ;;  %v1740_v13 = vadd.f32 %v1718_v55, %v4958_v5  ;;  %v5293_v6 = vadd.f32 %v1235_v53, %v4934_v12  ;;  %v5300_v45 = vadd.f32 %v1235_v53, %v4938_v15  ;;  %v2631_v22 = vld [vmem:[%s4901_s25 + $0x20] sm:$0xff] }
 0x236   : > { %4249 = vpow2.f32 %v1553_v16  ;;  %v1357_v24 = vsel %vm1356_vm6, %v5217_v37, %v1355_v30  ;;  %v5302_v28 = vadd.f32 1.0, %v2378_v57  ;;  %v1669_v60 = vmul.f32 0.1, %v1637_v33  ;;  %6953 = vst [vmem:[#allocation78_spill] sm:$0xff] %v5312_v63 }
 0x237   : > { %v1360_v40 = vsel %vm1358_vm7, %v1359_v20, %v1357_v24  ;;  %v1161_v55 = vadd.s32 %v4926_v54, %v1144_v10  ;;  %v5307_v46 = vadd.f32 1.0, %v1864_v39  ;;  %v5309_v16 = vsub.f32 1.0, %v1864_v39  ;;  %v5330_v39 = vld [vmem:[%s4880_s14 + $0x250] sm:$0xff] }
 0x238   : > { %6950 = vst [vmem:[#allocation75_spill] sm:$0xff] %v5302_v28  ;;  %v4246_v47 = vpop.eup %4245  ;;  %v1512_v37 = vmul.f32 -2.0, %v1360_v40  ;;  %v1638_v30 = vadd.f32 0.5, %v1606_v58  ;;  %v1813_v53 = vmul.f32 1.442695, %v1771_v59  ;;  %4251 = vrsqrt.f32 %v5293_v6  ;;  %v5323_v59 = vld [vmem:[%s4880_s14 + $0x150] sm:$0xff] }
 0x239   : > { %6951 = vst [vmem:[#allocation76_spill] sm:$0xff] %v5307_v46  ;;  %6952 = vst [vmem:[#allocation77_spill] sm:$0xff] %v5309_v16  ;;  %v1772_v57 = vmul.f32 -1.3888888, %v1740_v13  ;;  %v2651_v33 = vunpack.c.l.bf16 %v2631_v22  ;;  %v3818_v10 = vadd.f32 0.25, %v3798_v43  ;;  %4253 = vrsqrt.f32 %v5300_v45  ;;  %v5320_v16 = vld [vmem:[%s4880_s14 + $0x50] sm:$0xff] }
 0x23a   : > { %v1555_v20 = vmul.f32 1.442695, %v1512_v37  ;;  %v1865_v3 = vmul.f32 0.15, %v4246_v47  ;;  %v2379_v35 = vmul.f32 0.3, %v1669_v60  ;;  %v1177_v46 = vcvt.s32.f32 %v1161_v55 }
 0x23b   : > { %v4248_v24 = vpop.eup %4247  ;;  %v5317_v40 = vmul.f32 0.2, %v1669_v60  ;;  %v2652_v58 = vunpack.c.h.bf16 %v2631_v22  ;;  %6955 = vst [vmem:[#allocation80_spill] sm:$0xff] %v5320_v16  ;;  %6956 = vst [vmem:[#allocation81_spill] sm:$0xff] %v5323_v59  ;;  %v1719_v13 = vmul.f32 %v3818_v10, %v3818_v10  ;;  %v1670_v37 = vmul.f32 0.1, %v1638_v30 }
 0x23c   : > { %4255 = vpow2.f32 %v1555_v20  ;;  %v1815_v43 = vmul.f32 1.442695, %v1772_v57  ;;  %v1198_v17 = vmul.f32 0.007843138, %v1177_v46  ;;  %v5325_v28 = vadd.f32 1.0, %v1669_v60  ;;  %6958 = vst [vmem:[#allocation83_spill] sm:$0xff] %v5330_v39 }
 0x23d   : > { %6954 = vst [vmem:[#allocation79_spill] sm:$0xff] %v5317_v40  ;;  %4257 = vpow2.f32 %v1813_v53  ;;  %v5327_v47 = vsub.f32 1.0, %v2651_v33  ;;  %v1866_v36 = vmul.f32 0.15, %v4248_v24  ;;  %v1741_v55 = vadd.f32 %v1719_v13, %v4953_v61  ;;  %v2632_v39 = vld [vmem:[%s4901_s25 + $0x28] sm:$0xff]  ;;  %v5385_v40 = vld [vmem:[%s4880_s14 + $0x258] sm:$0xff] }
 0x23e   : > { %v5333_v22 = vadd.f32 1.0, %v2379_v35  ;;  %v5335_v63 = vadd.f32 1.0, %v1865_v3  ;;  %v5337_v0 = vsub.f32 1.0, %v1865_v3  ;;  %v3799_v20 = vadd.f32 -1.0, %v1198_v17  ;;  %6968 = vst [vmem:[#allocation93_spill] sm:$0xff] %v5385_v40 }
 0x23f   : > { %6957 = vst [vmem:[#allocation82_spill] sm:$0xff] %v5327_v47  ;;  %v5340_v46 = vsub.f32 1.0, %v2652_v58  ;;  %v5344_v33 = vadd.f32 1.0, %v1670_v37  ;;  %v2380_v10 = vmul.f32 0.3, %v1670_v37  ;;  %4259 = vpow2.f32 %v1815_v43  ;;  %v5381_v47 = vld [vmem:[%s4880_s14 + $0x158] sm:$0xff] }
 0x240   : > { %6959 = vst [vmem:[#allocation84_spill] sm:$0xff] %v5335_v63  ;;  %6960 = vst [vmem:[#allocation85_spill] sm:$0xff] %v5337_v0  ;;  %v4250_v30 = vpop.eup %4249  ;;  %v5347_v24 = vmul.f32 0.2, %v1670_v37  ;;  %v5349_v3 = vadd.f32 1.0, %v1866_v36  ;;  %v5351_v17 = vsub.f32 1.0, %v1866_v36  ;;  %v1742_v57 = vadd.f32 %v1719_v13, %v4958_v5 }
 0x241   : > { %6961 = vst [vmem:[#allocation86_spill] sm:$0xff] %v5340_v46  ;;  %6962 = vst [vmem:[#allocation87_spill] sm:$0xff] %v5344_v33  ;;  %v1773_v63 = vmul.f32 -1.3888888, %v1741_v55  ;;  %v1607_v58 = vmul.f32 0.5, %v4250_v30  ;;  %vm1363_vm8 = vcmp.eq.f32.partialorder %v5293_v6, inf  ;;  %v1236_v60 = vmul.f32 %v3799_v20, %v3799_v20 }
 0x242   : > { %6963 = vst [vmem:[#allocation88_spill] sm:$0xff] %v5347_v24  ;;  %6964 = vst [vmem:[#allocation89_spill] sm:$0xff] %v5349_v3  ;;  %v4252_v53 = vpop.eup %4251  ;;  %vm1365_vm9 = vcmp.eq.f32.partialorder %v5293_v6, 0.0  ;;  %v1366_v37 = vand.u32 2147483648, %v5293_v6  ;;  %v3819_v43 = vadd.f32 0.25, %v3799_v20  ;;  %vm1370_vm10 = vcmp.eq.f32.partialorder %v5300_v45, inf }
 0x243   : > { %6965 = vst [vmem:[#allocation90_spill] sm:$0xff] %v5351_v17  ;;  %v4254_v59 = vpop.eup %4253  ;;  %v1362_v16 = vmul.f32 %v4252_v53, %v5293_v6  ;;  %v5361_v55 = vadd.f32 %v1236_v60, %v4934_v12  ;;  %v1145_v30 = vadd.s32 64, %v4924_v52  ;;  %v5364_v13 = vadd.f32 1.0, %v2380_v10  ;;  %v5378_v0 = vld [vmem:[%s4880_s14 + $0x58] sm:$0xff]  ;;  %6967 = vst [vmem:[#allocation92_spill] sm:$0xff] %v5381_v47 }
 0x244   : > { %v1369_v36 = vmul.f32 %v4254_v59, %v5300_v45  ;;  %v1817_v3 = vmul.f32 1.442695, %v1773_v63  ;;  %v1373_v20 = vand.u32 2147483648, %v5300_v45  ;;  %v1639_v59 = vadd.f32 0.5, %v1607_v58 }
 0x245   : > { %6966 = vst [vmem:[#allocation91_spill] sm:$0xff] %v5364_v13  ;;  %v1364_v53 = vsel %vm1363_vm8, %v5293_v6, %v1362_v16  ;;  %vm1372_vm11 = vcmp.eq.f32.partialorder %v5300_v45, 0.0  ;;  %v1774_v33 = vmul.f32 -1.3888888, %v1742_v57  ;;  %4261 = vrsqrt.f32 %v5361_v55 }
 0x246   : > { %v4256_v35 = vpop.eup %4255  ;;  %v1367_v52 = vsel %vm1365_vm9, %v1366_v37, %v1364_v53  ;;  %v1371_v10 = vsel %vm1370_vm10, %v5300_v45, %v1369_v36  ;;  %v5374_v13 = vmul.f32 %v3819_v43, %v3819_v43  ;;  %v2653_v16 = vunpack.c.l.bf16 %v2632_v39 }
 0x247   : > { %v4258_v17 = vpop.eup %4257  ;;  %v1608_v46 = vmul.f32 0.5, %v4256_v35  ;;  %v1513_v35 = vmul.f32 -2.0, %v1367_v52  ;;  %v1162_v58 = vadd.s32 %v4926_v54, %v1145_v30  ;;  %4263 = vpow2.f32 %v1817_v3 }
 0x248   : > { %v1867_v57 = vmul.f32 0.15, %v4258_v17  ;;  %v1374_v45 = vsel %vm1372_vm11, %v1373_v20, %v1371_v10  ;;  %v5388_v6 = vadd.f32 %v1236_v60, %v4938_v15  ;;  %v1819_v63 = vmul.f32 1.442695, %v1774_v33  ;;  %v5398_v60 = vld [vmem:[%s4880_s14 + $0x60] sm:$0xff] }
 0x249   : > { %v4260_v37 = vpop.eup %4259  ;;  %v1640_v43 = vadd.f32 0.5, %v1608_v46  ;;  %v1557_v36 = vmul.f32 1.442695, %v1513_v35  ;;  %v1514_v53 = vmul.f32 -2.0, %v1374_v45  ;;  %v1671_v24 = vmul.f32 0.1, %v1639_v59 }
 0x24a   : > { %v1743_v17 = vadd.f32 %v5374_v13, %v4953_v61  ;;  %v5394_v3 = vsub.f32 1.0, %v2653_v16  ;;  %v2654_v10 = vunpack.c.h.bf16 %v2632_v39  ;;  %6970 = vst [vmem:[#allocation95_spill] sm:$0xff] %v5398_v60  ;;  %v5401_v46 = vld [vmem:[%s4880_s14 + $0x160] sm:$0xff]  ;;  %v1868_v33 = vmul.f32 0.15, %v4260_v37 }
 0x24b   : > { %4265 = vpow2.f32 %v1557_v36  ;;  %6971 = vst [vmem:[#allocation96_spill] sm:$0xff] %v5401_v46  ;;  %v1559_v59 = vmul.f32 1.442695, %v1514_v53  ;;  %v5404_v45 = vadd.f32 1.0, %v1867_v57  ;;  %v1672_v30 = vmul.f32 0.1, %v1640_v43 }
 0x24c   : > { %6969 = vst [vmem:[#allocation94_spill] sm:$0xff] %v5394_v3  ;;  %v1775_v35 = vmul.f32 -1.3888888, %v1743_v17  ;;  %4267 = vrsqrt.f32 %v5388_v6  ;;  %v1178_v16 = vcvt.s32.f32 %v1162_v58  ;;  %v2381_v20 = vmul.f32 0.3, %v1671_v24  ;;  %v5413_v37 = vld [vmem:[%s4880_s14 + $0x260] sm:$0xff] }
 0x24d   : > { %6972 = vst [vmem:[#allocation97_spill] sm:$0xff] %v5404_v45  ;;  %4269 = vpow2.f32 %v1819_v63  ;;  %v5406_v39 = vmul.f32 0.2, %v1671_v24  ;;  %v5408_v36 = vsub.f32 1.0, %v1867_v57  ;;  %v5410_v52 = vsub.f32 1.0, %v2654_v10  ;;  %6976 = vst [vmem:[#allocation101_spill] sm:$0xff] %v5413_v37 }
 0x24e   : > { %4271 = vpow2.f32 %v1559_v59  ;;  %v1821_v54 = vmul.f32 1.442695, %v1775_v35  ;;  %v5417_v61 = vadd.f32 1.0, %v1868_v33  ;;  %v5419_v63 = vsub.f32 1.0, %v1868_v33  ;;  %v5422_v58 = vld [vmem:[%s4880_s14 + $0x68] sm:$0xff] }
 0x24f   : > { %6973 = vst [vmem:[#allocation98_spill] sm:$0xff] %v5406_v39  ;;  %6974 = vst [vmem:[#allocation99_spill] sm:$0xff] %v5408_v36  ;;  %v4262_v43 = vpop.eup %4261  ;;  %v5425_v57 = vld [vmem:[%s4880_s14 + $0x168] sm:$0xff]  ;;  %vm1377_vm12 = vcmp.eq.f32.partialorder %v5361_v55, inf  ;;  %v1380_v10 = vand.u32 2147483648, %v5361_v55  ;;  %vm1379_vm13 = vcmp.eq.f32.partialorder %v5361_v55, 0.0 }
 0x250   : > { %6975 = vst [vmem:[#allocation100_spill] sm:$0xff] %v5410_v52  ;;  %6977 = vst [vmem:[#allocation102_spill] sm:$0xff] %v5417_v61  ;;  %v2382_v59 = vmul.f32 0.3, %v1672_v30  ;;  %v5430_v52 = vld [vmem:[%s4880_s14 + $0x268] sm:$0xff]  ;;  %v1376_v17 = vmul.f32 %v4262_v43, %v5361_v55  ;;  %v5434_v46 = vadd.f32 1.0, %v1671_v24  ;;  %4273 = vpow2.f32 %v1821_v54 }
 0x251   : > { %6978 = vst [vmem:[#allocation103_spill] sm:$0xff] %v5419_v63  ;;  %6979 = vst [vmem:[#allocation104_spill] sm:$0xff] %v5425_v57  ;;  %v1199_v35 = vmul.f32 0.007843138, %v1178_v16  ;;  %v4264_v53 = vpop.eup %4263  ;;  %v5436_v33 = vadd.f32 1.0, %v2381_v20  ;;  %v2633_v63 = vld [vmem:[%s4901_s25 + $0x30] sm:$0xff] }
 0x252   : > { %6980 = vst [vmem:[#allocation105_spill] sm:$0xff] %v5430_v52  ;;  %v5441_v45 = vmul.f32 0.2, %v1672_v30  ;;  %v1378_v43 = vsel %vm1377_vm12, %v5361_v55, %v1376_v17  ;;  %v5449_v60 = vadd.f32 1.0, %v1672_v30  ;;  %v5451_v61 = vadd.f32 1.0, %v2382_v59  ;;  %v5454_v36 = vld [vmem:[%s4880_s14 + $0x70] sm:$0xff] }
 0x253   : > { %6981 = vst [vmem:[#allocation106_spill] sm:$0xff] %v5436_v33  ;;  %v1381_v3 = vsel %vm1379_vm13, %v1380_v10, %v1378_v43  ;;  %v5447_v20 = vadd.f32 -1.0, %v1199_v35  ;;  %v1869_v37 = vmul.f32 0.15, %v4264_v53  ;;  %v2655_v39 = vunpack.c.l.bf16 %v2633_v63  ;;  %6983 = vst [vmem:[#allocation108_spill] sm:$0xff] %v5454_v36  ;;  %v2634_v36 = vld [vmem:[%s4901_s25 + $0x38] sm:$0xff] }
 0x254   : > { %vm1384_vm14 = vcmp.eq.f32.partialorder %v5388_v6, inf  ;;  %v1387_v54 = vand.u32 2147483648, %v5388_v6  ;;  %v1744_v55 = vadd.f32 %v5374_v13, %v4958_v5  ;;  %v1515_v10 = vmul.f32 -2.0, %v1381_v3  ;;  %v5468_v5 = vld [vmem:[%s4880_s14 + $0x170] sm:$0xff] }
 0x255   : > { %6982 = vst [vmem:[#allocation107_spill] sm:$0xff] %v5447_v20  ;;  %v4266_v40 = vpop.eup %4265  ;;  %vm1386_vm15 = vcmp.eq.f32.partialorder %v5388_v6, 0.0  ;;  %v2656_v35 = vunpack.c.h.bf16 %v2633_v63  ;;  %v1237_v24 = vmul.f32 %v5447_v20, %v5447_v20  ;;  %v5465_v16 = vsub.f32 1.0, %v2655_v39  ;;  %6985 = vst [vmem:[#allocation110_spill] sm:$0xff] %v5468_v5 }
 0x256   : > { %v4268_v33 = vpop.eup %4267  ;;  %v1609_v47 = vmul.f32 0.5, %v4266_v40  ;;  %v1776_v43 = vmul.f32 -1.3888888, %v1744_v55  ;;  %v5476_v52 = vsub.f32 1.0, %v1869_v37  ;;  %v1561_v39 = vmul.f32 1.442695, %v1515_v10 }
 0x257   : > { %v4270_v17 = vpop.eup %4269  ;;  %v1383_v59 = vmul.f32 %v4268_v33, %v5388_v6  ;;  %6984 = vst [vmem:[#allocation109_spill] sm:$0xff] %v5465_v16  ;;  %v5479_v16 = vld [vmem:[%s4880_s14 + $0x270] sm:$0xff]  ;;  %v5481_v57 = vsub.f32 1.0, %v2656_v35 }
 0x258   : > { %v4272_v53 = vpop.eup %4271  ;;  %v1641_v40 = vadd.f32 0.5, %v1609_v47  ;;  %v5474_v47 = vadd.f32 1.0, %v1869_v37  ;;  %v1870_v63 = vmul.f32 0.15, %v4270_v17  ;;  %6987 = vst [vmem:[#allocation112_spill] sm:$0xff] %v5479_v16  ;;  %4275 = vpow2.f32 %v1561_v39 }
 0x259   : > { %v1610_v13 = vmul.f32 0.5, %v4272_v53  ;;  %v1385_v33 = vsel %vm1384_vm14, %v5388_v6, %v1383_v59  ;;  %6988 = vst [vmem:[#allocation113_spill] sm:$0xff] %v5481_v57  ;;  %v1823_v6 = vmul.f32 1.442695, %v1776_v43  ;;  %v5486_v59 = vadd.f32 %v1237_v24, %v4934_v12  ;;  %v5496_v43 = vld [vmem:[%s4880_s14 + $0x78] sm:$0xff] }
 0x25a   : > { %v1673_v30 = vmul.f32 0.1, %v1641_v40  ;;  %6986 = vst [vmem:[#allocation111_spill] sm:$0xff] %v5474_v47  ;;  %v1388_v55 = vsel %vm1386_vm15, %v1387_v54, %v1385_v33  ;;  %v4274_v54 = vpop.eup %4273  ;;  %v5490_v40 = vadd.f32 1.0, %v1870_v63  ;;  %v2657_v33 = vunpack.c.l.bf16 %v2634_v36  ;;  %6991 = vst [vmem:[#allocation116_spill] sm:$0xff] %v5496_v43  ;;  %v5499_v12 = vld [vmem:[%s4880_s14 + $0x178] sm:$0xff] }
 0x25b   : > { %v1642_v20 = vadd.f32 0.5, %v1610_v13  ;;  %v1516_v53 = vmul.f32 -2.0, %v1388_v55  ;;  %6989 = vst [vmem:[#allocation114_spill] sm:$0xff] %v5486_v59  ;;  %v5492_v13 = vsub.f32 1.0, %v1870_v63  ;;  %6992 = vst [vmem:[#allocation117_spill] sm:$0xff] %v5499_v12  ;;  %v5504_v47 = vld [vmem:[%s4880_s14 + $0x278] sm:$0xff]  ;;  %4277 = vrsqrt.f32 %v5486_v59 }
 0x25c   : > { %v2383_v37 = vmul.f32 0.3, %v1673_v30  ;;  %v5488_v17 = vmul.f32 0.2, %v1673_v30  ;;  %6990 = vst [vmem:[#allocation115_spill] sm:$0xff] %v5490_v40  ;;  %6993 = vst [vmem:[#allocation118_spill] sm:$0xff] %v5504_v47  ;;  %4279 = vpow2.f32 %v1823_v6 }
 0x25d   : > { %v1674_v10 = vmul.f32 0.1, %v1642_v20  ;;  %v1563_v3 = vmul.f32 1.442695, %v1516_v53  ;;  %v1871_v57 = vmul.f32 0.15, %v4274_v54  ;;  %v5507_v20 = vadd.f32 %v1237_v24, %v4938_v15 }
 0x25e   : > { %v5510_v63 = vadd.f32 1.0, %v1673_v30  ;;  %v5512_v36 = vadd.f32 1.0, %v2383_v37  ;;  %v5517_v16 = vsub.f32 1.0, %v2657_v33  ;;  %v6998_v40 = vsub.f32 1.0, %v4968_v26  ;;  %v4378_v12 = vld [vmem:[%s4880_s14 + $0x100] sm:$0xff]  ;;  %v4380_v43 = vld [vmem:[%s4880_s14 + $0x8] sm:$0xff] }
 0x25f   : > { %v2384_v55 = vmul.f32 0.3, %v1674_v10  ;;  %v5501_v5 = vmul.f32 0.2, %v1674_v10  ;;  %6994 = vst [vmem:[#allocation119_spill] sm:$0xff] %v5507_v20  ;;  %v5515_v35 = vadd.f32 1.0, %v1674_v10  ;;  %4281 = vpow2.f32 %v1563_v3 }
 0x260   : > { %6995 = vst [vmem:[#allocation120_spill] sm:$0xff] %v5517_v16  ;;  %v5525_v33 = vadd.f32 1.0, %v1871_v57  ;;  %v5527_v39 = vsub.f32 1.0, %v1871_v57  ;;  %v7000_v54 = vsub.f32 1.05, %v4972_v29  ;;  %v7001_v10 = vsub.f32 1.0, %v4985_v41 }
 0x261   : > { %v5521_v20 = vadd.f32 1.0, %v2384_v55  ;;  %v6999_v55 = vsub.f32 1.0, %v4976_v34  ;;  %v7002_v57 = vsub.f32 1.0, %v4988_v42  ;;  %v7003_v26 = vsub.f32 1.05, %v4995_v50  ;;  %v4377_v34 = vld [vmem:[%s4880_s14] sm:$0xff] }
 0x262   : > { %6996 = vst [vmem:[#allocation121_spill] sm:$0xff] %v5525_v33  ;;  %6997 = vst [vmem:[#allocation122_spill] sm:$0xff] %v5527_v39  ;;  %v4381_v42 = vld [vmem:[%s4880_s14 + $0x108] sm:$0xff] }
 0x263   : > { %v4382_v16 = vld [vmem:[%s4880_s14 + $0x208] sm:$0xff] }
 0x298   : > { %v1024_v53 = vpop.f32.mrb[0].mxu1 }
 0x299   : > { %v1103_v24 = vmul.f32 0.2, %v1024_v53  ;;  %v1026_v15 = vpop.f32.mrb[1].mxu1 }
 0x29a   : > { %v1104_v37 = vmul.f32 0.2, %v1026_v15  ;;  %v1028_v6 = vpop.f32.mrb[2].mxu1 }
 0x29b   : > { %v2019_v53 = vmul.f32 %v6998_v40, %v1103_v24  ;;  %v2115_v3 = vmul.f32 %v6999_v55, %v1103_v24  ;;  %v2211_v30 = vmul.f32 %v7000_v54, %v1103_v24  ;;  %v1105_v15 = vmul.f32 0.2, %v1028_v6  ;;  %v1030_v59 = vpop.f32.mrb[3].mxu1  ;;  %v4379_v54 = vld [vmem:[%s4880_s14 + $0x200] sm:$0xff] }
 0x29c   : > { %v2020_v47 = vmul.f32 %v7001_v10, %v1104_v37  ;;  %v2116_v39 = vmul.f32 %v7002_v57, %v1104_v37  ;;  %v2212_v40 = vmul.f32 %v7003_v26, %v1104_v37  ;;  %v5541_v33 = vmul.f32 0.2, %v1030_v59  ;;  %v5553_v26 = vpop.eup %4275 }
 0x29d   : > { %v2051_v55 = vadd.f32 %v4377_v34, %v2019_v53  ;;  %v2147_v29 = vadd.f32 %v4378_v12, %v2115_v3  ;;  %v2243_v24 = vadd.f32 %v4379_v54, %v2211_v30  ;;  %v7004_v6 = vsub.f32 1.0, %v4998_v51  ;;  %v4383_v3 = vld [vmem:[%s4880_s14 + $0x10] sm:$0xff] }
 0x29e   : > { %v2052_v10 = vadd.f32 %v4380_v43, %v2020_v47  ;;  %v2148_v57 = vadd.f32 %v4381_v42, %v2116_v39  ;;  %v2244_v50 = vadd.f32 %v4382_v16, %v2212_v40  ;;  %v7005_v59 = vsub.f32 1.0, %v5009_v2  ;;  %v5560_v47 = vpop.eup %4277  ;;  %v4384_v40 = vld [vmem:[%s4880_s14 + $0x110] sm:$0xff] }
 0x29f   : > { %v2021_v41 = vmul.f32 %v7004_v6, %v1105_v15  ;;  %v2307_v53 = vmul.f32 %v5004_v62, %v2051_v55  ;;  %v2435_v12 = vmul.f32 %v5011_v4, %v2147_v29  ;;  %v7006_v30 = vsub.f32 1.0, %v4992_v48  ;;  %v5569_v62 = vpop.eup %4279 }
 0x2a0   : > { %v2117_v37 = vmul.f32 %v7005_v59, %v1105_v15  ;;  %v2308_v43 = vmul.f32 %v5030_v49, %v2052_v10  ;;  %v2436_v16 = vmul.f32 %v5037_v44, %v2148_v57  ;;  %v7007_v2 = vsub.f32 1.0, %v5019_v19  ;;  %v5567_v6 = vpop.f32.mrb[4].mxu1  ;;  %v5578_v57 = vpop.eup %4281 }
 0x2a1   : > { %v2563_v51 = vmul.f32 %v7006_v30, %v2243_v24  ;;  %v2053_v34 = vadd.f32 %v4383_v3, %v2021_v41  ;;  %v2339_v48 = vmin.f32 %v2307_v53, 1.0  ;;  %v2467_v4 = vmin.f32 %v2435_v12, 1.0  ;;  %v5573_v41 = vpop.f32.mrb[5].mxu1  ;;  %v4385_v53 = vld [vmem:[%s4880_s14 + $0x210] sm:$0xff] }
 0x2a2   : > { %v2564_v39 = vmul.f32 %v7007_v2, %v2244_v50  ;;  %v2149_v54 = vadd.f32 %v4384_v40, %v2117_v37  ;;  %v7008_v29 = vsub.f32 1.05, %v5023_v23  ;;  %v2340_v49 = vmin.f32 %v2308_v43, 1.0  ;;  %v5576_v42 = vpop.f32.mrb[6].mxu1 }
 0x2a3   : > { %v2595_v55 = vmin.f32 %v2563_v51, 1.0  ;;  %v2468_v44 = vmin.f32 %v2436_v16, 1.0  ;;  %v2309_v19 = vmul.f32 %v5052_v11, %v2053_v34  ;;  %v2707_v50 = vmul.f32 %v5041_v1, %v2339_v48 }
 0x2a4   : > { %v2213_v24 = vmul.f32 %v7008_v29, %v1105_v15  ;;  %v2596_v10 = vmin.f32 %v2564_v39, 1.0  ;;  %v2739_v59 = vmul.f32 %v5041_v1, %v2467_v4  ;;  %v5584_v15 = vpop.f32.mrb[7].mxu1  ;;  %v2708_v12 = vmul.f32 %v5050_v9, %v2340_v49 }
 0x2a5   : > { %v2771_v37 = vmul.f32 %v5041_v1, %v2595_v55  ;;  %v2740_v30 = vmul.f32 %v5050_v9, %v2468_v44  ;;  %v2341_v51 = vmin.f32 %v2309_v19, 1.0  ;;  %v2867_v3 = vmul.f32 %v5048_v8, %v2707_v50 }
 0x2a6   : > { %v2245_v23 = vadd.f32 %v4385_v53, %v2213_v24  ;;  %v2772_v11 = vmul.f32 %v5050_v9, %v2596_v10  ;;  %v2899_v34 = vmul.f32 %v5046_v25, %v2707_v50  ;;  %v3027_v43 = vmul.f32 %v5048_v8, %v2739_v59 }
 0x2a7   : > { %v3059_v16 = vmul.f32 %v5046_v25, %v2739_v59  ;;  %v3187_v1 = vmul.f32 %v5048_v8, %v2771_v37  ;;  %v3219_v2 = vmul.f32 %v5046_v25, %v2771_v37  ;;  %v2868_v39 = vmul.f32 %v5063_v27, %v2708_v12 }
 0x2a8   : > { %v2900_v40 = vmul.f32 %v5061_v21, %v2708_v12  ;;  %v2931_v48 = vmul.f32 1.05, %v2899_v34  ;;  %v3028_v9 = vmul.f32 %v5063_v27, %v2740_v30  ;;  %v3060_v55 = vmul.f32 %v5061_v21, %v2740_v30  ;;  %v5601_v10 = vpop.f32.mrb[8].mxu1 }
 0x2a9   : > { %v3091_v4 = vmul.f32 1.03, %v3059_v16  ;;  %v3251_v29 = vmin.f32 %v3219_v2, 1.0  ;;  %v3188_v49 = vmul.f32 %v5063_v27, %v2772_v11  ;;  %v3220_v44 = vmul.f32 %v5061_v21, %v2772_v11  ;;  %v5604_v59 = vpop.f32.mrb[9].mxu1 }
 0x2aa   : > { %v2932_v24 = vmul.f32 1.05, %v2900_v40  ;;  %v2963_v8 = vmin.f32 %v2931_v48, 1.0  ;;  %v3092_v19 = vmul.f32 1.03, %v3060_v55  ;;  %v2437_v50 = vmul.f32 %v5054_v14, %v2149_v54  ;;  %v5608_v16 = vpop.f32.mrb[10].mxu1 }
 0x2ab   : > { %v3123_v25 = vmin.f32 %v3091_v4, 1.0  ;;  %v3283_v37 = vadd.f32 %v3251_v29, %v3187_v1  ;;  %v3252_v12 = vmin.f32 %v3220_v44, 1.0  ;;  %v7009_v30 = vsub.f32 1.0, %v5065_v32  ;;  %v5610_v40 = vpop.f32.mrb[11].mxu1 }
 0x2ac   : > { %v2964_v53 = vmin.f32 %v2932_v24, 1.0  ;;  %v2995_v27 = vadd.f32 %v2963_v8, %v2867_v3  ;;  %v3124_v11 = vmin.f32 %v3092_v19, 1.0  ;;  %v2469_v2 = vmin.f32 %v2437_v50, 1.0 }
 0x2ad   : > { %v2565_v34 = vmul.f32 %v7009_v30, %v2245_v23  ;;  %v3155_v21 = vadd.f32 %v3123_v25, %v3027_v43  ;;  %v3444_v48 = vmin.f32 %v3283_v37, 1.0  ;;  %v3284_v14 = vadd.f32 %v3252_v12, %v3188_v49  ;;  %v4386_v37 = vld [vmem:[%s4880_s14 + $0x18] sm:$0xff]  ;;  %v7012_v30 = vld [vmem:[#allocation30_spill] sm:$0xff] }
 0x2ae   : > { %v2996_v4 = vadd.f32 %v2964_v53, %v2868_v39  ;;  %v3315_v55 = vmin.f32 %v2995_v27, 1.0  ;;  %v3156_v29 = vadd.f32 %v3124_v11, %v3028_v9  ;;  %v2709_v24 = vmul.f32 %v5095_v7, %v2341_v51 }
 0x2af   : > { %v2597_v54 = vmin.f32 %v2565_v34, 1.0  ;;  %v3379_v1 = vmin.f32 %v3155_v21, 1.0  ;;  %3924 = vst [vmem:[%s5615_s13 + $0x200] sm:$0xff] %v3444_v48  ;;  %v3445_v23 = vmin.f32 %v3284_v14, 1.0  ;;  %v2741_v3 = vmul.f32 %v5095_v7, %v2469_v2 }
 0x2b0   : > { %v3316_v32 = vmin.f32 %v2996_v4, 1.0  ;;  %3347 = vst [vmem:[%s5615_s13] sm:$0xff] %v3315_v55  ;;  %v3380_v51 = vmin.f32 %v3156_v29, 1.0  ;;  %v2901_v39 = vmul.f32 %v5105_v18, %v2709_v24  ;;  %v7010_v9 = vsub.f32 1.0, %v5068_v56  ;;  %v5635_v50 = vpop.f32.mrb[12].mxu1  ;;  %v7014_v29 = vld [vmem:[#allocation32_spill] sm:$0xff] }
 0x2b1   : > { %v2773_v43 = vmul.f32 %v5095_v7, %v2597_v54  ;;  %3892 = vst [vmem:[%s5615_s13 + $0x100] sm:$0xff] %v3379_v1  ;;  %v5627_v44 = vmul.f32 0.5, %v5553_v26  ;;  %3925 = vst [vmem:[%s5615_s13 + $0x208] sm:$0xff] %v3445_v23  ;;  %v2869_v8 = vmul.f32 %v5112_v38, %v2709_v24  ;;  %v3029_v25 = vmul.f32 %v5112_v38, %v2741_v3  ;;  %v5645_v21 = vpop.f32.mrb[13].mxu1  ;;  %v4387_v54 = vld [vmem:[%s4880_s14 + $0x118] sm:$0xff] }
 0x2b2   : > { %v2022_v49 = vmul.f32 %v7010_v9, %v5541_v33  ;;  %3348 = vst [vmem:[%s5615_s13 + $0x8] sm:$0xff] %v3316_v32  ;;  %v3061_v7 = vmul.f32 %v5105_v18, %v2741_v3  ;;  %3893 = vst [vmem:[%s5615_s13 + $0x108] sm:$0xff] %v3380_v51  ;;  %v2933_v56 = vmul.f32 1.05, %v2901_v39  ;;  %v7011_v26 = vsub.f32 1.0, %v5084_v31  ;;  %v5649_v4 = vpop.f32.mrb[14].mxu1 }
 0x2b3   : > { %v3221_v19 = vmul.f32 %v5105_v18, %v2773_v43  ;;  %v7013_v34 = vsub.f32 1.05, %v7012_v30  ;;  %v3189_v18 = vmul.f32 %v5112_v38, %v2773_v43  ;;  %v1107_v48 = vmul.f32 0.2, %v5567_v6  ;;  %v4388_v31 = vld [vmem:[%s4880_s14 + $0x218] sm:$0xff]  ;;  %v7015_v3 = vld [vmem:[#allocation33_spill] sm:$0xff] }
 0x2b4   : > { %v2054_v53 = vadd.f32 %v4386_v37, %v2022_v49  ;;  %v2118_v12 = vmul.f32 %v7011_v26, %v5541_v33  ;;  %v3093_v11 = vmul.f32 1.03, %v3061_v7  ;;  %v2965_v14 = vmin.f32 %v2933_v56, 1.0  ;;  %v7017_v51 = vld [vmem:[#allocation34_spill] sm:$0xff]  ;;  %v7019_v7 = vld [vmem:[#allocation36_spill] sm:$0xff]  ;;  %v7020_v56 = vld [vmem:[#allocation31_spill] sm:$0xff] }
 0x2b5   : > { %v2214_v27 = vmul.f32 %v7013_v34, %v5541_v33  ;;  %v3253_v2 = vmin.f32 %v3221_v19, 1.0  ;;  %v5654_v33 = vpop.f32.mrb[15].mxu1  ;;  %v7016_v38 = vsub.f32 1.0, %v7015_v3  ;;  %v7018_v6 = vsub.f32 1.0, %v7017_v51  ;;  %v4389_v30 = vld [vmem:[%s4880_s14 + $0x20] sm:$0xff] }
 0x2b6   : > { %v2150_v55 = vadd.f32 %v4387_v54, %v2118_v12  ;;  %v2310_v24 = vmul.f32 %v7014_v29, %v2054_v53  ;;  %v3125_v32 = vmin.f32 %v3093_v11, 1.0  ;;  %v2997_v9 = vadd.f32 %v2965_v14, %v2869_v8  ;;  %v7027_v51 = vld [vmem:[#allocation40_spill] sm:$0xff] }
 0x2b7   : > { %v2246_v1 = vadd.f32 %v4388_v31, %v2214_v27  ;;  %v3285_v23 = vadd.f32 %v3253_v2, %v3189_v18  ;;  %v2023_v43 = vmul.f32 %v7016_v38, %v1107_v48  ;;  %v2119_v39 = vmul.f32 %v7018_v6, %v1107_v48  ;;  %v4390_v27 = vld [vmem:[%s4880_s14 + $0x120] sm:$0xff]  ;;  %v7022_v31 = vld [vmem:[#allocation38_spill] sm:$0xff] }
 0x2b8   : > { %v2342_v49 = vmin.f32 %v2310_v24, 1.0  ;;  %v2438_v19 = vmul.f32 %v7019_v7, %v2150_v55  ;;  %v7021_v37 = vsub.f32 1.0, %v7020_v56  ;;  %v3157_v12 = vadd.f32 %v3125_v32, %v3029_v25  ;;  %v7023_v55 = vld [vmem:[#allocation35_spill] sm:$0xff]  ;;  %v7026_v32 = vld [vmem:[#allocation45_spill] sm:$0xff]  ;;  %v5671_v3 = vpop.f32.mrb[16].mxu1  ;;  %v4391_v7 = vld [vmem:[%s4880_s14 + $0x220] sm:$0xff] }
 0x2b9   : > { %v3446_v53 = vmin.f32 %v3285_v23, 1.0  ;;  %v2055_v34 = vadd.f32 %v4389_v30, %v2023_v43  ;;  %v2151_v11 = vadd.f32 %v4390_v27, %v2119_v39  ;;  %v3317_v18 = vmin.f32 %v2997_v9, 1.0  ;;  %v7028_v39 = vld [vmem:[#allocation39_spill] sm:$0xff] }
 0x2ba   : > { %v2566_v26 = vmul.f32 %v7021_v37, %v2246_v1  ;;  %v2470_v2 = vmin.f32 %v2438_v19, 1.0  ;;  %v2710_v8 = vmul.f32 %v7022_v31, %v2342_v49  ;;  %v3381_v14 = vmin.f32 %v3157_v12, 1.0  ;;  %v7025_v1 = vld [vmem:[#allocation44_spill] sm:$0xff]  ;;  %v5678_v49 = vpop.f32.mrb[17].mxu1  ;;  %v7029_v27 = vld [vmem:[#allocation43_spill] sm:$0xff] }
 0x2bb   : > { %3926 = vst [vmem:[%s5615_s13 + $0x210] sm:$0xff] %v3446_v53  ;;  %v7024_v29 = vsub.f32 1.05, %v7023_v55  ;;  %v2311_v25 = vmul.f32 %v7025_v1, %v2055_v34  ;;  %v2439_v23 = vmul.f32 %v7026_v32, %v2151_v11  ;;  %3349 = vst [vmem:[%s5615_s13 + $0x10] sm:$0xff] %v3317_v18  ;;  %v1108_v37 = vmul.f32 0.2, %v5573_v41 }
 0x2bc   : > { %v2598_v54 = vmin.f32 %v2566_v26, 1.0  ;;  %v2742_v38 = vmul.f32 %v7022_v31, %v2470_v2  ;;  %v2870_v6 = vmul.f32 %v7027_v51, %v2710_v8  ;;  %v2902_v9 = vmul.f32 %v7028_v39, %v2710_v8  ;;  %3894 = vst [vmem:[%s5615_s13 + $0x110] sm:$0xff] %v3381_v14  ;;  %v7031_v2 = vld [vmem:[#allocation46_spill] sm:$0xff]  ;;  %v7032_v41 = vld [vmem:[#allocation37_spill] sm:$0xff] }
 0x2bd   : > { %v2215_v24 = vmul.f32 %v7024_v29, %v1107_v48  ;;  %v2343_v19 = vmin.f32 %v2311_v25, 1.0  ;;  %v2471_v56 = vmin.f32 %v2439_v23, 1.0  ;;  %v7030_v11 = vsub.f32 1.0, %v7029_v27  ;;  %v4392_v27 = vld [vmem:[%s4880_s14 + $0x28] sm:$0xff] }
 0x2be   : > { %v2774_v43 = vmul.f32 %v7022_v31, %v2598_v54  ;;  %v2934_v26 = vmul.f32 1.05, %v2902_v9  ;;  %v3030_v12 = vmul.f32 %v7027_v51, %v2742_v38  ;;  %v3062_v53 = vmul.f32 %v7028_v39, %v2742_v38  ;;  %v7036_v38 = vld [vmem:[#allocation51_spill] sm:$0xff] }
 0x2bf   : > { %v2247_v48 = vadd.f32 %v4391_v7, %v2215_v24  ;;  %v2711_v54 = vmul.f32 %v7031_v2, %v2343_v19  ;;  %v2743_v31 = vmul.f32 %v7031_v2, %v2471_v56  ;;  %v7033_v55 = vsub.f32 1.0, %v7032_v41  ;;  %v7034_v24 = vld [vmem:[#allocation41_spill] sm:$0xff] }
 0x2c0   : > { %v3190_v30 = vmul.f32 %v7027_v51, %v2774_v43  ;;  %v3222_v34 = vmul.f32 %v7028_v39, %v2774_v43  ;;  %v2966_v8 = vmin.f32 %v2934_v26, 1.0  ;;  %v3094_v14 = vmul.f32 1.03, %v3062_v53  ;;  %v7037_v51 = vld [vmem:[#allocation48_spill] sm:$0xff] }
 0x2c1   : > { %v2567_v18 = vmul.f32 %v7030_v11, %v2247_v48  ;;  %v2024_v29 = vmul.f32 %v7033_v55, %v1108_v37  ;;  %v7035_v1 = vsub.f32 1.0, %v7034_v24  ;;  %v2871_v43 = vmul.f32 %v7036_v38, %v2711_v54  ;;  %v4393_v55 = vld [vmem:[%s4880_s14 + $0x128] sm:$0xff] }
 0x2c2   : > { %v3254_v32 = vmin.f32 %v3222_v34, 1.0  ;;  %v2903_v39 = vmul.f32 %v7037_v51, %v2711_v54  ;;  %v2998_v9 = vadd.f32 %v2966_v8, %v2870_v6  ;;  %v3126_v7 = vmin.f32 %v3094_v14, 1.0  ;;  %v7038_v14 = vld [vmem:[#allocation42_spill] sm:$0xff] }
 0x2c3   : > { %v2120_v25 = vmul.f32 %v7035_v1, %v1108_v37  ;;  %v2599_v23 = vmin.f32 %v2567_v18, 1.0  ;;  %v3031_v48 = vmul.f32 %v7036_v38, %v2743_v31  ;;  %v3063_v19 = vmul.f32 %v7037_v51, %v2743_v31 }
 0x2c4   : > { %v3286_v56 = vadd.f32 %v3254_v32, %v3190_v30  ;;  %v2935_v53 = vmul.f32 1.05, %v2903_v39  ;;  %v2056_v11 = vadd.f32 %v4392_v27, %v2024_v29  ;;  %v3158_v34 = vadd.f32 %v3126_v7, %v3030_v12  ;;  %v7040_v32 = vld [vmem:[#allocation57_spill] sm:$0xff] }
 0x2c5   : > { %v2775_v26 = vmul.f32 %v7031_v2, %v2599_v23  ;;  %v3318_v18 = vmin.f32 %v2998_v9, 1.0  ;;  %v3095_v41 = vmul.f32 1.03, %v3063_v19  ;;  %v2152_v24 = vadd.f32 %v4393_v55, %v2120_v25  ;;  %v5708_v23 = vpop.f32.mrb[18].mxu1  ;;  %v7041_v9 = vld [vmem:[#allocation60_spill] sm:$0xff]  ;;  %v4394_v19 = vld [vmem:[%s4880_s14 + $0x228] sm:$0xff] }
 0x2c6   : > { %v3447_v6 = vmin.f32 %v3286_v56, 1.0  ;;  %v2967_v54 = vmin.f32 %v2935_v53, 1.0  ;;  %v3382_v30 = vmin.f32 %v3158_v34, 1.0  ;;  %v7039_v1 = vsub.f32 1.05, %v7038_v14  ;;  %v7044_v55 = vld [vmem:[#allocation56_spill] sm:$0xff] }
 0x2c7   : > { %v3191_v8 = vmul.f32 %v7036_v38, %v2775_v26  ;;  %v3223_v31 = vmul.f32 %v7037_v51, %v2775_v26  ;;  %3350 = vst [vmem:[%s5615_s13 + $0x18] sm:$0xff] %v3318_v18  ;;  %v3127_v2 = vmin.f32 %v3095_v41, 1.0  ;;  %v2312_v12 = vmul.f32 %v7040_v32, %v2056_v11 }
 0x2c8   : > { %v2216_v29 = vmul.f32 %v7039_v1, %v1108_v37  ;;  %3927 = vst [vmem:[%s5615_s13 + $0x218] sm:$0xff] %v3447_v6  ;;  %v2999_v25 = vadd.f32 %v2967_v54, %v2871_v43  ;;  %v2440_v7 = vmul.f32 %v7041_v9, %v2152_v24  ;;  %v1109_v38 = vmul.f32 0.2, %v5576_v42  ;;  %3895 = vst [vmem:[%s5615_s13 + $0x118] sm:$0xff] %v3382_v30  ;;  %v7042_v43 = vld [vmem:[#allocation47_spill] sm:$0xff]  ;;  %v7046_v24 = vld [vmem:[#allocation54_spill] sm:$0xff] }
 0x2c9   : > { %v3255_v39 = vmin.f32 %v3223_v31, 1.0  ;;  %v3159_v51 = vadd.f32 %v3127_v2, %v3031_v48  ;;  %v2344_v26 = vmin.f32 %v2312_v12, 1.0  ;;  %v5716_v37 = vmul.f32 0.2, %v5584_v15  ;;  %v7047_v54 = vld [vmem:[#allocation49_spill] sm:$0xff]  ;;  %v4395_v2 = vld [vmem:[%s4880_s14 + $0x30] sm:$0xff] }
 0x2ca   : > { %v2248_v56 = vadd.f32 %v4394_v19, %v2216_v29  ;;  %v3319_v27 = vmin.f32 %v2999_v25, 1.0  ;;  %v2472_v11 = vmin.f32 %v2440_v7, 1.0  ;;  %v7043_v34 = vsub.f32 1.0, %v7042_v43  ;;  %v7049_v1 = vld [vmem:[#allocation50_spill] sm:$0xff]  ;;  %v7051_v25 = vld [vmem:[#allocation59_spill] sm:$0xff] }
 0x2cb   : > { %v3287_v53 = vadd.f32 %v3255_v39, %v3191_v8  ;;  %v3383_v41 = vmin.f32 %v3159_v51, 1.0  ;;  %v7045_v42 = vsub.f32 1.0, %v7044_v55  ;;  %v2712_v6 = vmul.f32 %v7046_v24, %v2344_v26  ;;  %v7052_v9 = vld [vmem:[#allocation58_spill] sm:$0xff]  ;;  %v7055_v55 = vld [vmem:[#allocation52_spill] sm:$0xff] }
 0x2cc   : > { %v2025_v18 = vmul.f32 %v7043_v34, %v1109_v38  ;;  %v7048_v31 = vsub.f32 1.0, %v7047_v54  ;;  %3351 = vst [vmem:[%s5615_s13 + $0x20] sm:$0xff] %v3319_v27  ;;  %v2744_v8 = vmul.f32 %v7046_v24, %v2472_v11  ;;  %v7050_v29 = vsub.f32 1.05, %v7049_v1  ;;  %v4396_v51 = vld [vmem:[%s4880_s14 + $0x130] sm:$0xff]  ;;  %v7053_v11 = vld [vmem:[#allocation68_spill] sm:$0xff] }
 0x2cd   : > { %v2568_v48 = vmul.f32 %v7045_v42, %v2248_v56  ;;  %v3448_v15 = vmin.f32 %v3287_v53, 1.0  ;;  %3896 = vst [vmem:[%s5615_s13 + $0x120] sm:$0xff] %v3383_v41  ;;  %v2872_v39 = vmul.f32 %v7051_v25, %v2712_v6  ;;  %v2904_v7 = vmul.f32 %v7052_v9, %v2712_v6  ;;  %v4397_v53 = vld [vmem:[%s4880_s14 + $0x230] sm:$0xff] }
 0x2ce   : > { %v2121_v30 = vmul.f32 %v7048_v31, %v1109_v38  ;;  %v2057_v14 = vadd.f32 %v4395_v2, %v2025_v18  ;;  %v2217_v32 = vmul.f32 %v7050_v29, %v1109_v38  ;;  %v3032_v56 = vmul.f32 %v7051_v25, %v2744_v8  ;;  %v7054_v18 = vld [vmem:[#allocation69_spill] sm:$0xff] }
 0x2cf   : > { %v2600_v12 = vmin.f32 %v2568_v48, 1.0  ;;  %3928 = vst [vmem:[%s5615_s13 + $0x220] sm:$0xff] %v3448_v15  ;;  %v3064_v26 = vmul.f32 %v7052_v9, %v2744_v8  ;;  %v2936_v34 = vmul.f32 1.05, %v2904_v7  ;;  %v7056_v42 = vsub.f32 1.0, %v7055_v55  ;;  %v7057_v31 = vld [vmem:[#allocation65_spill] sm:$0xff] }
 0x2d0   : > { %v2153_v19 = vadd.f32 %v4396_v51, %v2121_v30  ;;  %v2249_v27 = vadd.f32 %v4397_v53, %v2217_v32  ;;  %v2313_v43 = vmul.f32 %v7053_v11, %v2057_v14  ;;  %v7058_v30 = vsub.f32 1.0, %v7057_v31  ;;  %v7059_v8 = vld [vmem:[#allocation53_spill] sm:$0xff] }
 0x2d1   : > { %v2776_v38 = vmul.f32 %v7046_v24, %v2600_v12  ;;  %v2026_v48 = vmul.f32 %v7056_v42, %v5716_v37  ;;  %v3096_v6 = vmul.f32 1.03, %v3064_v26  ;;  %v7060_v2 = vsub.f32 1.0, %v7059_v8  ;;  %v7061_v51 = vld [vmem:[#allocation61_spill] sm:$0xff]  ;;  %v4398_v26 = vld [vmem:[%s4880_s14 + $0x38] sm:$0xff] }
 0x2d2   : > { %v2441_v41 = vmul.f32 %v7054_v18, %v2153_v19  ;;  %v2345_v54 = vmin.f32 %v2313_v43, 1.0  ;;  %v2569_v15 = vmul.f32 %v7058_v30, %v2249_v27  ;;  %v2968_v1 = vmin.f32 %v2936_v34, 1.0  ;;  %v4399_v18 = vld [vmem:[%s4880_s14 + $0x138] sm:$0xff] }
 0x2d3   : > { %v2122_v14 = vmul.f32 %v7060_v2, %v5716_v37  ;;  %v3192_v24 = vmul.f32 %v7051_v25, %v2776_v38  ;;  %v3224_v29 = vmul.f32 %v7052_v9, %v2776_v38  ;;  %v3128_v12 = vmin.f32 %v3096_v6, 1.0  ;;  %v7062_v25 = vld [vmem:[#allocation63_spill] sm:$0xff]  ;;  %v7063_v38 = vld [vmem:[#allocation62_spill] sm:$0xff] }
 0x2d4   : > { %v2473_v32 = vmin.f32 %v2441_v41, 1.0  ;;  %v2601_v7 = vmin.f32 %v2569_v15, 1.0  ;;  %v2713_v19 = vmul.f32 %v7061_v51, %v2345_v54  ;;  %v2058_v53 = vadd.f32 %v4398_v26, %v2026_v48 }
 0x2d5   : > { %v3000_v11 = vadd.f32 %v2968_v1, %v2872_v39  ;;  %v3256_v43 = vmin.f32 %v3224_v29, 1.0  ;;  %v2154_v55 = vadd.f32 %v4399_v18, %v2122_v14  ;;  %v3160_v42 = vadd.f32 %v3128_v12, %v3032_v56  ;;  %v7064_v14 = vld [vmem:[#allocation55_spill] sm:$0xff] }
 0x2d6   : > { %v2745_v27 = vmul.f32 %v7061_v51, %v2473_v32  ;;  %v2777_v34 = vmul.f32 %v7061_v51, %v2601_v7  ;;  %v2873_v9 = vmul.f32 %v7062_v25, %v2713_v19  ;;  %v2905_v41 = vmul.f32 %v7063_v38, %v2713_v19  ;;  %v7066_v29 = vld [vmem:[#allocation71_spill] sm:$0xff] }
 0x2d7   : > { %v3288_v6 = vadd.f32 %v3256_v43, %v3192_v24  ;;  %v3320_v31 = vmin.f32 %v3000_v11, 1.0  ;;  %v3384_v48 = vmin.f32 %v3160_v42, 1.0  ;;  %v7065_v1 = vsub.f32 1.05, %v7064_v14  ;;  %v7067_v51 = vld [vmem:[#allocation75_spill] sm:$0xff] }
 0x2d8   : > { %v3033_v54 = vmul.f32 %v7062_v25, %v2745_v27  ;;  %v3065_v39 = vmul.f32 %v7063_v38, %v2745_v27  ;;  %v2937_v30 = vmul.f32 1.05, %v2905_v41  ;;  %v3193_v15 = vmul.f32 %v7062_v25, %v2777_v34  ;;  %v4400_v43 = vld [vmem:[%s4880_s14 + $0x238] sm:$0xff] }
 0x2d9   : > { %v3225_v56 = vmul.f32 %v7063_v38, %v2777_v34  ;;  %3352 = vst [vmem:[%s5615_s13 + $0x28] sm:$0xff] %v3320_v31  ;;  %v3449_v8 = vmin.f32 %v3288_v6, 1.0  ;;  %v2218_v24 = vmul.f32 %v7065_v1, %v5716_v37  ;;  %v2314_v32 = vmul.f32 %v7066_v29, %v2058_v53  ;;  %3897 = vst [vmem:[%s5615_s13 + $0x128] sm:$0xff] %v3384_v48  ;;  %v7068_v53 = vld [vmem:[#allocation64_spill] sm:$0xff]  ;;  %v7075_v29 = vld [vmem:[#allocation77_spill] sm:$0xff] }
 0x2da   : > { %v3097_v2 = vmul.f32 1.03, %v3065_v39  ;;  %v2969_v12 = vmin.f32 %v2937_v30, 1.0  ;;  %v2442_v19 = vmul.f32 %v7067_v51, %v2154_v55  ;;  %v1111_v26 = vmul.f32 0.2, %v5601_v10  ;;  %v7070_v55 = vld [vmem:[#allocation72_spill] sm:$0xff] }
 0x2db   : > { %v3257_v7 = vmin.f32 %v3225_v56, 1.0  ;;  %3929 = vst [vmem:[%s5615_s13 + $0x228] sm:$0xff] %v3449_v8  ;;  %v2250_v27 = vadd.f32 %v4400_v43, %v2218_v24  ;;  %v2346_v18 = vmin.f32 %v2314_v32, 1.0  ;;  %v1112_v42 = vmul.f32 0.2, %v5604_v59  ;;  %v7072_v39 = vld [vmem:[#allocation74_spill] sm:$0xff] }
 0x2dc   : > { %v3129_v11 = vmin.f32 %v3097_v2, 1.0  ;;  %v3001_v34 = vadd.f32 %v2969_v12, %v2873_v9  ;;  %v2474_v37 = vmin.f32 %v2442_v19, 1.0  ;;  %v7069_v38 = vsub.f32 1.0, %v7068_v53  ;;  %v7073_v30 = vld [vmem:[#allocation66_spill] sm:$0xff]  ;;  %v7076_v32 = vld [vmem:[#allocation76_spill] sm:$0xff]  ;;  %v7077_v43 = vld [vmem:[#allocation67_spill] sm:$0xff] }
 0x2dd   : > { %v3289_v25 = vadd.f32 %v3257_v7, %v3193_v15  ;;  %v7071_v31 = vsub.f32 1.0, %v7070_v55  ;;  %v2714_v48 = vmul.f32 %v7072_v39, %v2346_v18  ;;  %v7074_v56 = vsub.f32 1.0, %v7073_v30  ;;  %v4401_v15 = vld [vmem:[%s4880_s14 + $0x40] sm:$0xff]  ;;  %v7079_v53 = vld [vmem:[#allocation70_spill] sm:$0xff] }
 0x2de   : > { %v2027_v41 = vmul.f32 %v7069_v38, %v1111_v26  ;;  %v3161_v6 = vadd.f32 %v3129_v11, %v3033_v54  ;;  %v3321_v2 = vmin.f32 %v3001_v34, 1.0  ;;  %v2746_v9 = vmul.f32 %v7072_v39, %v2474_v37  ;;  %v4402_v19 = vld [vmem:[%s4880_s14 + $0x140] sm:$0xff] }
 0x2df   : > { %v2570_v10 = vmul.f32 %v7071_v31, %v2250_v27  ;;  %v2123_v8 = vmul.f32 %v7074_v56, %v1111_v26  ;;  %v3450_v59 = vmin.f32 %v3289_v25, 1.0  ;;  %v2874_v54 = vmul.f32 %v7075_v29, %v2714_v48  ;;  %v4403_v55 = vld [vmem:[%s4880_s14 + $0x240] sm:$0xff] }
 0x2e0   : > { %v2059_v14 = vadd.f32 %v4401_v15, %v2027_v41  ;;  %v3385_v1 = vmin.f32 %v3161_v6, 1.0  ;;  %v2906_v12 = vmul.f32 %v7076_v32, %v2714_v48  ;;  %3353 = vst [vmem:[%s5615_s13 + $0x30] sm:$0xff] %v3321_v2  ;;  %v3034_v7 = vmul.f32 %v7075_v29, %v2746_v9  ;;  %v7081_v48 = vld [vmem:[#allocation73_spill] sm:$0xff]  ;;  %v7083_v15 = vld [vmem:[#allocation79_spill] sm:$0xff] }
 0x2e1   : > { %v2602_v24 = vmin.f32 %v2570_v10, 1.0  ;;  %3930 = vst [vmem:[%s5615_s13 + $0x230] sm:$0xff] %v3450_v59  ;;  %v3066_v51 = vmul.f32 %v7076_v32, %v2746_v9  ;;  %v2155_v11 = vadd.f32 %v4402_v19, %v2123_v8  ;;  %v7078_v27 = vsub.f32 1.05, %v7077_v43  ;;  %v5802_v59 = vpop.f32.mrb[19].mxu1  ;;  %v7085_v19 = vld [vmem:[#allocation82_spill] sm:$0xff] }
 0x2e2   : > { %3898 = vst [vmem:[%s5615_s13 + $0x130] sm:$0xff] %v3385_v1  ;;  %v2938_v25 = vmul.f32 1.05, %v2906_v12  ;;  %v2315_v37 = vmul.f32 %v5325_v28, %v2059_v14  ;;  %v7080_v38 = vsub.f32 1.0, %v7079_v53  ;;  %v7082_v30 = vsub.f32 1.0, %v7081_v48  ;;  %v4405_v43 = vld [vmem:[%s4880_s14 + $0x148] sm:$0xff] }
 0x2e3   : > { %v2219_v18 = vmul.f32 %v7078_v27, %v1111_v26  ;;  %v2778_v34 = vmul.f32 %v7072_v39, %v2602_v24  ;;  %v3098_v6 = vmul.f32 1.03, %v3066_v51  ;;  %v2443_v10 = vmul.f32 %v5333_v22, %v2155_v11  ;;  %v4404_v24 = vld [vmem:[%s4880_s14 + $0x48] sm:$0xff] }
 0x2e4   : > { %v2028_v41 = vmul.f32 %v7080_v38, %v1112_v42  ;;  %v2124_v56 = vmul.f32 %v7082_v30, %v1112_v42  ;;  %v2970_v26 = vmin.f32 %v2938_v25, 1.0  ;;  %v2347_v2 = vmin.f32 %v2315_v37, 1.0 }
 0x2e5   : > { %v2251_v31 = vadd.f32 %v4403_v55, %v2219_v18  ;;  %v3194_v8 = vmul.f32 %v7075_v29, %v2778_v34  ;;  %v3226_v39 = vmul.f32 %v7076_v32, %v2778_v34  ;;  %v3130_v28 = vmin.f32 %v3098_v6, 1.0  ;;  %v7086_v34 = vld [vmem:[#allocation78_spill] sm:$0xff]  ;;  %v7088_v6 = vld [vmem:[#allocation85_spill] sm:$0xff] }
 0x2e6   : > { %v2475_v9 = vmin.f32 %v2443_v10, 1.0  ;;  %v7084_v14 = vsub.f32 1.0, %v7083_v15  ;;  %v2060_v12 = vadd.f32 %v4404_v24, %v2028_v41  ;;  %v3002_v51 = vadd.f32 %v2970_v26, %v2874_v54  ;;  %v7089_v54 = vld [vmem:[#allocation84_spill] sm:$0xff]  ;;  %v4406_v26 = vld [vmem:[%s4880_s14 + $0x248] sm:$0xff]  ;;  %v7091_v15 = vld [vmem:[#allocation91_spill] sm:$0xff] }
 0x2e7   : > { %v3258_v22 = vmin.f32 %v3226_v39, 1.0  ;;  %v2715_v11 = vmul.f32 %v7085_v19, %v2347_v2  ;;  %v2156_v27 = vadd.f32 %v4405_v43, %v2124_v56  ;;  %v3162_v29 = vadd.f32 %v3130_v28, %v3034_v7 }
 0x2e8   : > { %v2571_v1 = vmul.f32 %v7084_v14, %v2251_v31  ;;  %v2747_v18 = vmul.f32 %v7085_v19, %v2475_v9  ;;  %v7087_v25 = vsub.f32 1.05, %v7086_v34  ;;  %v3322_v38 = vmin.f32 %v3002_v51, 1.0  ;;  %v7092_v51 = vld [vmem:[#allocation88_spill] sm:$0xff] }
 0x2e9   : > { %v3290_v53 = vadd.f32 %v3258_v22, %v3194_v8  ;;  %v2875_v41 = vmul.f32 %v7088_v6, %v2715_v11  ;;  %v2907_v55 = vmul.f32 %v7089_v54, %v2715_v11  ;;  %v3386_v31 = vmin.f32 %v3162_v29, 1.0 }
 0x2ea   : > { %v2603_v32 = vmin.f32 %v2571_v1, 1.0  ;;  %v2220_v37 = vmul.f32 %v7087_v25, %v1112_v42  ;;  %v3035_v48 = vmul.f32 %v7088_v6, %v2747_v18  ;;  %v3067_v7 = vmul.f32 %v7089_v54, %v2747_v18  ;;  %3354 = vst [vmem:[%s5615_s13 + $0x38] sm:$0xff] %v3322_v38  ;;  %v7090_v42 = vld [vmem:[#allocation87_spill] sm:$0xff]  ;;  %v7094_v25 = vld [vmem:[#allocation86_spill] sm:$0xff] }
 0x2eb   : > { %v3451_v30 = vmin.f32 %v3290_v53, 1.0  ;;  %v2939_v56 = vmul.f32 1.05, %v2907_v55  ;;  %v2316_v8 = vmul.f32 %v7090_v42, %v2060_v12  ;;  %3899 = vst [vmem:[%s5615_s13 + $0x138] sm:$0xff] %v3386_v31  ;;  %v2444_v14 = vmul.f32 %v7091_v15, %v2156_v27  ;;  %v7095_v53 = vld [vmem:[#allocation80_spill] sm:$0xff]  ;;  %v7097_v31 = vld [vmem:[#allocation81_spill] sm:$0xff] }
 0x2ec   : > { %v2779_v10 = vmul.f32 %v7085_v19, %v2603_v32  ;;  %v2252_v39 = vadd.f32 %v4406_v26, %v2220_v37  ;;  %v3099_v2 = vmul.f32 1.03, %v3067_v7  ;;  %v7093_v22 = vsub.f32 1.0, %v7092_v51  ;;  %v5835_v7 = vpop.f32.mrb[20].mxu1  ;;  %v7100_v26 = vld [vmem:[#allocation89_spill] sm:$0xff]  ;;  %v4408_v51 = vld [vmem:[%s4880_s14 + $0x150] sm:$0xff] }
 0x2ed   : > { %3931 = vst [vmem:[%s5615_s13 + $0x238] sm:$0xff] %v3451_v30  ;;  %v2971_v1 = vmin.f32 %v2939_v56, 1.0  ;;  %v2348_v24 = vmin.f32 %v2316_v8, 1.0  ;;  %v1113_v11 = vmul.f32 0.2, %v5608_v16  ;;  %v2476_v32 = vmin.f32 %v2444_v14, 1.0 }
 0x2ee   : > { %v3195_v28 = vmul.f32 %v7088_v6, %v2779_v10  ;;  %v3227_v9 = vmul.f32 %v7089_v54, %v2779_v10  ;;  %v2572_v19 = vmul.f32 %v7093_v22, %v2252_v39  ;;  %v3131_v43 = vmin.f32 %v3099_v2, 1.0  ;;  %v7099_v30 = vld [vmem:[#allocation90_spill] sm:$0xff] }
 0x2ef   : > { %v1114_v12 = vmul.f32 0.2, %v5610_v40  ;;  %v3003_v18 = vadd.f32 %v2971_v1, %v2875_v41  ;;  %v2716_v37 = vmul.f32 %v7094_v25, %v2348_v24  ;;  %v7096_v27 = vsub.f32 1.0, %v7095_v53  ;;  %v4407_v14 = vld [vmem:[%s4880_s14 + $0x50] sm:$0xff]  ;;  %v7104_v53 = vld [vmem:[#allocation92_spill] sm:$0xff] }
 0x2f0   : > { %v3259_v29 = vmin.f32 %v3227_v9, 1.0  ;;  %v2604_v34 = vmin.f32 %v2572_v19, 1.0  ;;  %v3163_v6 = vadd.f32 %v3131_v43, %v3035_v48  ;;  %v2748_v55 = vmul.f32 %v7094_v25, %v2476_v32  ;;  %v7101_v19 = vld [vmem:[#allocation83_spill] sm:$0xff] }
 0x2f1   : > { %v2029_v38 = vmul.f32 %v7096_v27, %v1113_v11  ;;  %v7098_v16 = vsub.f32 1.0, %v7097_v31  ;;  %v3323_v40 = vmin.f32 %v3003_v18, 1.0  ;;  %v2876_v56 = vmul.f32 %v7099_v30, %v2716_v37  ;;  %v7106_v31 = vld [vmem:[#allocation106_spill] sm:$0xff] }
 0x2f2   : > { %v3291_v54 = vadd.f32 %v3259_v29, %v3195_v28  ;;  %v2780_v41 = vmul.f32 %v7094_v25, %v2604_v34  ;;  %v2908_v39 = vmul.f32 %v7100_v26, %v2716_v37  ;;  %v3387_v48 = vmin.f32 %v3163_v6, 1.0 }
 0x2f3   : > { %v2125_v10 = vmul.f32 %v7098_v16, %v1113_v11  ;;  %v3036_v8 = vmul.f32 %v7099_v30, %v2748_v55  ;;  %v3068_v2 = vmul.f32 %v7100_v26, %v2748_v55  ;;  %3355 = vst [vmem:[%s5615_s13 + $0x40] sm:$0xff] %v3323_v40  ;;  %v2061_v1 = vadd.f32 %v4407_v14, %v2029_v38 }
 0x2f4   : > { %v3452_v42 = vmin.f32 %v3291_v54, 1.0  ;;  %v2940_v28 = vmul.f32 1.05, %v2908_v39  ;;  %v3196_v9 = vmul.f32 %v7099_v30, %v2780_v41  ;;  %v3228_v15 = vmul.f32 %v7100_v26, %v2780_v41  ;;  %3900 = vst [vmem:[%s5615_s13 + $0x140] sm:$0xff] %v3387_v48  ;;  %v4409_v54 = vld [vmem:[%s4880_s14 + $0x250] sm:$0xff] }
 0x2f5   : > { %v3100_v24 = vmul.f32 1.03, %v3068_v2  ;;  %v2157_v22 = vadd.f32 %v4408_v51, %v2125_v10  ;;  %v7102_v43 = vsub.f32 1.05, %v7101_v19  ;;  %v7103_v32 = vsub.f32 1.0, %v5378_v0  ;;  %v4410_v10 = vld [vmem:[%s4880_s14 + $0x58] sm:$0xff] }
 0x2f6   : > { %3932 = vst [vmem:[%s5615_s13 + $0x240] sm:$0xff] %v3452_v42  ;;  %v2972_v34 = vmin.f32 %v2940_v28, 1.0  ;;  %v3260_v25 = vmin.f32 %v3228_v15, 1.0  ;;  %v2317_v37 = vmul.f32 %v5434_v46, %v2061_v1  ;;  %v7105_v27 = vsub.f32 1.0, %v7104_v53  ;;  %v4411_v0 = vld [vmem:[%s4880_s14 + $0x158] sm:$0xff]  ;;  %v7107_v48 = vld [vmem:[#allocation98_spill] sm:$0xff] }
 0x2f7   : > { %v2221_v29 = vmul.f32 %v7102_v43, %v1113_v11  ;;  %v2030_v18 = vmul.f32 %v7103_v32, %v1114_v12  ;;  %v3132_v6 = vmin.f32 %v3100_v24, 1.0  ;;  %v2445_v16 = vmul.f32 %v7106_v31, %v2157_v22  ;;  %v7109_v28 = vld [vmem:[#allocation93_spill] sm:$0xff]  ;;  %v7111_v51 = vld [vmem:[#allocation94_spill] sm:$0xff]  ;;  %v7112_v32 = vld [vmem:[#allocation99_spill] sm:$0xff] }
 0x2f8   : > { %v2126_v38 = vmul.f32 %v7105_v27, %v1114_v12  ;;  %v3004_v41 = vadd.f32 %v2972_v34, %v2876_v56  ;;  %v3292_v11 = vadd.f32 %v3260_v25, %v3196_v9  ;;  %v2349_v30 = vmin.f32 %v2317_v37, 1.0  ;;  %v7113_v34 = vld [vmem:[#allocation97_spill] sm:$0xff]  ;;  %v7115_v31 = vld [vmem:[#allocation100_spill] sm:$0xff] }
 0x2f9   : > { %v2253_v55 = vadd.f32 %v4409_v54, %v2221_v29  ;;  %v2062_v40 = vadd.f32 %v4410_v10, %v2030_v18  ;;  %v3164_v39 = vadd.f32 %v3132_v6, %v3036_v8  ;;  %v2477_v46 = vmin.f32 %v2445_v16, 1.0  ;;  %v4412_v29 = vld [vmem:[%s4880_s14 + $0x258] sm:$0xff] }
 0x2fa   : > { %v2158_v26 = vadd.f32 %v4411_v0, %v2126_v38  ;;  %v7108_v42 = vsub.f32 1.0, %v7107_v48  ;;  %v7110_v15 = vsub.f32 1.05, %v7109_v28  ;;  %v3324_v1 = vmin.f32 %v3004_v41, 1.0  ;;  %v7118_v28 = vld [vmem:[#allocation95_spill] sm:$0xff] }
 0x2fb   : > { %v3453_v24 = vmin.f32 %v3292_v11, 1.0  ;;  %v2717_v56 = vmul.f32 %v7111_v51, %v2349_v30  ;;  %v2318_v9 = vmul.f32 %v5449_v60, %v2062_v40  ;;  %v3388_v22 = vmin.f32 %v3164_v39, 1.0 }
 0x2fc   : > { %v2573_v2 = vmul.f32 %v7108_v42, %v2253_v55  ;;  %v2222_v14 = vmul.f32 %v7110_v15, %v1114_v12  ;;  %v2749_v43 = vmul.f32 %v7111_v51, %v2477_v46  ;;  %3356 = vst [vmem:[%s5615_s13 + $0x48] sm:$0xff] %v3324_v1  ;;  %v2446_v37 = vmul.f32 %v5451_v61, %v2158_v26  ;;  %v7116_v26 = vld [vmem:[#allocation103_spill] sm:$0xff]  ;;  %v7117_v46 = vld [vmem:[#allocation102_spill] sm:$0xff] }
 0x2fd   : > { %3933 = vst [vmem:[%s5615_s13 + $0x248] sm:$0xff] %v3453_v24  ;;  %v2877_v18 = vmul.f32 %v7112_v32, %v2717_v56  ;;  %v2909_v25 = vmul.f32 %v7113_v34, %v2717_v56  ;;  %v2350_v12 = vmin.f32 %v2318_v9, 1.0  ;;  %3901 = vst [vmem:[%s5615_s13 + $0x148] sm:$0xff] %v3388_v22  ;;  %v7114_v38 = vsub.f32 1.0, %v5441_v45 }
 0x2fe   : > { %v2605_v19 = vmin.f32 %v2573_v2, 1.0  ;;  %v2254_v8 = vadd.f32 %v4412_v29, %v2222_v14  ;;  %v3037_v60 = vmul.f32 %v7112_v32, %v2749_v43  ;;  %v3069_v27 = vmul.f32 %v7113_v34, %v2749_v43 }
 0x2ff   : > { %v2941_v54 = vmul.f32 1.05, %v2909_v25  ;;  %v2478_v55 = vmin.f32 %v2446_v37, 1.0  ;;  %v2718_v16 = vmul.f32 %v7115_v31, %v2350_v12  ;;  %v1115_v10 = vmul.f32 0.2, %v5635_v50  ;;  %v7120_v37 = vld [vmem:[#allocation96_spill] sm:$0xff] }
 0x300   : > { %v2781_v53 = vmul.f32 %v7111_v51, %v2605_v19  ;;  %v2574_v6 = vmul.f32 %v7114_v38, %v2254_v8  ;;  %v3101_v40 = vmul.f32 1.03, %v3069_v27  ;;  %v7119_v50 = vsub.f32 1.0, %v7118_v28 }
 0x301   : > { %v2973_v30 = vmin.f32 %v2941_v54, 1.0  ;;  %v2750_v0 = vmul.f32 %v7115_v31, %v2478_v55  ;;  %v2878_v39 = vmul.f32 %v7116_v26, %v2718_v16  ;;  %v2910_v45 = vmul.f32 %v7117_v46, %v2718_v16 }
 0x302   : > { %v3197_v41 = vmul.f32 %v7112_v32, %v2781_v53  ;;  %v3229_v61 = vmul.f32 %v7113_v34, %v2781_v53  ;;  %v2606_v11 = vmin.f32 %v2574_v6, 1.0  ;;  %v3133_v48 = vmin.f32 %v3101_v40, 1.0  ;;  %v4413_v32 = vld [vmem:[%s4880_s14 + $0x60] sm:$0xff]  ;;  %v7122_v6 = vld [vmem:[#allocation101_spill] sm:$0xff] }
 0x303   : > { %v2031_v15 = vmul.f32 %v7119_v50, %v1115_v10  ;;  %v3005_v14 = vadd.f32 %v2973_v30, %v2877_v18  ;;  %v2942_v1 = vmul.f32 1.05, %v2910_v45  ;;  %v3038_v24 = vmul.f32 %v7116_v26, %v2750_v0  ;;  %v4414_v40 = vld [vmem:[%s4880_s14 + $0x160] sm:$0xff] }
 0x304   : > { %v3261_v42 = vmin.f32 %v3229_v61, 1.0  ;;  %v2782_v2 = vmul.f32 %v7115_v31, %v2606_v11  ;;  %v3070_v51 = vmul.f32 %v7117_v46, %v2750_v0  ;;  %v3165_v56 = vadd.f32 %v3133_v48, %v3037_v60 }
 0x305   : > { %v3325_v43 = vmin.f32 %v3005_v14, 1.0  ;;  %v2974_v29 = vmin.f32 %v2942_v1, 1.0  ;;  %v2063_v18 = vadd.f32 %v4413_v32, %v2031_v15  ;;  %v7121_v53 = vsub.f32 1.0, %v7120_v37  ;;  %v7128_v15 = vld [vmem:[#allocation109_spill] sm:$0xff] }
 0x306   : > { %v3293_v9 = vadd.f32 %v3261_v42, %v3197_v41  ;;  %v3198_v22 = vmul.f32 %v7116_v26, %v2782_v2  ;;  %v3230_v19 = vmul.f32 %v7117_v46, %v2782_v2  ;;  %v3102_v8 = vmul.f32 1.03, %v3070_v51  ;;  %v4415_v26 = vld [vmem:[%s4880_s14 + $0x260] sm:$0xff]  ;;  %v7129_v1 = vld [vmem:[#allocation105_spill] sm:$0xff] }
 0x307   : > { %v3389_v34 = vmin.f32 %v3165_v56, 1.0  ;;  %v2127_v60 = vmul.f32 %v7121_v53, %v1115_v10  ;;  %3357 = vst [vmem:[%s5615_s13 + $0x50] sm:$0xff] %v3325_v43  ;;  %v3006_v27 = vadd.f32 %v2974_v29, %v2878_v39  ;;  %v7123_v54 = vsub.f32 1.05, %v7122_v6  ;;  %v7125_v42 = vld [vmem:[#allocation104_spill] sm:$0xff]  ;;  %v4418_v32 = vld [vmem:[%s4880_s14 + $0x268] sm:$0xff] }
 0x308   : > { %v3454_v25 = vmin.f32 %v3293_v9, 1.0  ;;  %v3262_v12 = vmin.f32 %v3230_v19, 1.0  ;;  %v3134_v38 = vmin.f32 %v3102_v8, 1.0  ;;  %v2319_v31 = vmul.f32 %v5510_v63, %v2063_v18  ;;  %v7131_v8 = vld [vmem:[#allocation111_spill] sm:$0xff]  ;;  %v5930_v53 = vpop.f32.mrb[21].mxu1  ;;  %v7133_v6 = vld [vmem:[#allocation108_spill] sm:$0xff] }
 0x309   : > { %v2223_v55 = vmul.f32 %v7123_v54, %v1115_v10  ;;  %3902 = vst [vmem:[%s5615_s13 + $0x150] sm:$0xff] %v3389_v34  ;;  %v2159_v41 = vadd.f32 %v4414_v40, %v2127_v60  ;;  %v1116_v61 = vmul.f32 0.2, %v5645_v21  ;;  %v5905_v11 = vmul.f32 0.2, %v5649_v4 }
 0x30a   : > { %3934 = vst [vmem:[%s5615_s13 + $0x250] sm:$0xff] %v3454_v25  ;;  %v3294_v16 = vadd.f32 %v3262_v12, %v3198_v22  ;;  %v3166_v30 = vadd.f32 %v3134_v38, %v3038_v24  ;;  %v3326_v0 = vmin.f32 %v3006_v27, 1.0  ;;  %v2351_v39 = vmin.f32 %v2319_v31, 1.0 }
 0x30b   : > { %v2255_v10 = vadd.f32 %v4415_v26, %v2223_v55  ;;  %v2447_v46 = vmul.f32 %v5512_v36, %v2159_v41  ;;  %v7124_v45 = vsub.f32 1.0, %v5422_v58  ;;  %v7126_v21 = vsub.f32 1.0, %v7125_v42  ;;  %v4416_v36 = vld [vmem:[%s4880_s14 + $0x68] sm:$0xff]  ;;  %v7136_v42 = vld [vmem:[#allocation110_spill] sm:$0xff] }
 0x30c   : > { %v3455_v63 = vmin.f32 %v3294_v16, 1.0  ;;  %3358 = vst [vmem:[%s5615_s13 + $0x58] sm:$0xff] %v3326_v0  ;;  %v3390_v4 = vmin.f32 %v3166_v30, 1.0  ;;  %v7127_v28 = vsub.f32 1.0, %v5488_v17  ;;  %v2719_v14 = vmul.f32 %v7128_v15, %v2351_v39  ;;  %v4417_v58 = vld [vmem:[%s4880_s14 + $0x168] sm:$0xff]  ;;  %v4419_v39 = vld [vmem:[%s4880_s14 + $0x70] sm:$0xff] }
 0x30d   : > { %v2032_v48 = vmul.f32 %v7124_v45, %v1116_v61  ;;  %v2128_v2 = vmul.f32 %v7126_v21, %v1116_v61  ;;  %v7130_v24 = vsub.f32 1.05, %v7129_v1  ;;  %v2479_v56 = vmin.f32 %v2447_v46, 1.0  ;;  %v7135_v26 = vld [vmem:[#allocation113_spill] sm:$0xff] }
 0x30e   : > { %v2575_v50 = vmul.f32 %v7127_v28, %v2255_v10  ;;  %3935 = vst [vmem:[%s5615_s13 + $0x258] sm:$0xff] %v3455_v63  ;;  %v1643_v19 = vadd.f32 0.5, %v5627_v44  ;;  %3903 = vst [vmem:[%s5615_s13 + $0x158] sm:$0xff] %v3390_v4  ;;  %v2879_v29 = vmul.f32 %v5476_v52, %v2719_v14  ;;  %v2911_v17 = vmul.f32 %v7131_v8, %v2719_v14 }
 0x30f   : > { %v2224_v51 = vmul.f32 %v7130_v24, %v1116_v61  ;;  %v2064_v9 = vadd.f32 %v4416_v36, %v2032_v48  ;;  %v2160_v22 = vadd.f32 %v4417_v58, %v2128_v2  ;;  %v2751_v34 = vmul.f32 %v7128_v15, %v2479_v56  ;;  %v5949_v2 = vpop.f32.mrb[22].mxu1 }
 0x310   : > { %v2607_v43 = vmin.f32 %v2575_v50, 1.0  ;;  %v1675_v37 = vmul.f32 0.1, %v1643_v19  ;;  %v2943_v60 = vmul.f32 1.05, %v2911_v17  ;;  %v7132_v27 = vsub.f32 1.0, %v5501_v5 }
 0x311   : > { %v2256_v18 = vadd.f32 %v4418_v32, %v2224_v51  ;;  %v2320_v25 = vmul.f32 %v5515_v35, %v2064_v9  ;;  %v2448_v12 = vmul.f32 %v5521_v20, %v2160_v22  ;;  %v7134_v54 = vsub.f32 1.0, %v7133_v6  ;;  %v7138_v50 = vld [vmem:[#allocation115_spill] sm:$0xff]  ;;  %v4420_v22 = vld [vmem:[%s4880_s14 + $0x170] sm:$0xff] }
 0x312   : > { %v2783_v44 = vmul.f32 %v7128_v15, %v2607_v43  ;;  %v3039_v31 = vmul.f32 %v5476_v52, %v2751_v34  ;;  %v3071_v35 = vmul.f32 %v7131_v8, %v2751_v34  ;;  %v2975_v40 = vmin.f32 %v2943_v60, 1.0  ;;  %v4421_v60 = vld [vmem:[%s4880_s14 + $0x270] sm:$0xff] }
 0x313   : > { %v2576_v38 = vmul.f32 %v7132_v27, %v2256_v18  ;;  %v2033_v55 = vmul.f32 %v7134_v54, %v5905_v11  ;;  %v2352_v16 = vmin.f32 %v2320_v25, 1.0  ;;  %v2480_v20 = vmin.f32 %v2448_v12, 1.0 }
 0x314   : > { %v3199_v41 = vmul.f32 %v5476_v52, %v2783_v44  ;;  %v3231_v61 = vmul.f32 %v7131_v8, %v2783_v44  ;;  %v3103_v0 = vmul.f32 1.03, %v3071_v35  ;;  %v3007_v46 = vadd.f32 %v2975_v40, %v2879_v29  ;;  %v7139_v8 = vld [vmem:[#allocation112_spill] sm:$0xff] }
 0x315   : > { %v2608_v30 = vmin.f32 %v2576_v38, 1.0  ;;  %v2720_v5 = vmul.f32 %v7135_v26, %v2352_v16  ;;  %v2752_v10 = vmul.f32 %v7135_v26, %v2480_v20  ;;  %v2065_v63 = vadd.f32 %v4419_v39, %v2033_v55 }
 0x316   : > { %v3263_v45 = vmin.f32 %v3231_v61, 1.0  ;;  %v7137_v21 = vsub.f32 1.0, %v7136_v42  ;;  %v3135_v4 = vmin.f32 %v3103_v0, 1.0  ;;  %v3327_v24 = vmin.f32 %v3007_v46, 1.0  ;;  %v7141_v0 = vld [vmem:[#allocation119_spill] sm:$0xff] }
 0x317   : > { %v2784_v48 = vmul.f32 %v7135_v26, %v2608_v30  ;;  %v2880_v28 = vmul.f32 %v5492_v13, %v2720_v5  ;;  %v2912_v15 = vmul.f32 %v7138_v50, %v2720_v5  ;;  %v3040_v14 = vmul.f32 %v5492_v13, %v2752_v10  ;;  %v7142_v5 = vld [vmem:[#allocation120_spill] sm:$0xff] }
 0x318   : > { %v2129_v52 = vmul.f32 %v7137_v21, %v5905_v11  ;;  %v3295_v1 = vadd.f32 %v3263_v45, %v3199_v41  ;;  %v3072_v51 = vmul.f32 %v7138_v50, %v2752_v10  ;;  %v3167_v36 = vadd.f32 %v3135_v4, %v3039_v31  ;;  %3359 = vst [vmem:[%s5615_s13 + $0x60] sm:$0xff] %v3327_v24  ;;  %v7147_v21 = vld [vmem:[#allocation118_spill] sm:$0xff] }
 0x319   : > { %v3200_v56 = vmul.f32 %v5492_v13, %v2784_v48  ;;  %v2944_v9 = vmul.f32 1.05, %v2912_v15  ;;  %v3232_v58 = vmul.f32 %v7138_v50, %v2784_v48  ;;  %v7140_v17 = vsub.f32 1.05, %v7139_v8  ;;  %v7145_v48 = vld [vmem:[#allocation117_spill] sm:$0xff] }
 0x31a   : > { %v2161_v19 = vadd.f32 %v4420_v22, %v2129_v52  ;;  %v3456_v43 = vmin.f32 %v3295_v1, 1.0  ;;  %v3104_v29 = vmul.f32 1.03, %v3072_v51  ;;  %v2289_v18 = vadd.f32 1.0, %v1675_v37  ;;  %v7149_v50 = vld [vmem:[#allocation121_spill] sm:$0xff]  ;;  %v4422_v1 = vld [vmem:[%s4901_s25 + $0x38] sm:$0xff] }
 0x31b   : > { %v2225_v32 = vmul.f32 %v7140_v17, %v5905_v11  ;;  %v3391_v34 = vmin.f32 %v3167_v36, 1.0  ;;  %v2976_v25 = vmin.f32 %v2944_v9, 1.0  ;;  %v3264_v12 = vmin.f32 %v3232_v58, 1.0  ;;  %v4423_v58 = vld [vmem:[%s4880_s14 + $0x78] sm:$0xff] }
 0x31c   : > { %v2385_v13 = vmul.f32 0.3, %v1675_v37  ;;  %3936 = vst [vmem:[%s5615_s13 + $0x260] sm:$0xff] %v3456_v43  ;;  %v3136_v44 = vmin.f32 %v3104_v29, 1.0  ;;  %v2321_v38 = vmul.f32 %v2289_v18, %v2065_v63  ;;  %v2513_v6 = vmul.f32 0.2, %v1675_v37 }
 0x31d   : > { %v2257_v27 = vadd.f32 %v4421_v60, %v2225_v32  ;;  %3904 = vst [vmem:[%s5615_s13 + $0x160] sm:$0xff] %v3391_v34  ;;  %v3008_v54 = vadd.f32 %v2976_v25, %v2880_v28  ;;  %v3296_v55 = vadd.f32 %v3264_v12, %v3200_v56  ;;  %v1118_v35 = vmul.f32 0.2, %v5654_v33  ;;  %v7143_v63 = vld [vmem:[#allocation116_spill] sm:$0xff]  ;;  %v7150_v56 = vld [vmem:[#allocation122_spill] sm:$0xff]  ;;  %v4424_v32 = vld [vmem:[%s4880_s14 + $0x178] sm:$0xff] }
 0x31e   : > { %v2417_v31 = vadd.f32 1.0, %v2385_v13  ;;  %v3168_v11 = vadd.f32 %v3136_v44, %v3040_v14  ;;  %v2353_v16 = vmin.f32 %v2321_v38, 1.0  ;;  %v2545_v20 = vsub.f32 1.0, %v2513_v6  ;;  %v4425_v34 = vld [vmem:[%s4880_s14 + $0x278] sm:$0xff] }
 0x31f   : > { %v1612_v40 = vmul.f32 0.5, %v5578_v57  ;;  %v3328_v41 = vmin.f32 %v3008_v54, 1.0  ;;  %v3457_v61 = vmin.f32 %v3296_v55, 1.0  ;;  %4283 = vrsqrt.f32 %v7141_v0 }
 0x320   : > { %v2449_v30 = vmul.f32 %v2417_v31, %v2161_v19  ;;  %v3392_v37 = vmin.f32 %v3168_v11, 1.0  ;;  %v2577_v26 = vmul.f32 %v2545_v20, %v2257_v27  ;;  %v2721_v10 = vmul.f32 %v7142_v5, %v2353_v16 }
 0x321   : > { %v1644_v39 = vadd.f32 0.5, %v1612_v40  ;;  %3360 = vst [vmem:[%s5615_s13 + $0x68] sm:$0xff] %v3328_v41  ;;  %3937 = vst [vmem:[%s5615_s13 + $0x268] sm:$0xff] %v3457_v61  ;;  %v7144_v46 = vsub.f32 1.0, %v7143_v63  ;;  %v7146_v57 = vsub.f32 1.0, %v7145_v48  ;;  %v2658_v24 = vunpack.c.h.bf16 %v4422_v1 }
 0x322   : > { %v2481_v33 = vmin.f32 %v2449_v30, 1.0  ;;  %v7148_v52 = vsub.f32 1.05, %v7147_v21  ;;  %3905 = vst [vmem:[%s5615_s13 + $0x168] sm:$0xff] %v3392_v37  ;;  %v2609_v28 = vmin.f32 %v2577_v26, 1.0  ;;  %v2913_v15 = vmul.f32 %v7149_v50, %v2721_v10 }
 0x323   : > { %v2034_v45 = vmul.f32 %v7144_v46, %v1118_v35  ;;  %v2130_v42 = vmul.f32 %v7146_v57, %v1118_v35  ;;  %v1676_v14 = vmul.f32 0.1, %v1644_v39  ;;  %v2881_v36 = vmul.f32 %v7150_v56, %v2721_v10  ;;  %v5994_v46 = vpop.f32.mrb[23].mxu1 }
 0x324   : > { %v2226_v4 = vmul.f32 %v7148_v52, %v1118_v35  ;;  %v2753_v51 = vmul.f32 %v7142_v5, %v2481_v33  ;;  %v1872_v9 = vmul.f32 0.15, %v5569_v62  ;;  %v2785_v19 = vmul.f32 %v7142_v5, %v2609_v28  ;;  %v7151_v5 = vld [vmem:[#allocation114_spill] sm:$0xff] }
 0x325   : > { %v2066_v22 = vadd.f32 %v4423_v58, %v2034_v45  ;;  %v2945_v43 = vmul.f32 1.05, %v2913_v15  ;;  %v2290_v29 = vadd.f32 1.0, %v1676_v14  ;;  %v2386_v8 = vmul.f32 0.3, %v1676_v14 }
 0x326   : > { %v3073_v17 = vmul.f32 %v7149_v50, %v2753_v51  ;;  %v2162_v18 = vadd.f32 %v4424_v32, %v2130_v42  ;;  %v2258_v25 = vadd.f32 %v4425_v34, %v2226_v4  ;;  %v2514_v12 = vmul.f32 0.2, %v1676_v14 }
 0x327   : > { %v2977_v13 = vmin.f32 %v2945_v43, 1.0  ;;  %v3233_v44 = vmul.f32 %v7149_v50, %v2785_v19  ;;  %v2322_v60 = vmul.f32 %v2290_v29, %v2066_v22  ;;  %v2690_v27 = vsub.f32 1.0, %v2658_v24  ;;  %v7152_v50 = vld [vmem:[#allocation107_spill] sm:$0xff]  ;;  %v7153_v24 = vld [vmem:[#allocation24_spill] sm:$0xff] }
 0x328   : > { %v3105_v62 = vmul.f32 1.03, %v3073_v17  ;;  %v3201_v38 = vmul.f32 %v7150_v56, %v2785_v19  ;;  %v2418_v6 = vadd.f32 1.0, %v2386_v8  ;;  %v2546_v54 = vsub.f32 1.0, %v2514_v12  ;;  %v7154_v17 = vld [vmem:[#allocation28_spill] sm:$0xff] }
 0x329   : > { %v3009_v55 = vadd.f32 %v2977_v13, %v2881_v36  ;;  %v3265_v31 = vmin.f32 %v3233_v44, 1.0  ;;  %v2354_v35 = vmin.f32 %v2322_v60, 1.0  ;;  %v2818_v11 = vadd.f32 1.0, %v1872_v9  ;;  %v4284_v16 = vpop.eup %4283  ;;  %v7155_v60 = vld [vmem:[#allocation25_spill] sm:$0xff] }
 0x32a   : > { %v3041_v20 = vmul.f32 %v7150_v56, %v2753_v51  ;;  %v3137_v40 = vmin.f32 %v3105_v62, 1.0  ;;  %v2450_v41 = vmul.f32 %v2418_v6, %v2162_v18  ;;  %v2578_v61 = vmul.f32 %v2546_v54, %v2258_v25  ;;  %v1905_v54 = vld [vmem:[%s4880_s14 + $0x80] sm:$0xff] }
 0x32b   : > { %v3297_v30 = vadd.f32 %v3265_v31, %v3201_v38  ;;  %v3329_v37 = vmin.f32 %v3009_v55, 1.0  ;;  %v2722_v26 = vmul.f32 %v2690_v27, %v2354_v35  ;;  %v1390_v10 = vmul.f32 %v5560_v47, %v7151_v5  ;;  %v3844_v31 = vld [vmem:[%s4880_s14 + $0x180] sm:$0xff] }
 0x32c   : > { %v3169_v39 = vadd.f32 %v3137_v40, %v3041_v20  ;;  %v2482_v33 = vmin.f32 %v2450_v41, 1.0  ;;  %v2610_v63 = vmin.f32 %v2578_v61, 1.0  ;;  %vm1391_vm0 = vcmp.eq.f32.partialorder %v7151_v5, inf  ;;  %v7156_v40 = vld [vmem:[#allocation29_spill] sm:$0xff] }
 0x32d   : > { %3361 = vst [vmem:[%s5615_s13 + $0x70] sm:$0xff] %v3329_v37  ;;  %v3458_v45 = vmin.f32 %v3297_v30, 1.0  ;;  %v2850_v48 = vsub.f32 1.0, %v1872_v9  ;;  %v2914_v57 = vmul.f32 %v2818_v11, %v2722_v26  ;;  %v1392_v42 = vsel %vm1391_vm0, %v7151_v5, %v1390_v10 }
 0x32e   : > { %v3393_v21 = vmin.f32 %v3169_v39, 1.0  ;;  %v2754_v52 = vmul.f32 %v2690_v27, %v2482_v33  ;;  %v2786_v4 = vmul.f32 %v2690_v27, %v2610_v63  ;;  %vm1393_vm1 = vcmp.eq.f32.partialorder %v7151_v5, 0.0  ;;  %v1906_v39 = vld [vmem:[%s4880_s14 + $0x88] sm:$0xff]  ;;  %v6020_v33 = vpop.f32.mrb[24].mxu1 }
 0x32f   : > { %3938 = vst [vmem:[%s5615_s13 + $0x270] sm:$0xff] %v3458_v45  ;;  %v2946_v47 = vmul.f32 1.05, %v2914_v57  ;;  %v1394_v28 = vand.u32 2147483648, %v7151_v5  ;;  %v3820_v15 = vadd.f32 0.25, %v7152_v50  ;;  %v1146_v51 = vadd.s32 72, %v7153_v24 }
 0x330   : > { %3906 = vst [vmem:[%s5615_s13 + $0x170] sm:$0xff] %v3393_v21  ;;  %v3074_v14 = vmul.f32 %v2818_v11, %v2754_v52  ;;  %v3234_v1 = vmul.f32 %v2818_v11, %v2786_v4  ;;  %v2882_v56 = vmul.f32 %v2850_v48, %v2722_v26  ;;  %v3202_v19 = vmul.f32 %v2850_v48, %v2786_v4  ;;  %v3876_v11 = vld [vmem:[%s4880_s14 + $0x280] sm:$0xff]  ;;  %v3845_v57 = vld [vmem:[%s4880_s14 + $0x188] sm:$0xff] }
 0x331   : > { %v2978_v36 = vmin.f32 %v2946_v47, 1.0  ;;  %v1395_v9 = vsel %vm1393_vm1, %v1394_v28, %v1392_v42  ;;  %v1721_v58 = vmul.f32 %v3820_v15, %v3820_v15  ;;  %v3042_v18 = vmul.f32 %v2850_v48, %v2754_v52  ;;  %v3877_v42 = vld [vmem:[%s4880_s14 + $0x288] sm:$0xff]  ;;  %v2635_v4 = vld [vmem:[%s4901_s25 + $0x40] sm:$0xff] }
 0x332   : > { %v3106_v22 = vmul.f32 1.03, %v3074_v14  ;;  %v3266_v43 = vmin.f32 %v3234_v1, 1.0  ;;  %v1517_v29 = vmul.f32 -2.0, %v1395_v9  ;;  %v1163_v27 = vadd.s32 %v7155_v60, %v1146_v51 }
 0x333   : > { %v3010_v8 = vadd.f32 %v2978_v36, %v2882_v56  ;;  %v1745_v32 = vadd.f32 %v1721_v58, %v7154_v17  ;;  %v1397_v35 = vmul.f32 %v4284_v16, %v7141_v0  ;;  %vm1398_vm2 = vcmp.eq.f32.partialorder %v7141_v0, inf }
 0x334   : > { %v3138_v34 = vmin.f32 %v3106_v22, 1.0  ;;  %v3298_v25 = vadd.f32 %v3266_v43, %v3202_v19  ;;  %v1565_v12 = vmul.f32 1.442695, %v1517_v29  ;;  %vm1400_vm3 = vcmp.eq.f32.partialorder %v7141_v0, 0.0 }
 0x335   : > { %v3330_v13 = vmin.f32 %v3010_v8, 1.0  ;;  %v1777_v44 = vmul.f32 -1.3888888, %v1745_v32  ;;  %v1401_v20 = vand.u32 2147483648, %v7141_v0  ;;  %v1746_v41 = vadd.f32 %v1721_v58, %v7156_v40  ;;  %v7157_v8 = vld [vmem:[#allocation26_spill] sm:$0xff] }
 0x336   : > { %v3170_v62 = vadd.f32 %v3138_v34, %v3042_v18  ;;  %v3459_v38 = vmin.f32 %v3298_v25, 1.0  ;;  %4285 = vpow2.f32 %v1565_v12  ;;  %v1179_v61 = vcvt.s32.f32 %v1163_v27  ;;  %v7158_v18 = vld [vmem:[#allocation27_spill] sm:$0xff] }
 0x337   : > { %3362 = vst [vmem:[%s5615_s13 + $0x78] sm:$0xff] %v3330_v13  ;;  %v1825_v6 = vmul.f32 1.442695, %v1777_v44  ;;  %v1119_v30 = vmul.f32 0.2, %v5671_v3  ;;  %v2003_v37 = vsub.f32 1.0, %v1905_v54  ;;  %v1399_v16 = vsel %vm1398_vm2, %v7141_v0, %v1397_v35 }
 0x338   : > { %v3394_v55 = vmin.f32 %v3170_v62, 1.0  ;;  %3939 = vst [vmem:[%s5615_s13 + $0x278] sm:$0xff] %v3459_v38  ;;  %v2099_v26 = vsub.f32 1.0, %v3844_v31  ;;  %v1402_v5 = vsel %vm1400_vm3, %v1401_v20, %v1399_v16  ;;  %v1778_v10 = vmul.f32 -1.3888888, %v1746_v41 }
 0x339   : > { %4287 = vpow2.f32 %v1825_v6  ;;  %v2195_v63 = vsub.f32 1.05, %v3876_v11  ;;  %v1518_v45 = vmul.f32 -2.0, %v1402_v5  ;;  %v1200_v21 = vmul.f32 0.007843138, %v1179_v61 }
 0x33a   : > { %3907 = vst [vmem:[%s5615_s13 + $0x178] sm:$0xff] %v3394_v55  ;;  %v1827_v48 = vmul.f32 1.442695, %v1778_v10  ;;  %v2035_v52 = vmul.f32 %v2003_v37, %v1119_v30  ;;  %v1120_v47 = vmul.f32 0.2, %v5678_v49  ;;  %v2004_v28 = vsub.f32 1.0, %v1906_v39 }
 0x33b   : > { %v1567_v3 = vmul.f32 1.442695, %v1518_v45  ;;  %v2131_v50 = vmul.f32 %v2099_v26, %v1119_v30  ;;  %v3801_v0 = vadd.f32 -1.0, %v1200_v21  ;;  %v2227_v14 = vmul.f32 %v2195_v63, %v1119_v30  ;;  %v6045_v30 = vld [vmem:[%s4880_s14 + $0x190] sm:$0xff] }
 0x33c   : > { %4289 = vpow2.f32 %v1827_v48  ;;  %v2100_v1 = vsub.f32 1.0, %v3845_v57  ;;  %v2196_v51 = vsub.f32 1.05, %v3877_v42  ;;  %v2659_v36 = vunpack.c.l.bf16 %v2635_v4 }
 0x33d   : > { %4291 = vpow2.f32 %v1567_v3  ;;  %v1238_v9 = vmul.f32 %v3801_v0, %v3801_v0  ;;  %v3821_v58 = vadd.f32 0.25, %v3801_v0  ;;  %v2067_v22 = vadd.f32 %v2035_v52, %v1905_v54  ;;  %v6037_v54 = vld [vmem:[%s4880_s14 + $0x90] sm:$0xff] }
 0x33e   : > { %v2036_v19 = vmul.f32 %v2004_v28, %v1120_v47  ;;  %v2660_v43 = vunpack.c.h.bf16 %v2635_v4  ;;  %v2163_v12 = vadd.f32 %v3844_v31, %v2131_v50  ;;  %v2259_v13 = vadd.f32 %v3876_v11, %v2227_v14 }
 0x33f   : > { %v6027_v32 = vadd.f32 %v1238_v9, %v7157_v8  ;;  %v6030_v34 = vadd.f32 %v1238_v9, %v7158_v18  ;;  %v1722_v25 = vmul.f32 %v3821_v58, %v3821_v58  ;;  %v2132_v44 = vmul.f32 %v2100_v1, %v1120_v47 }
 0x340   : > { %v4286_v15 = vpop.eup %4285  ;;  %v2228_v27 = vmul.f32 %v2196_v51, %v1120_v47  ;;  %v2691_v38 = vsub.f32 1.0, %v2659_v36  ;;  %v6033_v6 = vmul.f32 0.2, %v5708_v23  ;;  %v6039_v35 = vadd.f32 %v2036_v19, %v1906_v39 }
 0x341   : > { %v1613_v56 = vmul.f32 0.5, %v4286_v15  ;;  %4293 = vrsqrt.f32 %v6027_v32  ;;  %v6041_v20 = vsub.f32 1.0, %v2660_v43  ;;  %v1747_v31 = vadd.f32 %v1722_v25, %v7154_v17 }
 0x342   : > { %4295 = vrsqrt.f32 %v6030_v34  ;;  %v6048_v23 = vadd.f32 %v3845_v57, %v2132_v44  ;;  %v6050_v37 = vadd.f32 %v3877_v42, %v2228_v27  ;;  %v2005_v26 = vsub.f32 1.0, %v6037_v54 }
 0x343   : > { %v4288_v29 = vpop.eup %4287  ;;  %v1645_v49 = vadd.f32 0.5, %v1613_v56  ;;  %v1779_v16 = vmul.f32 -1.3888888, %v1747_v31  ;;  %v1748_v45 = vadd.f32 %v1722_v25, %v7156_v40  ;;  %vm1405_vm4 = vcmp.eq.f32.partialorder %v6027_v32, inf }
 0x344   : > { %v1873_v55 = vmul.f32 0.15, %v4288_v29  ;;  %v2101_v57 = vsub.f32 1.0, %v6045_v30  ;;  %vm1407_vm5 = vcmp.eq.f32.partialorder %v6027_v32, 0.0  ;;  %v1408_v56 = vand.u32 2147483648, %v6027_v32 }
 0x345   : > { %v1677_v62 = vmul.f32 0.1, %v1645_v49  ;;  %v1829_v50 = vmul.f32 1.442695, %v1779_v16  ;;  %v1780_v0 = vmul.f32 -1.3888888, %v1748_v45 }
 0x346   : > { %v4290_v5 = vpop.eup %4289  ;;  %v2819_v21 = vadd.f32 1.0, %v1873_v55  ;;  %v2851_v28 = vsub.f32 1.0, %v1873_v55  ;;  %vm1412_vm6 = vcmp.eq.f32.partialorder %v6030_v34, inf  ;;  %v1415_v36 = vand.u32 2147483648, %v6030_v34  ;;  %v6065_v55 = vpop.f32.mrb[25].mxu1 }
 0x347   : > { %v2291_v41 = vadd.f32 1.0, %v1677_v62  ;;  %v2387_v11 = vmul.f32 0.3, %v1677_v62  ;;  %v2515_v61 = vmul.f32 0.2, %v1677_v62  ;;  %v4292_v48 = vpop.eup %4291  ;;  %4297 = vpow2.f32 %v1829_v50 }
 0x348   : > { %v6054_v52 = vmul.f32 0.15, %v4290_v5  ;;  %v1614_v3 = vmul.f32 0.5, %v4292_v48  ;;  %v1831_v9 = vmul.f32 1.442695, %v1780_v0  ;;  %vm1414_vm7 = vcmp.eq.f32.partialorder %v6030_v34, 0.0 }
 0x349   : > { %v2323_v10 = vmul.f32 %v2291_v41, %v2067_v22  ;;  %v2419_v39 = vadd.f32 1.0, %v2387_v11  ;;  %v2547_v63 = vsub.f32 1.0, %v2515_v61 }
 0x34a   : > { %v1646_v51 = vadd.f32 0.5, %v1614_v3  ;;  %v2820_v29 = vadd.f32 1.0, %v6054_v52  ;;  %4299 = vpow2.f32 %v1831_v9 }
 0x34b   : > { %v2355_v4 = vmin.f32 %v2323_v10, 1.0  ;;  %v2451_v42 = vmul.f32 %v2419_v39, %v2163_v12  ;;  %v2579_v47 = vmul.f32 %v2547_v63, %v2259_v13  ;;  %v4294_v58 = vpop.eup %4293 }
 0x34c   : > { %v1678_v25 = vmul.f32 0.1, %v1646_v51  ;;  %v1404_v12 = vmul.f32 %v4294_v58, %v6027_v32  ;;  %v4296_v13 = vpop.eup %4295  ;;  %v6080_v58 = vpop.f32.mrb[26].mxu1 }
 0x34d   : > { %v2483_v15 = vmin.f32 %v2451_v42, 1.0  ;;  %v2611_v14 = vmin.f32 %v2579_v47, 1.0  ;;  %v2723_v1 = vmul.f32 %v2691_v38, %v2355_v4  ;;  %v1411_v10 = vmul.f32 %v4296_v13, %v6030_v34  ;;  %v1908_v13 = vld [vmem:[%s4880_s14 + $0x98] sm:$0xff] }
 0x34e   : > { %v2292_v41 = vadd.f32 1.0, %v1678_v25  ;;  %v2516_v11 = vmul.f32 0.2, %v1678_v25  ;;  %v1406_v5 = vsel %vm1405_vm4, %v6027_v32, %v1404_v12 }
 0x34f   : > { %v2755_v22 = vmul.f32 %v2691_v38, %v2483_v15  ;;  %v2787_v19 = vmul.f32 %v2691_v38, %v2611_v14  ;;  %v2915_v43 = vmul.f32 %v2819_v21, %v2723_v1  ;;  %v2883_v49 = vmul.f32 %v2851_v28, %v2723_v1 }
 0x350   : > { %v2388_v38 = vmul.f32 0.3, %v1678_v25  ;;  %v2324_v63 = vmul.f32 %v2292_v41, %v6039_v35  ;;  %v2548_v48 = vsub.f32 1.0, %v2516_v11  ;;  %v1409_v47 = vsel %vm1407_vm5, %v1408_v56, %v1406_v5  ;;  %v3879_v5 = vld [vmem:[%s4880_s14 + $0x298] sm:$0xff] }
 0x351   : > { %v2947_v44 = vmul.f32 1.05, %v2915_v43  ;;  %v3075_v27 = vmul.f32 %v2819_v21, %v2755_v22  ;;  %v3203_v62 = vmul.f32 %v2851_v28, %v2787_v19  ;;  %v3235_v31 = vmul.f32 %v2819_v21, %v2787_v19  ;;  %v4298_v19 = vpop.eup %4297 }
 0x352   : > { %v2420_v45 = vadd.f32 1.0, %v2388_v38  ;;  %v3043_v42 = vmul.f32 %v2851_v28, %v2755_v22  ;;  %v2356_v50 = vmin.f32 %v2324_v63, 1.0  ;;  %v2580_v15 = vmul.f32 %v2548_v48, %v6050_v37  ;;  %v3878_v22 = vld [vmem:[%s4880_s14 + $0x290] sm:$0xff] }
 0x353   : > { %v2979_v61 = vmin.f32 %v2947_v44, 1.0  ;;  %v3107_v16 = vmul.f32 1.03, %v3075_v27  ;;  %v3267_v39 = vmin.f32 %v3235_v31, 1.0  ;;  %v1519_v35 = vmul.f32 -2.0, %v1409_v47  ;;  %v3847_v31 = vld [vmem:[%s4880_s14 + $0x198] sm:$0xff] }
 0x354   : > { %v2452_v0 = vmul.f32 %v2420_v45, %v6048_v23  ;;  %v1413_v28 = vsel %vm1412_vm6, %v6030_v34, %v1411_v10  ;;  %v2612_v32 = vmin.f32 %v2580_v15, 1.0  ;;  %v2724_v56 = vmul.f32 %v6041_v20, %v2356_v50  ;;  %v4300_v44 = vpop.eup %4299  ;;  %v2636_v45 = vld [vmem:[%s4901_s25 + $0x48] sm:$0xff] }
 0x355   : > { %v3011_v4 = vadd.f32 %v2979_v61, %v2883_v49  ;;  %v3139_v21 = vmin.f32 %v3107_v16, 1.0  ;;  %v3299_v3 = vadd.f32 %v3267_v39, %v3203_v62  ;;  %v1569_v37 = vmul.f32 1.442695, %v1519_v35 }
 0x356   : > { %v2484_v9 = vmin.f32 %v2452_v0, 1.0  ;;  %v2788_v49 = vmul.f32 %v6041_v20, %v2612_v32  ;;  %v2852_v25 = vsub.f32 1.0, %v6054_v52  ;;  %v2916_v12 = vmul.f32 %v2820_v29, %v2724_v56 }
 0x357   : > { %v3171_v14 = vadd.f32 %v3139_v21, %v3043_v42  ;;  %v3331_v1 = vmin.f32 %v3011_v4, 1.0  ;;  %v3460_v51 = vmin.f32 %v3299_v3, 1.0  ;;  %4301 = vpow2.f32 %v1569_v37 }
 0x358   : > { %v2756_v43 = vmul.f32 %v6041_v20, %v2484_v9  ;;  %v2037_v27 = vmul.f32 %v2005_v26, %v6033_v6  ;;  %v1416_v62 = vsel %vm1414_vm7, %v1415_v36, %v1413_v28  ;;  %v2948_v20 = vmul.f32 1.05, %v2916_v12 }
 0x359   : > { %3363 = vst [vmem:[%s5615_s13 + $0x80] sm:$0xff] %v3331_v1  ;;  %v3395_v23 = vmin.f32 %v3171_v14, 1.0  ;;  %3940 = vst [vmem:[%s5615_s13 + $0x280] sm:$0xff] %v3460_v51  ;;  %v2133_v52 = vmul.f32 %v2101_v57, %v6033_v6  ;;  %v2197_v38 = vsub.f32 1.05, %v3878_v22  ;;  %v3236_v11 = vmul.f32 %v2820_v29, %v2788_v49 }
 0x35a   : > { %v3076_v41 = vmul.f32 %v2820_v29, %v2756_v43  ;;  %v1122_v61 = vmul.f32 0.2, %v5802_v59  ;;  %v1520_v16 = vmul.f32 -2.0, %v1416_v62  ;;  %v2006_v10 = vsub.f32 1.0, %v1908_v13 }
 0x35b   : > { %3908 = vst [vmem:[%s5615_s13 + $0x180] sm:$0xff] %v3395_v23  ;;  %v2884_v26 = vmul.f32 %v2852_v25, %v2724_v56  ;;  %v2980_v39 = vmin.f32 %v2948_v20, 1.0  ;;  %v2102_v34 = vsub.f32 1.0, %v3847_v31  ;;  %v3204_v36 = vmul.f32 %v2852_v25, %v2788_v49 }
 0x35c   : > { %v3108_v63 = vmul.f32 1.03, %v3076_v41  ;;  %v3268_v48 = vmin.f32 %v3236_v11, 1.0  ;;  %v1571_v4 = vmul.f32 1.442695, %v1520_v16  ;;  %v1147_v42 = vadd.s32 80, %v7153_v24 }
 0x35d   : > { %v3012_v21 = vadd.f32 %v2980_v39, %v2884_v26  ;;  %v3044_v57 = vmul.f32 %v2852_v25, %v2756_v43  ;;  %v2198_v29 = vsub.f32 1.05, %v3879_v5  ;;  %v2661_v59 = vunpack.c.l.bf16 %v2636_v45  ;;  %v6141_v39 = vld [vmem:[%s4880_s14 + $0xa8] sm:$0xff] }
 0x35e   : > { %v3140_v47 = vmin.f32 %v3108_v63, 1.0  ;;  %v3300_v3 = vadd.f32 %v3268_v48, %v3204_v36  ;;  %4303 = vpow2.f32 %v1571_v4  ;;  %v1164_v50 = vadd.s32 %v7155_v60, %v1147_v42  ;;  %v6144_v63 = vld [vmem:[%s4880_s14 + $0x1a8] sm:$0xff] }
 0x35f   : > { %v3332_v15 = vmin.f32 %v3012_v21, 1.0  ;;  %v2229_v14 = vmul.f32 %v2197_v38, %v6033_v6  ;;  %v2038_v1 = vmul.f32 %v2006_v10, %v1122_v61  ;;  %v1875_v28 = vmul.f32 0.15, %v4298_v19 }
 0x360   : > { %v3172_v0 = vadd.f32 %v3140_v47, %v3044_v57  ;;  %v3461_v35 = vmin.f32 %v3300_v3, 1.0  ;;  %v2134_v51 = vmul.f32 %v2102_v34, %v1122_v61  ;;  %v1180_v9 = vcvt.s32.f32 %v1164_v50 }
 0x361   : > { %3364 = vst [vmem:[%s5615_s13 + $0x88] sm:$0xff] %v3332_v15  ;;  %v1876_v56 = vmul.f32 0.15, %v4300_v44  ;;  %v2230_v23 = vmul.f32 %v2198_v29, %v1122_v61  ;;  %v2662_v37 = vunpack.c.h.bf16 %v2636_v45  ;;  %v4302_v43 = vpop.eup %4301  ;;  %v2069_v49 = vadd.f32 %v2037_v27, %v6037_v54  ;;  %v6121_v61 = vld [vmem:[%s4880_s14 + $0xa0] sm:$0xff] }
 0x362   : > { %v3396_v32 = vmin.f32 %v3172_v0, 1.0  ;;  %3941 = vst [vmem:[%s5615_s13 + $0x288] sm:$0xff] %v3461_v35  ;;  %v2165_v6 = vadd.f32 %v6045_v30, %v2133_v52  ;;  %v1201_v25 = vmul.f32 0.007843138, %v1180_v9  ;;  %v1615_v12 = vmul.f32 0.5, %v4302_v43  ;;  %v6124_v54 = vld [vmem:[%s4880_s14 + $0x1a0] sm:$0xff] }
 0x363   : > { %v2261_v19 = vadd.f32 %v3878_v22, %v2229_v14  ;;  %v2693_v62 = vsub.f32 1.0, %v2661_v59  ;;  %v6112_v20 = vadd.f32 %v2038_v1, %v1908_v13  ;;  %v6114_v44 = vadd.f32 1.0, %v1875_v28  ;;  %v6127_v30 = vld [vmem:[%s4880_s14 + $0x2a0] sm:$0xff] }
 0x364   : > { %3909 = vst [vmem:[%s5615_s13 + $0x188] sm:$0xff] %v3396_v32  ;;  %v6116_v41 = vsub.f32 1.0, %v1875_v28  ;;  %v6118_v38 = vadd.f32 %v3847_v31, %v2134_v51  ;;  %v3802_v11 = vadd.f32 -1.0, %v1201_v25  ;;  %v1647_v27 = vadd.f32 0.5, %v1615_v12 }
 0x365   : > { %v6129_v22 = vadd.f32 %v3879_v5, %v2230_v23  ;;  %v6131_v13 = vsub.f32 1.0, %v2662_v37  ;;  %v6133_v52 = vadd.f32 1.0, %v1876_v56  ;;  %v6135_v16 = vsub.f32 1.0, %v1876_v56 }
 0x366   : > { %v6138_v10 = vmul.f32 0.2, %v5835_v7  ;;  %v1239_v31 = vmul.f32 %v3802_v11, %v3802_v11  ;;  %v3822_v26 = vadd.f32 0.25, %v3802_v11  ;;  %v1679_v45 = vmul.f32 0.1, %v1647_v27 }
 0x367   : > { %v2007_v34 = vsub.f32 1.0, %v6121_v61  ;;  %v2103_v5 = vsub.f32 1.0, %v6124_v54  ;;  %v2199_v36 = vsub.f32 1.05, %v6127_v30  ;;  %v1148_v21 = vadd.s32 88, %v7153_v24 }
 0x368   : > { %v4304_v48 = vpop.eup %4303  ;;  %v6150_v4 = vadd.f32 %v1239_v31, %v7157_v8  ;;  %v6153_v7 = vadd.f32 %v1239_v31, %v7158_v18  ;;  %v1723_v42 = vmul.f32 %v3822_v26, %v3822_v26  ;;  %v2293_v57 = vadd.f32 1.0, %v1679_v45 }
 0x369   : > { %v2389_v47 = vmul.f32 0.3, %v1679_v45  ;;  %v2517_v29 = vmul.f32 0.2, %v1679_v45  ;;  %v1616_v3 = vmul.f32 0.5, %v4304_v48  ;;  %v2008_v50 = vsub.f32 1.0, %v6141_v39 }
 0x36a   : > { %4305 = vrsqrt.f32 %v6150_v4  ;;  %v6158_v59 = vmul.f32 0.2, %v5930_v53  ;;  %v2104_v0 = vsub.f32 1.0, %v6144_v63  ;;  %v2325_v15 = vmul.f32 %v2293_v57, %v2069_v49 }
 0x36b   : > { %v2421_v14 = vadd.f32 1.0, %v2389_v47  ;;  %v2549_v1 = vsub.f32 1.0, %v2517_v29  ;;  %v1648_v35 = vadd.f32 0.5, %v1616_v3  ;;  %vm1419_vm8 = vcmp.eq.f32.partialorder %v6150_v4, inf }
 0x36c   : > { %v1749_v28 = vadd.f32 %v1723_v42, %v7154_v17  ;;  %4307 = vrsqrt.f32 %v6153_v7  ;;  %v6166_v51 = vadd.s32 %v7155_v60, %v1148_v21  ;;  %v2357_v9 = vmin.f32 %v2325_v15, 1.0 }
 0x36d   : > { %v2453_v53 = vmul.f32 %v2421_v14, %v2165_v6  ;;  %v2581_v32 = vmul.f32 %v2549_v1, %v2261_v19  ;;  %v1680_v56 = vmul.f32 0.1, %v1648_v35  ;;  %vm1421_vm9 = vcmp.eq.f32.partialorder %v6150_v4, 0.0 }
 0x36e   : > { %v1422_v23 = vand.u32 2147483648, %v6150_v4  ;;  %v1781_v37 = vmul.f32 -1.3888888, %v1749_v28  ;;  %v1429_v43 = vand.u32 2147483648, %v6153_v7  ;;  %v2725_v12 = vmul.f32 %v2693_v62, %v2357_v9 }
 0x36f   : > { %v2485_v49 = vmin.f32 %v2453_v53, 1.0  ;;  %v2613_v25 = vmin.f32 %v2581_v32, 1.0  ;;  %v2294_v11 = vadd.f32 1.0, %v1680_v56  ;;  %v2390_v27 = vmul.f32 0.3, %v1680_v56 }
 0x370   : > { %v2518_v31 = vmul.f32 0.2, %v1680_v56  ;;  %v1833_v26 = vmul.f32 1.442695, %v1781_v37  ;;  %v1750_v45 = vadd.f32 %v1723_v42, %v7156_v40  ;;  %v2917_v19 = vmul.f32 %v6114_v44, %v2725_v12  ;;  %v6185_v56 = vpop.f32.mrb[27].mxu1 }
 0x371   : > { %v2757_v48 = vmul.f32 %v2693_v62, %v2485_v49  ;;  %v2789_v6 = vmul.f32 %v2693_v62, %v2613_v25  ;;  %vm1426_vm10 = vcmp.eq.f32.partialorder %v6153_v7, inf  ;;  %v1181_v21 = vcvt.s32.f32 %v6166_v51 }
 0x372   : > { %v2885_v57 = vmul.f32 %v6116_v41, %v2725_v12  ;;  %v2326_v47 = vmul.f32 %v2294_v11, %v6112_v20  ;;  %v2422_v29 = vadd.f32 1.0, %v2390_v27  ;;  %v2550_v3 = vsub.f32 1.0, %v2518_v31 }
 0x373   : > { %v2949_v15 = vmul.f32 1.05, %v2917_v19  ;;  %v3045_v14 = vmul.f32 %v6116_v41, %v2757_v48  ;;  %v3077_v1 = vmul.f32 %v6114_v44, %v2757_v48  ;;  %4309 = vpow2.f32 %v1833_v26 }
 0x374   : > { %vm1428_vm11 = vcmp.eq.f32.partialorder %v6153_v7, 0.0  ;;  %v4306_v62 = vpop.eup %4305  ;;  %v3237_v42 = vmul.f32 %v6114_v44, %v2789_v6  ;;  %v2358_v35 = vmin.f32 %v2326_v47, 1.0  ;;  %v2454_v28 = vmul.f32 %v2422_v29, %v6118_v38 }
 0x375   : > { %v2582_v51 = vmul.f32 %v2550_v3, %v6129_v22  ;;  %v2981_v9 = vmin.f32 %v2949_v15, 1.0  ;;  %v3109_v20 = vmul.f32 1.03, %v3077_v1  ;;  %v3205_v53 = vmul.f32 %v6116_v41, %v2789_v6 }
 0x376   : > { %v1418_v32 = vmul.f32 %v4306_v62, %v6150_v4  ;;  %v4308_v37 = vpop.eup %4307  ;;  %v3269_v49 = vmin.f32 %v3237_v42, 1.0  ;;  %v2486_v25 = vmin.f32 %v2454_v28, 1.0  ;;  %v2726_v11 = vmul.f32 %v6131_v13, %v2358_v35  ;;  %v6203_v42 = vld [vmem:[%s4880_s14 + $0x2a8] sm:$0xff] }
 0x377   : > { %v2614_v12 = vmin.f32 %v2582_v51, 1.0  ;;  %v3013_v44 = vadd.f32 %v2981_v9, %v2885_v57  ;;  %v3141_v27 = vmin.f32 %v3109_v20, 1.0  ;;  %v1782_v22 = vmul.f32 -1.3888888, %v1750_v45 }
 0x378   : > { %v1420_v38 = vsel %vm1419_vm8, %v6150_v4, %v1418_v32  ;;  %v3301_v31 = vadd.f32 %v3269_v49, %v3205_v53  ;;  %v2758_v41 = vmul.f32 %v6131_v13, %v2486_v25  ;;  %v1425_v48 = vmul.f32 %v4308_v37, %v6153_v7  ;;  %v1911_v25 = vld [vmem:[%s4880_s14 + $0xb0] sm:$0xff] }
 0x379   : > { %v2790_v26 = vmul.f32 %v6131_v13, %v2614_v12  ;;  %v3173_v6 = vadd.f32 %v3141_v27, %v3045_v14  ;;  %v3333_v19 = vmin.f32 %v3013_v44, 1.0  ;;  %v2918_v57 = vmul.f32 %v6133_v52, %v2726_v11  ;;  %v6216_v12 = vpop.f32.mrb[28].mxu1 }
 0x37a   : > { %v1423_v47 = vsel %vm1421_vm9, %v1422_v23, %v1420_v38  ;;  %v3462_v29 = vmin.f32 %v3301_v31, 1.0  ;;  %v2886_v45 = vmul.f32 %v6135_v16, %v2726_v11  ;;  %v3046_v3 = vmul.f32 %v6135_v16, %v2758_v41  ;;  %v2637_v31 = vld [vmem:[%s4901_s25 + $0x50] sm:$0xff] }
 0x37b   : > { %v3078_v15 = vmul.f32 %v6133_v52, %v2758_v41  ;;  %3365 = vst [vmem:[%s5615_s13 + $0x90] sm:$0xff] %v3333_v19  ;;  %v3397_v13 = vmin.f32 %v3173_v6, 1.0  ;;  %v2950_v1 = vmul.f32 1.05, %v2918_v57  ;;  %v3238_v62 = vmul.f32 %v6133_v52, %v2790_v26 }
 0x37c   : > { %v1521_v14 = vmul.f32 -2.0, %v1423_v47  ;;  %3942 = vst [vmem:[%s5615_s13 + $0x290] sm:$0xff] %v3462_v29  ;;  %v1427_v23 = vsel %vm1426_vm10, %v6153_v7, %v1425_v48  ;;  %v1835_v35 = vmul.f32 1.442695, %v1782_v22  ;;  %v1202_v28 = vmul.f32 0.007843138, %v1181_v21 }
 0x37d   : > { %v3110_v4 = vmul.f32 1.03, %v3078_v15  ;;  %v4310_v51 = vpop.eup %4309  ;;  %3910 = vst [vmem:[%s5615_s13 + $0x190] sm:$0xff] %v3397_v13  ;;  %v2982_v9 = vmin.f32 %v2950_v1, 1.0  ;;  %v3206_v20 = vmul.f32 %v6135_v16, %v2790_v26  ;;  %v3270_v53 = vmin.f32 %v3238_v62, 1.0  ;;  %v6245_v1 = vld [vmem:[%s4880_s14 + $0x1b0] sm:$0xff] }
 0x37e   : > { %v1573_v32 = vmul.f32 1.442695, %v1521_v14  ;;  %v1430_v37 = vsel %vm1428_vm11, %v1429_v43, %v1427_v23  ;;  %4311 = vpow2.f32 %v1835_v35  ;;  %v3803_v49 = vadd.f32 -1.0, %v1202_v28  ;;  %v6264_v28 = vld [vmem:[%s4880_s14 + $0x2b0] sm:$0xff] }
 0x37f   : > { %v3142_v52 = vmin.f32 %v3110_v4, 1.0  ;;  %v3014_v21 = vadd.f32 %v2982_v9, %v2886_v45  ;;  %v3302_v11 = vadd.f32 %v3270_v53, %v3206_v20  ;;  %v2200_v16 = vsub.f32 1.05, %v6203_v42 }
 0x380   : > { %4313 = vpow2.f32 %v1573_v32  ;;  %v1522_v27 = vmul.f32 -2.0, %v1430_v37  ;;  %v6220_v38 = vmul.f32 0.2, %v5949_v2  ;;  %v1240_v7 = vmul.f32 %v3803_v49, %v3803_v49 }
 0x381   : > { %v3174_v44 = vadd.f32 %v3142_v52, %v3046_v3  ;;  %v3334_v43 = vmin.f32 %v3014_v21, 1.0  ;;  %v3463_v22 = vmin.f32 %v3302_v11, 1.0  ;;  %v3823_v41 = vadd.f32 0.25, %v3803_v49  ;;  %v6290_v21 = vld [vmem:[%s4880_s14 + $0xb8] sm:$0xff] }
 0x382   : > { %v2009_v26 = vsub.f32 1.0, %v1911_v25  ;;  %v1575_v6 = vmul.f32 1.442695, %v1522_v27  ;;  %v6224_v19 = vadd.f32 %v1240_v7, %v7157_v8  ;;  %v6227_v57 = vadd.f32 %v1240_v7, %v7158_v18 }
 0x383   : > { %v3398_v48 = vmin.f32 %v3174_v44, 1.0  ;;  %3366 = vst [vmem:[%s5615_s13 + $0x98] sm:$0xff] %v3334_v43  ;;  %3943 = vst [vmem:[%s5615_s13 + $0x298] sm:$0xff] %v3463_v22  ;;  %v2039_v2 = vmul.f32 %v2007_v34, %v6138_v10  ;;  %v2135_v47 = vmul.f32 %v2103_v5, %v6138_v10  ;;  %v2231_v29 = vmul.f32 %v2199_v36, %v6138_v10  ;;  %v6296_v44 = vld [vmem:[%s4880_s14 + $0x1b8] sm:$0xff] }
 0x384   : > { %v1724_v45 = vmul.f32 %v3823_v41, %v3823_v41  ;;  %v2663_v3 = vunpack.c.l.bf16 %v2637_v31  ;;  %4315 = vpow2.f32 %v1575_v6  ;;  %v2040_v15 = vmul.f32 %v2008_v50, %v6158_v59 }
 0x385   : > { %3911 = vst [vmem:[%s5615_s13 + $0x198] sm:$0xff] %v3398_v48  ;;  %v2664_v13 = vunpack.c.h.bf16 %v2637_v31  ;;  %v2136_v34 = vmul.f32 %v2104_v0, %v6158_v59  ;;  %v2232_v5 = vmul.f32 %v2200_v16, %v6158_v59  ;;  %4317 = vrsqrt.f32 %v6224_v19 }
 0x386   : > { %v1751_v10 = vadd.f32 %v1724_v45, %v7154_v17  ;;  %v1877_v36 = vmul.f32 0.15, %v4310_v51  ;;  %v2041_v62 = vmul.f32 %v2009_v26, %v6220_v38  ;;  %4319 = vrsqrt.f32 %v6227_v57 }
 0x387   : > { %v2071_v50 = vadd.f32 %v2039_v2, %v6121_v61  ;;  %v2105_v14 = vsub.f32 1.0, %v6245_v1  ;;  %v2167_v23 = vadd.f32 %v6124_v54, %v2135_v47  ;;  %v2263_v0 = vadd.f32 %v6127_v30, %v2231_v29  ;;  %v6276_v30 = vld [vmem:[%s4901_s25 + $0x58] sm:$0xff]  ;;  %v6310_v29 = vpop.f32.mrb[29].mxu1 }
 0x388   : > { %v4312_v4 = vpop.eup %4311  ;;  %v6259_v59 = vsub.f32 1.0, %v2663_v3  ;;  %v6261_v35 = vsub.f32 1.0, %v2664_v13  ;;  %v6267_v9 = vadd.f32 %v2040_v15, %v6141_v39  ;;  %v6270_v61 = vadd.f32 %v6144_v63, %v2136_v34 }
 0x389   : > { %v6273_v20 = vadd.f32 %v6203_v42, %v2232_v5  ;;  %v1783_v54 = vmul.f32 -1.3888888, %v1751_v10  ;;  %v6278_v32 = vadd.f32 1.0, %v1877_v36  ;;  %v6280_v52 = vsub.f32 1.0, %v1877_v36 }
 0x38a   : > { %v4314_v51 = vpop.eup %4313  ;;  %v6282_v37 = vadd.f32 %v2041_v62, %v1911_v25  ;;  %v1878_v49 = vmul.f32 0.15, %v4312_v4  ;;  %v6285_v39 = vmul.f32 %v2105_v14, %v6220_v38  ;;  %v2201_v63 = vsub.f32 1.05, %v6264_v28 }
 0x38b   : > { %v1617_v53 = vmul.f32 0.5, %v4314_v51  ;;  %v1752_v42 = vadd.f32 %v1724_v45, %v7156_v40  ;;  %vm1433_vm12 = vcmp.eq.f32.partialorder %v6224_v19, inf  ;;  %vm1435_vm13 = vcmp.eq.f32.partialorder %v6224_v19, 0.0 }
 0x38c   : > { %v2665_v16 = vunpack.c.l.bf16 %v6276_v30  ;;  %v1436_v25 = vand.u32 2147483648, %v6224_v19  ;;  %v1837_v27 = vmul.f32 1.442695, %v1783_v54  ;;  %v6300_v7 = vmul.f32 0.2, %v5994_v46 }
 0x38d   : > { %v1649_v11 = vadd.f32 0.5, %v1617_v53  ;;  %v1149_v43 = vadd.s32 96, %v7153_v24  ;;  %vm1440_vm14 = vcmp.eq.f32.partialorder %v6227_v57, inf  ;;  %v1443_v41 = vand.u32 2147483648, %v6227_v57 }
 0x38e   : > { %v4316_v22 = vpop.eup %4315  ;;  %v2010_v26 = vsub.f32 1.0, %v6290_v21  ;;  %v6306_v2 = vadd.f32 1.0, %v1878_v49  ;;  %vm1442_vm15 = vcmp.eq.f32.partialorder %v6227_v57, 0.0  ;;  %v1784_v47 = vmul.f32 -1.3888888, %v1752_v42 }
 0x38f   : > { %v1681_v31 = vmul.f32 0.1, %v1649_v11  ;;  %v4318_v48 = vpop.eup %4317  ;;  %v1618_v6 = vmul.f32 0.5, %v4316_v22  ;;  %v2106_v46 = vsub.f32 1.0, %v6296_v44  ;;  %v6313_v10 = vsub.f32 1.0, %v1878_v49 }
 0x390   : > { %v4320_v45 = vpop.eup %4319  ;;  %v1432_v34 = vmul.f32 %v4318_v48, %v6224_v19  ;;  %4321 = vpow2.f32 %v1837_v27  ;;  %v1166_v36 = vadd.s32 %v7155_v60, %v1149_v43  ;;  %v1839_v11 = vmul.f32 1.442695, %v1784_v47 }
 0x391   : > { %v2295_v3 = vadd.f32 1.0, %v1681_v31  ;;  %v2391_v15 = vmul.f32 0.3, %v1681_v31  ;;  %v2519_v13 = vmul.f32 0.2, %v1681_v31  ;;  %v1650_v5 = vadd.f32 0.5, %v1618_v6 }
 0x392   : > { %v1434_v51 = vsel %vm1433_vm12, %v6224_v19, %v1432_v34  ;;  %v1439_v42 = vmul.f32 %v4320_v45, %v6227_v57  ;;  %v1182_v6 = vcvt.s32.f32 %v1166_v36  ;;  %4323 = vpow2.f32 %v1839_v11 }
 0x393   : > { %v2327_v62 = vmul.f32 %v2295_v3, %v2071_v50  ;;  %v2423_v14 = vadd.f32 1.0, %v2391_v15  ;;  %v2551_v4 = vsub.f32 1.0, %v2519_v13  ;;  %v1682_v54 = vmul.f32 0.1, %v1650_v5 }
 0x394   : > { %v1437_v53 = vsel %vm1435_vm13, %v1436_v25, %v1434_v51  ;;  %v1441_v47 = vsel %vm1440_vm14, %v6227_v57, %v1439_v42 }
 0x395   : > { %v2359_v22 = vmin.f32 %v2327_v62, 1.0  ;;  %v2455_v49 = vmul.f32 %v2423_v14, %v2167_v23  ;;  %v2583_v31 = vmul.f32 %v2551_v4, %v2263_v0  ;;  %v1523_v27 = vmul.f32 -2.0, %v1437_v53  ;;  %v6335_v53 = vpop.f32.mrb[30].mxu1 }
 0x396   : > { %v2296_v48 = vadd.f32 1.0, %v1682_v54  ;;  %v2392_v43 = vmul.f32 0.3, %v1682_v54  ;;  %v2520_v50 = vmul.f32 0.2, %v1682_v54  ;;  %v1444_v51 = vsel %vm1442_vm15, %v1443_v41, %v1441_v47 }
 0x397   : > { %v2487_v3 = vmin.f32 %v2455_v49, 1.0  ;;  %v2615_v15 = vmin.f32 %v2583_v31, 1.0  ;;  %v2727_v13 = vmul.f32 %v6259_v59, %v2359_v22  ;;  %v1577_v34 = vmul.f32 1.442695, %v1523_v27 }
 0x398   : > { %v2328_v5 = vmul.f32 %v2296_v48, %v6267_v9  ;;  %v2424_v19 = vadd.f32 1.0, %v2392_v43  ;;  %v2552_v25 = vsub.f32 1.0, %v2520_v50  ;;  %v1203_v54 = vmul.f32 0.007843138, %v1182_v6 }
 0x399   : > { %v2759_v23 = vmul.f32 %v6259_v59, %v2487_v3  ;;  %v2791_v0 = vmul.f32 %v6259_v59, %v2615_v15  ;;  %v2919_v45 = vmul.f32 %v6278_v32, %v2727_v13  ;;  %4325 = vpow2.f32 %v1577_v34 }
 0x39a   : > { %v2360_v36 = vmin.f32 %v2328_v5, 1.0  ;;  %v2456_v62 = vmul.f32 %v2424_v19, %v6270_v61  ;;  %v2584_v14 = vmul.f32 %v2552_v25, %v6273_v20  ;;  %v6337_v42 = vpop.eup %4321  ;;  %v2887_v20 = vmul.f32 %v6280_v52, %v2727_v13 }
 0x39b   : > { %v2951_v9 = vmul.f32 1.05, %v2919_v45  ;;  %v3079_v4 = vmul.f32 %v6278_v32, %v2759_v23  ;;  %v3239_v59 = vmul.f32 %v6278_v32, %v2791_v0  ;;  %v3047_v31 = vmul.f32 %v6280_v52, %v2759_v23 }
 0x39c   : > { %v2488_v11 = vmin.f32 %v2456_v62, 1.0  ;;  %v2616_v22 = vmin.f32 %v2584_v14, 1.0  ;;  %v2728_v61 = vmul.f32 %v6261_v35, %v2360_v36  ;;  %v3207_v57 = vmul.f32 %v6280_v52, %v2791_v0  ;;  %v4324_v36 = vpop.eup %4323 }
 0x39d   : > { %v2983_v49 = vmin.f32 %v2951_v9, 1.0  ;;  %v3111_v27 = vmul.f32 1.03, %v3079_v4  ;;  %v3271_v41 = vmin.f32 %v3239_v59, 1.0  ;;  %v1524_v3 = vmul.f32 -2.0, %v1444_v51  ;;  %v3883_v51 = vld [vmem:[%s4880_s14 + $0x2b8] sm:$0xff] }
 0x39e   : > { %v2760_v48 = vmul.f32 %v6261_v35, %v2488_v11  ;;  %v2792_v43 = vmul.f32 %v6261_v35, %v2616_v22  ;;  %v2920_v32 = vmul.f32 %v6306_v2, %v2728_v61  ;;  %v2888_v13 = vmul.f32 %v6313_v10, %v2728_v61 }
 0x39f   : > { %v3015_v50 = vadd.f32 %v2983_v49, %v2887_v20  ;;  %v3143_v6 = vmin.f32 %v3111_v27, 1.0  ;;  %v3303_v15 = vadd.f32 %v3271_v41, %v3207_v57  ;;  %v1579_v0 = vmul.f32 1.442695, %v1524_v3 }
 0x3a0   : > { %v3048_v34 = vmul.f32 %v6313_v10, %v2760_v48  ;;  %v3080_v5 = vmul.f32 %v6306_v2, %v2760_v48  ;;  %v2952_v25 = vmul.f32 1.05, %v2920_v32  ;;  %v3240_v35 = vmul.f32 %v6306_v2, %v2792_v43 }
 0x3a1   : > { %v3175_v52 = vadd.f32 %v3143_v6, %v3047_v31  ;;  %v3335_v19 = vmin.f32 %v3015_v50, 1.0  ;;  %v3464_v47 = vmin.f32 %v3303_v15, 1.0  ;;  %v3804_v45 = vadd.f32 -1.0, %v1203_v54 }
 0x3a2   : > { %v3112_v23 = vmul.f32 1.03, %v3080_v5  ;;  %v2984_v14 = vmin.f32 %v2952_v25, 1.0  ;;  %v3208_v9 = vmul.f32 %v6313_v10, %v2792_v43  ;;  %v3272_v4 = vmin.f32 %v3240_v35, 1.0 }
 0x3a3   : > { %3367 = vst [vmem:[%s5615_s13 + $0xa0] sm:$0xff] %v3335_v19  ;;  %v3399_v62 = vmin.f32 %v3175_v52, 1.0  ;;  %v4326_v59 = vpop.eup %4325  ;;  %3944 = vst [vmem:[%s5615_s13 + $0x2a0] sm:$0xff] %v3464_v47  ;;  %4327 = vpow2.f32 %v1579_v0  ;;  %v1241_v22 = vmul.f32 %v3804_v45, %v3804_v45  ;;  %v3824_v61 = vadd.f32 0.25, %v3804_v45 }
 0x3a4   : > { %v3144_v11 = vmin.f32 %v3112_v23, 1.0  ;;  %v3016_v2 = vadd.f32 %v2984_v14, %v2888_v13  ;;  %v3304_v20 = vadd.f32 %v3272_v4, %v3208_v9  ;;  %v1619_v54 = vmul.f32 0.5, %v4326_v59 }
 0x3a5   : > { %3912 = vst [vmem:[%s5615_s13 + $0x1a0] sm:$0xff] %v3399_v62  ;;  %v2233_v49 = vmul.f32 %v2201_v63, %v6220_v38  ;;  %v2202_v10 = vsub.f32 1.05, %v3883_v51  ;;  %v6360_v27 = vadd.f32 %v1241_v22, %v7157_v8  ;;  %v6363_v57 = vadd.f32 %v1241_v22, %v7158_v18 }
 0x3a6   : > { %v3176_v31 = vadd.f32 %v3144_v11, %v3048_v34  ;;  %v3336_v41 = vmin.f32 %v3016_v2, 1.0  ;;  %v3465_v48 = vmin.f32 %v3304_v20, 1.0  ;;  %v1651_v43 = vadd.f32 0.5, %v1619_v54 }
 0x3a7   : > { %v1725_v50 = vmul.f32 %v3824_v61, %v3824_v61  ;;  %v2042_v32 = vmul.f32 %v2010_v26, %v6300_v7  ;;  %v2138_v38 = vmul.f32 %v2106_v46, %v6300_v7  ;;  %4329 = vrsqrt.f32 %v6360_v27 }
 0x3a8   : > { %v3400_v6 = vmin.f32 %v3176_v31, 1.0  ;;  %3368 = vst [vmem:[%s5615_s13 + $0xa8] sm:$0xff] %v3336_v41  ;;  %3945 = vst [vmem:[%s5615_s13 + $0x2a8] sm:$0xff] %v3465_v48  ;;  %v1683_v63 = vmul.f32 0.1, %v1651_v43  ;;  %v2169_v3 = vadd.f32 %v6245_v1, %v6285_v39  ;;  %v2697_v15 = vsub.f32 1.0, %v2665_v16 }
 0x3a9   : > { %v1753_v13 = vadd.f32 %v1725_v50, %v7154_v17  ;;  %v1879_v26 = vmul.f32 0.15, %v6337_v42  ;;  %v2234_v34 = vmul.f32 %v2202_v10, %v6300_v7  ;;  %v2666_v46 = vunpack.c.h.bf16 %v6276_v30 }
 0x3aa   : > { %3913 = vst [vmem:[%s5615_s13 + $0x1a8] sm:$0xff] %v3400_v6  ;;  %4331 = vrsqrt.f32 %v6363_v57  ;;  %v2265_v5 = vadd.f32 %v6264_v28, %v2233_v49  ;;  %v2297_v52 = vadd.f32 1.0, %v1683_v63  ;;  %v2393_v19 = vmul.f32 0.3, %v1683_v63 }
 0x3ab   : > { %v2521_v25 = vmul.f32 0.2, %v1683_v63  ;;  %v6385_v1 = vmul.f32 0.15, %v4324_v36  ;;  %v2074_v39 = vadd.f32 %v2042_v32, %v6290_v21  ;;  %v2170_v16 = vadd.f32 %v6296_v44, %v2138_v38  ;;  %v6403_v63 = vpop.f32.mrb[31].mxu1 }
 0x3ac   : > { %v1785_v35 = vmul.f32 -1.3888888, %v1753_v13  ;;  %v2329_v42 = vmul.f32 %v2297_v52, %v6282_v37  ;;  %v2425_v47 = vadd.f32 1.0, %v2393_v19  ;;  %v1754_v30 = vadd.f32 %v1725_v50, %v7156_v40 }
 0x3ad   : > { %v2553_v7 = vsub.f32 1.0, %v2521_v25  ;;  %v4328_v23 = vpop.eup %4327  ;;  %v2825_v0 = vadd.f32 1.0, %v1879_v26  ;;  %v2857_v45 = vsub.f32 1.0, %v1879_v26  ;;  %v2266_v28 = vadd.f32 %v3883_v51, %v2234_v34 }
 0x3ae   : > { %v6391_v62 = vsub.f32 1.0, %v2666_v46  ;;  %v2361_v14 = vmin.f32 %v2329_v42, 1.0  ;;  %v2457_v36 = vmul.f32 %v2425_v47, %v2169_v3  ;;  %v1620_v4 = vmul.f32 0.5, %v4328_v23 }
 0x3af   : > { %v2585_v9 = vmul.f32 %v2553_v7, %v2265_v5  ;;  %v6394_v21 = vadd.f32 1.0, %v6385_v1  ;;  %vm1447_vm0 = vcmp.eq.f32.partialorder %v6360_v27, inf  ;;  %v1841_v37 = vmul.f32 1.442695, %v1785_v35 }
 0x3b0   : > { %v1786_v44 = vmul.f32 -1.3888888, %v1754_v30  ;;  %v2489_v59 = vmin.f32 %v2457_v36, 1.0  ;;  %v2729_v22 = vmul.f32 %v2697_v15, %v2361_v14  ;;  %v1652_v61 = vadd.f32 0.5, %v1620_v4  ;;  %v6412_v4 = vld [vmem:[%s4901_s25 + $0x60] sm:$0xff] }
 0x3b1   : > { %v2617_v11 = vmin.f32 %v2585_v9, 1.0  ;;  %v4330_v2 = vpop.eup %4329  ;;  %vm1449_vm1 = vcmp.eq.f32.partialorder %v6360_v27, 0.0  ;;  %v1450_v51 = vand.u32 2147483648, %v6360_v27  ;;  %vm1454_vm2 = vcmp.eq.f32.partialorder %v6363_v57, inf }
 0x3b2   : > { %v1843_v20 = vmul.f32 1.442695, %v1786_v44  ;;  %v2761_v54 = vmul.f32 %v2697_v15, %v2489_v59  ;;  %v2921_v31 = vmul.f32 %v2825_v0, %v2729_v22  ;;  %v1457_v10 = vand.u32 2147483648, %v6363_v57 }
 0x3b3   : > { %v2793_v49 = vmul.f32 %v2697_v15, %v2617_v11  ;;  %v2889_v48 = vmul.f32 %v2857_v45, %v2729_v22  ;;  %v1684_v43 = vmul.f32 0.1, %v1652_v61  ;;  %v1446_v50 = vmul.f32 %v4330_v2, %v6360_v27  ;;  %v3852_v2 = vld [vmem:[%s4880_s14 + $0x1c0] sm:$0xff] }
 0x3b4   : > { %v4332_v41 = vpop.eup %4331  ;;  %4333 = vpow2.f32 %v1841_v37  ;;  %vm1456_vm3 = vcmp.eq.f32.partialorder %v6363_v57, 0.0  ;;  %v2953_v6 = vmul.f32 1.05, %v2921_v31  ;;  %v3081_v32 = vmul.f32 %v2825_v0, %v2761_v54 }
 0x3b5   : > { %v3209_v38 = vmul.f32 %v2857_v45, %v2793_v49  ;;  %4335 = vpow2.f32 %v1843_v20  ;;  %v3241_v3 = vmul.f32 %v2825_v0, %v2793_v49  ;;  %v2298_v13 = vadd.f32 1.0, %v1684_v43 }
 0x3b6   : > { %v2394_v15 = vmul.f32 0.3, %v1684_v43  ;;  %v2522_v26 = vmul.f32 0.2, %v1684_v43  ;;  %v2985_v34 = vmin.f32 %v2953_v6, 1.0  ;;  %v1448_v5 = vsel %vm1447_vm0, %v6360_v27, %v1446_v50  ;;  %v1914_v43 = vld [vmem:[%s4880_s14 + $0xc8] sm:$0xff] }
 0x3b7   : > { %v3113_v46 = vmul.f32 1.03, %v3081_v32  ;;  %v1453_v52 = vmul.f32 %v4332_v41, %v6363_v57  ;;  %v3273_v19 = vmin.f32 %v3241_v3, 1.0  ;;  %v2330_v25 = vmul.f32 %v2298_v13, %v2074_v39  ;;  %v3853_v3 = vld [vmem:[%s4880_s14 + $0x1c8] sm:$0xff] }
 0x3b8   : > { %v2426_v35 = vadd.f32 1.0, %v2394_v15  ;;  %v2554_v42 = vsub.f32 1.0, %v2522_v26  ;;  %v3017_v47 = vadd.f32 %v2985_v34, %v2889_v48  ;;  %v3049_v7 = vmul.f32 %v2857_v45, %v2761_v54 }
 0x3b9   : > { %v3145_v30 = vmin.f32 %v3113_v46, 1.0  ;;  %v1451_v23 = vsel %vm1449_vm1, %v1450_v51, %v1448_v5  ;;  %v3305_v0 = vadd.f32 %v3273_v19, %v3209_v38  ;;  %v2362_v14 = vmin.f32 %v2330_v25, 1.0  ;;  %v6424_v51 = vld [vmem:[%s4880_s14 + $0x2c0] sm:$0xff]  ;;  %v3885_v5 = vld [vmem:[%s4880_s14 + $0x2c8] sm:$0xff] }
 0x3ba   : > { %v2458_v36 = vmul.f32 %v2426_v35, %v2170_v16  ;;  %v2586_v9 = vmul.f32 %v2554_v42, %v2266_v28  ;;  %v3337_v39 = vmin.f32 %v3017_v47, 1.0  ;;  %v1525_v44 = vmul.f32 -2.0, %v1451_v23  ;;  %v6419_v16 = vld [vmem:[%s4880_s14 + $0xc0] sm:$0xff] }
 0x3bb   : > { %v3177_v37 = vadd.f32 %v3145_v30, %v3049_v7  ;;  %v1455_v45 = vsel %vm1454_vm2, %v6363_v57, %v1453_v52  ;;  %v3466_v59 = vmin.f32 %v3305_v0, 1.0  ;;  %v2730_v22 = vmul.f32 %v6391_v62, %v2362_v14 }
 0x3bc   : > { %v2490_v27 = vmin.f32 %v2458_v36, 1.0  ;;  %v2618_v11 = vmin.f32 %v2586_v9, 1.0  ;;  %3369 = vst [vmem:[%s5615_s13 + $0xb0] sm:$0xff] %v3337_v39  ;;  %v1581_v61 = vmul.f32 1.442695, %v1525_v44  ;;  %v2667_v20 = vunpack.c.l.bf16 %v6412_v4 }
 0x3bd   : > { %v3401_v28 = vmin.f32 %v3177_v37, 1.0  ;;  %3946 = vst [vmem:[%s5615_s13 + $0x2b0] sm:$0xff] %v3466_v59  ;;  %v2858_v41 = vsub.f32 1.0, %v6385_v1  ;;  %v2922_v48 = vmul.f32 %v6394_v21, %v2730_v22  ;;  %v1127_v6 = vmul.f32 0.2, %v6020_v33 }
 0x3be   : > { %v4334_v54 = vpop.eup %4333  ;;  %v2762_v49 = vmul.f32 %v6391_v62, %v2490_v27  ;;  %v2794_v31 = vmul.f32 %v6391_v62, %v2618_v11  ;;  %4337 = vpow2.f32 %v1581_v61  ;;  %v2011_v32 = vsub.f32 1.0, %v6419_v16 }
 0x3bf   : > { %v4336_v50 = vpop.eup %4335  ;;  %3914 = vst [vmem:[%s5615_s13 + $0x1b0] sm:$0xff] %v3401_v28  ;;  %v1458_v38 = vsel %vm1456_vm3, %v1457_v10, %v1455_v45  ;;  %v2954_v13 = vmul.f32 1.05, %v2922_v48  ;;  %v2107_v15 = vsub.f32 1.0, %v3852_v2  ;;  %v2203_v1 = vsub.f32 1.05, %v6424_v51 }
 0x3c0   : > { %v3082_v62 = vmul.f32 %v6394_v21, %v2762_v49  ;;  %v3242_v26 = vmul.f32 %v6394_v21, %v2794_v31  ;;  %v1128_v34 = vmul.f32 0.2, %v6065_v55  ;;  %v1526_v46 = vmul.f32 -2.0, %v1458_v38 }
 0x3c1   : > { %v2012_v33 = vsub.f32 1.0, %v1914_v43  ;;  %v2890_v52 = vmul.f32 %v2858_v41, %v2730_v22  ;;  %v2986_v19 = vmin.f32 %v2954_v13, 1.0  ;;  %v2108_v35 = vsub.f32 1.0, %v3853_v3 }
 0x3c2   : > { %v3114_v25 = vmul.f32 1.03, %v3082_v62  ;;  %v3210_v57 = vmul.f32 %v2858_v41, %v2794_v31  ;;  %v3274_v10 = vmin.f32 %v3242_v26, 1.0  ;;  %v1583_v42 = vmul.f32 1.442695, %v1526_v46 }
 0x3c3   : > { %v1150_v47 = vadd.s32 104, %v7153_v24  ;;  %v3018_v7 = vadd.f32 %v2986_v19, %v2890_v52  ;;  %v3050_v30 = vmul.f32 %v2858_v41, %v2762_v49  ;;  %v2204_v0 = vsub.f32 1.05, %v3885_v5 }
 0x3c4   : > { %v3146_v23 = vmin.f32 %v3114_v25, 1.0  ;;  %v3306_v21 = vadd.f32 %v3274_v10, %v3210_v57  ;;  %v2043_v14 = vmul.f32 %v2011_v32, %v1127_v6  ;;  %4339 = vpow2.f32 %v1583_v42 }
 0x3c5   : > { %v1167_v55 = vadd.s32 %v7155_v60, %v1150_v47  ;;  %v3338_v9 = vmin.f32 %v3018_v7, 1.0  ;;  %v2139_v37 = vmul.f32 %v2107_v15, %v1127_v6  ;;  %v2235_v39 = vmul.f32 %v2203_v1, %v1127_v6  ;;  %v6455_v1 = vld [vmem:[%s4880_s14 + $0xd0] sm:$0xff] }
 0x3c6   : > { %v3178_v36 = vadd.f32 %v3146_v23, %v3050_v30  ;;  %v3467_v44 = vmin.f32 %v3306_v21, 1.0  ;;  %v2044_v45 = vmul.f32 %v2012_v33, %v1128_v34  ;;  %v2140_v59 = vmul.f32 %v2108_v35, %v1128_v34 }
 0x3c7   : > { %v1183_v27 = vcvt.s32.f32 %v1167_v55  ;;  %3370 = vst [vmem:[%s5615_s13 + $0xb8] sm:$0xff] %v3338_v9  ;;  %v1881_v22 = vmul.f32 0.15, %v4334_v54  ;;  %v2236_v28 = vmul.f32 %v2204_v0, %v1128_v34  ;;  %v1882_v49 = vmul.f32 0.15, %v4336_v50 }
 0x3c8   : > { %v3402_v11 = vmin.f32 %v3178_v36, 1.0  ;;  %v4338_v61 = vpop.eup %4337  ;;  %3947 = vst [vmem:[%s5615_s13 + $0x2b8] sm:$0xff] %v3467_v44  ;;  %v2668_v31 = vunpack.c.h.bf16 %v6412_v4  ;;  %v2075_v32 = vadd.f32 %v2043_v14, %v6419_v16  ;;  %v2171_v6 = vadd.f32 %v3852_v2, %v2139_v37 }
 0x3c9   : > { %v1204_v41 = vmul.f32 0.007843138, %v1183_v27  ;;  %v1621_v48 = vmul.f32 0.5, %v4338_v61  ;;  %v2699_v38 = vsub.f32 1.0, %v2667_v20  ;;  %v2267_v13 = vadd.f32 %v6424_v51, %v2235_v39  ;;  %v6468_v51 = vld [vmem:[%s4880_s14 + $0x1d0] sm:$0xff] }
 0x3ca   : > { %3915 = vst [vmem:[%s5615_s13 + $0x1b8] sm:$0xff] %v3402_v11  ;;  %v2076_v62 = vadd.f32 %v2044_v45, %v1914_v43  ;;  %v6452_v54 = vadd.f32 %v3853_v3, %v2140_v59  ;;  %v6457_v26 = vadd.f32 1.0, %v1881_v22  ;;  %v6459_v4 = vsub.f32 1.0, %v1881_v22  ;;  %v6471_v43 = vld [vmem:[%s4880_s14 + $0x2d0] sm:$0xff] }
 0x3cb   : > { %v3805_v15 = vadd.f32 -1.0, %v1204_v41  ;;  %v1653_v50 = vadd.f32 0.5, %v1621_v48  ;;  %v6461_v34 = vadd.f32 %v3885_v5, %v2236_v28  ;;  %v6463_v16 = vsub.f32 1.0, %v2668_v31 }
 0x3cc   : > { %v6465_v2 = vadd.f32 1.0, %v1882_v49  ;;  %v6473_v33 = vsub.f32 1.0, %v1882_v49  ;;  %v6476_v52 = vmul.f32 0.2, %v6080_v58  ;;  %v2013_v19 = vsub.f32 1.0, %v6455_v1 }
 0x3cd   : > { %v1242_v20 = vmul.f32 %v3805_v15, %v3805_v15  ;;  %v3825_v46 = vadd.f32 0.25, %v3805_v15  ;;  %v1685_v3 = vmul.f32 0.1, %v1653_v50  ;;  %v1151_v10 = vadd.s32 112, %v7153_v24 }
 0x3ce   : > { %v4340_v5 = vpop.eup %4339  ;;  %v2109_v58 = vsub.f32 1.0, %v6468_v51  ;;  %v2205_v23 = vsub.f32 1.05, %v6471_v43  ;;  %v6490_v0 = vmul.f32 0.2, %v6185_v56 }
 0x3cf   : > { %v6480_v25 = vadd.f32 %v1242_v20, %v7157_v8  ;;  %v6483_v35 = vadd.f32 %v1242_v20, %v7158_v18  ;;  %v1726_v57 = vmul.f32 %v3825_v46, %v3825_v46  ;;  %v2299_v42 = vadd.f32 1.0, %v1685_v3 }
 0x3d0   : > { %v2395_v47 = vmul.f32 0.3, %v1685_v3  ;;  %v2523_v7 = vmul.f32 0.2, %v1685_v3  ;;  %v1622_v30 = vmul.f32 0.5, %v4340_v5  ;;  %v6496_v37 = vadd.s32 %v7155_v60, %v1151_v10 }
 0x3d1   : > { %4341 = vrsqrt.f32 %v6480_v25  ;;  %v2331_v21 = vmul.f32 %v2299_v42, %v2075_v32  ;;  %vm1461_vm4 = vcmp.eq.f32.partialorder %v6480_v25, inf  ;;  %v1755_v9 = vadd.f32 %v1726_v57, %v7154_v17 }
 0x3d2   : > { %v2427_v14 = vadd.f32 1.0, %v2395_v47  ;;  %v2555_v55 = vsub.f32 1.0, %v2523_v7  ;;  %v1654_v36 = vadd.f32 0.5, %v1622_v30  ;;  %4343 = vrsqrt.f32 %v6483_v35 }
 0x3d3   : > { %v2363_v39 = vmin.f32 %v2331_v21, 1.0  ;;  %vm1463_vm5 = vcmp.eq.f32.partialorder %v6480_v25, 0.0  ;;  %v1464_v56 = vand.u32 2147483648, %v6480_v25  ;;  %v1787_v27 = vmul.f32 -1.3888888, %v1755_v9 }
 0x3d4   : > { %v2459_v44 = vmul.f32 %v2427_v14, %v2171_v6  ;;  %v2587_v45 = vmul.f32 %v2555_v55, %v2267_v13  ;;  %v1686_v59 = vmul.f32 0.1, %v1654_v36  ;;  %v1471_v11 = vand.u32 2147483648, %v6483_v35 }
 0x3d5   : > { %v2731_v61 = vmul.f32 %v2699_v38, %v2363_v39  ;;  %v1845_v48 = vmul.f32 1.442695, %v1787_v27  ;;  %v1756_v32 = vadd.f32 %v1726_v57, %v7156_v40  ;;  %vm1468_vm6 = vcmp.eq.f32.partialorder %v6483_v35, inf }
 0x3d6   : > { %v2491_v22 = vmin.f32 %v2459_v44, 1.0  ;;  %v2619_v28 = vmin.f32 %v2587_v45, 1.0  ;;  %v2300_v49 = vadd.f32 1.0, %v1686_v59  ;;  %v2396_v31 = vmul.f32 0.3, %v1686_v59 }
 0x3d7   : > { %v2524_v41 = vmul.f32 0.2, %v1686_v59  ;;  %v2923_v13 = vmul.f32 %v6457_v26, %v2731_v61  ;;  %v1184_v50 = vcvt.s32.f32 %v6496_v37  ;;  %v2891_v20 = vmul.f32 %v6459_v4, %v2731_v61 }
 0x3d8   : > { %v2763_v15 = vmul.f32 %v2699_v38, %v2491_v22  ;;  %v2795_v6 = vmul.f32 %v2699_v38, %v2619_v28  ;;  %v2332_v46 = vmul.f32 %v2300_v49, %v2076_v62  ;;  %v2428_v3 = vadd.f32 1.0, %v2396_v31 }
 0x3d9   : > { %v2556_v5 = vsub.f32 1.0, %v2524_v41  ;;  %v2955_v10 = vmul.f32 1.05, %v2923_v13  ;;  %4345 = vpow2.f32 %v1845_v48  ;;  %vm1470_vm7 = vcmp.eq.f32.partialorder %v6483_v35, 0.0 }
 0x3da   : > { %v3051_v42 = vmul.f32 %v6459_v4, %v2763_v15  ;;  %v3083_v47 = vmul.f32 %v6457_v26, %v2763_v15  ;;  %v3243_v57 = vmul.f32 %v6457_v26, %v2795_v6  ;;  %v2364_v7 = vmin.f32 %v2332_v46, 1.0 }
 0x3db   : > { %v4342_v38 = vpop.eup %4341  ;;  %v2460_v30 = vmul.f32 %v2428_v3, %v6452_v54  ;;  %v2588_v21 = vmul.f32 %v2556_v5, %v6461_v34  ;;  %v2987_v14 = vmin.f32 %v2955_v10, 1.0  ;;  %v3211_v55 = vmul.f32 %v6459_v4, %v2795_v6  ;;  %v6530_v3 = vld [vmem:[%s4880_s14 + $0xd8] sm:$0xff] }
 0x3dc   : > { %v3115_v62 = vmul.f32 1.03, %v3083_v47  ;;  %v1460_v36 = vmul.f32 %v4342_v38, %v6480_v25  ;;  %v4344_v9 = vpop.eup %4343  ;;  %v3275_v37 = vmin.f32 %v3243_v57, 1.0  ;;  %v2732_v45 = vmul.f32 %v6463_v16, %v2364_v7 }
 0x3dd   : > { %v2492_v39 = vmin.f32 %v2460_v30, 1.0  ;;  %v2620_v44 = vmin.f32 %v2588_v21, 1.0  ;;  %v3019_v59 = vadd.f32 %v2987_v14, %v2891_v20  ;;  %v1788_v34 = vmul.f32 -1.3888888, %v1756_v32  ;;  %v3887_v14 = vld [vmem:[%s4880_s14 + $0x2d8] sm:$0xff] }
 0x3de   : > { %v3147_v26 = vmin.f32 %v3115_v62, 1.0  ;;  %v1462_v54 = vsel %vm1461_vm4, %v6480_v25, %v1460_v36  ;;  %v3307_v27 = vadd.f32 %v3275_v37, %v3211_v55  ;;  %v1467_v28 = vmul.f32 %v4344_v9, %v6483_v35 }
 0x3df   : > { %v2764_v22 = vmul.f32 %v6463_v16, %v2492_v39  ;;  %v2796_v4 = vmul.f32 %v6463_v16, %v2620_v44  ;;  %v3339_v49 = vmin.f32 %v3019_v59, 1.0  ;;  %v2924_v31 = vmul.f32 %v6465_v2, %v2732_v45 }
 0x3e0   : > { %v3179_v61 = vadd.f32 %v3147_v26, %v3051_v42  ;;  %v1465_v41 = vsel %vm1463_vm5, %v1464_v56, %v1462_v54  ;;  %v3468_v48 = vmin.f32 %v3307_v27, 1.0  ;;  %v2892_v32 = vmul.f32 %v6473_v33, %v2732_v45  ;;  %v2640_v26 = vld [vmem:[%s4901_s25 + $0x68] sm:$0xff] }
 0x3e1   : > { %v3052_v15 = vmul.f32 %v6473_v33, %v2764_v22  ;;  %v3084_v6 = vmul.f32 %v6465_v2, %v2764_v22  ;;  %3371 = vst [vmem:[%s5615_s13 + $0xc0] sm:$0xff] %v3339_v49  ;;  %v2956_v13 = vmul.f32 1.05, %v2924_v31  ;;  %v3244_v20 = vmul.f32 %v6465_v2, %v2796_v4  ;;  %v3855_v2 = vld [vmem:[%s4880_s14 + $0x1d8] sm:$0xff]  ;;  %v6565_v49 = vld [vmem:[%s4880_s14 + $0xe0] sm:$0xff] }
 0x3e2   : > { %v3403_v16 = vmin.f32 %v3179_v61, 1.0  ;;  %v1527_v46 = vmul.f32 -2.0, %v1465_v41  ;;  %3948 = vst [vmem:[%s5615_s13 + $0x2c0] sm:$0xff] %v3468_v48  ;;  %v1469_v56 = vsel %vm1468_vm6, %v6483_v35, %v1467_v28  ;;  %v1847_v5 = vmul.f32 1.442695, %v1788_v34 }
 0x3e3   : > { %v3116_v25 = vmul.f32 1.03, %v3084_v6  ;;  %v1205_v10 = vmul.f32 0.007843138, %v1184_v50  ;;  %v4346_v42 = vpop.eup %4345  ;;  %v2988_v47 = vmin.f32 %v2956_v13, 1.0  ;;  %v3212_v38 = vmul.f32 %v6473_v33, %v2796_v4 }
 0x3e4   : > { %3916 = vst [vmem:[%s5615_s13 + $0x1c0] sm:$0xff] %v3403_v16  ;;  %v3276_v57 = vmin.f32 %v3244_v20, 1.0  ;;  %v1585_v7 = vmul.f32 1.442695, %v1527_v46  ;;  %v1472_v21 = vsel %vm1470_vm7, %v1471_v11, %v1469_v56  ;;  %4347 = vpow2.f32 %v1847_v5 }
 0x3e5   : > { %v3148_v30 = vmin.f32 %v3116_v25, 1.0  ;;  %v3806_v62 = vadd.f32 -1.0, %v1205_v10  ;;  %v3020_v55 = vadd.f32 %v2988_v47, %v2892_v32  ;;  %v2014_v33 = vsub.f32 1.0, %v6530_v3  ;;  %v6570_v32 = vld [vmem:[%s4880_s14 + $0x1e0] sm:$0xff] }
 0x3e6   : > { %v3308_v50 = vadd.f32 %v3276_v57, %v3212_v38  ;;  %4349 = vpow2.f32 %v1585_v7  ;;  %v1528_v9 = vmul.f32 -2.0, %v1472_v21  ;;  %v2110_v37 = vsub.f32 1.0, %v3855_v2 }
 0x3e7   : > { %v3180_v36 = vadd.f32 %v3148_v30, %v3052_v15  ;;  %v1243_v39 = vmul.f32 %v3806_v62, %v3806_v62  ;;  %v3340_v44 = vmin.f32 %v3020_v55, 1.0  ;;  %v2206_v35 = vsub.f32 1.05, %v3887_v14 }
 0x3e8   : > { %v3469_v45 = vmin.f32 %v3308_v50, 1.0  ;;  %v3826_v11 = vadd.f32 0.25, %v3806_v62  ;;  %v1587_v54 = vmul.f32 1.442695, %v1528_v9  ;;  %v2045_v4 = vmul.f32 %v2013_v19, %v6476_v52 }
 0x3e9   : > { %v3404_v59 = vmin.f32 %v3180_v36, 1.0  ;;  %v6547_v34 = vadd.f32 %v1243_v39, %v7157_v8  ;;  %v6550_v27 = vadd.f32 %v1243_v39, %v7158_v18  ;;  %3372 = vst [vmem:[%s5615_s13 + $0xc8] sm:$0xff] %v3340_v44  ;;  %v2141_v28 = vmul.f32 %v2109_v58, %v6476_v52 }
 0x3ea   : > { %3949 = vst [vmem:[%s5615_s13 + $0x2c8] sm:$0xff] %v3469_v45  ;;  %v1727_v22 = vmul.f32 %v3826_v11, %v3826_v11  ;;  %v2237_v61 = vmul.f32 %v2205_v23, %v6476_v52  ;;  %4351 = vpow2.f32 %v1587_v54  ;;  %v2669_v31 = vunpack.c.l.bf16 %v2640_v26 }
 0x3eb   : > { %3917 = vst [vmem:[%s5615_s13 + $0x1c8] sm:$0xff] %v3404_v59  ;;  %v2670_v41 = vunpack.c.h.bf16 %v2640_v26  ;;  %4353 = vrsqrt.f32 %v6547_v34  ;;  %v2046_v19 = vmul.f32 %v2014_v33, %v6490_v0  ;;  %v2142_v58 = vmul.f32 %v2110_v37, %v6490_v0 }
 0x3ec   : > { %v1757_v48 = vadd.f32 %v1727_v22, %v7154_v17  ;;  %v2238_v15 = vmul.f32 %v2206_v35, %v6490_v0  ;;  %4355 = vrsqrt.f32 %v6550_v27  ;;  %v1883_v52 = vmul.f32 0.15, %v4346_v42  ;;  %v6589_v42 = vld [vmem:[%s4880_s14 + $0x2e0] sm:$0xff] }
 0x3ed   : > { %v6577_v23 = vmul.f32 0.2, %v6216_v12  ;;  %v2015_v6 = vsub.f32 1.0, %v6565_v49  ;;  %v2077_v13 = vadd.f32 %v2045_v4, %v6455_v1  ;;  %v2173_v20 = vadd.f32 %v6468_v51, %v2141_v28 }
 0x3ee   : > { %v4348_v16 = vpop.eup %4347  ;;  %v2111_v46 = vsub.f32 1.0, %v6570_v32  ;;  %v2269_v56 = vadd.f32 %v6471_v43, %v2237_v61  ;;  %v6584_v5 = vsub.f32 1.0, %v2669_v31  ;;  %v6586_v0 = vsub.f32 1.0, %v2670_v41 }
 0x3ef   : > { %v1789_v10 = vmul.f32 -1.3888888, %v1757_v48  ;;  %v2078_v47 = vadd.f32 %v2046_v19, %v6530_v3  ;;  %v6592_v38 = vadd.f32 %v3855_v2, %v2142_v58  ;;  %v6594_v1 = vadd.f32 %v3887_v14, %v2238_v15 }
 0x3f0   : > { %v4350_v25 = vpop.eup %4349  ;;  %v6596_v51 = vadd.f32 1.0, %v1883_v52  ;;  %v1884_v57 = vmul.f32 0.15, %v4348_v16  ;;  %v6599_v7 = vmul.f32 %v2015_v6, %v6577_v23  ;;  %v1758_v43 = vadd.f32 %v1727_v22, %v7156_v40 }
 0x3f1   : > { %v1623_v12 = vmul.f32 0.5, %v4350_v25  ;;  %v6602_v21 = vsub.f32 1.0, %v1883_v52  ;;  %v6605_v62 = vmul.f32 %v2111_v46, %v6577_v23  ;;  %v2207_v3 = vsub.f32 1.05, %v6589_v42 }
 0x3f2   : > { %vm1475_vm8 = vcmp.eq.f32.partialorder %v6547_v34, inf  ;;  %vm1477_vm9 = vcmp.eq.f32.partialorder %v6547_v34, 0.0  ;;  %v1849_v2 = vmul.f32 1.442695, %v1789_v10  ;;  %v1152_v14 = vadd.s32 120, %v7153_v24 }
 0x3f3   : > { %v1655_v30 = vadd.f32 0.5, %v1623_v12  ;;  %v1478_v33 = vand.u32 2147483648, %v6547_v34  ;;  %v6613_v36 = vmul.f32 0.2, %v6310_v29  ;;  %vm1482_vm10 = vcmp.eq.f32.partialorder %v6550_v27, inf }
 0x3f4   : > { %v4352_v55 = vpop.eup %4351  ;;  %v6616_v39 = vadd.f32 1.0, %v1884_v57  ;;  %vm1484_vm11 = vcmp.eq.f32.partialorder %v6550_v27, 0.0  ;;  %v1485_v44 = vand.u32 2147483648, %v6550_v27  ;;  %v1790_v45 = vmul.f32 -1.3888888, %v1758_v43 }
 0x3f5   : > { %v1687_v50 = vmul.f32 0.1, %v1655_v30  ;;  %v4354_v9 = vpop.eup %4353  ;;  %v1624_v37 = vmul.f32 0.5, %v4352_v55  ;;  %v6621_v29 = vsub.f32 1.0, %v1884_v57  ;;  %4357 = vpow2.f32 %v1849_v2 }
 0x3f6   : > { %v4356_v35 = vpop.eup %4355  ;;  %v1474_v26 = vmul.f32 %v4354_v9, %v6547_v34  ;;  %v1169_v22 = vadd.s32 %v7155_v60, %v1152_v14  ;;  %v1851_v58 = vmul.f32 1.442695, %v1790_v45 }
 0x3f7   : > { %v2301_v24 = vadd.f32 1.0, %v1687_v50  ;;  %v2397_v11 = vmul.f32 0.3, %v1687_v50  ;;  %v2525_v59 = vmul.f32 0.2, %v1687_v50  ;;  %v1656_v54 = vadd.f32 0.5, %v1624_v37 }
 0x3f8   : > { %v1476_v31 = vsel %vm1475_vm8, %v6547_v34, %v1474_v26  ;;  %v1481_v19 = vmul.f32 %v4356_v35, %v6550_v27  ;;  %v1185_v25 = vcvt.s32.f32 %v1169_v22  ;;  %4359 = vpow2.f32 %v1851_v58 }
 0x3f9   : > { %v2333_v4 = vmul.f32 %v2301_v24, %v2077_v13  ;;  %v2429_v28 = vadd.f32 1.0, %v2397_v11  ;;  %v2557_v61 = vsub.f32 1.0, %v2525_v59  ;;  %v1688_v41 = vmul.f32 0.1, %v1656_v54 }
 0x3fa   : > { %v1479_v48 = vsel %vm1477_vm9, %v1478_v33, %v1476_v31  ;;  %v1483_v14 = vsel %vm1482_vm10, %v6550_v27, %v1481_v19  ;;  %v1206_v35 = vmul.f32 0.007843138, %v1185_v25 }
 0x3fb   : > { %v2365_v15 = vmin.f32 %v2333_v4, 1.0  ;;  %v2461_v52 = vmul.f32 %v2429_v28, %v2173_v20  ;;  %v2589_v6 = vmul.f32 %v2557_v61, %v2269_v56  ;;  %v1529_v16 = vmul.f32 -2.0, %v1479_v48  ;;  %v6649_v4 = vld [vmem:[%s4880_s14 + $0xe8] sm:$0xff] }
 0x3fc   : > { %v2302_v46 = vadd.f32 1.0, %v1688_v41  ;;  %v2398_v60 = vmul.f32 0.3, %v1688_v41  ;;  %v2526_v13 = vmul.f32 0.2, %v1688_v41  ;;  %v1486_v45 = vsel %vm1484_vm11, %v1485_v44, %v1483_v14 }
 0x3fd   : > { %v2493_v10 = vmin.f32 %v2461_v52, 1.0  ;;  %v2621_v12 = vmin.f32 %v2589_v6, 1.0  ;;  %v2733_v57 = vmul.f32 %v6584_v5, %v2365_v15  ;;  %v1589_v43 = vmul.f32 1.442695, %v1529_v16 }
 0x3fe   : > { %v2334_v30 = vmul.f32 %v2302_v46, %v2078_v47  ;;  %v2430_v2 = vadd.f32 1.0, %v2398_v60  ;;  %v2558_v34 = vsub.f32 1.0, %v2526_v13  ;;  %v1530_v48 = vmul.f32 -2.0, %v1486_v45 }
 0x3ff   : > { %v2765_v20 = vmul.f32 %v6584_v5, %v2493_v10  ;;  %v2797_v56 = vmul.f32 %v6584_v5, %v2621_v12  ;;  %v2925_v55 = vmul.f32 %v6596_v51, %v2733_v57  ;;  %4361 = vpow2.f32 %v1589_v43  ;;  %v6642_v24 = vpop.eup %4357 }
 0x400   : > { %v2366_v50 = vmin.f32 %v2334_v30, 1.0  ;;  %v2462_v33 = vmul.f32 %v2430_v2, %v6592_v38  ;;  %v2590_v9 = vmul.f32 %v2558_v34, %v6594_v1  ;;  %v2893_v38 = vmul.f32 %v6602_v21, %v2733_v57 }
 0x401   : > { %v2957_v47 = vmul.f32 1.05, %v2925_v55  ;;  %v3085_v37 = vmul.f32 %v6596_v51, %v2765_v20  ;;  %v3245_v5 = vmul.f32 %v6596_v51, %v2797_v56  ;;  %v3053_v1 = vmul.f32 %v6602_v21, %v2765_v20 }
 0x402   : > { %v2494_v11 = vmin.f32 %v2462_v33, 1.0  ;;  %v2622_v59 = vmin.f32 %v2590_v9, 1.0  ;;  %v2734_v26 = vmul.f32 %v6586_v0, %v2366_v50  ;;  %v3213_v27 = vmul.f32 %v6602_v21, %v2797_v56  ;;  %v4360_v12 = vpop.eup %4359  ;;  %v3889_v33 = vld [vmem:[%s4880_s14 + $0x2e8] sm:$0xff] }
 0x403   : > { %v2989_v54 = vmin.f32 %v2957_v47, 1.0  ;;  %v3117_v22 = vmul.f32 1.03, %v3085_v37  ;;  %v3277_v44 = vmin.f32 %v3245_v5, 1.0  ;;  %v2016_v52 = vsub.f32 1.0, %v6649_v4  ;;  %v2641_v37 = vld [vmem:[%s4901_s25 + $0x70] sm:$0xff] }
 0x404   : > { %v2766_v28 = vmul.f32 %v6586_v0, %v2494_v11  ;;  %v2798_v51 = vmul.f32 %v6586_v0, %v2622_v59  ;;  %v2926_v41 = vmul.f32 %v6616_v39, %v2734_v26  ;;  %v2894_v58 = vmul.f32 %v6621_v29, %v2734_v26  ;;  %v3857_v0 = vld [vmem:[%s4880_s14 + $0x1e8] sm:$0xff] }
 0x405   : > { %v3021_v61 = vadd.f32 %v2989_v54, %v2893_v38  ;;  %v3149_v31 = vmin.f32 %v3117_v22, 1.0  ;;  %v3309_v19 = vadd.f32 %v3277_v44, %v3213_v27  ;;  %v1591_v25 = vmul.f32 1.442695, %v1530_v48 }
 0x406   : > { %v3086_v15 = vmul.f32 %v6616_v39, %v2766_v28  ;;  %v2958_v16 = vmul.f32 1.05, %v2926_v41  ;;  %v3246_v46 = vmul.f32 %v6616_v39, %v2798_v51  ;;  %v3807_v10 = vadd.f32 -1.0, %v1206_v35 }
 0x407   : > { %v3181_v21 = vadd.f32 %v3149_v31, %v3053_v1  ;;  %v3341_v6 = vmin.f32 %v3021_v61, 1.0  ;;  %v3470_v60 = vmin.f32 %v3309_v19, 1.0  ;;  %v3214_v30 = vmul.f32 %v6621_v29, %v2798_v51 }
 0x408   : > { %v3118_v13 = vmul.f32 1.03, %v3086_v15  ;;  %v2990_v43 = vmin.f32 %v2958_v16, 1.0  ;;  %v3278_v2 = vmin.f32 %v3246_v46, 1.0  ;;  %v3054_v14 = vmul.f32 %v6621_v29, %v2766_v28 }
 0x409   : > { %3373 = vst [vmem:[%s5615_s13 + $0xd0] sm:$0xff] %v3341_v6  ;;  %v3405_v57 = vmin.f32 %v3181_v21, 1.0  ;;  %v4362_v34 = vpop.eup %4361  ;;  %3950 = vst [vmem:[%s5615_s13 + $0x2d0] sm:$0xff] %v3470_v60  ;;  %4363 = vpow2.f32 %v1591_v25  ;;  %v1244_v20 = vmul.f32 %v3807_v10, %v3807_v10  ;;  %v2112_v9 = vsub.f32 1.0, %v3857_v0 }
 0x40a   : > { %v3150_v39 = vmin.f32 %v3118_v13, 1.0  ;;  %v3022_v56 = vadd.f32 %v2990_v43, %v2894_v58  ;;  %v3310_v55 = vadd.f32 %v3278_v2, %v3214_v30  ;;  %v1625_v50 = vmul.f32 0.5, %v4362_v34 }
 0x40b   : > { %3918 = vst [vmem:[%s5615_s13 + $0x1d0] sm:$0xff] %v3405_v57  ;;  %v6668_v45 = vadd.f32 %v1244_v20, %v7157_v8  ;;  %v6671_v35 = vadd.f32 %v1244_v20, %v7158_v18  ;;  %v3827_v29 = vadd.f32 0.25, %v3807_v10  ;;  %v2239_v26 = vmul.f32 %v2207_v3, %v6577_v23 }
 0x40c   : > { %v3182_v47 = vadd.f32 %v3150_v39, %v3054_v14  ;;  %v3342_v5 = vmin.f32 %v3022_v56, 1.0  ;;  %v3471_v11 = vmin.f32 %v3310_v55, 1.0  ;;  %v1657_v59 = vadd.f32 0.5, %v1625_v50 }
 0x40d   : > { %v2079_v54 = vadd.f32 %v6599_v7, %v6565_v49  ;;  %v2208_v1 = vsub.f32 1.05, %v3889_v33  ;;  %4365 = vrsqrt.f32 %v6668_v45  ;;  %v2175_v18 = vadd.f32 %v6570_v32, %v6605_v62 }
 0x40e   : > { %v3406_v38 = vmin.f32 %v3182_v47, 1.0  ;;  %3374 = vst [vmem:[%s5615_s13 + $0xd8] sm:$0xff] %v3342_v5  ;;  %3951 = vst [vmem:[%s5615_s13 + $0x2d8] sm:$0xff] %v3471_v11  ;;  %v1689_v8 = vmul.f32 0.1, %v1657_v59  ;;  %v2671_v22 = vunpack.c.l.bf16 %v2641_v37  ;;  %v2048_v27 = vmul.f32 %v2016_v52, %v6613_v36 }
 0x40f   : > { %v1885_v44 = vmul.f32 0.15, %v6642_v24  ;;  %v2144_v23 = vmul.f32 %v2112_v9, %v6613_v36  ;;  %v1728_v3 = vmul.f32 %v3827_v29, %v3827_v29  ;;  %4367 = vrsqrt.f32 %v6671_v35 }
 0x410   : > { %3919 = vst [vmem:[%s5615_s13 + $0x1d8] sm:$0xff] %v3406_v38  ;;  %v2271_v49 = vadd.f32 %v6589_v42, %v2239_v26  ;;  %v2303_v7 = vadd.f32 1.0, %v1689_v8  ;;  %v2399_v28 = vmul.f32 0.3, %v1689_v8  ;;  %v2527_v51 = vmul.f32 0.2, %v1689_v8 }
 0x411   : > { %v6689_v61 = vmul.f32 0.15, %v4360_v12  ;;  %v2240_v32 = vmul.f32 %v2208_v1, %v6613_v36  ;;  %v2672_v62 = vunpack.c.h.bf16 %v2641_v37  ;;  %v2703_v19 = vsub.f32 1.0, %v2671_v22 }
 0x412   : > { %v2335_v31 = vmul.f32 %v2303_v7, %v2079_v54  ;;  %v2431_v41 = vadd.f32 1.0, %v2399_v28  ;;  %v2559_v48 = vsub.f32 1.0, %v2527_v51  ;;  %v2831_v58 = vadd.f32 1.0, %v1885_v44 }
 0x413   : > { %v4364_v24 = vpop.eup %4363  ;;  %v2080_v15 = vadd.f32 %v2048_v27, %v6649_v4  ;;  %v2176_v52 = vadd.f32 %v3857_v0, %v2144_v23  ;;  %v1759_v21 = vadd.f32 %v1728_v3, %v7154_v17  ;;  %v2863_v60 = vsub.f32 1.0, %v1885_v44 }
 0x414   : > { %v2367_v42 = vmin.f32 %v2335_v31, 1.0  ;;  %v2463_v6 = vmul.f32 %v2431_v41, %v2175_v18  ;;  %v2591_v16 = vmul.f32 %v2559_v48, %v2271_v49  ;;  %v1626_v46 = vmul.f32 0.5, %v4364_v24 }
 0x415   : > { %v2272_v13 = vadd.f32 %v3889_v33, %v2240_v32  ;;  %v2704_v25 = vsub.f32 1.0, %v2672_v62  ;;  %v6695_v36 = vadd.f32 1.0, %v6689_v61  ;;  %vm1489_vm12 = vcmp.eq.f32.partialorder %v6668_v45, inf }
 0x416   : > { %v2495_v10 = vmin.f32 %v2463_v6, 1.0  ;;  %v2623_v12 = vmin.f32 %v2591_v16, 1.0  ;;  %v2735_v57 = vmul.f32 %v2703_v19, %v2367_v42  ;;  %v1658_v43 = vadd.f32 0.5, %v1626_v46 }
 0x417   : > { %v4366_v30 = vpop.eup %4365  ;;  %vm1491_vm13 = vcmp.eq.f32.partialorder %v6668_v45, 0.0  ;;  %v1492_v17 = vand.u32 2147483648, %v6668_v45  ;;  %vm1496_vm14 = vcmp.eq.f32.partialorder %v6671_v35, inf  ;;  %v1791_v34 = vmul.f32 -1.3888888, %v1759_v21 }
 0x418   : > { %v2767_v4 = vmul.f32 %v2703_v19, %v2495_v10  ;;  %v2799_v0 = vmul.f32 %v2703_v19, %v2623_v12  ;;  %v2927_v2 = vmul.f32 %v2831_v58, %v2735_v57  ;;  %v1690_v39 = vmul.f32 0.1, %v1658_v43 }
 0x419   : > { %v4368_v14 = vpop.eup %4367  ;;  %v1488_v20 = vmul.f32 %v4366_v30, %v6668_v45  ;;  %vm1498_vm15 = vcmp.eq.f32.partialorder %v6671_v35, 0.0  ;;  %v1499_v56 = vand.u32 2147483648, %v6671_v35  ;;  %v1760_v55 = vadd.f32 %v1728_v3, %v7156_v40 }
 0x41a   : > { %v2895_v50 = vmul.f32 %v2863_v60, %v2735_v57  ;;  %v2959_v33 = vmul.f32 1.05, %v2927_v2  ;;  %v3087_v9 = vmul.f32 %v2831_v58, %v2767_v4  ;;  %v3215_v47 = vmul.f32 %v2863_v60, %v2799_v0 }
 0x41b   : > { %v3247_v37 = vmul.f32 %v2831_v58, %v2799_v0  ;;  %v2304_v29 = vadd.f32 1.0, %v1690_v39  ;;  %v2400_v5 = vmul.f32 0.3, %v1690_v39  ;;  %v2528_v11 = vmul.f32 0.2, %v1690_v39 }
 0x41c   : > { %v2991_v59 = vmin.f32 %v2959_v33, 1.0  ;;  %v3119_v26 = vmul.f32 1.03, %v3087_v9  ;;  %v1490_v38 = vsel %vm1489_vm12, %v6668_v45, %v1488_v20  ;;  %v1495_v54 = vmul.f32 %v4368_v14, %v6671_v35  ;;  %v3890_v14 = vld [vmem:[%s4880_s14 + $0x2f0] sm:$0xff] }
 0x41d   : > { %v3279_v1 = vmin.f32 %v3247_v37, 1.0  ;;  %v2336_v8 = vmul.f32 %v2304_v29, %v2080_v15  ;;  %v2432_v18 = vadd.f32 1.0, %v2400_v5  ;;  %v2560_v40 = vsub.f32 1.0, %v2528_v11 }
 0x41e   : > { %v3023_v22 = vadd.f32 %v2991_v59, %v2895_v50  ;;  %v3055_v27 = vmul.f32 %v2863_v60, %v2767_v4  ;;  %v3151_v44 = vmin.f32 %v3119_v26, 1.0  ;;  %v1493_v23 = vsel %vm1491_vm13, %v1492_v17, %v1490_v38  ;;  %v1919_v17 = vld [vmem:[%s4880_s14 + $0xf0] sm:$0xff]  ;;  %v2642_v59 = vld [vmem:[%s4901_s25 + $0x78] sm:$0xff] }
 0x41f   : > { %v3311_v3 = vadd.f32 %v3279_v1, %v3215_v47  ;;  %v2368_v49 = vmin.f32 %v2336_v8, 1.0  ;;  %v2464_v7 = vmul.f32 %v2432_v18, %v2176_v52  ;;  %v2592_v28 = vmul.f32 %v2560_v40, %v2272_v13  ;;  %v3858_v4 = vld [vmem:[%s4880_s14 + $0x1f0] sm:$0xff]  ;;  %v1920_v26 = vld [vmem:[%s4880_s14 + $0xf8] sm:$0xff] }
 0x420   : > { %v3183_v51 = vadd.f32 %v3151_v44, %v3055_v27  ;;  %v3343_v32 = vmin.f32 %v3023_v22, 1.0  ;;  %v1531_v62 = vmul.f32 -2.0, %v1493_v23  ;;  %v1497_v31 = vsel %vm1496_vm14, %v6671_v35, %v1495_v54  ;;  %v3859_v8 = vld [vmem:[%s4880_s14 + $0x1f8] sm:$0xff] }
 0x421   : > { %v3472_v41 = vmin.f32 %v3311_v3, 1.0  ;;  %v2496_v48 = vmin.f32 %v2464_v7, 1.0  ;;  %v2624_v19 = vmin.f32 %v2592_v28, 1.0  ;;  %v2736_v24 = vmul.f32 %v2704_v25, %v2368_v49  ;;  %v3891_v18 = vld [vmem:[%s4880_s14 + $0x2f8] sm:$0xff] }
 0x422   : > { %3375 = vst [vmem:[%s5615_s13 + $0xe0] sm:$0xff] %v3343_v32  ;;  %v3407_v45 = vmin.f32 %v3183_v51, 1.0  ;;  %v2864_v58 = vsub.f32 1.0, %v6689_v61  ;;  %v1593_v15 = vmul.f32 1.442695, %v1531_v62  ;;  %v1500_v16 = vsel %vm1498_vm15, %v1499_v56, %v1497_v31 }
 0x423   : > { %3952 = vst [vmem:[%s5615_s13 + $0x2e0] sm:$0xff] %v3472_v41  ;;  %v2768_v52 = vmul.f32 %v2704_v25, %v2496_v48  ;;  %v2800_v21 = vmul.f32 %v2704_v25, %v2624_v19  ;;  %v2928_v42 = vmul.f32 %v6695_v36, %v2736_v24  ;;  %v1853_v6 = vmul.f32 1.442695, %v1791_v34 }
 0x424   : > { %3920 = vst [vmem:[%s5615_s13 + $0x1e0] sm:$0xff] %v3407_v45  ;;  %4369 = vpow2.f32 %v1593_v15  ;;  %v1792_v13 = vmul.f32 -1.3888888, %v1760_v55  ;;  %v1532_v10 = vmul.f32 -2.0, %v1500_v16  ;;  %v2896_v12 = vmul.f32 %v2864_v58, %v2736_v24 }
 0x425   : > { %v2960_v46 = vmul.f32 1.05, %v2928_v42  ;;  %v3088_v60 = vmul.f32 %v6695_v36, %v2768_v52  ;;  %v3248_v61 = vmul.f32 %v6695_v36, %v2800_v21  ;;  %4371 = vpow2.f32 %v1853_v6 }
 0x426   : > { %v3216_v43 = vmul.f32 %v2864_v58, %v2800_v21  ;;  %v1595_v0 = vmul.f32 1.442695, %v1532_v10  ;;  %v3056_v2 = vmul.f32 %v2864_v58, %v2768_v52  ;;  %v1855_v39 = vmul.f32 1.442695, %v1792_v13 }
 0x427   : > { %v2992_v25 = vmin.f32 %v2960_v46, 1.0  ;;  %v3120_v57 = vmul.f32 1.03, %v3088_v60  ;;  %v3280_v30 = vmin.f32 %v3248_v61, 1.0  ;;  %v1133_v36 = vmul.f32 0.2, %v6335_v53 }
 0x428   : > { %4373 = vpow2.f32 %v1595_v0  ;;  %v2017_v50 = vsub.f32 1.0, %v1919_v17  ;;  %v2113_v33 = vsub.f32 1.0, %v3858_v4  ;;  %v2209_v47 = vsub.f32 1.05, %v3890_v14 }
 0x429   : > { %v3024_v35 = vadd.f32 %v2992_v25, %v2896_v12  ;;  %v3152_v34 = vmin.f32 %v3120_v57, 1.0  ;;  %v3312_v20 = vadd.f32 %v3280_v30, %v3216_v43  ;;  %4375 = vpow2.f32 %v1855_v39 }
 0x42a   : > { %v2049_v11 = vmul.f32 %v2017_v50, %v1133_v36  ;;  %v2145_v53 = vmul.f32 %v2113_v33, %v1133_v36  ;;  %v2241_v38 = vmul.f32 %v2209_v47, %v1133_v36  ;;  %v2673_v40 = vunpack.c.l.bf16 %v2642_v59 }
 0x42b   : > { %v3184_v56 = vadd.f32 %v3152_v34, %v3056_v2  ;;  %v3344_v55 = vmin.f32 %v3024_v35, 1.0  ;;  %v3473_v9 = vmin.f32 %v3312_v20, 1.0  ;;  %v1134_v22 = vmul.f32 0.2, %v6403_v63 }
 0x42c   : > { %v2018_v27 = vsub.f32 1.0, %v1920_v26  ;;  %v2081_v23 = vadd.f32 %v2049_v11, %v1919_v17  ;;  %v2177_v3 = vadd.f32 %v3858_v4, %v2145_v53  ;;  %v2273_v28 = vadd.f32 %v3890_v14, %v2241_v38 }
 0x42d   : > { %3376 = vst [vmem:[%s5615_s13 + $0xe8] sm:$0xff] %v3344_v55  ;;  %v3408_v37 = vmin.f32 %v3184_v56, 1.0  ;;  %3953 = vst [vmem:[%s5615_s13 + $0x2e8] sm:$0xff] %v3473_v9  ;;  %v2114_v51 = vsub.f32 1.0, %v3859_v8  ;;  %v2210_v32 = vsub.f32 1.05, %v3891_v18  ;;  %v2674_v12 = vunpack.c.h.bf16 %v2642_v59 }
 0x42e   : > { %v4370_v29 = vpop.eup %4369  ;;  %v2705_v19 = vsub.f32 1.0, %v2673_v40  ;;  %v2050_v24 = vmul.f32 %v2018_v27, %v1134_v22 }
 0x42f   : > { %3921 = vst [vmem:[%s5615_s13 + $0x1e8] sm:$0xff] %v3408_v37  ;;  %v1627_v5 = vmul.f32 0.5, %v4370_v29  ;;  %v4372_v54 = vpop.eup %4371  ;;  %v2146_v42 = vmul.f32 %v2114_v51, %v1134_v22  ;;  %v2242_v6 = vmul.f32 %v2210_v32, %v1134_v22  ;;  %v2706_v55 = vsub.f32 1.0, %v2674_v12 }
 0x430   : > { %v1887_v7 = vmul.f32 0.15, %v4372_v54  ;;  %v2082_v10 = vadd.f32 %v2050_v24, %v1920_v26 }
 0x431   : > { %v1659_v1 = vadd.f32 0.5, %v1627_v5  ;;  %v2178_v17 = vadd.f32 %v3859_v8, %v2146_v42  ;;  %v2274_v4 = vadd.f32 %v3891_v18, %v2242_v6 }
 0x432   : > { %v4374_v49 = vpop.eup %4373  ;;  %v2833_v21 = vadd.f32 1.0, %v1887_v7  ;;  %v2865_v14 = vsub.f32 1.0, %v1887_v7 }
 0x433   : > { %v1691_v44 = vmul.f32 0.1, %v1659_v1  ;;  %v1628_v48 = vmul.f32 0.5, %v4374_v49  ;;  %v4376_v45 = vpop.eup %4375 }
 0x434   : > { %v1888_v61 = vmul.f32 0.15, %v4376_v45 }
 0x435   : > { %v2305_v62 = vadd.f32 1.0, %v1691_v44  ;;  %v2401_v31 = vmul.f32 0.3, %v1691_v44  ;;  %v2529_v41 = vmul.f32 0.2, %v1691_v44  ;;  %v1660_v63 = vadd.f32 0.5, %v1628_v48 }
 0x436   : > { %v2834_v9 = vadd.f32 1.0, %v1888_v61  ;;  %v2866_v7 = vsub.f32 1.0, %v1888_v61 }
 0x437   : > { %v2337_v58 = vmul.f32 %v2305_v62, %v2081_v23  ;;  %v2433_v15 = vadd.f32 1.0, %v2401_v31  ;;  %v2561_v52 = vsub.f32 1.0, %v2529_v41  ;;  %v1692_v13 = vmul.f32 0.1, %v1660_v63 }
 0x439   : > { %v2369_v16 = vmin.f32 %v2337_v58, 1.0  ;;  %v2465_v46 = vmul.f32 %v2433_v15, %v2177_v3  ;;  %v2593_v60 = vmul.f32 %v2561_v52, %v2273_v28  ;;  %v2306_v30 = vadd.f32 1.0, %v1692_v13 }
 0x43a   : > { %v2402_v0 = vmul.f32 0.3, %v1692_v13  ;;  %v2530_v35 = vmul.f32 0.2, %v1692_v13 }
 0x43b   : > { %v2497_v25 = vmin.f32 %v2465_v46, 1.0  ;;  %v2625_v57 = vmin.f32 %v2593_v60, 1.0  ;;  %v2737_v43 = vmul.f32 %v2705_v19, %v2369_v16  ;;  %v2338_v20 = vmul.f32 %v2306_v30, %v2082_v10 }
 0x43c   : > { %v2434_v36 = vadd.f32 1.0, %v2402_v0  ;;  %v2562_v56 = vsub.f32 1.0, %v2530_v35 }
 0x43d   : > { %v2769_v2 = vmul.f32 %v2705_v19, %v2497_v25  ;;  %v2801_v34 = vmul.f32 %v2705_v19, %v2625_v57  ;;  %v2929_v39 = vmul.f32 %v2833_v21, %v2737_v43  ;;  %v2370_v37 = vmin.f32 %v2338_v20, 1.0 }
 0x43e   : > { %v2466_v29 = vmul.f32 %v2434_v36, %v2178_v17  ;;  %v2594_v5 = vmul.f32 %v2562_v56, %v2274_v4  ;;  %v2897_v11 = vmul.f32 %v2865_v14, %v2737_v43 }
 0x43f   : > { %v2961_v50 = vmul.f32 1.05, %v2929_v39  ;;  %v3089_v33 = vmul.f32 %v2833_v21, %v2769_v2  ;;  %v3249_v47 = vmul.f32 %v2833_v21, %v2801_v34  ;;  %v3217_v26 = vmul.f32 %v2865_v14, %v2801_v34 }
 0x440   : > { %v2498_v54 = vmin.f32 %v2466_v29, 1.0  ;;  %v2626_v1 = vmin.f32 %v2594_v5, 1.0  ;;  %v2738_v8 = vmul.f32 %v2706_v55, %v2370_v37  ;;  %v3057_v40 = vmul.f32 %v2865_v14, %v2769_v2 }
 0x441   : > { %v2993_v53 = vmin.f32 %v2961_v50, 1.0  ;;  %v3121_v59 = vmul.f32 1.03, %v3089_v33  ;;  %v3281_v38 = vmin.f32 %v3249_v47, 1.0 }
 0x442   : > { %v2770_v44 = vmul.f32 %v2706_v55, %v2498_v54  ;;  %v2802_v23 = vmul.f32 %v2706_v55, %v2626_v1  ;;  %v2930_v28 = vmul.f32 %v2834_v9, %v2738_v8  ;;  %v2898_v19 = vmul.f32 %v2866_v7, %v2738_v8 }
 0x443   : > { %v3025_v18 = vadd.f32 %v2993_v53, %v2897_v11  ;;  %v3153_v22 = vmin.f32 %v3121_v59, 1.0  ;;  %v3313_v27 = vadd.f32 %v3281_v38, %v3217_v26 }
 0x444   : > { %v3090_v32 = vmul.f32 %v2834_v9, %v2770_v44  ;;  %v2962_v31 = vmul.f32 1.05, %v2930_v28  ;;  %v3250_v41 = vmul.f32 %v2834_v9, %v2802_v23  ;;  %v3218_v45 = vmul.f32 %v2866_v7, %v2802_v23 }
 0x445   : > { %v3185_v3 = vadd.f32 %v3153_v22, %v3057_v40  ;;  %v3345_v49 = vmin.f32 %v3025_v18, 1.0  ;;  %v3474_v51 = vmin.f32 %v3313_v27, 1.0  ;;  %v3058_v15 = vmul.f32 %v2866_v7, %v2770_v44 }
 0x446   : > { %v3122_v48 = vmul.f32 1.03, %v3090_v32  ;;  %v2994_v24 = vmin.f32 %v2962_v31, 1.0  ;;  %v3282_v58 = vmin.f32 %v3250_v41, 1.0 }
 0x447   : > { %3377 = vst [vmem:[%s5615_s13 + $0xf0] sm:$0xff] %v3345_v49  ;;  %v3409_v62 = vmin.f32 %v3185_v3, 1.0  ;;  %3954 = vst [vmem:[%s5615_s13 + $0x2f0] sm:$0xff] %v3474_v51 }
 0x448   : > { %v3154_v52 = vmin.f32 %v3122_v48, 1.0  ;;  %v3026_v63 = vadd.f32 %v2994_v24, %v2898_v19  ;;  %v3314_v21 = vadd.f32 %v3282_v58, %v3218_v45 }
 0x449   : > { %3922 = vst [vmem:[%s5615_s13 + $0x1f0] sm:$0xff] %v3409_v62 }
 0x44a   : > { %v3186_v42 = vadd.f32 %v3154_v52, %v3058_v15  ;;  %v3346_v6 = vmin.f32 %v3026_v63, 1.0  ;;  %v3475_v16 = vmin.f32 %v3314_v21, 1.0 }
 0x44c   : > { %v3410_v46 = vmin.f32 %v3186_v42, 1.0  ;;  %3378 = vst [vmem:[%s5615_s13 + $0xf8] sm:$0xff] %v3346_v6  ;;  %3955 = vst [vmem:[%s5615_s13 + $0x2f8] sm:$0xff] %v3475_v16 }
 0x44e   : > { %3923 = vst [vmem:[%s5615_s13 + $0x1f8] sm:$0xff] %v3410_v46 }
 0x44f   : > { %s3968_s26 = sshll.u32 %s4664_s22, 12  ;;  %s3540_s12 = sshll.u32 %s5615_s13, 4  ;;  %s3541_s12 = int_to_ptr.vmem [resolvable:$true] %s3540_s12 }
 0x450   : > { %s3523_s9 = scalar_lea.hbm %s6784_s5, %s3968_s26  ;;  %s4607_s8 = smov 4096  }
 0x451   : > { %p7159_p5 = scmp.ne.s32.totalorder %s6886_s30, 0  ;;  %s4608_s23 = smov 8192  }
 0x452   : > { %s4609_s28 = smov 16   ;;  %s4610_s27 = smov 256  }
 0x453   : > { %3992 = sst [smem:[#allocation15]] (%p7159_p5), %s4607_s8  ;;  %s4611_s22 = smov [#allocation14]  }
 0x454   : > { %3993 = sst [smem:[#allocation15 + $0x1]] (%p7159_p5), %s4608_s23  ;;  %s4612_s14 = smov 0  }
 0x455   : > { %3994 = sst [smem:[#allocation15 + $0x2]] (%p7159_p5), %s4609_s28 }
 0x456   : > { %3995 = sst [smem:[#allocation15 + $0x3]] (%p7159_p5), %s4610_s27 }
 0x457   : > { %3996 = sst [smem:[#allocation15 + $0x4]] (%p7159_p5), %s4610_s27 }
 0x458   : > { %3997 = sst [smem:[#allocation15 + $0x5]] (%p7159_p5), %s4609_s28 }
 0x459   : > { %3998 = dma.general (%p7159_p5), %s3541_s12, 12288, %s3523_s9, %s3510_s10, %s4611_s22, [#allocation15], %s4612_s14, 0  }
 0x45a PF: > { %s3568_s7 = sand.u32 1, %s4580_s18   ;;  %p7160_p11 = scmp.ne.s32.totalorder %s6887_s6, 0 }
 0x45b   : > { %s3569_s17 = scalar_lea.sflag [#allocation4], %s3568_s7 }
 0x45c   : > { %p4008_p12 = pnand %p3692_p4, %p7160_p11 }
 0x45e   : > { %4575 = dma.done.wait (!%p4008_p12), %s3569_s17, 12288  }
 0x45f   : > { %4577 = vsyncadd (!%p4008_p12), %s3569_s17, 4294955008  ;;  %s7161_s16 = sld [smem:[#allocation23_spill]]  ;;  %p22_p6 = scmp.ge.s32.totalorder %s4668_s24, 4  }
 0x460   : > { %s7162_s18 = smov %s4584_s19  ;;  %s7163_s19 = smov %s4588_s20 }
 0x461   : > { %s7165_s21 = smov %s4668_s24  ;;  %24 = sbr.rel (!%p22_p6) target bundleno = 8 (0x8), region = 131 }
 0x465   : > { %s7164_s20 = smov %s7161_s16 }
 0x468   :  { %3574 = vsyncpa [#allocation3], 1 }
 0x469   :  { %3576 = vsyncpa [#allocation3 + $0x1], 1 }
 0x46a   :  { %3577 = vsyncpa [#allocation6], 1 }
 0x46b   :  { %3579 = vsyncpa [#allocation6 + $0x1], 1 }
 0x46c   :  { %3580 = vsyncpa [#allocation9], 1 }
 0x46d   :  { %3581 = vsyncpa [#allocation4], 1 }
 0x46e   :  { %3583 = vsyncpa [#allocation4 + $0x1], 1 }

// kernel: tpu_custom_call.1
= control target key start
LH: loop header
LB: loop body
LE: loop exit
PB: predicated region body
PF: predicated region fallthrough
CT: control target
= control target key end

     0   :  { %10 = vsyncpa [#allocation3], 0  ;;  %s6779_s0 = inlined_call_operand.hbm [shape: f32[3,256,256], index: 0, kind: input, shape index: {}]   ;;  %s6780_s1 = inlined_call_operand.hbm [shape: bf16[256,256], index: 1, kind: input, shape index: {}]   ;;  %s6781_s2 = inlined_call_operand.hbm [shape: bf16[256,256], index: 2, kind: input, shape index: {}]   ;;  %s6782_s3 = inlined_call_operand.hbm [shape: bf16[256,256], index: 3, kind: input, shape index: {}]   ;;  %s6783_s4 = inlined_call_operand.hbm [shape: bf16[256,256], index: 4, kind: input, shape index: {}]   ;;  %s6784_s5 = inlined_call_operand.hbm [shape: f32[3,256,256], index: 5, kind: output, shape index: {}]  }
   0x1   :  { %12 = vsyncpa [#allocation3 + $0x1], 0 }
   0x2   :  { %13 = vsyncpa [#allocation6], 0 }
   0x3   :  { %15 = vsyncpa [#allocation6 + $0x1], 0 }
   0x4   :  { %16 = vsyncpa [#allocation9], 0 }
   0x5   :  { %17 = vsyncpa [#allocation4], 0 }
   0x6   :  { %19 = vsyncpa [#allocation4 + $0x1], 0  ;;  %s4643_s18 = smov 0   ;;  %s4645_s19 = smov 0  }
   0x7   :  { %s4647_s20 = smov 0   ;;  %s4649_s21 = smov 0  }
   0x8 LB: > { %s4664_s22 = sadd.s32 4294967295, %s4592_s21   ;;  %s3688_s23 = sadd.s32 4294967294, %s4592_s21   ;;  %s4592_s21 = sphi %s4649_s21, %s7165_s21   ;;  %s4588_s20 = sphi %s4647_s20, %s7164_s20   ;;  %s4584_s19 = sphi %s4645_s19, %s7163_s19   ;;  %s4580_s18 = sphi %s4643_s18, %s7162_s18  }
   0x9   : > { %s4668_s24 = sadd.s32 1, %s4592_s21   ;;  %s32_s25 = sadd.s32 1, %s4588_s20 }
   0xa   : > { %s29_s26 = ssub.s32 %s4592_s21, %s4668_s24  ;;  %p39_p0 = scmp.ne.s32.totalorder %s4588_s20, %s4584_s19 }
   0xb   : > { %p30_p1 = scmp.eq.s32.totalorder %s29_s26, 0  ;;  %p40_p2 = scmp.eq.s32.totalorder %s4592_s21, 0 }
   0xc   : > { %p45_p3 = scmp.ne.s32.totalorder %s4584_s19, %s4580_s18  ;;  %p6785_p4 = scmp.eq.s32.totalorder %s4664_s22, 0 }
   0xd   : > { %s4680_s27 = scalar_select %p30_p1, %s4588_s20, %s32_s25  }
   0xe   : > { %p4682_p5 = por %p40_p2, %p39_p0  ;;  %p4688_p6 = por %p6785_p4, %p45_p3 }
   0xf   : > { %6883 = sst [smem:[#allocation23_spill]] %s4680_s27  ;;  %p163_p7 = scmp.eq.s32.totalorder %s4664_s22, 1 }
  0x10   : > { %s6884_s28 = scalar_select %p4682_p5, 1, 0 }
  0x11   : > { %s6885_s29 = scalar_select %p4688_p6, 1, 0 }
  0x12   : > { %p169_p8 = scmp.eq.s32.totalorder %s3688_s23, 1  ;;  %p3689_p9 = scmp.ge.s32.totalorder %s4592_s21, 1 }
  0x13   : > { %p176_p10 = scmp.lt.s32.totalorder %s4592_s21, 3  ;;  %p4695_p11 = por %p163_p7, %p39_p0 }
  0x14   : > { %p4699_p12 = por %p169_p8, %p45_p3  ;;  %s4594_s8 = smov [#allocation7]  }
  0x15   : > { %s6886_s30 = scalar_select %p4695_p11, 1, 0 }
  0x16   : > { %s6887_s6 = scalar_select %p4699_p12, 1, 0 }
  0x17   : > { %p4703_p13 = pnand %p3689_p9, %p176_p10  ;;  %s188_s9 = sshll.u32 %s4594_s8, 4  ;;  %s189_s9 = int_to_ptr.vmem [resolvable:$true] %s188_s9 }
  0x18   : > { %s4595_s11 = smov [#allocation8]   ;;  %s4426_s15 = scalar_lea.hbm %s6781_s2, 4096 }
  0x19   : > { %s6888_s7 = scalar_select %p4703_p13, 1, 0 }
  0x1a   : > { %p4000_p1 = pneg %p4703_p13  ;;  %s201_s12 = sshll.u32 %s4595_s11, 4  ;;  %s4715_s12 = int_to_ptr.vmem [resolvable:$true] %s201_s12 }
  0x1b   : > { %p4427_p0 = scmp.ne.s32.totalorder %s6781_s2, %s4426_s15  ;;  %p4433_p9 = scmp.lt.u32.totalorder %s4426_s15, %s6781_s2 }
  0x1c   : > { %p4711_p2 = pnand %p4000_p1, %p6785_p4 }
  0x1e   : > { %p4428_p3 = pneg %p4711_p2 }
  0x20   : > { %p4429_p7 = pnand %p4428_p3, %p4427_p0 }
  0x22   : > { %p4430_p8 = pneg %p4429_p7 }
  0x24   : > { %p4435_p10 = pnand %p4433_p9, %p4430_p8 }
  0x26   : > { %4438 = shalt.err (!%p4435_p10)
}
  0x27   : > { %s4439_s26 = scalar_lea.vmem %s189_s9, 4096  ;;  %p4447_p11 = scmp.lt.s32.totalorder %s189_s9, %s189_s9 }
  0x28   : > { %p4440_p1 = scmp.ne.s32.totalorder %s189_s9, %s4439_s26  ;;  %p4448_p6 = scmp.lt.s32.totalorder %s4439_s26, %s4439_s26 }
  0x2a   : > { %p4442_p4 = pnand %p4440_p1, %p4428_p3  ;;  %p4449_p13 = por %p4448_p6, %p4447_p11 }
  0x2c   : > { %p4443_p12 = pneg %p4442_p4 }
  0x2e   : > { %p4450_p5 = pnand %p4449_p13, %p4443_p12 }
  0x30   : > { %4453 = shalt.err (!%p4450_p5)
}
  0x31   : > { %s4596_s8 = smov 128   ;;  %s4597_s11 = smov 8  }
  0x32   : > { %4003 = dma.hbm_to_vmem [thread:$0]  (!%p4711_p2), %s6781_s2, 4096, %s189_s9, [#allocation6], %s4596_s8, %s4596_s8, %s4597_s11  }
  0x33   : > { %s4454_s17 = scalar_lea.hbm %s6782_s3, 4096 }
  0x34   : > { %p4455_p4 = scmp.ne.s32.totalorder %s6782_s3, %s4454_s17  ;;  %p4461_p11 = scmp.lt.u32.totalorder %s4454_s17, %s6782_s3 }
  0x36   : > { %p4457_p5 = pnand %p4455_p4, %p4428_p3 }
  0x38   : > { %p4458_p6 = pneg %p4457_p5 }
  0x3a   : > { %p4463_p12 = pnand %p4461_p11, %p4458_p6 }
  0x3c   : > { %4466 = shalt.err (!%p4463_p12)
}
  0x3d   : > { %s4467_s9 = scalar_lea.vmem %s4715_s12, 4096  ;;  %p4475_p8 = scmp.lt.s32.totalorder %s4715_s12, %s4715_s12 }
  0x3e   : > { %p4468_p13 = scmp.ne.s32.totalorder %s4715_s12, %s4467_s9  ;;  %p4476_p9 = scmp.lt.s32.totalorder %s4467_s9, %s4467_s9 }
  0x40   : > { %p4470_p0 = pnand %p4468_p13, %p4428_p3  ;;  %p4477_p10 = por %p4476_p9, %p4475_p8 }
  0x42   : > { %p4471_p7 = pneg %p4470_p0 }
  0x44   : > { %p4478_p1 = pnand %p4477_p10, %p4471_p7 }
  0x46   : > { %4481 = shalt.err (!%p4478_p1)
}
  0x47   : > { %4006 = dma.hbm_to_vmem [thread:$0]  (!%p4711_p2), %s6782_s3, 4096, %s4715_s12, [#allocation9], %s4596_s8, %s4596_s8, %s4597_s11  }
  0x48   : > { %p3692_p4 = scmp.ge.s32.totalorder %s4592_s21, 2 }
  0x4a   : > { %211 = sbr.rel (%p3692_p4) target bundleno = 144 (0x90), region = 24 }
  0x51   : > { %s217_s15 = sand.u32 1, %s4588_s20   ;;  %p6890_p3 = scmp.ne.s32.totalorder %s6884_s28, 0 }
  0x52   : > { %s3969_s10 = smul.u32 768, %s217_s15  ;;  %s3962_s12 = sshll.u32 %s4592_s21, 12 }
  0x53   : > { %s3975_s16 = scalar_select %p6890_p3, [#allocation0], [#allocation16] }
  0x54   : > { %s4598_s8 = smov 8192   ;;  %s219_s17 = scalar_lea.vmem [#allocation2], %s3969_s10 }
  0x55   : > { %3976 = sst [smem:[#allocation13]] (%p6890_p3), %s4598_s8  ;;  %s239_s23 = sshll.u32 %s219_s17, 4  ;;  %s240_s23 = int_to_ptr.vmem [resolvable:$true] %s239_s23 }
  0x56   : > { %s231_s11 = sld [smem:[%s3975_s16]]   ;;  %s4599_s25 = smov 4096  }
  0x57   : > { %3977 = sst [smem:[#allocation13 + $0x1]] (%p6890_p3), %s4599_s25  ;;  %s226_s27 = scalar_lea.hbm %s6779_s0, %s3962_s12 }
  0x58   : > { %s4600_s13 = smov 16   ;;  %s4601_s14 = smov 256  }
  0x59   : > { %3978 = sst [smem:[#allocation13 + $0x2]] (%p6890_p3), %s4600_s13  ;;  %s6891_s8 = sand.u32 1, %s4592_s21  }
  0x5a   : > { %3979 = sst [smem:[#allocation13 + $0x3]] (%p6890_p3), %s4601_s14  ;;  %s4789_s17 = scalar_lea.sflag [#allocation3], %s6891_s8 }
  0x5b   : > { %3980 = sst [smem:[#allocation13 + $0x4]] (%p6890_p3), %s4601_s14  ;;  %s4602_s25 = smov [#allocation12]  }
  0x5c   : > { %s3696_s16 = sshll.u32 %s231_s11, 26  ;;  %3981 = sst [smem:[#allocation13 + $0x5]] (%p6890_p3), %s4600_s13 }
  0x5d   : > { %s3697_s10 = sadd.s32 134217728, %s3696_s16  ;;  %s4794_s12 = sshll.u32 %s217_s15, 7 }
  0x5e   : > { %3982 = dma.general (%p6890_p3), %s226_s27, 12288, %s240_s23, %s4789_s17, %s4602_s25, [#allocation13], %s3697_s10, 0  }
  0x5f   : > { %s3964_s26 = sshll.u32 %s4592_s21, 11  ;;  %s266_s13 = scalar_lea.vmem [#allocation5], %s4794_s12 }
  0x60   : > { %s4802_s9 = scalar_lea.hbm %s6780_s1, %s3964_s26  ;;  %s274_s23 = sshll.u32 %s266_s13, 4  ;;  %s4805_s23 = int_to_ptr.vmem [resolvable:$true] %s274_s23 }
  0x61   : > { %s6892_s15 = smov %s6891_s8  ;;  %s4482_s16 = scalar_lea.hbm %s4802_s9, 2048 }
  0x62   : > { %s4809_s27 = scalar_lea.sflag [#allocation6], %s6892_s15  ;;  %p4483_p2 = scmp.ne.s32.totalorder %s4802_s9, %s4482_s16 }
  0x63   : > { %s4486_s25 = scalar_lea.hbm %s6780_s1, 4096  ;;  %p4487_p11 = scmp.lt.u32.totalorder %s4802_s9, %s6780_s1 }
  0x64   : > { %p4484_p5 = pnand %p4483_p2, %p6890_p3  ;;  %p4488_p12 = scmp.lt.u32.totalorder %s4486_s25, %s4482_s16 }
  0x65   : > { %p4490_p0 = scmp.lt.u32.totalorder %s4482_s16, %s4802_s9 }
  0x66   : > { %p4485_p6 = pneg %p4484_p5  ;;  %p4489_p13 = por %p4488_p12, %p4487_p11 }
  0x68   : > { %p4491_p7 = por %p4490_p0, %p4489_p13 }
  0x6a   : > { %p4492_p8 = pnand %p4491_p7, %p4485_p6 }
  0x6c   : > { %4495 = shalt.err (!%p4492_p8)
}
  0x6d   : > { %s4496_s13 = scalar_lea.vmem %s4805_s23, 2048  ;;  %s4603_s15 = smov [#allocation5]  }
  0x6e   : > { %p4497_p9 = scmp.ne.s32.totalorder %s4805_s23, %s4496_s13  ;;  %s4500_s10 = sshll.u32 %s4603_s15, 4  ;;  %s4501_s10 = int_to_ptr.vmem [resolvable:$false] %s4500_s10 }
  0x6f   : > { %s4502_s8 = scalar_lea.vmem %s4501_s10, 4096  ;;  %p4503_p2 = scmp.lt.s32.totalorder %s4805_s23, %s4501_s10 }
  0x70   : > { %p4498_p10 = pnand %p4497_p9, %p6890_p3  ;;  %p4504_p5 = scmp.lt.s32.totalorder %s4502_s8, %s4496_s13 }
  0x72   : > { %p4499_p1 = pneg %p4498_p10  ;;  %p4505_p11 = por %p4504_p5, %p4503_p2 }
  0x74   : > { %p4506_p12 = pnand %p4505_p11, %p4499_p1 }
  0x76   : > { %4509 = shalt.err (!%p4506_p12)
}
  0x77   : > { %s4604_s16 = smov 128   ;;  %s4605_s25 = smov 8  }
  0x78   : > { %3983 = dma.hbm_to_vmem [thread:$0]  (%p6890_p3), %s4802_s9, 2048, %s4805_s23, %s4809_s27, %s4604_s16, %s4604_s16, %s4605_s25  }
  0x79   : > { %s4841_s13 = scalar_lea.hbm %s6783_s4, %s3964_s26  ;;  %s288_s15 = scalar_lea.vmem [#allocation10], %s4794_s12 }
  0x7a   : > { %s296_s10 = sshll.u32 %s288_s15, 4  ;;  %s4510_s8 = scalar_lea.hbm %s4841_s13, 2048  ;;  %s4844_s10 = int_to_ptr.vmem [resolvable:$true] %s296_s10 }
  0x7b   : > { %p4511_p6 = scmp.ne.s32.totalorder %s4841_s13, %s4510_s8  ;;  %s4514_s27 = scalar_lea.hbm %s6783_s4, 4096 }
  0x7c   : > { %p4515_p7 = scmp.lt.u32.totalorder %s4841_s13, %s6783_s4  ;;  %p4516_p8 = scmp.lt.u32.totalorder %s4514_s27, %s4510_s8 }
  0x7d   : > { %p4512_p13 = pnand %p4511_p6, %p6890_p3  ;;  %p4518_p10 = scmp.lt.u32.totalorder %s4510_s8, %s4841_s13 }
  0x7e   : > { %p4517_p9 = por %p4516_p8, %p4515_p7 }
  0x7f   : > { %p4513_p0 = pneg %p4512_p13 }
  0x80   : > { %p4519_p1 = por %p4518_p10, %p4517_p9 }
  0x82   : > { %p4520_p2 = pnand %p4519_p1, %p4513_p0 }
  0x84   : > { %4523 = shalt.err (!%p4520_p2)
}
  0x85   : > { %s4524_s12 = scalar_lea.vmem %s4844_s10, 2048  ;;  %s4606_s11 = smov [#allocation10]  }
  0x86   : > { %p4525_p5 = scmp.ne.s32.totalorder %s4844_s10, %s4524_s12  ;;  %s4528_s15 = sshll.u32 %s4606_s11, 4  ;;  %s4529_s15 = int_to_ptr.vmem [resolvable:$false] %s4528_s15 }
  0x87   : > { %s4530_s9 = scalar_lea.vmem %s4529_s15, 4096  ;;  %p4531_p6 = scmp.lt.s32.totalorder %s4844_s10, %s4529_s15 }
  0x88   : > { %p4526_p11 = pnand %p4525_p5, %p6890_p3  ;;  %p4532_p13 = scmp.lt.s32.totalorder %s4530_s9, %s4524_s12 }
  0x8a   : > { %p4527_p12 = pneg %p4526_p11  ;;  %p4533_p7 = por %p4532_p13, %p4531_p6 }
  0x8c   : > { %p4534_p8 = pnand %p4533_p7, %p4527_p12 }
  0x8e   : > { %4537 = shalt.err (!%p4534_p8)
}
  0x8f   : > { %3984 = dma.hbm_to_vmem [thread:$0]  (%p6890_p3), %s4841_s13, 2048, %s4844_s10, %s4789_s17, %s4604_s16, %s4604_s16, %s4605_s25  }
  0x90 PF: > { %p6893_p0 = scmp.ne.s32.totalorder %s6888_s7, 0 }
  0x92   : > { %308 = sbr.rel (%p6893_p0) target bundleno = 1114 (0x45a), region = 40 }
  0x99   : > { %s310_s8 = sand.u32 1, %s4664_s22   ;;  %s4875_s23 = sand.u32 1, %s4584_s19  }
  0x9a   : > { %s3970_s28 = smul.u32 768, %s4875_s23  ;;  %s311_s27 = scalar_lea.sflag [#allocation3], %s310_s8 }
  0x9b   : > { %p6894_p9 = scmp.ne.s32.totalorder %s6885_s29, 0 }
  0x9c   : > { %s4880_s14 = scalar_lea.vmem [#allocation2], %s3970_s28 }
  0x9d   : > { %4555 = dma.done.wait (%p6894_p9), %s311_s27, 12288  }
  0x9e   : > { %4557 = vsyncadd (%p6894_p9), %s311_s27, 4294955008  ;;  %s3707_s7 = sshll.u32 %s4875_s23, 7  ;;  %s320_s17 = scalar_lea.sflag [#allocation6], %s310_s8 }
  0x9f   : > { %s4887_s16 = scalar_lea.vmem [#allocation5], %s3707_s7 }
  0xa0   : > { %4559 = dma.done.wait (%p6894_p9), %s320_s17, 2048  }
  0xa1   : > { %4561 = vsyncadd (%p6894_p9), %s320_s17, 4294965248  ;;  %p6895_p3 = scmp.eq.s32.totalorder %s4664_s22, 0 }
  0xa3   : > { %4563 = dma.done.wait (%p6895_p3), [#allocation6], 4096   ;;  %p6896_p10 = pmov %p6895_p3 }
  0xa4   : > { %p6897_p1 = pmov %p6895_p3 }
  0xa5   : > { %4565 = vsyncadd (%p6896_p10), [#allocation6], 4294963200 }
  0xa6   : > { %4567 = dma.done.wait (%p6897_p1), [#allocation9], 4096   ;;  %p6898_p2 = pmov %p6897_p1 }
  0xa7   : > { %s4901_s25 = scalar_lea.vmem [#allocation10], %s3707_s7 }
  0xa8   : > { %4569 = vsyncadd (%p6898_p2), [#allocation9], 4294963200 }
  0xa9   : > { %4571 = dma.done.wait (%p6894_p9), %s311_s27, 2048  }
  0xaa   : > { %4573 = vsyncadd (%p6894_p9), %s311_s27, 4294965248  ;;  %v4065_v0 = vld [vmem:[#allocation7 + $0x4] ss:$8 sps:$4 sm:$0xff]   ;;  %v4067_v1 = vld [vmem:[#allocation7] ss:$8 sps:$4 sm:$0xff]   ;;  %s3791_s29 = sshll.u32 %s4664_s22, 7 }
  0xab   : > { %669 = vmatprep.subr.bf16.mxu0 %v4065_v0  ;;  %v4068_v2 = vld [vmem:[#allocation7 + $0x14] ss:$8 sps:$4 sm:$0xff]   ;;  %v4070_v3 = vld [vmem:[#allocation7 + $0x10] ss:$8 sps:$4 sm:$0xff]   ;;  %v4071_v4 = vld [vmem:[#allocation7 + $0x24] ss:$8 sps:$4 sm:$0xff]  }
  0xac   : > { %670 = vmatpush1.bf16.msra.mxu0 %v4067_v1  ;;  %v4073_v5 = vld [vmem:[#allocation7 + $0x20] ss:$8 sps:$4 sm:$0xff]   ;;  %v4074_v6 = vld [vmem:[#allocation7 + $0x34] ss:$8 sps:$4 sm:$0xff]   ;;  %v4076_v7 = vld [vmem:[#allocation7 + $0x30] ss:$8 sps:$4 sm:$0xff]  }
  0xad   : > { %671 = vmatprep.subr.bf16.mxu0 %v4068_v2  ;;  %v4077_v8 = vld [vmem:[#allocation7 + $0x44] ss:$8 sps:$4 sm:$0xff]   ;;  %v4079_v9 = vld [vmem:[#allocation7 + $0x40] ss:$8 sps:$4 sm:$0xff]   ;;  %v4080_v10 = vld [vmem:[#allocation7 + $0x54] ss:$8 sps:$4 sm:$0xff]  }
  0xae   : > { %v4082_v11 = vld [vmem:[#allocation7 + $0x50] ss:$8 sps:$4 sm:$0xff]   ;;  %v4083_v12 = vld [vmem:[#allocation7 + $0x64] ss:$8 sps:$4 sm:$0xff]   ;;  %v4085_v14 = vld [vmem:[#allocation7 + $0x60] ss:$8 sps:$4 sm:$0xff]  }
  0xaf   : > { %v4115_v13 = vld [vmem:[%s4887_s16 + $0x4] ss:$8 sps:$4 sm:$0xff]   ;;  %v4086_v15 = vld [vmem:[#allocation7 + $0x74] ss:$8 sps:$4 sm:$0xff]   ;;  %v4088_v16 = vld [vmem:[#allocation7 + $0x70] ss:$8 sps:$4 sm:$0xff]  }
  0xb0   : > { %672 = vmatpush1.bf16.msra.mxu0 %v4070_v3  ;;  %701 = vmatprep.mubr.bf16.mxu0 %v4115_v13  ;;  %v4089_v17 = vld [vmem:[#allocation7 + $0x84] ss:$8 sps:$4 sm:$0xff]   ;;  %v4091_v18 = vld [vmem:[#allocation7 + $0x80] ss:$8 sps:$4 sm:$0xff]   ;;  %v4092_v19 = vld [vmem:[#allocation7 + $0x94] ss:$8 sps:$4 sm:$0xff]  }
  0xb1   : > { %673 = vmatprep.subr.bf16.mxu0 %v4071_v4  ;;  %v4137_v20 = vld [vmem:[#allocation8 + $0x4] ss:$8 sps:$4 sm:$0xff]   ;;  %v4139_v21 = vld [vmem:[#allocation8] ss:$8 sps:$4 sm:$0xff]   ;;  %v4094_v22 = vld [vmem:[#allocation7 + $0x90] ss:$8 sps:$4 sm:$0xff]  }
  0xb2   : > { %990 = vmatprep.subr.bf16.mxu1 %v4137_v20  ;;  %v4140_v23 = vld [vmem:[#allocation8 + $0x14] ss:$8 sps:$4 sm:$0xff]   ;;  %v4095_v24 = vld [vmem:[#allocation7 + $0xa4] ss:$8 sps:$4 sm:$0xff]   ;;  %v4142_v25 = vld [vmem:[#allocation8 + $0x10] ss:$8 sps:$4 sm:$0xff]  }
  0xb3   : > { %991 = vmatpush1.bf16.msra.mxu1 %v4139_v21  ;;  %v4143_v26 = vld [vmem:[#allocation8 + $0x24] ss:$8 sps:$4 sm:$0xff]   ;;  %v4097_v27 = vld [vmem:[#allocation7 + $0xa0] ss:$8 sps:$4 sm:$0xff]   ;;  %v4098_v28 = vld [vmem:[#allocation7 + $0xb4] ss:$8 sps:$4 sm:$0xff]  }
  0xb4   : > { %674 = vmatpush1.bf16.msra.mxu0 %v4073_v5  ;;  %992 = vmatprep.subr.bf16.mxu1 %v4140_v23  ;;  %v4145_v29 = vld [vmem:[#allocation8 + $0x20] ss:$8 sps:$4 sm:$0xff]   ;;  %v4146_v30 = vld [vmem:[#allocation8 + $0x34] ss:$8 sps:$4 sm:$0xff]   ;;  %v4100_v31 = vld [vmem:[#allocation7 + $0xb0] ss:$8 sps:$4 sm:$0xff]  }
  0xb5   : > { %675 = vmatprep.subr.bf16.mxu0 %v4074_v6  ;;  %v4101_v32 = vld [vmem:[#allocation7 + $0xc4] ss:$8 sps:$4 sm:$0xff]   ;;  %v4148_v33 = vld [vmem:[#allocation8 + $0x30] ss:$8 sps:$4 sm:$0xff]   ;;  %v4103_v35 = vld [vmem:[#allocation7 + $0xc0] ss:$8 sps:$4 sm:$0xff]  }
  0xb6   : > { %v4149_v34 = vld [vmem:[#allocation8 + $0x44] ss:$8 sps:$4 sm:$0xff]   ;;  %v4104_v36 = vld [vmem:[#allocation7 + $0xd4] ss:$8 sps:$4 sm:$0xff]   ;;  %v4151_v37 = vld [vmem:[#allocation8 + $0x40] ss:$8 sps:$4 sm:$0xff]  }
  0xb7   : > { %993 = vmatpush1.bf16.msra.mxu1 %v4142_v25  ;;  %v4152_v38 = vld [vmem:[#allocation8 + $0x54] ss:$8 sps:$4 sm:$0xff]   ;;  %v4106_v39 = vld [vmem:[#allocation7 + $0xd0] ss:$8 sps:$4 sm:$0xff]   ;;  %v4107_v41 = vld [vmem:[#allocation7 + $0xe4] ss:$8 sps:$4 sm:$0xff]  }
  0xb8   : > { %676 = vmatpush1.bf16.msra.mxu0 %v4076_v7  ;;  %994 = vmatprep.subr.bf16.mxu1 %v4143_v26  ;;  %v4154_v40 = vld [vmem:[#allocation8 + $0x50] ss:$8 sps:$4 sm:$0xff]   ;;  %v4155_v42 = vld [vmem:[#allocation8 + $0x64] ss:$8 sps:$4 sm:$0xff]   ;;  %v4109_v43 = vld [vmem:[#allocation7 + $0xe0] ss:$8 sps:$4 sm:$0xff]  }
  0xb9   : > { %677 = vmatprep.subr.bf16.mxu0 %v4077_v8  ;;  %v4157_v44 = vld [vmem:[#allocation8 + $0x60] ss:$8 sps:$4 sm:$0xff]   ;;  %v4110_v45 = vld [vmem:[#allocation7 + $0xf4] ss:$8 sps:$4 sm:$0xff]   ;;  %v4112_v47 = vld [vmem:[#allocation7 + $0xf0] ss:$8 sps:$4 sm:$0xff]  }
  0xba   : > { %v4158_v46 = vld [vmem:[#allocation8 + $0x74] ss:$8 sps:$4 sm:$0xff]   ;;  %v4160_v48 = vld [vmem:[#allocation8 + $0x70] ss:$8 sps:$4 sm:$0xff]   ;;  %v4161_v49 = vld [vmem:[#allocation8 + $0x84] ss:$8 sps:$4 sm:$0xff]  }
  0xbb   : > { %995 = vmatpush1.bf16.msra.mxu1 %v4145_v29  ;;  %v4113_v50 = vld [vmem:[%s4887_s16] ss:$8 sps:$4 sm:$0xff]   ;;  %v4116_v51 = vld [vmem:[%s4887_s16 + $0x14] ss:$8 sps:$4 sm:$0xff]   ;;  %v4166_v54 = vld [vmem:[#allocation8 + $0x90] ss:$8 sps:$4 sm:$0xff]  }
  0xbc   : > { %678 = vmatpush1.bf16.msra.mxu0 %v4079_v9  ;;  %996 = vmatprep.subr.bf16.mxu1 %v4146_v30  ;;  %v4163_v52 = vld [vmem:[#allocation8 + $0x80] ss:$8 sps:$4 sm:$0xff]   ;;  %v4164_v53 = vld [vmem:[#allocation8 + $0x94] ss:$8 sps:$4 sm:$0xff]   ;;  %v4167_v55 = vld [vmem:[#allocation8 + $0xa4] ss:$8 sps:$4 sm:$0xff]  }
  0xbd   : > { %679 = vmatprep.subr.bf16.mxu0 %v4080_v10  ;;  %v4118_v56 = vld [vmem:[%s4887_s16 + $0x10] ss:$8 sps:$4 sm:$0xff]   ;;  %v4119_v57 = vld [vmem:[%s4887_s16 + $0x24] ss:$8 sps:$4 sm:$0xff]   ;;  %v4169_v58 = vld [vmem:[#allocation8 + $0xa0] ss:$8 sps:$4 sm:$0xff]  }
  0xbe   : > { %v4170_v59 = vld [vmem:[#allocation8 + $0xb4] ss:$8 sps:$4 sm:$0xff]   ;;  %v4172_v60 = vld [vmem:[#allocation8 + $0xb0] ss:$8 sps:$4 sm:$0xff]   ;;  %v4173_v61 = vld [vmem:[#allocation8 + $0xc4] ss:$8 sps:$4 sm:$0xff]  }
  0xbf   : > { %997 = vmatpush1.bf16.msra.mxu1 %v4148_v33  ;;  %v4121_v62 = vld [vmem:[%s4887_s16 + $0x20] ss:$8 sps:$4 sm:$0xff]   ;;  %v4122_v63 = vld [vmem:[%s4887_s16 + $0x34] ss:$8 sps:$4 sm:$0xff]   ;;  %v4178_v2 = vld [vmem:[#allocation8 + $0xd0] ss:$8 sps:$4 sm:$0xff]  }
  0xc0   : > { %680 = vmatpush1.bf16.msra.mxu0 %v4082_v11  ;;  %998 = vmatprep.subr.bf16.mxu1 %v4149_v34  ;;  %v4175_v0 = vld [vmem:[#allocation8 + $0xc0] ss:$8 sps:$4 sm:$0xff]   ;;  %v4176_v1 = vld [vmem:[#allocation8 + $0xd4] ss:$8 sps:$4 sm:$0xff]   ;;  %v4179_v3 = vld [vmem:[#allocation8 + $0xe4] ss:$8 sps:$4 sm:$0xff]  }
  0xc1   : > { %681 = vmatprep.subr.bf16.mxu0 %v4083_v12  ;;  %v4124_v4 = vld [vmem:[%s4887_s16 + $0x30] ss:$8 sps:$4 sm:$0xff]   ;;  %v4125_v5 = vld [vmem:[%s4887_s16 + $0x44] ss:$8 sps:$4 sm:$0xff]   ;;  %v4127_v6 = vld [vmem:[%s4887_s16 + $0x40] ss:$8 sps:$4 sm:$0xff]  }
  0xc2   : > { %v4128_v7 = vld [vmem:[%s4887_s16 + $0x54] ss:$8 sps:$4 sm:$0xff]   ;;  %v4130_v8 = vld [vmem:[%s4887_s16 + $0x50] ss:$8 sps:$4 sm:$0xff]   ;;  %v4131_v9 = vld [vmem:[%s4887_s16 + $0x64] ss:$8 sps:$4 sm:$0xff]  }
  0xc3   : > { %999 = vmatpush1.bf16.msra.mxu1 %v4151_v37  ;;  %v4133_v10 = vld [vmem:[%s4887_s16 + $0x60] ss:$8 sps:$4 sm:$0xff]   ;;  %v4134_v11 = vld [vmem:[%s4887_s16 + $0x74] ss:$8 sps:$4 sm:$0xff]   ;;  %v4136_v12 = vld [vmem:[%s4887_s16 + $0x70] ss:$8 sps:$4 sm:$0xff]  }
  0xc4   : > { %682 = vmatpush1.bf16.msra.mxu0 %v4085_v14  ;;  %1000 = vmatprep.subr.bf16.mxu1 %v4152_v38  ;;  %v4181_v13 = vld [vmem:[#allocation8 + $0xe0] ss:$8 sps:$4 sm:$0xff]   ;;  %v4182_v14 = vld [vmem:[#allocation8 + $0xf4] ss:$8 sps:$4 sm:$0xff]   ;;  %s5615_s13 = scalar_lea.vmem [#allocation11], %s3970_s28  ;;  %s3510_s10 = scalar_lea.sflag [#allocation4], %s4875_s23 }
  0xc5   : > { %683 = vmatprep.subr.bf16.mxu0 %v4086_v15  ;;  %v4184_v15 = vld [vmem:[#allocation8 + $0xf0] ss:$8 sps:$4 sm:$0xff]  }
  0xc7   : > { %1001 = vmatpush1.bf16.msra.mxu1 %v4154_v40 }
  0xc8   : > { %684 = vmatpush1.bf16.msra.mxu0 %v4088_v16  ;;  %1002 = vmatprep.subr.bf16.mxu1 %v4155_v42 }
  0xc9   : > { %685 = vmatprep.subr.bf16.mxu0 %v4089_v17 }
  0xcb   : > { %1003 = vmatpush1.bf16.msra.mxu1 %v4157_v44 }
  0xcc   : > { %686 = vmatpush1.bf16.msra.mxu0 %v4091_v18  ;;  %1004 = vmatprep.subr.bf16.mxu1 %v4158_v46 }
  0xcd   : > { %687 = vmatprep.subr.bf16.mxu0 %v4092_v19 }
  0xcf   : > { %1005 = vmatpush1.bf16.msra.mxu1 %v4160_v48  ;;  %v1136_v48 = vlaneseq }
  0xd0   : > { %688 = vmatpush1.bf16.msra.mxu0 %v4094_v22  ;;  %1006 = vmatprep.subr.bf16.mxu1 %v4161_v49 }
  0xd1   : > { %689 = vmatprep.subr.bf16.mxu0 %v4095_v24 }
  0xd3   : > { %1007 = vmatpush1.bf16.msra.mxu1 %v4163_v52  ;;  %v4924_v52 = vshrl.u32 %v1136_v48, 7 }
  0xd4   : > { %690 = vmatpush1.bf16.msra.mxu0 %v4097_v27  ;;  %1008 = vmatprep.subr.bf16.mxu1 %v4164_v53 }
  0xd5   : > { %691 = vmatprep.subr.bf16.mxu0 %v4098_v28  ;;  %6899 = vst [vmem:[#allocation24_spill] sm:$0xff] %v4924_v52 }
  0xd7   : > { %1009 = vmatpush1.bf16.msra.mxu1 %v4166_v54  ;;  %v4926_v54 = vstv %s3791_s29 }
  0xd8   : > { %692 = vmatpush1.bf16.msra.mxu0 %v4100_v31  ;;  %1010 = vmatprep.subr.bf16.mxu1 %v4167_v55  ;;  %6900 = vst [vmem:[#allocation25_spill] sm:$0xff] %v4926_v54  ;;  %v1187_v55 = vand.u32 127, %v1136_v48 }
  0xd9   : > { %693 = vmatprep.subr.bf16.mxu0 %v4101_v32 }
  0xdb   : > { %1011 = vmatpush1.bf16.msra.mxu1 %v4169_v58 }
  0xdc   : > { %694 = vmatpush1.bf16.msra.mxu0 %v4103_v35  ;;  %1012 = vmatprep.subr.bf16.mxu1 %v4170_v59  ;;  %v1189_v59 = vcvt.s32.f32 %v1187_v55 }
  0xdd   : > { %695 = vmatprep.subr.bf16.mxu0 %v4104_v36 }
  0xdf   : > { %1013 = vmatpush1.bf16.msra.mxu1 %v4172_v60  ;;  %v1138_v60 = vadd.s32 8, %v4924_v52 }
  0xe0   : > { %696 = vmatpush1.bf16.msra.mxu0 %v4106_v39  ;;  %1014 = vmatprep.subr.bf16.mxu1 %v4173_v61 }
  0xe1   : > { %697 = vmatprep.subr.bf16.mxu0 %v4107_v41 }
  0xe3   : > { %1015 = vmatpush1.bf16.msra.mxu1 %v4175_v0 }
  0xe4   : > { %698 = vmatpush1.bf16.msra.mxu0 %v4109_v43  ;;  %1016 = vmatprep.subr.bf16.mxu1 %v4176_v1  ;;  %v1223_v1 = vmul.f32 0.007843138, %v1189_v59 }
  0xe5   : > { %699 = vmatprep.subr.bf16.mxu0 %v4110_v45 }
  0xe7   : > { %1017 = vmatpush1.bf16.msra.mxu1 %v4178_v2  ;;  %v1155_v2 = vadd.s32 %v4926_v54, %v1138_v60 }
  0xe8   : > { %700 = vmatpush1.bf16.msra.mxu0 %v4112_v47  ;;  %1018 = vmatprep.subr.bf16.mxu1 %v4179_v3 }
  0xeb   : > { %702 = vmatmul.mubr.bf16.vlgmr.msra.gmra.mrb[0].mxu0 %v4113_v50  ;;  %1019 = vmatpush1.bf16.msra.mxu1 %v4181_v13 }
  0xec   : > { %711 = vmatprep.mubr.bf16.mxu0 %v4116_v51  ;;  %1020 = vmatprep.subr.bf16.mxu1 %v4182_v14 }
  0xef   : > { %1021 = vmatpush1.bf16.msra.mxu1 %v4184_v15 }
  0xf3   : > { %712 = vmatmul.mubr.bf16.gmra.mrb[4].mxu0 %v4118_v56  ;;  %v1154_v56 = vadd.s32 %v4926_v54, %v4924_v52 }
  0xf4   : > { %721 = vmatprep.mubr.bf16.mxu0 %v4119_v57  ;;  %v1188_v57 = vadd.s32 128, %v1187_v55 }
  0xf5   : > { %v1170_v58 = vcvt.s32.f32 %v1154_v56 }
  0xf7   : > { %v1191_v0 = vmul.f32 0.007843138, %v1170_v58 }
  0xfb   : > { %722 = vmatmul.mubr.bf16.gmra.mrb[8].mxu0 %v4121_v62  ;;  %v1190_v62 = vcvt.s32.f32 %v1188_v57 }
  0xfc   : > { %731 = vmatprep.mubr.bf16.mxu0 %v4122_v63 }
 0x103   : > { %732 = vmatmul.mubr.bf16.gmra.mrb[12].mxu0 %v4124_v4  ;;  %v1224_v4 = vmul.f32 0.007843138, %v1190_v62 }
 0x104   : > { %741 = vmatprep.mubr.bf16.mxu0 %v4125_v5 }
 0x10b   : > { %742 = vmatmul.mubr.bf16.gmra.mrb[16].mxu0 %v4127_v6 }
 0x10c   : > { %751 = vmatprep.mubr.bf16.mxu0 %v4128_v7  ;;  %v3792_v7 = vadd.f32 -1.0, %v1191_v0 }
 0x10e   : > { %v1229_v13 = vmul.f32 %v3792_v7, %v3792_v7  ;;  %v3812_v55 = vadd.f32 0.25, %v3792_v7 }
 0x110   : > { %v1713_v62 = vmul.f32 %v3812_v55, %v3812_v55 }
 0x113   : > { %752 = vmatmul.mubr.bf16.gmra.mrb[20].mxu0 %v4130_v8  ;;  %v3808_v8 = vadd.f32 -1.0, %v1223_v1 }
 0x114   : > { %761 = vmatprep.mubr.bf16.mxu0 %v4131_v9  ;;  %v1171_v9 = vcvt.s32.f32 %v1155_v2 }
 0x116   : > { %v1192_v14 = vmul.f32 0.007843138, %v1171_v9 }
 0x11b   : > { %762 = vmatmul.mubr.bf16.gmra.mrb[24].mxu0 %v4133_v10 }
 0x11c   : > { %771 = vmatprep.mubr.bf16.mxu0 %v4134_v11  ;;  %v4932_v11 = vadd.f32 -1.0, %v1224_v4 }
 0x11e   : > { %v4938_v15 = vmul.f32 %v4932_v11, %v4932_v11 }
 0x120   : > { %6902 = vst [vmem:[#allocation27_spill] sm:$0xff] %v4938_v15 }
 0x123   : > { %772 = vmatmul.mubr.bf16.gmra.mrb[28].mxu0 %v4136_v12  ;;  %v4934_v12 = vmul.f32 %v3808_v8, %v3808_v8 }
 0x125   : > { %6901 = vst [vmem:[#allocation26_spill] sm:$0xff] %v4934_v12 }
 0x1be   : > { %v703_v16 = vpop.f32.mrb[0].mxu0 }
 0x1bf   : > { %v705_v17 = vpop.f32.mrb[1].mxu0 }
 0x1c0   : > { %v707_v18 = vpop.f32.mrb[2].mxu0 }
 0x1c1   : > { %v782_v19 = vpack.c.bf16 %v707_v18, %v703_v16  ;;  %v709_v20 = vpop.f32.mrb[3].mxu0  ;;  %v1245_v16 = vadd.f32 %v1229_v13, %v4934_v12 }
 0x1c2   : > { %v783_v21 = vpack.c.bf16 %v709_v20, %v705_v17  ;;  %v3793_v17 = vadd.f32 -1.0, %v1192_v14 }
 0x1c3   : > { %4185 = vrsqrt.f32 %v1245_v16  ;;  %vm1279_vm0 = vcmp.eq.f32.partialorder %v1245_v16, inf  ;;  %vm1281_vm1 = vcmp.eq.f32.partialorder %v1245_v16, 0.0 }
 0x1c4   : > { %1022 = vmatprep.mubr.bf16.mxu1 %v783_v21  ;;  %v1230_v21 = vmul.f32 %v3793_v17, %v3793_v17  ;;  %v3813_v0 = vadd.f32 0.25, %v3793_v17 }
 0x1c5   : > { %1023 = vmatmul.mubr.bf16.vlgmr.msra.gmra.mrb[0].mxu1 %v782_v19  ;;  %v1246_v19 = vadd.f32 %v1229_v13, %v4938_v15 }
 0x1c6   : > { %v713_v22 = vpop.f32.mrb[4].mxu0  ;;  %v1714_v7 = vmul.f32 %v3813_v0, %v3813_v0  ;;  %v5099_v0 = vld [vmem:[%s4880_s14 + $0x218] sm:$0xff] }
 0x1c7   : > { %v715_v23 = vpop.f32.mrb[5].mxu0  ;;  %4187 = vrsqrt.f32 %v1246_v19  ;;  %vm1286_vm2 = vcmp.eq.f32.partialorder %v1246_v19, inf  ;;  %vm1288_vm3 = vcmp.eq.f32.partialorder %v1246_v19, 0.0  ;;  %6905 = vst [vmem:[#allocation30_spill] sm:$0xff] %v5099_v0 }
 0x1c8   : > { %v717_v24 = vpop.f32.mrb[6].mxu0 }
 0x1c9   : > { %v784_v25 = vpack.c.bf16 %v717_v24, %v713_v22  ;;  %v719_v26 = vpop.f32.mrb[7].mxu0 }
 0x1ca   : > { %v785_v27 = vpack.c.bf16 %v719_v26, %v715_v23 }
 0x1cc   : > { %1032 = vmatprep.mubr.bf16.mxu1 %v785_v27 }
 0x1cd   : > { %1033 = vmatmul.mubr.bf16.gmra.mrb[4].mxu1 %v784_v25  ;;  %v1247_v25 = vadd.f32 %v1230_v21, %v4934_v12  ;;  %v4186_v27 = vpop.eup %4185 }
 0x1ce   : > { %v723_v28 = vpop.f32.mrb[8].mxu0 }
 0x1cf   : > { %v725_v29 = vpop.f32.mrb[9].mxu0  ;;  %4189 = vrsqrt.f32 %v1247_v25  ;;  %vm1293_vm4 = vcmp.eq.f32.partialorder %v1247_v25, inf  ;;  %vm1295_vm5 = vcmp.eq.f32.partialorder %v1247_v25, 0.0 }
 0x1d0   : > { %v727_v30 = vpop.f32.mrb[10].mxu0 }
 0x1d1   : > { %v786_v31 = vpack.c.bf16 %v727_v30, %v723_v28  ;;  %v729_v32 = vpop.f32.mrb[11].mxu0  ;;  %v1278_v28 = vmul.f32 %v4186_v27, %v1245_v16  ;;  %v4188_v30 = vpop.eup %4187 }
 0x1d2   : > { %v787_v33 = vpack.c.bf16 %v729_v32, %v725_v29  ;;  %v1248_v29 = vadd.f32 %v1230_v21, %v4938_v15 }
 0x1d3   : > { %v1280_v32 = vsel %vm1279_vm0, %v1245_v16, %v1278_v28 }
 0x1d4   : > { %1042 = vmatprep.mubr.bf16.mxu1 %v787_v33  ;;  %v1285_v33 = vmul.f32 %v4188_v30, %v1246_v19  ;;  %4191 = vrsqrt.f32 %v1248_v29  ;;  %vm1300_vm6 = vcmp.eq.f32.partialorder %v1248_v29, inf  ;;  %v1303_v1 = vand.u32 2147483648, %v1248_v29 }
 0x1d5   : > { %1043 = vmatmul.mubr.bf16.gmra.mrb[8].mxu1 %v786_v31  ;;  %v1282_v31 = vand.u32 2147483648, %v1245_v16  ;;  %vm1302_vm7 = vcmp.eq.f32.partialorder %v1248_v29, 0.0 }
 0x1d6   : > { %v733_v34 = vpop.f32.mrb[12].mxu0 }
 0x1d7   : > { %v735_v35 = vpop.f32.mrb[13].mxu0 }
 0x1d8   : > { %v737_v36 = vpop.f32.mrb[14].mxu0 }
 0x1d9   : > { %v788_v37 = vpack.c.bf16 %v737_v36, %v733_v34  ;;  %v739_v38 = vpop.f32.mrb[15].mxu0  ;;  %v1283_v34 = vsel %vm1281_vm1, %v1282_v31, %v1280_v32  ;;  %v4190_v36 = vpop.eup %4189 }
 0x1da   : > { %v789_v39 = vpack.c.bf16 %v739_v38, %v735_v35  ;;  %v1139_v35 = vadd.s32 16, %v4924_v52  ;;  %v1287_v38 = vsel %vm1286_vm2, %v1246_v19, %v1285_v33 }
 0x1dc   : > { %1052 = vmatprep.mubr.bf16.mxu1 %v789_v39  ;;  %v1156_v39 = vadd.s32 %v4926_v54, %v1139_v35 }
 0x1dd   : > { %1053 = vmatmul.mubr.bf16.gmra.mrb[12].mxu1 %v788_v37  ;;  %v1289_v37 = vand.u32 2147483648, %v1246_v19 }
 0x1de   : > { %v743_v40 = vpop.f32.mrb[16].mxu0 }
 0x1df   : > { %v745_v41 = vpop.f32.mrb[17].mxu0 }
 0x1e0   : > { %v747_v42 = vpop.f32.mrb[18].mxu0 }
 0x1e1   : > { %v790_v43 = vpack.c.bf16 %v747_v42, %v743_v40  ;;  %v749_v44 = vpop.f32.mrb[19].mxu0  ;;  %v1501_v40 = vmul.f32 -2.0, %v1283_v34  ;;  %v1172_v42 = vcvt.s32.f32 %v1156_v39  ;;  %v4976_v34 = vld [vmem:[%s4880_s14 + $0x100] sm:$0xff] }
 0x1e2   : > { %v791_v45 = vpack.c.bf16 %v749_v44, %v745_v41  ;;  %v1292_v41 = vmul.f32 %v4190_v36, %v1247_v25 }
 0x1e3   : > { %v1193_v44 = vmul.f32 0.007843138, %v1172_v42  ;;  %v4988_v42 = vld [vmem:[%s4880_s14 + $0x108] sm:$0xff] }
 0x1e4   : > { %1062 = vmatprep.mubr.bf16.mxu1 %v791_v45  ;;  %v1533_v45 = vmul.f32 1.442695, %v1501_v40  ;;  %v1294_v48 = vsel %vm1293_vm4, %v1247_v25, %v1292_v41  ;;  %v4985_v41 = vld [vmem:[%s4880_s14 + $0x8] sm:$0xff] }
 0x1e5   : > { %1063 = vmatmul.mubr.bf16.gmra.mrb[16].mxu1 %v790_v43  ;;  %v1290_v43 = vsel %vm1288_vm3, %v1289_v37, %v1287_v38 }
 0x1e6   : > { %v753_v46 = vpop.f32.mrb[20].mxu0  ;;  %4193 = vpow2.f32 %v1533_v45  ;;  %v1141_v45 = vadd.s32 32, %v4924_v52 }
 0x1e7   : > { %v755_v47 = vpop.f32.mrb[21].mxu0 }
 0x1e8   : > { %v757_v49 = vpop.f32.mrb[22].mxu0 }
 0x1e9   : > { %v792_v50 = vpack.c.bf16 %v757_v49, %v753_v46  ;;  %v759_v51 = vpop.f32.mrb[23].mxu0  ;;  %v1296_v46 = vand.u32 2147483648, %v1247_v25  ;;  %v4946_v49 = vadd.f32 -1.0, %v1193_v44 }
 0x1ea   : > { %v793_v53 = vpack.c.bf16 %v759_v51, %v755_v47  ;;  %v1502_v47 = vmul.f32 -2.0, %v1290_v43  ;;  %v4192_v51 = vpop.eup %4191 }
 0x1eb   : > { %v1297_v56 = vsel %vm1295_vm5, %v1296_v46, %v1294_v48  ;;  %v1299_v60 = vmul.f32 %v4192_v51, %v1248_v29  ;;  %v4998_v51 = vld [vmem:[%s4880_s14 + $0x10] sm:$0xff]  ;;  %v5136_v46 = vld [vmem:[%s4880_s14 + $0x28] sm:$0xff] }
 0x1ec   : > { %1072 = vmatprep.mubr.bf16.mxu1 %v793_v53  ;;  %v3810_v53 = vadd.f32 -0.25, %v3808_v8  ;;  %v1535_v57 = vmul.f32 1.442695, %v1502_v47  ;;  %v1503_v59 = vmul.f32 -2.0, %v1297_v56  ;;  %6912 = vst [vmem:[#allocation37_spill] sm:$0xff] %v5136_v46 }
 0x1ed   : > { %1073 = vmatmul.mubr.bf16.gmra.mrb[20].mxu1 %v792_v50  ;;  %v1231_v50 = vmul.f32 %v4946_v49, %v4946_v49 }
 0x1ee   : > { %v763_v61 = vpop.f32.mrb[24].mxu0  ;;  %4195 = vpow2.f32 %v1535_v57  ;;  %v1537_v2 = vmul.f32 1.442695, %v1503_v59  ;;  %v1158_v57 = vadd.s32 %v4926_v54, %v1141_v45 }
 0x1ef   : > { %v765_v63 = vpop.f32.mrb[25].mxu0  ;;  %v4951_v58 = vadd.f32 %v1231_v50, %v4934_v12  ;;  %v4965_v25 = vadd.f32 %v1231_v50, %v4938_v15  ;;  %v4995_v50 = vld [vmem:[%s4880_s14 + $0x208] sm:$0xff] }
 0x1f0   : > { %v767_v3 = vpop.f32.mrb[26].mxu0 }
 0x1f1   : > { %v794_v5 = vpack.c.bf16 %v767_v3, %v763_v61  ;;  %v769_v6 = vpop.f32.mrb[27].mxu0  ;;  %v4953_v61 = vmul.f32 %v3810_v53, %v3810_v53  ;;  %4197 = vrsqrt.f32 %v4951_v58  ;;  %v1301_v3 = vsel %vm1300_vm6, %v1248_v29, %v1299_v60  ;;  %v4972_v29 = vld [vmem:[%s4880_s14 + $0x200] sm:$0xff] }
 0x1f2   : > { %v795_v10 = vpack.c.bf16 %v769_v6, %v765_v63  ;;  %v3811_v63 = vadd.f32 -0.25, %v4932_v11  ;;  %v4194_v6 = vpop.eup %4193  ;;  %v1304_v8 = vsel %vm1302_vm7, %v1303_v1, %v1301_v3  ;;  %4199 = vpow2.f32 %v1537_v2  ;;  %v5009_v2 = vld [vmem:[%s4880_s14 + $0x110] sm:$0xff] }
 0x1f3   : > { %6903 = vst [vmem:[#allocation28_spill] sm:$0xff] %v4953_v61  ;;  %v1729_v4 = vadd.f32 %v1713_v62, %v4953_v61  ;;  %v1140_v11 = vadd.s32 24, %v4924_v52  ;;  %v1597_v13 = vmul.f32 0.5, %v4194_v6  ;;  %v1504_v14 = vmul.f32 -2.0, %v1304_v8 }
 0x1f4   : > { %1082 = vmatprep.mubr.bf16.mxu1 %v795_v10  ;;  %v1731_v16 = vadd.f32 %v1714_v7, %v4953_v61  ;;  %vm1307_vm8 = vcmp.eq.f32.partialorder %v4951_v58, inf  ;;  %v1310_v37 = vand.u32 2147483648, %v4951_v58  ;;  %vm1309_vm9 = vcmp.eq.f32.partialorder %v4951_v58, 0.0 }
 0x1f5   : > { %1083 = vmatmul.mubr.bf16.gmra.mrb[24].mxu1 %v794_v5  ;;  %v4958_v5 = vmul.f32 %v3811_v63, %v3811_v63  ;;  %v1761_v9 = vmul.f32 -1.3888888, %v1729_v4  ;;  %v1157_v21 = vadd.s32 %v4926_v54, %v1140_v11  ;;  %v2627_v63 = vld [vmem:[%s4901_s25] sm:$0xff]  ;;  %v3814_v11 = vadd.f32 0.25, %v4946_v49 }
 0x1f6   : > { %v773_v18 = vpop.f32.mrb[28].mxu0  ;;  %vm1314_vm10 = vcmp.eq.f32.partialorder %v4965_v25, inf  ;;  %vm1316_vm11 = vcmp.eq.f32.partialorder %v4965_v25, 0.0 }
 0x1f7   : > { %v775_v20 = vpop.f32.mrb[29].mxu0  ;;  %6904 = vst [vmem:[#allocation29_spill] sm:$0xff] %v4958_v5  ;;  %v1730_v10 = vadd.f32 %v1713_v62, %v4958_v5  ;;  %v1793_v19 = vmul.f32 1.442695, %v1761_v9  ;;  %v1173_v31 = vcvt.s32.f32 %v1157_v21  ;;  %v1732_v53 = vadd.f32 %v1714_v7, %v4958_v5 }
 0x1f8   : > { %v777_v22 = vpop.f32.mrb[30].mxu0  ;;  %v4196_v17 = vpop.eup %4195 }
 0x1f9   : > { %v796_v23 = vpack.c.bf16 %v777_v22, %v773_v18  ;;  %v779_v24 = vpop.f32.mrb[31].mxu0  ;;  %v1629_v22 = vadd.f32 0.5, %v1597_v13  ;;  %v1598_v27 = vmul.f32 0.5, %v4196_v17  ;;  %4201 = vpow2.f32 %v1793_v19 }
 0x1fa   : > { %v797_v26 = vpack.c.bf16 %v779_v24, %v775_v20  ;;  %v1762_v20 = vmul.f32 -1.3888888, %v1730_v10  ;;  %v1763_v24 = vmul.f32 -1.3888888, %v1731_v16  ;;  %v1194_v44 = vmul.f32 0.007843138, %v1173_v31 }
 0x1fb   : > { %v4198_v18 = vpop.eup %4197  ;;  %v1661_v33 = vmul.f32 0.1, %v1629_v22  ;;  %v1630_v39 = vadd.f32 0.5, %v1598_v27  ;;  %v1764_v10 = vmul.f32 -1.3888888, %v1732_v53  ;;  %v2643_v17 = vunpack.c.l.bf16 %v2627_v63 }
 0x1fc   : > { %1092 = vmatprep.mubr.bf16.mxu1 %v797_v26  ;;  %v4968_v26 = vld [vmem:[%s4880_s14] sm:$0xff]  ;;  %v1306_v28 = vmul.f32 %v4198_v18, %v4951_v58  ;;  %v1795_v30 = vmul.f32 1.442695, %v1762_v20  ;;  %v4200_v32 = vpop.eup %4199  ;;  %v1797_v36 = vmul.f32 1.442695, %v1763_v24  ;;  %v3795_v56 = vadd.f32 -1.0, %v1194_v44 }
 0x1fd   : > { %1093 = vmatmul.mubr.bf16.gmra.mrb[28].mxu1 %v796_v23  ;;  %v1539_v23 = vmul.f32 1.442695, %v1504_v14  ;;  %v1599_v43 = vmul.f32 0.5, %v4200_v32  ;;  %v2371_v47 = vmul.f32 0.3, %v1661_v33  ;;  %v5004_v62 = vadd.f32 1.0, %v1661_v33 }
 0x1fe   : > { %v1308_v40 = vsel %vm1307_vm8, %v4951_v58, %v1306_v28  ;;  %v4992_v48 = vmul.f32 0.2, %v1661_v33  ;;  %v1662_v58 = vmul.f32 0.1, %v1630_v39  ;;  %v1232_v3 = vmul.f32 %v3795_v56, %v3795_v56 }
 0x1ff   : > { %4203 = vpow2.f32 %v1539_v23  ;;  %v1311_v55 = vsel %vm1309_vm9, %v1310_v37, %v1308_v40  ;;  %v1631_v1 = vadd.f32 0.5, %v1599_v43  ;;  %v5011_v4 = vadd.f32 1.0, %v2371_v47  ;;  %v5023_v23 = vld [vmem:[%s4880_s14 + $0x210] sm:$0xff] }
 0x200   : > { %4205 = vrsqrt.f32 %v4965_v25  ;;  %v1505_v8 = vmul.f32 -2.0, %v1311_v55  ;;  %v5017_v13 = vadd.f32 %v1232_v3, %v4934_v12  ;;  %v1174_v14 = vcvt.s32.f32 %v1158_v57 }
 0x201   : > { %4207 = vpow2.f32 %v1795_v30  ;;  %v2372_v18 = vmul.f32 0.3, %v1662_v58  ;;  %v5019_v19 = vmul.f32 0.2, %v1662_v58  ;;  %v1663_v22 = vmul.f32 0.1, %v1631_v1 }
 0x202   : > { %4209 = vpow2.f32 %v1797_v36  ;;  %v5027_v24 = vadd.f32 %v1232_v3, %v4938_v15  ;;  %v5030_v49 = vadd.f32 1.0, %v1662_v58  ;;  %v1541_v27 = vmul.f32 1.442695, %v1505_v8 }
 0x203   : > { %v4202_v9 = vpop.eup %4201  ;;  %4211 = vrsqrt.f32 %v5017_v13  ;;  %v1317_v30 = vand.u32 2147483648, %v4965_v25  ;;  %v1799_v32 = vmul.f32 1.442695, %v1764_v10  ;;  %v1715_v33 = vmul.f32 %v3814_v11, %v3814_v11 }
 0x204   : > { %v1195_v36 = vmul.f32 0.007843138, %v1174_v14  ;;  %v1857_v37 = vmul.f32 0.15, %v4202_v9  ;;  %v2644_v39 = vunpack.c.h.bf16 %v2627_v63  ;;  %v5037_v44 = vadd.f32 1.0, %v2372_v18 }
 0x205   : > { %v2373_v47 = vmul.f32 0.3, %v1663_v22  ;;  %4213 = vrsqrt.f32 %v5027_v24  ;;  %v5041_v1 = vsub.f32 1.0, %v2643_v17  ;;  %v1733_v63 = vadd.f32 %v1715_v33, %v4953_v61 }
 0x206   : > { %4215 = vpow2.f32 %v1541_v27  ;;  %v5044_v3 = vadd.f32 -1.0, %v1195_v36  ;;  %v5048_v8 = vsub.f32 1.0, %v1857_v37  ;;  %v5050_v9 = vsub.f32 1.0, %v2644_v39 }
 0x207   : > { %4217 = vpow2.f32 %v1799_v32  ;;  %v3815_v10 = vadd.f32 0.25, %v3795_v56  ;;  %v5052_v11 = vadd.f32 1.0, %v1663_v22  ;;  %v5054_v14 = vadd.f32 1.0, %v2373_v47  ;;  %v5068_v56 = vld [vmem:[%s4880_s14 + $0x18] sm:$0xff] }
 0x208   : > { %v1233_v18 = vmul.f32 %v5044_v3, %v5044_v3  ;;  %v5065_v32 = vmul.f32 0.2, %v1663_v22  ;;  %v1765_v36 = vmul.f32 -1.3888888, %v1733_v63  ;;  %vm1321_vm12 = vcmp.eq.f32.partialorder %v5017_v13, inf }
 0x209   : > { %v4204_v16 = vpop.eup %4203  ;;  %v1324_v47 = vand.u32 2147483648, %v5017_v13  ;;  %vm1323_vm13 = vcmp.eq.f32.partialorder %v5017_v13, 0.0  ;;  %v1142_v22 = vadd.s32 40, %v4924_v52  ;;  %v1734_v63 = vadd.f32 %v1715_v33, %v4958_v5 }
 0x20a   : > { %v4206_v21 = vpop.eup %4205  ;;  %v1600_v57 = vmul.f32 0.5, %v4204_v16  ;;  %v5057_v16 = vld [vmem:[%s4901_s25 + $0x8] sm:$0xff]  ;;  %v1801_v6 = vmul.f32 1.442695, %v1765_v36  ;;  %vm1328_vm14 = vcmp.eq.f32.partialorder %v5027_v24, inf  ;;  %vm1330_vm15 = vcmp.eq.f32.partialorder %v5027_v24, 0.0 }
 0x20b   : > { %v1313_v28 = vmul.f32 %v4206_v21, %v4965_v25  ;;  %v4208_v31 = vpop.eup %4207  ;;  %v2645_v39 = vunpack.c.l.bf16 %v5057_v16  ;;  %v5092_v33 = vadd.f32 %v1233_v18, %v4938_v15  ;;  %v1159_v36 = vadd.s32 %v4926_v54, %v1142_v22 }
 0x20c   : > { %v4210_v53 = vpop.eup %4209  ;;  %v1858_v55 = vmul.f32 0.15, %v4208_v31 }
 0x20d   : > { %v1315_v43 = vsel %vm1314_vm10, %v4965_v25, %v1313_v28  ;;  %v5046_v25 = vadd.f32 1.0, %v1857_v37  ;;  %v1859_v28 = vmul.f32 0.15, %v4210_v53  ;;  %v4212_v31 = vpop.eup %4211  ;;  %v5072_v37 = vadd.f32 %v1233_v18, %v4934_v12 }
 0x20e   : > { %v1318_v58 = vsel %vm1316_vm11, %v1317_v30, %v1315_v43  ;;  %v5061_v21 = vadd.f32 1.0, %v1858_v55  ;;  %v5063_v27 = vsub.f32 1.0, %v1858_v55  ;;  %v1632_v30 = vadd.f32 0.5, %v1600_v57 }
 0x20f   : > { %v1506_v17 = vmul.f32 -2.0, %v1318_v58  ;;  %v1320_v43 = vmul.f32 %v4212_v31, %v5017_v13  ;;  %v1716_v53 = vmul.f32 %v3815_v10, %v3815_v10  ;;  %4219 = vrsqrt.f32 %v5072_v37  ;;  %v4214_v45 = vpop.eup %4213  ;;  %v5084_v31 = vld [vmem:[%s4880_s14 + $0x118] sm:$0xff] }
 0x210   : > { %v1664_v57 = vmul.f32 0.1, %v1632_v30  ;;  %v1331_v10 = vand.u32 2147483648, %v5027_v24  ;;  %v1327_v58 = vmul.f32 %v4214_v45, %v5027_v24  ;;  %v5095_v7 = vsub.f32 1.0, %v2645_v39 }
 0x211   : > { %v1543_v55 = vmul.f32 1.442695, %v1506_v17  ;;  %v1322_v40 = vsel %vm1321_vm12, %v5017_v13, %v1320_v43  ;;  %v4216_v17 = vpop.eup %4215  ;;  %v1735_v30 = vadd.f32 %v1716_v53, %v4953_v61  ;;  %v5105_v18 = vadd.f32 1.0, %v1859_v28 }
 0x212   : > { %v1325_v20 = vsel %vm1323_vm13, %v1324_v47, %v1322_v40  ;;  %v4218_v13 = vpop.eup %4217  ;;  %v1766_v40 = vmul.f32 -1.3888888, %v1734_v63  ;;  %v1329_v45 = vsel %vm1328_vm14, %v5027_v24, %v1327_v58  ;;  %v1601_v59 = vmul.f32 0.5, %v4216_v17 }
 0x213   : > { %4221 = vpow2.f32 %v1543_v55  ;;  %v1507_v47 = vmul.f32 -2.0, %v1325_v20  ;;  %v1332_v39 = vsel %vm1330_vm15, %v1331_v10, %v1329_v45  ;;  %v1860_v55 = vmul.f32 0.15, %v4218_v13  ;;  %v5121_v45 = vld [vmem:[%s4880_s14 + $0x20] sm:$0xff] }
 0x214   : > { %4223 = vpow2.f32 %v1801_v6  ;;  %v1767_v22 = vmul.f32 -1.3888888, %v1735_v30  ;;  %v2374_v63 = vmul.f32 0.3, %v1664_v57  ;;  %v1736_v58 = vadd.f32 %v1716_v53, %v4958_v5  ;;  %6908 = vst [vmem:[#allocation33_spill] sm:$0xff] %v5121_v45  ;;  %v5124_v20 = vld [vmem:[%s4880_s14 + $0x120] sm:$0xff] }
 0x215   : > { %v1545_v43 = vmul.f32 1.442695, %v1507_v47  ;;  %4225 = vrsqrt.f32 %v5092_v33  ;;  %v1175_v60 = vcvt.s32.f32 %v1159_v36  ;;  %v5112_v38 = vsub.f32 1.0, %v1859_v28  ;;  %6909 = vst [vmem:[#allocation34_spill] sm:$0xff] %v5124_v20  ;;  %v5127_v53 = vld [vmem:[%s4880_s14 + $0x220] sm:$0xff] }
 0x216   : > { %v5114_v6 = vmul.f32 0.2, %v1664_v57  ;;  %v1803_v24 = vmul.f32 1.442695, %v1766_v40  ;;  %v1508_v10 = vmul.f32 -2.0, %v1332_v39  ;;  %v5116_v13 = vadd.f32 1.0, %v1664_v57 }
 0x217   : > { %v2646_v30 = vunpack.c.h.bf16 %v5057_v16  ;;  %v1633_v47 = vadd.f32 0.5, %v1601_v59  ;;  %vm1335_vm0 = vcmp.eq.f32.partialorder %v5072_v37, inf  ;;  %6910 = vst [vmem:[#allocation35_spill] sm:$0xff] %v5127_v53  ;;  %4227 = vpow2.f32 %v1545_v43 }
 0x218   : > { %6906 = vst [vmem:[#allocation31_spill] sm:$0xff] %v5114_v6  ;;  %6907 = vst [vmem:[#allocation32_spill] sm:$0xff] %v5116_v13  ;;  %v1805_v28 = vmul.f32 1.442695, %v1767_v22  ;;  %v1338_v40 = vand.u32 2147483648, %v5072_v37  ;;  %v5131_v57 = vadd.f32 1.0, %v2374_v63  ;;  %4229 = vpow2.f32 %v1803_v24 }
 0x219   : > { %v4220_v17 = vpop.eup %4219  ;;  %v1768_v39 = vmul.f32 -1.3888888, %v1736_v58  ;;  %vm1337_vm1 = vcmp.eq.f32.partialorder %v5072_v37, 0.0  ;;  %v1196_v59 = vmul.f32 0.007843138, %v1175_v60  ;;  %v5146_v16 = vsub.f32 1.0, %v2646_v30 }
 0x21a   : > { %v1334_v36 = vmul.f32 %v4220_v17, %v5072_v37  ;;  %6911 = vst [vmem:[#allocation36_spill] sm:$0xff] %v5131_v57  ;;  %v1547_v35 = vmul.f32 1.442695, %v1508_v10  ;;  %v5148_v24 = vadd.f32 1.0, %v1860_v55  ;;  %v1665_v6 = vmul.f32 0.1, %v1633_v47 }
 0x21b   : > { %v5144_v17 = vadd.f32 -1.0, %v1196_v59  ;;  %6913 = vst [vmem:[#allocation38_spill] sm:$0xff] %v5146_v16  ;;  %v5150_v13 = vsub.f32 1.0, %v1860_v55  ;;  %4231 = vpow2.f32 %v1805_v28  ;;  %v1807_v58 = vmul.f32 1.442695, %v1768_v39  ;;  %v5158_v59 = vld [vmem:[%s4880_s14 + $0x228] sm:$0xff] }
 0x21c   : > { %v1336_v43 = vsel %vm1335_vm0, %v5072_v37, %v1334_v36  ;;  %6914 = vst [vmem:[#allocation39_spill] sm:$0xff] %v5148_v24  ;;  %v2629_v37 = vld [vmem:[%s4901_s25 + $0x10] sm:$0xff]  ;;  %v5154_v36 = vld [vmem:[%s4880_s14 + $0x128] sm:$0xff]  ;;  %6917 = vst [vmem:[#allocation42_spill] sm:$0xff] %v5158_v59  ;;  %4233 = vpow2.f32 %v1547_v35  ;;  %vm1342_vm2 = vcmp.eq.f32.partialorder %v5092_v33, inf  ;;  %v1345_v30 = vand.u32 2147483648, %v5092_v33 }
 0x21d   : > { %v4222_v22 = vpop.eup %4221  ;;  %v1339_v10 = vsel %vm1337_vm1, %v1338_v40, %v1336_v43  ;;  %6915 = vst [vmem:[#allocation40_spill] sm:$0xff] %v5150_v13  ;;  %6916 = vst [vmem:[#allocation41_spill] sm:$0xff] %v5154_v36  ;;  %v3816_v55 = vadd.f32 0.25, %v5044_v3  ;;  %v1234_v43 = vmul.f32 %v5144_v17, %v5144_v17  ;;  %v2375_v63 = vmul.f32 0.3, %v1665_v6  ;;  %v5185_v59 = vld [vmem:[%s4880_s14 + $0x30] sm:$0xff] }
 0x21e   : > { %v4224_v57 = vpop.eup %4223  ;;  %v1602_v60 = vmul.f32 0.5, %v4222_v22  ;;  %v1509_v47 = vmul.f32 -2.0, %v1339_v10  ;;  %v2647_v28 = vunpack.c.l.bf16 %v2629_v37  ;;  %vm1344_vm3 = vcmp.eq.f32.partialorder %v5092_v33, 0.0  ;;  %6922 = vst [vmem:[#allocation47_spill] sm:$0xff] %v5185_v59  ;;  %v5194_v16 = vld [vmem:[%s4880_s14 + $0x230] sm:$0xff] }
 0x21f   : > { %v4226_v20 = vpop.eup %4225  ;;  %v1861_v22 = vmul.f32 0.15, %v4224_v57  ;;  %v5168_v35 = vmul.f32 0.2, %v1665_v6  ;;  %4235 = vpow2.f32 %v1807_v58  ;;  %v1717_v36 = vmul.f32 %v3816_v55, %v3816_v55  ;;  %6925 = vst [vmem:[#allocation50_spill] sm:$0xff] %v5194_v16 }
 0x220   : > { %v1341_v40 = vmul.f32 %v4226_v20, %v5092_v33  ;;  %v1634_v24 = vadd.f32 0.5, %v1602_v60  ;;  %v1143_v20 = vadd.s32 48, %v4924_v52  ;;  %v1549_v39 = vmul.f32 1.442695, %v1509_v47 }
 0x221   : > { %6918 = vst [vmem:[#allocation43_spill] sm:$0xff] %v5168_v35  ;;  %v4228_v10 = vpop.eup %4227  ;;  %v5176_v57 = vadd.f32 %v1234_v43, %v4934_v12  ;;  %v5178_v46 = vadd.f32 1.0, %v1665_v6  ;;  %v5180_v60 = vadd.f32 1.0, %v2375_v63  ;;  %v5182_v58 = vsub.f32 1.0, %v2647_v28  ;;  %v5199_v28 = vld [vmem:[%s4880_s14 + $0x38] sm:$0xff] }
 0x222   : > { %v1343_v3 = vsel %vm1342_vm2, %v5092_v33, %v1341_v40  ;;  %v4230_v53 = vpop.eup %4229  ;;  %v5188_v47 = vadd.f32 1.0, %v1861_v22  ;;  %v1603_v55 = vmul.f32 0.5, %v4228_v10  ;;  %v5196_v6 = vsub.f32 1.0, %v1861_v22  ;;  %6927 = vst [vmem:[#allocation52_spill] sm:$0xff] %v5199_v28  ;;  %v5205_v10 = vld [vmem:[%s4880_s14 + $0x138] sm:$0xff] }
 0x223   : > { %v1346_v13 = vsel %vm1344_vm3, %v1345_v30, %v1343_v3  ;;  %6919 = vst [vmem:[#allocation44_spill] sm:$0xff] %v5178_v46  ;;  %6920 = vst [vmem:[#allocation45_spill] sm:$0xff] %v5180_v60  ;;  %v2648_v30 = vunpack.c.h.bf16 %v2629_v37  ;;  %v5191_v3 = vld [vmem:[%s4880_s14 + $0x130] sm:$0xff]  ;;  %v1666_v63 = vmul.f32 0.1, %v1634_v24  ;;  %4237 = vrsqrt.f32 %v5176_v57 }
 0x224   : > { %6921 = vst [vmem:[#allocation46_spill] sm:$0xff] %v5182_v58  ;;  %v1510_v33 = vmul.f32 -2.0, %v1346_v13  ;;  %6923 = vst [vmem:[#allocation48_spill] sm:$0xff] %v5188_v47  ;;  %v1160_v13 = vadd.s32 %v4926_v54, %v1143_v20  ;;  %v1862_v40 = vmul.f32 0.15, %v4230_v53  ;;  %4239 = vpow2.f32 %v1549_v39  ;;  %v5220_v39 = vld [vmem:[%s4880_s14 + $0x238] sm:$0xff] }
 0x225   : > { %6924 = vst [vmem:[#allocation49_spill] sm:$0xff] %v5191_v3  ;;  %6926 = vst [vmem:[#allocation51_spill] sm:$0xff] %v5196_v6  ;;  %v4232_v58 = vpop.eup %4231  ;;  %v1737_v47 = vadd.f32 %v1717_v36, %v4953_v61  ;;  %v5211_v6 = vld [vmem:[%s4901_s25 + $0x18] sm:$0xff]  ;;  %v5213_v46 = vsub.f32 1.0, %v2648_v30  ;;  %v1635_v20 = vadd.f32 0.5, %v1603_v55  ;;  %v5217_v37 = vadd.f32 %v1234_v43, %v4938_v15 }
 0x226   : > { %6928 = vst [vmem:[#allocation53_spill] sm:$0xff] %v5205_v10  ;;  %v4234_v35 = vpop.eup %4233  ;;  %v1551_v60 = vmul.f32 1.442695, %v1510_v33  ;;  %v2376_v59 = vmul.f32 0.3, %v1666_v63  ;;  %6930 = vst [vmem:[#allocation55_spill] sm:$0xff] %v5220_v39  ;;  %v1738_v22 = vadd.f32 %v1717_v36, %v4958_v5  ;;  %v1176_v3 = vcvt.s32.f32 %v1160_v13 }
 0x227   : > { %6929 = vst [vmem:[#allocation54_spill] sm:$0xff] %v5213_v46  ;;  %v5224_v24 = vmul.f32 0.2, %v1666_v63  ;;  %v2649_v33 = vunpack.c.l.bf16 %v5211_v6  ;;  %v1604_v30 = vmul.f32 0.5, %v4234_v35  ;;  %v1769_v16 = vmul.f32 -1.3888888, %v1737_v47 }
 0x228   : > { %v5227_v46 = vadd.f32 1.0, %v1666_v63  ;;  %v5229_v53 = vadd.f32 1.0, %v1862_v40  ;;  %v1863_v43 = vmul.f32 0.15, %v4232_v58  ;;  %4241 = vpow2.f32 %v1551_v60  ;;  %v5252_v63 = vld [vmem:[%s4880_s14 + $0x140] sm:$0xff] }
 0x229   : > { %6931 = vst [vmem:[#allocation56_spill] sm:$0xff] %v5224_v24  ;;  %v4236_v55 = vpop.eup %4235  ;;  %v5231_v28 = vsub.f32 1.0, %v1862_v40  ;;  %v1667_v45 = vmul.f32 0.1, %v1635_v20  ;;  %4243 = vrsqrt.f32 %v5217_v37  ;;  %v5235_v13 = vadd.f32 1.0, %v2376_v59  ;;  %v5246_v59 = vld [vmem:[%s4880_s14 + $0x40] sm:$0xff] }
 0x22a   : > { %6932 = vst [vmem:[#allocation57_spill] sm:$0xff] %v5227_v46  ;;  %6933 = vst [vmem:[#allocation58_spill] sm:$0xff] %v5229_v53  ;;  %v1770_v10 = vmul.f32 -1.3888888, %v1738_v22  ;;  %v3817_v35 = vadd.f32 0.25, %v5144_v17  ;;  %v5239_v58 = vsub.f32 1.0, %v2649_v33  ;;  %v2650_v24 = vunpack.c.h.bf16 %v5211_v6 }
 0x22b   : > { %6934 = vst [vmem:[#allocation59_spill] sm:$0xff] %v5231_v28  ;;  %6935 = vst [vmem:[#allocation60_spill] sm:$0xff] %v5235_v13  ;;  %v1197_v47 = vmul.f32 0.007843138, %v1176_v3  ;;  %v1636_v60 = vadd.f32 0.5, %v1604_v30  ;;  %v5241_v20 = vadd.f32 1.0, %v1863_v43 }
 0x22c   : > { %6936 = vst [vmem:[#allocation61_spill] sm:$0xff] %v5239_v58  ;;  %v1809_v40 = vmul.f32 1.442695, %v1769_v16  ;;  %v5243_v36 = vsub.f32 1.0, %v1863_v43  ;;  %v1864_v39 = vmul.f32 0.15, %v4236_v55  ;;  %v1718_v55 = vmul.f32 %v3817_v35, %v3817_v35 }
 0x22d   : > { %v4238_v53 = vpop.eup %4237  ;;  %6937 = vst [vmem:[#allocation62_spill] sm:$0xff] %v5241_v20  ;;  %6939 = vst [vmem:[#allocation64_spill] sm:$0xff] %v5246_v59  ;;  %vm1349_vm4 = vcmp.eq.f32.partialorder %v5176_v57, inf  ;;  %v2377_v17 = vmul.f32 0.3, %v1667_v45  ;;  %v1352_v16 = vand.u32 2147483648, %v5176_v57 }
 0x22e   : > { %6938 = vst [vmem:[#allocation63_spill] sm:$0xff] %v5243_v36  ;;  %v4240_v22 = vpop.eup %4239  ;;  %v5249_v3 = vmul.f32 0.2, %v1667_v45  ;;  %6941 = vst [vmem:[#allocation66_spill] sm:$0xff] %v5252_v63  ;;  %v1348_v33 = vmul.f32 %v4238_v53, %v5176_v57  ;;  %v5257_v30 = vld [vmem:[%s4880_s14 + $0x240] sm:$0xff]  ;;  %vm1351_vm5 = vcmp.eq.f32.partialorder %v5176_v57, 0.0  ;;  %4245 = vpow2.f32 %v1809_v40 }
 0x22f   : > { %6942 = vst [vmem:[#allocation67_spill] sm:$0xff] %v5257_v30  ;;  %v1811_v20 = vmul.f32 1.442695, %v1770_v10  ;;  %v3798_v43 = vadd.f32 -1.0, %v1197_v47  ;;  %v5260_v36 = vadd.f32 1.0, %v1667_v45  ;;  %v1605_v13 = vmul.f32 0.5, %v4240_v22 }
 0x230   : > { %6940 = vst [vmem:[#allocation65_spill] sm:$0xff] %v5249_v3  ;;  %v1668_v58 = vmul.f32 0.1, %v1636_v60  ;;  %v1350_v10 = vsel %vm1349_vm4, %v5176_v57, %v1348_v33  ;;  %v5268_v46 = vadd.f32 1.0, %v2377_v17  ;;  %v5273_v40 = vld [vmem:[%s4880_s14 + $0x48] sm:$0xff]  ;;  %v1739_v22 = vadd.f32 %v1718_v55, %v4953_v61 }
 0x231   : > { %6943 = vst [vmem:[#allocation68_spill] sm:$0xff] %v5260_v36  ;;  %v1353_v47 = vsel %vm1351_vm5, %v1352_v16, %v1350_v10  ;;  %4247 = vpow2.f32 %v1811_v20  ;;  %6945 = vst [vmem:[#allocation70_spill] sm:$0xff] %v5273_v40  ;;  %v1235_v53 = vmul.f32 %v3798_v43, %v3798_v43  ;;  %vm1356_vm6 = vcmp.eq.f32.partialorder %v5217_v37, inf  ;;  %v5282_v35 = vld [vmem:[%s4880_s14 + $0x148] sm:$0xff] }
 0x232   : > { %6944 = vst [vmem:[#allocation69_spill] sm:$0xff] %v5268_v46  ;;  %v4242_v60 = vpop.eup %4241  ;;  %v1511_v6 = vmul.f32 -2.0, %v1353_v47  ;;  %v5276_v63 = vadd.f32 1.0, %v1668_v58  ;;  %v2378_v57 = vmul.f32 0.3, %v1668_v58  ;;  %v1637_v33 = vadd.f32 0.5, %v1605_v13 }
 0x233   : > { %v4244_v28 = vpop.eup %4243  ;;  %v5278_v17 = vmul.f32 0.2, %v1668_v58  ;;  %6948 = vst [vmem:[#allocation73_spill] sm:$0xff] %v5282_v35  ;;  %v1359_v20 = vand.u32 2147483648, %v5217_v37  ;;  %v1144_v10 = vadd.s32 56, %v4924_v52  ;;  %v5286_v47 = vsub.f32 1.0, %v2650_v24 }
 0x234   : > { %6946 = vst [vmem:[#allocation71_spill] sm:$0xff] %v5276_v63  ;;  %v1553_v16 = vmul.f32 1.442695, %v1511_v6  ;;  %v1355_v30 = vmul.f32 %v4244_v28, %v5217_v37  ;;  %vm1358_vm7 = vcmp.eq.f32.partialorder %v5217_v37, 0.0  ;;  %v1606_v58 = vmul.f32 0.5, %v4242_v60  ;;  %v5312_v63 = vld [vmem:[%s4880_s14 + $0x248] sm:$0xff] }
 0x235   : > { %6947 = vst [vmem:[#allocation72_spill] sm:$0xff] %v5278_v17  ;;  %6949 = vst [vmem:[#allocation74_spill] sm:$0xff] %v5286_v47  ;;  %v1771_v59 = vmul.f32 -1.3888888, %v1739_v22  ;;  %v1740_v13 = vadd.f32 %v1718_v55, %v4958_v5  ;;  %v5293_v6 = vadd.f32 %v1235_v53, %v4934_v12  ;;  %v5300_v45 = vadd.f32 %v1235_v53, %v4938_v15  ;;  %v2631_v22 = vld [vmem:[%s4901_s25 + $0x20] sm:$0xff] }
 0x236   : > { %4249 = vpow2.f32 %v1553_v16  ;;  %v1357_v24 = vsel %vm1356_vm6, %v5217_v37, %v1355_v30  ;;  %v5302_v28 = vadd.f32 1.0, %v2378_v57  ;;  %v1669_v60 = vmul.f32 0.1, %v1637_v33  ;;  %6953 = vst [vmem:[#allocation78_spill] sm:$0xff] %v5312_v63 }
 0x237   : > { %v1360_v40 = vsel %vm1358_vm7, %v1359_v20, %v1357_v24  ;;  %v1161_v55 = vadd.s32 %v4926_v54, %v1144_v10  ;;  %v5307_v46 = vadd.f32 1.0, %v1864_v39  ;;  %v5309_v16 = vsub.f32 1.0, %v1864_v39  ;;  %v5330_v39 = vld [vmem:[%s4880_s14 + $0x250] sm:$0xff] }
 0x238   : > { %6950 = vst [vmem:[#allocation75_spill] sm:$0xff] %v5302_v28  ;;  %v4246_v47 = vpop.eup %4245  ;;  %v1512_v37 = vmul.f32 -2.0, %v1360_v40  ;;  %v1638_v30 = vadd.f32 0.5, %v1606_v58  ;;  %v1813_v53 = vmul.f32 1.442695, %v1771_v59  ;;  %4251 = vrsqrt.f32 %v5293_v6  ;;  %v5323_v59 = vld [vmem:[%s4880_s14 + $0x150] sm:$0xff] }
 0x239   : > { %6951 = vst [vmem:[#allocation76_spill] sm:$0xff] %v5307_v46  ;;  %6952 = vst [vmem:[#allocation77_spill] sm:$0xff] %v5309_v16  ;;  %v1772_v57 = vmul.f32 -1.3888888, %v1740_v13  ;;  %v2651_v33 = vunpack.c.l.bf16 %v2631_v22  ;;  %v3818_v10 = vadd.f32 0.25, %v3798_v43  ;;  %4253 = vrsqrt.f32 %v5300_v45  ;;  %v5320_v16 = vld [vmem:[%s4880_s14 + $0x50] sm:$0xff] }
 0x23a   : > { %v1555_v20 = vmul.f32 1.442695, %v1512_v37  ;;  %v1865_v3 = vmul.f32 0.15, %v4246_v47  ;;  %v2379_v35 = vmul.f32 0.3, %v1669_v60  ;;  %v1177_v46 = vcvt.s32.f32 %v1161_v55 }
 0x23b   : > { %v4248_v24 = vpop.eup %4247  ;;  %v5317_v40 = vmul.f32 0.2, %v1669_v60  ;;  %v2652_v58 = vunpack.c.h.bf16 %v2631_v22  ;;  %6955 = vst [vmem:[#allocation80_spill] sm:$0xff] %v5320_v16  ;;  %6956 = vst [vmem:[#allocation81_spill] sm:$0xff] %v5323_v59  ;;  %v1719_v13 = vmul.f32 %v3818_v10, %v3818_v10  ;;  %v1670_v37 = vmul.f32 0.1, %v1638_v30 }
 0x23c   : > { %4255 = vpow2.f32 %v1555_v20  ;;  %v1815_v43 = vmul.f32 1.442695, %v1772_v57  ;;  %v1198_v17 = vmul.f32 0.007843138, %v1177_v46  ;;  %v5325_v28 = vadd.f32 1.0, %v1669_v60  ;;  %6958 = vst [vmem:[#allocation83_spill] sm:$0xff] %v5330_v39 }
 0x23d   : > { %6954 = vst [vmem:[#allocation79_spill] sm:$0xff] %v5317_v40  ;;  %4257 = vpow2.f32 %v1813_v53  ;;  %v5327_v47 = vsub.f32 1.0, %v2651_v33  ;;  %v1866_v36 = vmul.f32 0.15, %v4248_v24  ;;  %v1741_v55 = vadd.f32 %v1719_v13, %v4953_v61  ;;  %v2632_v39 = vld [vmem:[%s4901_s25 + $0x28] sm:$0xff]  ;;  %v5385_v40 = vld [vmem:[%s4880_s14 + $0x258] sm:$0xff] }
 0x23e   : > { %v5333_v22 = vadd.f32 1.0, %v2379_v35  ;;  %v5335_v63 = vadd.f32 1.0, %v1865_v3  ;;  %v5337_v0 = vsub.f32 1.0, %v1865_v3  ;;  %v3799_v20 = vadd.f32 -1.0, %v1198_v17  ;;  %6968 = vst [vmem:[#allocation93_spill] sm:$0xff] %v5385_v40 }
 0x23f   : > { %6957 = vst [vmem:[#allocation82_spill] sm:$0xff] %v5327_v47  ;;  %v5340_v46 = vsub.f32 1.0, %v2652_v58  ;;  %v5344_v33 = vadd.f32 1.0, %v1670_v37  ;;  %v2380_v10 = vmul.f32 0.3, %v1670_v37  ;;  %4259 = vpow2.f32 %v1815_v43  ;;  %v5381_v47 = vld [vmem:[%s4880_s14 + $0x158] sm:$0xff] }
 0x240   : > { %6959 = vst [vmem:[#allocation84_spill] sm:$0xff] %v5335_v63  ;;  %6960 = vst [vmem:[#allocation85_spill] sm:$0xff] %v5337_v0  ;;  %v4250_v30 = vpop.eup %4249  ;;  %v5347_v24 = vmul.f32 0.2, %v1670_v37  ;;  %v5349_v3 = vadd.f32 1.0, %v1866_v36  ;;  %v5351_v17 = vsub.f32 1.0, %v1866_v36  ;;  %v1742_v57 = vadd.f32 %v1719_v13, %v4958_v5 }
 0x241   : > { %6961 = vst [vmem:[#allocation86_spill] sm:$0xff] %v5340_v46  ;;  %6962 = vst [vmem:[#allocation87_spill] sm:$0xff] %v5344_v33  ;;  %v1773_v63 = vmul.f32 -1.3888888, %v1741_v55  ;;  %v1607_v58 = vmul.f32 0.5, %v4250_v30  ;;  %vm1363_vm8 = vcmp.eq.f32.partialorder %v5293_v6, inf  ;;  %v1236_v60 = vmul.f32 %v3799_v20, %v3799_v20 }
 0x242   : > { %6963 = vst [vmem:[#allocation88_spill] sm:$0xff] %v5347_v24  ;;  %6964 = vst [vmem:[#allocation89_spill] sm:$0xff] %v5349_v3  ;;  %v4252_v53 = vpop.eup %4251  ;;  %vm1365_vm9 = vcmp.eq.f32.partialorder %v5293_v6, 0.0  ;;  %v1366_v37 = vand.u32 2147483648, %v5293_v6  ;;  %v3819_v43 = vadd.f32 0.25, %v3799_v20  ;;  %vm1370_vm10 = vcmp.eq.f32.partialorder %v5300_v45, inf }
 0x243   : > { %6965 = vst [vmem:[#allocation90_spill] sm:$0xff] %v5351_v17  ;;  %v4254_v59 = vpop.eup %4253  ;;  %v1362_v16 = vmul.f32 %v4252_v53, %v5293_v6  ;;  %v5361_v55 = vadd.f32 %v1236_v60, %v4934_v12  ;;  %v1145_v30 = vadd.s32 64, %v4924_v52  ;;  %v5364_v13 = vadd.f32 1.0, %v2380_v10  ;;  %v5378_v0 = vld [vmem:[%s4880_s14 + $0x58] sm:$0xff]  ;;  %6967 = vst [vmem:[#allocation92_spill] sm:$0xff] %v5381_v47 }
 0x244   : > { %v1369_v36 = vmul.f32 %v4254_v59, %v5300_v45  ;;  %v1817_v3 = vmul.f32 1.442695, %v1773_v63  ;;  %v1373_v20 = vand.u32 2147483648, %v5300_v45  ;;  %v1639_v59 = vadd.f32 0.5, %v1607_v58 }
 0x245   : > { %6966 = vst [vmem:[#allocation91_spill] sm:$0xff] %v5364_v13  ;;  %v1364_v53 = vsel %vm1363_vm8, %v5293_v6, %v1362_v16  ;;  %vm1372_vm11 = vcmp.eq.f32.partialorder %v5300_v45, 0.0  ;;  %v1774_v33 = vmul.f32 -1.3888888, %v1742_v57  ;;  %4261 = vrsqrt.f32 %v5361_v55 }
 0x246   : > { %v4256_v35 = vpop.eup %4255  ;;  %v1367_v52 = vsel %vm1365_vm9, %v1366_v37, %v1364_v53  ;;  %v1371_v10 = vsel %vm1370_vm10, %v5300_v45, %v1369_v36  ;;  %v5374_v13 = vmul.f32 %v3819_v43, %v3819_v43  ;;  %v2653_v16 = vunpack.c.l.bf16 %v2632_v39 }
 0x247   : > { %v4258_v17 = vpop.eup %4257  ;;  %v1608_v46 = vmul.f32 0.5, %v4256_v35  ;;  %v1513_v35 = vmul.f32 -2.0, %v1367_v52  ;;  %v1162_v58 = vadd.s32 %v4926_v54, %v1145_v30  ;;  %4263 = vpow2.f32 %v1817_v3 }
 0x248   : > { %v1867_v57 = vmul.f32 0.15, %v4258_v17  ;;  %v1374_v45 = vsel %vm1372_vm11, %v1373_v20, %v1371_v10  ;;  %v5388_v6 = vadd.f32 %v1236_v60, %v4938_v15  ;;  %v1819_v63 = vmul.f32 1.442695, %v1774_v33  ;;  %v5398_v60 = vld [vmem:[%s4880_s14 + $0x60] sm:$0xff] }
 0x249   : > { %v4260_v37 = vpop.eup %4259  ;;  %v1640_v43 = vadd.f32 0.5, %v1608_v46  ;;  %v1557_v36 = vmul.f32 1.442695, %v1513_v35  ;;  %v1514_v53 = vmul.f32 -2.0, %v1374_v45  ;;  %v1671_v24 = vmul.f32 0.1, %v1639_v59 }
 0x24a   : > { %v1743_v17 = vadd.f32 %v5374_v13, %v4953_v61  ;;  %v5394_v3 = vsub.f32 1.0, %v2653_v16  ;;  %v2654_v10 = vunpack.c.h.bf16 %v2632_v39  ;;  %6970 = vst [vmem:[#allocation95_spill] sm:$0xff] %v5398_v60  ;;  %v5401_v46 = vld [vmem:[%s4880_s14 + $0x160] sm:$0xff]  ;;  %v1868_v33 = vmul.f32 0.15, %v4260_v37 }
 0x24b   : > { %4265 = vpow2.f32 %v1557_v36  ;;  %6971 = vst [vmem:[#allocation96_spill] sm:$0xff] %v5401_v46  ;;  %v1559_v59 = vmul.f32 1.442695, %v1514_v53  ;;  %v5404_v45 = vadd.f32 1.0, %v1867_v57  ;;  %v1672_v30 = vmul.f32 0.1, %v1640_v43 }
 0x24c   : > { %6969 = vst [vmem:[#allocation94_spill] sm:$0xff] %v5394_v3  ;;  %v1775_v35 = vmul.f32 -1.3888888, %v1743_v17  ;;  %4267 = vrsqrt.f32 %v5388_v6  ;;  %v1178_v16 = vcvt.s32.f32 %v1162_v58  ;;  %v2381_v20 = vmul.f32 0.3, %v1671_v24  ;;  %v5413_v37 = vld [vmem:[%s4880_s14 + $0x260] sm:$0xff] }
 0x24d   : > { %6972 = vst [vmem:[#allocation97_spill] sm:$0xff] %v5404_v45  ;;  %4269 = vpow2.f32 %v1819_v63  ;;  %v5406_v39 = vmul.f32 0.2, %v1671_v24  ;;  %v5408_v36 = vsub.f32 1.0, %v1867_v57  ;;  %v5410_v52 = vsub.f32 1.0, %v2654_v10  ;;  %6976 = vst [vmem:[#allocation101_spill] sm:$0xff] %v5413_v37 }
 0x24e   : > { %4271 = vpow2.f32 %v1559_v59  ;;  %v1821_v54 = vmul.f32 1.442695, %v1775_v35  ;;  %v5417_v61 = vadd.f32 1.0, %v1868_v33  ;;  %v5419_v63 = vsub.f32 1.0, %v1868_v33  ;;  %v5422_v58 = vld [vmem:[%s4880_s14 + $0x68] sm:$0xff] }
 0x24f   : > { %6973 = vst [vmem:[#allocation98_spill] sm:$0xff] %v5406_v39  ;;  %6974 = vst [vmem:[#allocation99_spill] sm:$0xff] %v5408_v36  ;;  %v4262_v43 = vpop.eup %4261  ;;  %v5425_v57 = vld [vmem:[%s4880_s14 + $0x168] sm:$0xff]  ;;  %vm1377_vm12 = vcmp.eq.f32.partialorder %v5361_v55, inf  ;;  %v1380_v10 = vand.u32 2147483648, %v5361_v55  ;;  %vm1379_vm13 = vcmp.eq.f32.partialorder %v5361_v55, 0.0 }
 0x250   : > { %6975 = vst [vmem:[#allocation100_spill] sm:$0xff] %v5410_v52  ;;  %6977 = vst [vmem:[#allocation102_spill] sm:$0xff] %v5417_v61  ;;  %v2382_v59 = vmul.f32 0.3, %v1672_v30  ;;  %v5430_v52 = vld [vmem:[%s4880_s14 + $0x268] sm:$0xff]  ;;  %v1376_v17 = vmul.f32 %v4262_v43, %v5361_v55  ;;  %v5434_v46 = vadd.f32 1.0, %v1671_v24  ;;  %4273 = vpow2.f32 %v1821_v54 }
 0x251   : > { %6978 = vst [vmem:[#allocation103_spill] sm:$0xff] %v5419_v63  ;;  %6979 = vst [vmem:[#allocation104_spill] sm:$0xff] %v5425_v57  ;;  %v1199_v35 = vmul.f32 0.007843138, %v1178_v16  ;;  %v4264_v53 = vpop.eup %4263  ;;  %v5436_v33 = vadd.f32 1.0, %v2381_v20  ;;  %v2633_v63 = vld [vmem:[%s4901_s25 + $0x30] sm:$0xff] }
 0x252   : > { %6980 = vst [vmem:[#allocation105_spill] sm:$0xff] %v5430_v52  ;;  %v5441_v45 = vmul.f32 0.2, %v1672_v30  ;;  %v1378_v43 = vsel %vm1377_vm12, %v5361_v55, %v1376_v17  ;;  %v5449_v60 = vadd.f32 1.0, %v1672_v30  ;;  %v5451_v61 = vadd.f32 1.0, %v2382_v59  ;;  %v5454_v36 = vld [vmem:[%s4880_s14 + $0x70] sm:$0xff] }
 0x253   : > { %6981 = vst [vmem:[#allocation106_spill] sm:$0xff] %v5436_v33  ;;  %v1381_v3 = vsel %vm1379_vm13, %v1380_v10, %v1378_v43  ;;  %v5447_v20 = vadd.f32 -1.0, %v1199_v35  ;;  %v1869_v37 = vmul.f32 0.15, %v4264_v53  ;;  %v2655_v39 = vunpack.c.l.bf16 %v2633_v63  ;;  %6983 = vst [vmem:[#allocation108_spill] sm:$0xff] %v5454_v36  ;;  %v2634_v36 = vld [vmem:[%s4901_s25 + $0x38] sm:$0xff] }
 0x254   : > { %vm1384_vm14 = vcmp.eq.f32.partialorder %v5388_v6, inf  ;;  %v1387_v54 = vand.u32 2147483648, %v5388_v6  ;;  %v1744_v55 = vadd.f32 %v5374_v13, %v4958_v5  ;;  %v1515_v10 = vmul.f32 -2.0, %v1381_v3  ;;  %v5468_v5 = vld [vmem:[%s4880_s14 + $0x170] sm:$0xff] }
 0x255   : > { %6982 = vst [vmem:[#allocation107_spill] sm:$0xff] %v5447_v20  ;;  %v4266_v40 = vpop.eup %4265  ;;  %vm1386_vm15 = vcmp.eq.f32.partialorder %v5388_v6, 0.0  ;;  %v2656_v35 = vunpack.c.h.bf16 %v2633_v63  ;;  %v1237_v24 = vmul.f32 %v5447_v20, %v5447_v20  ;;  %v5465_v16 = vsub.f32 1.0, %v2655_v39  ;;  %6985 = vst [vmem:[#allocation110_spill] sm:$0xff] %v5468_v5 }
 0x256   : > { %v4268_v33 = vpop.eup %4267  ;;  %v1609_v47 = vmul.f32 0.5, %v4266_v40  ;;  %v1776_v43 = vmul.f32 -1.3888888, %v1744_v55  ;;  %v5476_v52 = vsub.f32 1.0, %v1869_v37  ;;  %v1561_v39 = vmul.f32 1.442695, %v1515_v10 }
 0x257   : > { %v4270_v17 = vpop.eup %4269  ;;  %v1383_v59 = vmul.f32 %v4268_v33, %v5388_v6  ;;  %6984 = vst [vmem:[#allocation109_spill] sm:$0xff] %v5465_v16  ;;  %v5479_v16 = vld [vmem:[%s4880_s14 + $0x270] sm:$0xff]  ;;  %v5481_v57 = vsub.f32 1.0, %v2656_v35 }
 0x258   : > { %v4272_v53 = vpop.eup %4271  ;;  %v1641_v40 = vadd.f32 0.5, %v1609_v47  ;;  %v5474_v47 = vadd.f32 1.0, %v1869_v37  ;;  %v1870_v63 = vmul.f32 0.15, %v4270_v17  ;;  %6987 = vst [vmem:[#allocation112_spill] sm:$0xff] %v5479_v16  ;;  %4275 = vpow2.f32 %v1561_v39 }
 0x259   : > { %v1610_v13 = vmul.f32 0.5, %v4272_v53  ;;  %v1385_v33 = vsel %vm1384_vm14, %v5388_v6, %v1383_v59  ;;  %6988 = vst [vmem:[#allocation113_spill] sm:$0xff] %v5481_v57  ;;  %v1823_v6 = vmul.f32 1.442695, %v1776_v43  ;;  %v5486_v59 = vadd.f32 %v1237_v24, %v4934_v12  ;;  %v5496_v43 = vld [vmem:[%s4880_s14 + $0x78] sm:$0xff] }
 0x25a   : > { %v1673_v30 = vmul.f32 0.1, %v1641_v40  ;;  %6986 = vst [vmem:[#allocation111_spill] sm:$0xff] %v5474_v47  ;;  %v1388_v55 = vsel %vm1386_vm15, %v1387_v54, %v1385_v33  ;;  %v4274_v54 = vpop.eup %4273  ;;  %v5490_v40 = vadd.f32 1.0, %v1870_v63  ;;  %v2657_v33 = vunpack.c.l.bf16 %v2634_v36  ;;  %6991 = vst [vmem:[#allocation116_spill] sm:$0xff] %v5496_v43  ;;  %v5499_v12 = vld [vmem:[%s4880_s14 + $0x178] sm:$0xff] }
 0x25b   : > { %v1642_v20 = vadd.f32 0.5, %v1610_v13  ;;  %v1516_v53 = vmul.f32 -2.0, %v1388_v55  ;;  %6989 = vst [vmem:[#allocation114_spill] sm:$0xff] %v5486_v59  ;;  %v5492_v13 = vsub.f32 1.0, %v1870_v63  ;;  %6992 = vst [vmem:[#allocation117_spill] sm:$0xff] %v5499_v12  ;;  %v5504_v47 = vld [vmem:[%s4880_s14 + $0x278] sm:$0xff]  ;;  %4277 = vrsqrt.f32 %v5486_v59 }
 0x25c   : > { %v2383_v37 = vmul.f32 0.3, %v1673_v30  ;;  %v5488_v17 = vmul.f32 0.2, %v1673_v30  ;;  %6990 = vst [vmem:[#allocation115_spill] sm:$0xff] %v5490_v40  ;;  %6993 = vst [vmem:[#allocation118_spill] sm:$0xff] %v5504_v47  ;;  %4279 = vpow2.f32 %v1823_v6 }
 0x25d   : > { %v1674_v10 = vmul.f32 0.1, %v1642_v20  ;;  %v1563_v3 = vmul.f32 1.442695, %v1516_v53  ;;  %v1871_v57 = vmul.f32 0.15, %v4274_v54  ;;  %v5507_v20 = vadd.f32 %v1237_v24, %v4938_v15 }
 0x25e   : > { %v5510_v63 = vadd.f32 1.0, %v1673_v30  ;;  %v5512_v36 = vadd.f32 1.0, %v2383_v37  ;;  %v5517_v16 = vsub.f32 1.0, %v2657_v33  ;;  %v6998_v40 = vsub.f32 1.0, %v4968_v26  ;;  %v4378_v12 = vld [vmem:[%s4880_s14 + $0x100] sm:$0xff]  ;;  %v4380_v43 = vld [vmem:[%s4880_s14 + $0x8] sm:$0xff] }
 0x25f   : > { %v2384_v55 = vmul.f32 0.3, %v1674_v10  ;;  %v5501_v5 = vmul.f32 0.2, %v1674_v10  ;;  %6994 = vst [vmem:[#allocation119_spill] sm:$0xff] %v5507_v20  ;;  %v5515_v35 = vadd.f32 1.0, %v1674_v10  ;;  %4281 = vpow2.f32 %v1563_v3 }
 0x260   : > { %6995 = vst [vmem:[#allocation120_spill] sm:$0xff] %v5517_v16  ;;  %v5525_v33 = vadd.f32 1.0, %v1871_v57  ;;  %v5527_v39 = vsub.f32 1.0, %v1871_v57  ;;  %v7000_v54 = vsub.f32 1.05, %v4972_v29  ;;  %v7001_v10 = vsub.f32 1.0, %v4985_v41 }
 0x261   : > { %v5521_v20 = vadd.f32 1.0, %v2384_v55  ;;  %v6999_v55 = vsub.f32 1.0, %v4976_v34  ;;  %v7002_v57 = vsub.f32 1.0, %v4988_v42  ;;  %v7003_v26 = vsub.f32 1.05, %v4995_v50  ;;  %v4377_v34 = vld [vmem:[%s4880_s14] sm:$0xff] }
 0x262   : > { %6996 = vst [vmem:[#allocation121_spill] sm:$0xff] %v5525_v33  ;;  %6997 = vst [vmem:[#allocation122_spill] sm:$0xff] %v5527_v39  ;;  %v4381_v42 = vld [vmem:[%s4880_s14 + $0x108] sm:$0xff] }
 0x263   : > { %v4382_v16 = vld [vmem:[%s4880_s14 + $0x208] sm:$0xff] }
 0x298   : > { %v1024_v53 = vpop.f32.mrb[0].mxu1 }
 0x299   : > { %v1103_v24 = vmul.f32 0.2, %v1024_v53  ;;  %v1026_v15 = vpop.f32.mrb[1].mxu1 }
 0x29a   : > { %v1104_v37 = vmul.f32 0.2, %v1026_v15  ;;  %v1028_v6 = vpop.f32.mrb[2].mxu1 }
 0x29b   : > { %v2019_v53 = vmul.f32 %v6998_v40, %v1103_v24  ;;  %v2115_v3 = vmul.f32 %v6999_v55, %v1103_v24  ;;  %v2211_v30 = vmul.f32 %v7000_v54, %v1103_v24  ;;  %v1105_v15 = vmul.f32 0.2, %v1028_v6  ;;  %v1030_v59 = vpop.f32.mrb[3].mxu1  ;;  %v4379_v54 = vld [vmem:[%s4880_s14 + $0x200] sm:$0xff] }
 0x29c   : > { %v2020_v47 = vmul.f32 %v7001_v10, %v1104_v37  ;;  %v2116_v39 = vmul.f32 %v7002_v57, %v1104_v37  ;;  %v2212_v40 = vmul.f32 %v7003_v26, %v1104_v37  ;;  %v5541_v33 = vmul.f32 0.2, %v1030_v59  ;;  %v5553_v26 = vpop.eup %4275 }
 0x29d   : > { %v2051_v55 = vadd.f32 %v4377_v34, %v2019_v53  ;;  %v2147_v29 = vadd.f32 %v4378_v12, %v2115_v3  ;;  %v2243_v24 = vadd.f32 %v4379_v54, %v2211_v30  ;;  %v7004_v6 = vsub.f32 1.0, %v4998_v51  ;;  %v4383_v3 = vld [vmem:[%s4880_s14 + $0x10] sm:$0xff] }
 0x29e   : > { %v2052_v10 = vadd.f32 %v4380_v43, %v2020_v47  ;;  %v2148_v57 = vadd.f32 %v4381_v42, %v2116_v39  ;;  %v2244_v50 = vadd.f32 %v4382_v16, %v2212_v40  ;;  %v7005_v59 = vsub.f32 1.0, %v5009_v2  ;;  %v5560_v47 = vpop.eup %4277  ;;  %v4384_v40 = vld [vmem:[%s4880_s14 + $0x110] sm:$0xff] }
 0x29f   : > { %v2021_v41 = vmul.f32 %v7004_v6, %v1105_v15  ;;  %v2307_v53 = vmul.f32 %v5004_v62, %v2051_v55  ;;  %v2435_v12 = vmul.f32 %v5011_v4, %v2147_v29  ;;  %v7006_v30 = vsub.f32 1.0, %v4992_v48  ;;  %v5569_v62 = vpop.eup %4279 }
 0x2a0   : > { %v2117_v37 = vmul.f32 %v7005_v59, %v1105_v15  ;;  %v2308_v43 = vmul.f32 %v5030_v49, %v2052_v10  ;;  %v2436_v16 = vmul.f32 %v5037_v44, %v2148_v57  ;;  %v7007_v2 = vsub.f32 1.0, %v5019_v19  ;;  %v5567_v6 = vpop.f32.mrb[4].mxu1  ;;  %v5578_v57 = vpop.eup %4281 }
 0x2a1   : > { %v2563_v51 = vmul.f32 %v7006_v30, %v2243_v24  ;;  %v2053_v34 = vadd.f32 %v4383_v3, %v2021_v41  ;;  %v2339_v48 = vmin.f32 %v2307_v53, 1.0  ;;  %v2467_v4 = vmin.f32 %v2435_v12, 1.0  ;;  %v5573_v41 = vpop.f32.mrb[5].mxu1  ;;  %v4385_v53 = vld [vmem:[%s4880_s14 + $0x210] sm:$0xff] }
 0x2a2   : > { %v2564_v39 = vmul.f32 %v7007_v2, %v2244_v50  ;;  %v2149_v54 = vadd.f32 %v4384_v40, %v2117_v37  ;;  %v7008_v29 = vsub.f32 1.05, %v5023_v23  ;;  %v2340_v49 = vmin.f32 %v2308_v43, 1.0  ;;  %v5576_v42 = vpop.f32.mrb[6].mxu1 }
 0x2a3   : > { %v2595_v55 = vmin.f32 %v2563_v51, 1.0  ;;  %v2468_v44 = vmin.f32 %v2436_v16, 1.0  ;;  %v2309_v19 = vmul.f32 %v5052_v11, %v2053_v34  ;;  %v2707_v50 = vmul.f32 %v5041_v1, %v2339_v48 }
 0x2a4   : > { %v2213_v24 = vmul.f32 %v7008_v29, %v1105_v15  ;;  %v2596_v10 = vmin.f32 %v2564_v39, 1.0  ;;  %v2739_v59 = vmul.f32 %v5041_v1, %v2467_v4  ;;  %v5584_v15 = vpop.f32.mrb[7].mxu1  ;;  %v2708_v12 = vmul.f32 %v5050_v9, %v2340_v49 }
 0x2a5   : > { %v2771_v37 = vmul.f32 %v5041_v1, %v2595_v55  ;;  %v2740_v30 = vmul.f32 %v5050_v9, %v2468_v44  ;;  %v2341_v51 = vmin.f32 %v2309_v19, 1.0  ;;  %v2867_v3 = vmul.f32 %v5048_v8, %v2707_v50 }
 0x2a6   : > { %v2245_v23 = vadd.f32 %v4385_v53, %v2213_v24  ;;  %v2772_v11 = vmul.f32 %v5050_v9, %v2596_v10  ;;  %v2899_v34 = vmul.f32 %v5046_v25, %v2707_v50  ;;  %v3027_v43 = vmul.f32 %v5048_v8, %v2739_v59 }
 0x2a7   : > { %v3059_v16 = vmul.f32 %v5046_v25, %v2739_v59  ;;  %v3187_v1 = vmul.f32 %v5048_v8, %v2771_v37  ;;  %v3219_v2 = vmul.f32 %v5046_v25, %v2771_v37  ;;  %v2868_v39 = vmul.f32 %v5063_v27, %v2708_v12 }
 0x2a8   : > { %v2900_v40 = vmul.f32 %v5061_v21, %v2708_v12  ;;  %v2931_v48 = vmul.f32 1.05, %v2899_v34  ;;  %v3028_v9 = vmul.f32 %v5063_v27, %v2740_v30  ;;  %v3060_v55 = vmul.f32 %v5061_v21, %v2740_v30  ;;  %v5601_v10 = vpop.f32.mrb[8].mxu1 }
 0x2a9   : > { %v3091_v4 = vmul.f32 1.03, %v3059_v16  ;;  %v3251_v29 = vmin.f32 %v3219_v2, 1.0  ;;  %v3188_v49 = vmul.f32 %v5063_v27, %v2772_v11  ;;  %v3220_v44 = vmul.f32 %v5061_v21, %v2772_v11  ;;  %v5604_v59 = vpop.f32.mrb[9].mxu1 }
 0x2aa   : > { %v2932_v24 = vmul.f32 1.05, %v2900_v40  ;;  %v2963_v8 = vmin.f32 %v2931_v48, 1.0  ;;  %v3092_v19 = vmul.f32 1.03, %v3060_v55  ;;  %v2437_v50 = vmul.f32 %v5054_v14, %v2149_v54  ;;  %v5608_v16 = vpop.f32.mrb[10].mxu1 }
 0x2ab   : > { %v3123_v25 = vmin.f32 %v3091_v4, 1.0  ;;  %v3283_v37 = vadd.f32 %v3251_v29, %v3187_v1  ;;  %v3252_v12 = vmin.f32 %v3220_v44, 1.0  ;;  %v7009_v30 = vsub.f32 1.0, %v5065_v32  ;;  %v5610_v40 = vpop.f32.mrb[11].mxu1 }
 0x2ac   : > { %v2964_v53 = vmin.f32 %v2932_v24, 1.0  ;;  %v2995_v27 = vadd.f32 %v2963_v8, %v2867_v3  ;;  %v3124_v11 = vmin.f32 %v3092_v19, 1.0  ;;  %v2469_v2 = vmin.f32 %v2437_v50, 1.0 }
 0x2ad   : > { %v2565_v34 = vmul.f32 %v7009_v30, %v2245_v23  ;;  %v3155_v21 = vadd.f32 %v3123_v25, %v3027_v43  ;;  %v3444_v48 = vmin.f32 %v3283_v37, 1.0  ;;  %v3284_v14 = vadd.f32 %v3252_v12, %v3188_v49  ;;  %v4386_v37 = vld [vmem:[%s4880_s14 + $0x18] sm:$0xff]  ;;  %v7012_v30 = vld [vmem:[#allocation30_spill] sm:$0xff] }
 0x2ae   : > { %v2996_v4 = vadd.f32 %v2964_v53, %v2868_v39  ;;  %v3315_v55 = vmin.f32 %v2995_v27, 1.0  ;;  %v3156_v29 = vadd.f32 %v3124_v11, %v3028_v9  ;;  %v2709_v24 = vmul.f32 %v5095_v7, %v2341_v51 }
 0x2af   : > { %v2597_v54 = vmin.f32 %v2565_v34, 1.0  ;;  %v3379_v1 = vmin.f32 %v3155_v21, 1.0  ;;  %3924 = vst [vmem:[%s5615_s13 + $0x200] sm:$0xff] %v3444_v48  ;;  %v3445_v23 = vmin.f32 %v3284_v14, 1.0  ;;  %v2741_v3 = vmul.f32 %v5095_v7, %v2469_v2 }
 0x2b0   : > { %v3316_v32 = vmin.f32 %v2996_v4, 1.0  ;;  %3347 = vst [vmem:[%s5615_s13] sm:$0xff] %v3315_v55  ;;  %v3380_v51 = vmin.f32 %v3156_v29, 1.0  ;;  %v2901_v39 = vmul.f32 %v5105_v18, %v2709_v24  ;;  %v7010_v9 = vsub.f32 1.0, %v5068_v56  ;;  %v5635_v50 = vpop.f32.mrb[12].mxu1  ;;  %v7014_v29 = vld [vmem:[#allocation32_spill] sm:$0xff] }
 0x2b1   : > { %v2773_v43 = vmul.f32 %v5095_v7, %v2597_v54  ;;  %3892 = vst [vmem:[%s5615_s13 + $0x100] sm:$0xff] %v3379_v1  ;;  %v5627_v44 = vmul.f32 0.5, %v5553_v26  ;;  %3925 = vst [vmem:[%s5615_s13 + $0x208] sm:$0xff] %v3445_v23  ;;  %v2869_v8 = vmul.f32 %v5112_v38, %v2709_v24  ;;  %v3029_v25 = vmul.f32 %v5112_v38, %v2741_v3  ;;  %v5645_v21 = vpop.f32.mrb[13].mxu1  ;;  %v4387_v54 = vld [vmem:[%s4880_s14 + $0x118] sm:$0xff] }
 0x2b2   : > { %v2022_v49 = vmul.f32 %v7010_v9, %v5541_v33  ;;  %3348 = vst [vmem:[%s5615_s13 + $0x8] sm:$0xff] %v3316_v32  ;;  %v3061_v7 = vmul.f32 %v5105_v18, %v2741_v3  ;;  %3893 = vst [vmem:[%s5615_s13 + $0x108] sm:$0xff] %v3380_v51  ;;  %v2933_v56 = vmul.f32 1.05, %v2901_v39  ;;  %v7011_v26 = vsub.f32 1.0, %v5084_v31  ;;  %v5649_v4 = vpop.f32.mrb[14].mxu1 }
 0x2b3   : > { %v3221_v19 = vmul.f32 %v5105_v18, %v2773_v43  ;;  %v7013_v34 = vsub.f32 1.05, %v7012_v30  ;;  %v3189_v18 = vmul.f32 %v5112_v38, %v2773_v43  ;;  %v1107_v48 = vmul.f32 0.2, %v5567_v6  ;;  %v4388_v31 = vld [vmem:[%s4880_s14 + $0x218] sm:$0xff]  ;;  %v7015_v3 = vld [vmem:[#allocation33_spill] sm:$0xff] }
 0x2b4   : > { %v2054_v53 = vadd.f32 %v4386_v37, %v2022_v49  ;;  %v2118_v12 = vmul.f32 %v7011_v26, %v5541_v33  ;;  %v3093_v11 = vmul.f32 1.03, %v3061_v7  ;;  %v2965_v14 = vmin.f32 %v2933_v56, 1.0  ;;  %v7017_v51 = vld [vmem:[#allocation34_spill] sm:$0xff]  ;;  %v7019_v7 = vld [vmem:[#allocation36_spill] sm:$0xff]  ;;  %v7020_v56 = vld [vmem:[#allocation31_spill] sm:$0xff] }
 0x2b5   : > { %v2214_v27 = vmul.f32 %v7013_v34, %v5541_v33  ;;  %v3253_v2 = vmin.f32 %v3221_v19, 1.0  ;;  %v5654_v33 = vpop.f32.mrb[15].mxu1  ;;  %v7016_v38 = vsub.f32 1.0, %v7015_v3  ;;  %v7018_v6 = vsub.f32 1.0, %v7017_v51  ;;  %v4389_v30 = vld [vmem:[%s4880_s14 + $0x20] sm:$0xff] }
 0x2b6   : > { %v2150_v55 = vadd.f32 %v4387_v54, %v2118_v12  ;;  %v2310_v24 = vmul.f32 %v7014_v29, %v2054_v53  ;;  %v3125_v32 = vmin.f32 %v3093_v11, 1.0  ;;  %v2997_v9 = vadd.f32 %v2965_v14, %v2869_v8  ;;  %v7027_v51 = vld [vmem:[#allocation40_spill] sm:$0xff] }
 0x2b7   : > { %v2246_v1 = vadd.f32 %v4388_v31, %v2214_v27  ;;  %v3285_v23 = vadd.f32 %v3253_v2, %v3189_v18  ;;  %v2023_v43 = vmul.f32 %v7016_v38, %v1107_v48  ;;  %v2119_v39 = vmul.f32 %v7018_v6, %v1107_v48  ;;  %v4390_v27 = vld [vmem:[%s4880_s14 + $0x120] sm:$0xff]  ;;  %v7022_v31 = vld [vmem:[#allocation38_spill] sm:$0xff] }
 0x2b8   : > { %v2342_v49 = vmin.f32 %v2310_v24, 1.0  ;;  %v2438_v19 = vmul.f32 %v7019_v7, %v2150_v55  ;;  %v7021_v37 = vsub.f32 1.0, %v7020_v56  ;;  %v3157_v12 = vadd.f32 %v3125_v32, %v3029_v25  ;;  %v7023_v55 = vld [vmem:[#allocation35_spill] sm:$0xff]  ;;  %v7026_v32 = vld [vmem:[#allocation45_spill] sm:$0xff]  ;;  %v5671_v3 = vpop.f32.mrb[16].mxu1  ;;  %v4391_v7 = vld [vmem:[%s4880_s14 + $0x220] sm:$0xff] }
 0x2b9   : > { %v3446_v53 = vmin.f32 %v3285_v23, 1.0  ;;  %v2055_v34 = vadd.f32 %v4389_v30, %v2023_v43  ;;  %v2151_v11 = vadd.f32 %v4390_v27, %v2119_v39  ;;  %v3317_v18 = vmin.f32 %v2997_v9, 1.0  ;;  %v7028_v39 = vld [vmem:[#allocation39_spill] sm:$0xff] }
 0x2ba   : > { %v2566_v26 = vmul.f32 %v7021_v37, %v2246_v1  ;;  %v2470_v2 = vmin.f32 %v2438_v19, 1.0  ;;  %v2710_v8 = vmul.f32 %v7022_v31, %v2342_v49  ;;  %v3381_v14 = vmin.f32 %v3157_v12, 1.0  ;;  %v7025_v1 = vld [vmem:[#allocation44_spill] sm:$0xff]  ;;  %v5678_v49 = vpop.f32.mrb[17].mxu1  ;;  %v7029_v27 = vld [vmem:[#allocation43_spill] sm:$0xff] }
 0x2bb   : > { %3926 = vst [vmem:[%s5615_s13 + $0x210] sm:$0xff] %v3446_v53  ;;  %v7024_v29 = vsub.f32 1.05, %v7023_v55  ;;  %v2311_v25 = vmul.f32 %v7025_v1, %v2055_v34  ;;  %v2439_v23 = vmul.f32 %v7026_v32, %v2151_v11  ;;  %3349 = vst [vmem:[%s5615_s13 + $0x10] sm:$0xff] %v3317_v18  ;;  %v1108_v37 = vmul.f32 0.2, %v5573_v41 }
 0x2bc   : > { %v2598_v54 = vmin.f32 %v2566_v26, 1.0  ;;  %v2742_v38 = vmul.f32 %v7022_v31, %v2470_v2  ;;  %v2870_v6 = vmul.f32 %v7027_v51, %v2710_v8  ;;  %v2902_v9 = vmul.f32 %v7028_v39, %v2710_v8  ;;  %3894 = vst [vmem:[%s5615_s13 + $0x110] sm:$0xff] %v3381_v14  ;;  %v7031_v2 = vld [vmem:[#allocation46_spill] sm:$0xff]  ;;  %v7032_v41 = vld [vmem:[#allocation37_spill] sm:$0xff] }
 0x2bd   : > { %v2215_v24 = vmul.f32 %v7024_v29, %v1107_v48  ;;  %v2343_v19 = vmin.f32 %v2311_v25, 1.0  ;;  %v2471_v56 = vmin.f32 %v2439_v23, 1.0  ;;  %v7030_v11 = vsub.f32 1.0, %v7029_v27  ;;  %v4392_v27 = vld [vmem:[%s4880_s14 + $0x28] sm:$0xff] }
 0x2be   : > { %v2774_v43 = vmul.f32 %v7022_v31, %v2598_v54  ;;  %v2934_v26 = vmul.f32 1.05, %v2902_v9  ;;  %v3030_v12 = vmul.f32 %v7027_v51, %v2742_v38  ;;  %v3062_v53 = vmul.f32 %v7028_v39, %v2742_v38  ;;  %v7036_v38 = vld [vmem:[#allocation51_spill] sm:$0xff] }
 0x2bf   : > { %v2247_v48 = vadd.f32 %v4391_v7, %v2215_v24  ;;  %v2711_v54 = vmul.f32 %v7031_v2, %v2343_v19  ;;  %v2743_v31 = vmul.f32 %v7031_v2, %v2471_v56  ;;  %v7033_v55 = vsub.f32 1.0, %v7032_v41  ;;  %v7034_v24 = vld [vmem:[#allocation41_spill] sm:$0xff] }
 0x2c0   : > { %v3190_v30 = vmul.f32 %v7027_v51, %v2774_v43  ;;  %v3222_v34 = vmul.f32 %v7028_v39, %v2774_v43  ;;  %v2966_v8 = vmin.f32 %v2934_v26, 1.0  ;;  %v3094_v14 = vmul.f32 1.03, %v3062_v53  ;;  %v7037_v51 = vld [vmem:[#allocation48_spill] sm:$0xff] }
 0x2c1   : > { %v2567_v18 = vmul.f32 %v7030_v11, %v2247_v48  ;;  %v2024_v29 = vmul.f32 %v7033_v55, %v1108_v37  ;;  %v7035_v1 = vsub.f32 1.0, %v7034_v24  ;;  %v2871_v43 = vmul.f32 %v7036_v38, %v2711_v54  ;;  %v4393_v55 = vld [vmem:[%s4880_s14 + $0x128] sm:$0xff] }
 0x2c2   : > { %v3254_v32 = vmin.f32 %v3222_v34, 1.0  ;;  %v2903_v39 = vmul.f32 %v7037_v51, %v2711_v54  ;;  %v2998_v9 = vadd.f32 %v2966_v8, %v2870_v6  ;;  %v3126_v7 = vmin.f32 %v3094_v14, 1.0  ;;  %v7038_v14 = vld [vmem:[#allocation42_spill] sm:$0xff] }
 0x2c3   : > { %v2120_v25 = vmul.f32 %v7035_v1, %v1108_v37  ;;  %v2599_v23 = vmin.f32 %v2567_v18, 1.0  ;;  %v3031_v48 = vmul.f32 %v7036_v38, %v2743_v31  ;;  %v3063_v19 = vmul.f32 %v7037_v51, %v2743_v31 }
 0x2c4   : > { %v3286_v56 = vadd.f32 %v3254_v32, %v3190_v30  ;;  %v2935_v53 = vmul.f32 1.05, %v2903_v39  ;;  %v2056_v11 = vadd.f32 %v4392_v27, %v2024_v29  ;;  %v3158_v34 = vadd.f32 %v3126_v7, %v3030_v12  ;;  %v7040_v32 = vld [vmem:[#allocation57_spill] sm:$0xff] }
 0x2c5   : > { %v2775_v26 = vmul.f32 %v7031_v2, %v2599_v23  ;;  %v3318_v18 = vmin.f32 %v2998_v9, 1.0  ;;  %v3095_v41 = vmul.f32 1.03, %v3063_v19  ;;  %v2152_v24 = vadd.f32 %v4393_v55, %v2120_v25  ;;  %v5708_v23 = vpop.f32.mrb[18].mxu1  ;;  %v7041_v9 = vld [vmem:[#allocation60_spill] sm:$0xff]  ;;  %v4394_v19 = vld [vmem:[%s4880_s14 + $0x228] sm:$0xff] }
 0x2c6   : > { %v3447_v6 = vmin.f32 %v3286_v56, 1.0  ;;  %v2967_v54 = vmin.f32 %v2935_v53, 1.0  ;;  %v3382_v30 = vmin.f32 %v3158_v34, 1.0  ;;  %v7039_v1 = vsub.f32 1.05, %v7038_v14  ;;  %v7044_v55 = vld [vmem:[#allocation56_spill] sm:$0xff] }
 0x2c7   : > { %v3191_v8 = vmul.f32 %v7036_v38, %v2775_v26  ;;  %v3223_v31 = vmul.f32 %v7037_v51, %v2775_v26  ;;  %3350 = vst [vmem:[%s5615_s13 + $0x18] sm:$0xff] %v3318_v18  ;;  %v3127_v2 = vmin.f32 %v3095_v41, 1.0  ;;  %v2312_v12 = vmul.f32 %v7040_v32, %v2056_v11 }
 0x2c8   : > { %v2216_v29 = vmul.f32 %v7039_v1, %v1108_v37  ;;  %3927 = vst [vmem:[%s5615_s13 + $0x218] sm:$0xff] %v3447_v6  ;;  %v2999_v25 = vadd.f32 %v2967_v54, %v2871_v43  ;;  %v2440_v7 = vmul.f32 %v7041_v9, %v2152_v24  ;;  %v1109_v38 = vmul.f32 0.2, %v5576_v42  ;;  %3895 = vst [vmem:[%s5615_s13 + $0x118] sm:$0xff] %v3382_v30  ;;  %v7042_v43 = vld [vmem:[#allocation47_spill] sm:$0xff]  ;;  %v7046_v24 = vld [vmem:[#allocation54_spill] sm:$0xff] }
 0x2c9   : > { %v3255_v39 = vmin.f32 %v3223_v31, 1.0  ;;  %v3159_v51 = vadd.f32 %v3127_v2, %v3031_v48  ;;  %v2344_v26 = vmin.f32 %v2312_v12, 1.0  ;;  %v5716_v37 = vmul.f32 0.2, %v5584_v15  ;;  %v7047_v54 = vld [vmem:[#allocation49_spill] sm:$0xff]  ;;  %v4395_v2 = vld [vmem:[%s4880_s14 + $0x30] sm:$0xff] }
 0x2ca   : > { %v2248_v56 = vadd.f32 %v4394_v19, %v2216_v29  ;;  %v3319_v27 = vmin.f32 %v2999_v25, 1.0  ;;  %v2472_v11 = vmin.f32 %v2440_v7, 1.0  ;;  %v7043_v34 = vsub.f32 1.0, %v7042_v43  ;;  %v7049_v1 = vld [vmem:[#allocation50_spill] sm:$0xff]  ;;  %v7051_v25 = vld [vmem:[#allocation59_spill] sm:$0xff] }
 0x2cb   : > { %v3287_v53 = vadd.f32 %v3255_v39, %v3191_v8  ;;  %v3383_v41 = vmin.f32 %v3159_v51, 1.0  ;;  %v7045_v42 = vsub.f32 1.0, %v7044_v55  ;;  %v2712_v6 = vmul.f32 %v7046_v24, %v2344_v26  ;;  %v7052_v9 = vld [vmem:[#allocation58_spill] sm:$0xff]  ;;  %v7055_v55 = vld [vmem:[#allocation52_spill] sm:$0xff] }
 0x2cc   : > { %v2025_v18 = vmul.f32 %v7043_v34, %v1109_v38  ;;  %v7048_v31 = vsub.f32 1.0, %v7047_v54  ;;  %3351 = vst [vmem:[%s5615_s13 + $0x20] sm:$0xff] %v3319_v27  ;;  %v2744_v8 = vmul.f32 %v7046_v24, %v2472_v11  ;;  %v7050_v29 = vsub.f32 1.05, %v7049_v1  ;;  %v4396_v51 = vld [vmem:[%s4880_s14 + $0x130] sm:$0xff]  ;;  %v7053_v11 = vld [vmem:[#allocation68_spill] sm:$0xff] }
 0x2cd   : > { %v2568_v48 = vmul.f32 %v7045_v42, %v2248_v56  ;;  %v3448_v15 = vmin.f32 %v3287_v53, 1.0  ;;  %3896 = vst [vmem:[%s5615_s13 + $0x120] sm:$0xff] %v3383_v41  ;;  %v2872_v39 = vmul.f32 %v7051_v25, %v2712_v6  ;;  %v2904_v7 = vmul.f32 %v7052_v9, %v2712_v6  ;;  %v4397_v53 = vld [vmem:[%s4880_s14 + $0x230] sm:$0xff] }
 0x2ce   : > { %v2121_v30 = vmul.f32 %v7048_v31, %v1109_v38  ;;  %v2057_v14 = vadd.f32 %v4395_v2, %v2025_v18  ;;  %v2217_v32 = vmul.f32 %v7050_v29, %v1109_v38  ;;  %v3032_v56 = vmul.f32 %v7051_v25, %v2744_v8  ;;  %v7054_v18 = vld [vmem:[#allocation69_spill] sm:$0xff] }
 0x2cf   : > { %v2600_v12 = vmin.f32 %v2568_v48, 1.0  ;;  %3928 = vst [vmem:[%s5615_s13 + $0x220] sm:$0xff] %v3448_v15  ;;  %v3064_v26 = vmul.f32 %v7052_v9, %v2744_v8  ;;  %v2936_v34 = vmul.f32 1.05, %v2904_v7  ;;  %v7056_v42 = vsub.f32 1.0, %v7055_v55  ;;  %v7057_v31 = vld [vmem:[#allocation65_spill] sm:$0xff] }
 0x2d0   : > { %v2153_v19 = vadd.f32 %v4396_v51, %v2121_v30  ;;  %v2249_v27 = vadd.f32 %v4397_v53, %v2217_v32  ;;  %v2313_v43 = vmul.f32 %v7053_v11, %v2057_v14  ;;  %v7058_v30 = vsub.f32 1.0, %v7057_v31  ;;  %v7059_v8 = vld [vmem:[#allocation53_spill] sm:$0xff] }
 0x2d1   : > { %v2776_v38 = vmul.f32 %v7046_v24, %v2600_v12  ;;  %v2026_v48 = vmul.f32 %v7056_v42, %v5716_v37  ;;  %v3096_v6 = vmul.f32 1.03, %v3064_v26  ;;  %v7060_v2 = vsub.f32 1.0, %v7059_v8  ;;  %v7061_v51 = vld [vmem:[#allocation61_spill] sm:$0xff]  ;;  %v4398_v26 = vld [vmem:[%s4880_s14 + $0x38] sm:$0xff] }
 0x2d2   : > { %v2441_v41 = vmul.f32 %v7054_v18, %v2153_v19  ;;  %v2345_v54 = vmin.f32 %v2313_v43, 1.0  ;;  %v2569_v15 = vmul.f32 %v7058_v30, %v2249_v27  ;;  %v2968_v1 = vmin.f32 %v2936_v34, 1.0  ;;  %v4399_v18 = vld [vmem:[%s4880_s14 + $0x138] sm:$0xff] }
 0x2d3   : > { %v2122_v14 = vmul.f32 %v7060_v2, %v5716_v37  ;;  %v3192_v24 = vmul.f32 %v7051_v25, %v2776_v38  ;;  %v3224_v29 = vmul.f32 %v7052_v9, %v2776_v38  ;;  %v3128_v12 = vmin.f32 %v3096_v6, 1.0  ;;  %v7062_v25 = vld [vmem:[#allocation63_spill] sm:$0xff]  ;;  %v7063_v38 = vld [vmem:[#allocation62_spill] sm:$0xff] }
 0x2d4   : > { %v2473_v32 = vmin.f32 %v2441_v41, 1.0  ;;  %v2601_v7 = vmin.f32 %v2569_v15, 1.0  ;;  %v2713_v19 = vmul.f32 %v7061_v51, %v2345_v54  ;;  %v2058_v53 = vadd.f32 %v4398_v26, %v2026_v48 }
 0x2d5   : > { %v3000_v11 = vadd.f32 %v2968_v1, %v2872_v39  ;;  %v3256_v43 = vmin.f32 %v3224_v29, 1.0  ;;  %v2154_v55 = vadd.f32 %v4399_v18, %v2122_v14  ;;  %v3160_v42 = vadd.f32 %v3128_v12, %v3032_v56  ;;  %v7064_v14 = vld [vmem:[#allocation55_spill] sm:$0xff] }
 0x2d6   : > { %v2745_v27 = vmul.f32 %v7061_v51, %v2473_v32  ;;  %v2777_v34 = vmul.f32 %v7061_v51, %v2601_v7  ;;  %v2873_v9 = vmul.f32 %v7062_v25, %v2713_v19  ;;  %v2905_v41 = vmul.f32 %v7063_v38, %v2713_v19  ;;  %v7066_v29 = vld [vmem:[#allocation71_spill] sm:$0xff] }
 0x2d7   : > { %v3288_v6 = vadd.f32 %v3256_v43, %v3192_v24  ;;  %v3320_v31 = vmin.f32 %v3000_v11, 1.0  ;;  %v3384_v48 = vmin.f32 %v3160_v42, 1.0  ;;  %v7065_v1 = vsub.f32 1.05, %v7064_v14  ;;  %v7067_v51 = vld [vmem:[#allocation75_spill] sm:$0xff] }
 0x2d8   : > { %v3033_v54 = vmul.f32 %v7062_v25, %v2745_v27  ;;  %v3065_v39 = vmul.f32 %v7063_v38, %v2745_v27  ;;  %v2937_v30 = vmul.f32 1.05, %v2905_v41  ;;  %v3193_v15 = vmul.f32 %v7062_v25, %v2777_v34  ;;  %v4400_v43 = vld [vmem:[%s4880_s14 + $0x238] sm:$0xff] }
 0x2d9   : > { %v3225_v56 = vmul.f32 %v7063_v38, %v2777_v34  ;;  %3352 = vst [vmem:[%s5615_s13 + $0x28] sm:$0xff] %v3320_v31  ;;  %v3449_v8 = vmin.f32 %v3288_v6, 1.0  ;;  %v2218_v24 = vmul.f32 %v7065_v1, %v5716_v37  ;;  %v2314_v32 = vmul.f32 %v7066_v29, %v2058_v53  ;;  %3897 = vst [vmem:[%s5615_s13 + $0x128] sm:$0xff] %v3384_v48  ;;  %v7068_v53 = vld [vmem:[#allocation64_spill] sm:$0xff]  ;;  %v7075_v29 = vld [vmem:[#allocation77_spill] sm:$0xff] }
 0x2da   : > { %v3097_v2 = vmul.f32 1.03, %v3065_v39  ;;  %v2969_v12 = vmin.f32 %v2937_v30, 1.0  ;;  %v2442_v19 = vmul.f32 %v7067_v51, %v2154_v55  ;;  %v1111_v26 = vmul.f32 0.2, %v5601_v10  ;;  %v7070_v55 = vld [vmem:[#allocation72_spill] sm:$0xff] }
 0x2db   : > { %v3257_v7 = vmin.f32 %v3225_v56, 1.0  ;;  %3929 = vst [vmem:[%s5615_s13 + $0x228] sm:$0xff] %v3449_v8  ;;  %v2250_v27 = vadd.f32 %v4400_v43, %v2218_v24  ;;  %v2346_v18 = vmin.f32 %v2314_v32, 1.0  ;;  %v1112_v42 = vmul.f32 0.2, %v5604_v59  ;;  %v7072_v39 = vld [vmem:[#allocation74_spill] sm:$0xff] }
 0x2dc   : > { %v3129_v11 = vmin.f32 %v3097_v2, 1.0  ;;  %v3001_v34 = vadd.f32 %v2969_v12, %v2873_v9  ;;  %v2474_v37 = vmin.f32 %v2442_v19, 1.0  ;;  %v7069_v38 = vsub.f32 1.0, %v7068_v53  ;;  %v7073_v30 = vld [vmem:[#allocation66_spill] sm:$0xff]  ;;  %v7076_v32 = vld [vmem:[#allocation76_spill] sm:$0xff]  ;;  %v7077_v43 = vld [vmem:[#allocation67_spill] sm:$0xff] }
 0x2dd   : > { %v3289_v25 = vadd.f32 %v3257_v7, %v3193_v15  ;;  %v7071_v31 = vsub.f32 1.0, %v7070_v55  ;;  %v2714_v48 = vmul.f32 %v7072_v39, %v2346_v18  ;;  %v7074_v56 = vsub.f32 1.0, %v7073_v30  ;;  %v4401_v15 = vld [vmem:[%s4880_s14 + $0x40] sm:$0xff]  ;;  %v7079_v53 = vld [vmem:[#allocation70_spill] sm:$0xff] }
 0x2de   : > { %v2027_v41 = vmul.f32 %v7069_v38, %v1111_v26  ;;  %v3161_v6 = vadd.f32 %v3129_v11, %v3033_v54  ;;  %v3321_v2 = vmin.f32 %v3001_v34, 1.0  ;;  %v2746_v9 = vmul.f32 %v7072_v39, %v2474_v37  ;;  %v4402_v19 = vld [vmem:[%s4880_s14 + $0x140] sm:$0xff] }
 0x2df   : > { %v2570_v10 = vmul.f32 %v7071_v31, %v2250_v27  ;;  %v2123_v8 = vmul.f32 %v7074_v56, %v1111_v26  ;;  %v3450_v59 = vmin.f32 %v3289_v25, 1.0  ;;  %v2874_v54 = vmul.f32 %v7075_v29, %v2714_v48  ;;  %v4403_v55 = vld [vmem:[%s4880_s14 + $0x240] sm:$0xff] }
 0x2e0   : > { %v2059_v14 = vadd.f32 %v4401_v15, %v2027_v41  ;;  %v3385_v1 = vmin.f32 %v3161_v6, 1.0  ;;  %v2906_v12 = vmul.f32 %v7076_v32, %v2714_v48  ;;  %3353 = vst [vmem:[%s5615_s13 + $0x30] sm:$0xff] %v3321_v2  ;;  %v3034_v7 = vmul.f32 %v7075_v29, %v2746_v9  ;;  %v7081_v48 = vld [vmem:[#allocation73_spill] sm:$0xff]  ;;  %v7083_v15 = vld [vmem:[#allocation79_spill] sm:$0xff] }
 0x2e1   : > { %v2602_v24 = vmin.f32 %v2570_v10, 1.0  ;;  %3930 = vst [vmem:[%s5615_s13 + $0x230] sm:$0xff] %v3450_v59  ;;  %v3066_v51 = vmul.f32 %v7076_v32, %v2746_v9  ;;  %v2155_v11 = vadd.f32 %v4402_v19, %v2123_v8  ;;  %v7078_v27 = vsub.f32 1.05, %v7077_v43  ;;  %v5802_v59 = vpop.f32.mrb[19].mxu1  ;;  %v7085_v19 = vld [vmem:[#allocation82_spill] sm:$0xff] }
 0x2e2   : > { %3898 = vst [vmem:[%s5615_s13 + $0x130] sm:$0xff] %v3385_v1  ;;  %v2938_v25 = vmul.f32 1.05, %v2906_v12  ;;  %v2315_v37 = vmul.f32 %v5325_v28, %v2059_v14  ;;  %v7080_v38 = vsub.f32 1.0, %v7079_v53  ;;  %v7082_v30 = vsub.f32 1.0, %v7081_v48  ;;  %v4405_v43 = vld [vmem:[%s4880_s14 + $0x148] sm:$0xff] }
 0x2e3   : > { %v2219_v18 = vmul.f32 %v7078_v27, %v1111_v26  ;;  %v2778_v34 = vmul.f32 %v7072_v39, %v2602_v24  ;;  %v3098_v6 = vmul.f32 1.03, %v3066_v51  ;;  %v2443_v10 = vmul.f32 %v5333_v22, %v2155_v11  ;;  %v4404_v24 = vld [vmem:[%s4880_s14 + $0x48] sm:$0xff] }
 0x2e4   : > { %v2028_v41 = vmul.f32 %v7080_v38, %v1112_v42  ;;  %v2124_v56 = vmul.f32 %v7082_v30, %v1112_v42  ;;  %v2970_v26 = vmin.f32 %v2938_v25, 1.0  ;;  %v2347_v2 = vmin.f32 %v2315_v37, 1.0 }
 0x2e5   : > { %v2251_v31 = vadd.f32 %v4403_v55, %v2219_v18  ;;  %v3194_v8 = vmul.f32 %v7075_v29, %v2778_v34  ;;  %v3226_v39 = vmul.f32 %v7076_v32, %v2778_v34  ;;  %v3130_v28 = vmin.f32 %v3098_v6, 1.0  ;;  %v7086_v34 = vld [vmem:[#allocation78_spill] sm:$0xff]  ;;  %v7088_v6 = vld [vmem:[#allocation85_spill] sm:$0xff] }
 0x2e6   : > { %v2475_v9 = vmin.f32 %v2443_v10, 1.0  ;;  %v7084_v14 = vsub.f32 1.0, %v7083_v15  ;;  %v2060_v12 = vadd.f32 %v4404_v24, %v2028_v41  ;;  %v3002_v51 = vadd.f32 %v2970_v26, %v2874_v54  ;;  %v7089_v54 = vld [vmem:[#allocation84_spill] sm:$0xff]  ;;  %v4406_v26 = vld [vmem:[%s4880_s14 + $0x248] sm:$0xff]  ;;  %v7091_v15 = vld [vmem:[#allocation91_spill] sm:$0xff] }
 0x2e7   : > { %v3258_v22 = vmin.f32 %v3226_v39, 1.0  ;;  %v2715_v11 = vmul.f32 %v7085_v19, %v2347_v2  ;;  %v2156_v27 = vadd.f32 %v4405_v43, %v2124_v56  ;;  %v3162_v29 = vadd.f32 %v3130_v28, %v3034_v7 }
 0x2e8   : > { %v2571_v1 = vmul.f32 %v7084_v14, %v2251_v31  ;;  %v2747_v18 = vmul.f32 %v7085_v19, %v2475_v9  ;;  %v7087_v25 = vsub.f32 1.05, %v7086_v34  ;;  %v3322_v38 = vmin.f32 %v3002_v51, 1.0  ;;  %v7092_v51 = vld [vmem:[#allocation88_spill] sm:$0xff] }
 0x2e9   : > { %v3290_v53 = vadd.f32 %v3258_v22, %v3194_v8  ;;  %v2875_v41 = vmul.f32 %v7088_v6, %v2715_v11  ;;  %v2907_v55 = vmul.f32 %v7089_v54, %v2715_v11  ;;  %v3386_v31 = vmin.f32 %v3162_v29, 1.0 }
 0x2ea   : > { %v2603_v32 = vmin.f32 %v2571_v1, 1.0  ;;  %v2220_v37 = vmul.f32 %v7087_v25, %v1112_v42  ;;  %v3035_v48 = vmul.f32 %v7088_v6, %v2747_v18  ;;  %v3067_v7 = vmul.f32 %v7089_v54, %v2747_v18  ;;  %3354 = vst [vmem:[%s5615_s13 + $0x38] sm:$0xff] %v3322_v38  ;;  %v7090_v42 = vld [vmem:[#allocation87_spill] sm:$0xff]  ;;  %v7094_v25 = vld [vmem:[#allocation86_spill] sm:$0xff] }
 0x2eb   : > { %v3451_v30 = vmin.f32 %v3290_v53, 1.0  ;;  %v2939_v56 = vmul.f32 1.05, %v2907_v55  ;;  %v2316_v8 = vmul.f32 %v7090_v42, %v2060_v12  ;;  %3899 = vst [vmem:[%s5615_s13 + $0x138] sm:$0xff] %v3386_v31  ;;  %v2444_v14 = vmul.f32 %v7091_v15, %v2156_v27  ;;  %v7095_v53 = vld [vmem:[#allocation80_spill] sm:$0xff]  ;;  %v7097_v31 = vld [vmem:[#allocation81_spill] sm:$0xff] }
 0x2ec   : > { %v2779_v10 = vmul.f32 %v7085_v19, %v2603_v32  ;;  %v2252_v39 = vadd.f32 %v4406_v26, %v2220_v37  ;;  %v3099_v2 = vmul.f32 1.03, %v3067_v7  ;;  %v7093_v22 = vsub.f32 1.0, %v7092_v51  ;;  %v5835_v7 = vpop.f32.mrb[20].mxu1  ;;  %v7100_v26 = vld [vmem:[#allocation89_spill] sm:$0xff]  ;;  %v4408_v51 = vld [vmem:[%s4880_s14 + $0x150] sm:$0xff] }
 0x2ed   : > { %3931 = vst [vmem:[%s5615_s13 + $0x238] sm:$0xff] %v3451_v30  ;;  %v2971_v1 = vmin.f32 %v2939_v56, 1.0  ;;  %v2348_v24 = vmin.f32 %v2316_v8, 1.0  ;;  %v1113_v11 = vmul.f32 0.2, %v5608_v16  ;;  %v2476_v32 = vmin.f32 %v2444_v14, 1.0 }
 0x2ee   : > { %v3195_v28 = vmul.f32 %v7088_v6, %v2779_v10  ;;  %v3227_v9 = vmul.f32 %v7089_v54, %v2779_v10  ;;  %v2572_v19 = vmul.f32 %v7093_v22, %v2252_v39  ;;  %v3131_v43 = vmin.f32 %v3099_v2, 1.0  ;;  %v7099_v30 = vld [vmem:[#allocation90_spill] sm:$0xff] }
 0x2ef   : > { %v1114_v12 = vmul.f32 0.2, %v5610_v40  ;;  %v3003_v18 = vadd.f32 %v2971_v1, %v2875_v41  ;;  %v2716_v37 = vmul.f32 %v7094_v25, %v2348_v24  ;;  %v7096_v27 = vsub.f32 1.0, %v7095_v53  ;;  %v4407_v14 = vld [vmem:[%s4880_s14 + $0x50] sm:$0xff]  ;;  %v7104_v53 = vld [vmem:[#allocation92_spill] sm:$0xff] }
 0x2f0   : > { %v3259_v29 = vmin.f32 %v3227_v9, 1.0  ;;  %v2604_v34 = vmin.f32 %v2572_v19, 1.0  ;;  %v3163_v6 = vadd.f32 %v3131_v43, %v3035_v48  ;;  %v2748_v55 = vmul.f32 %v7094_v25, %v2476_v32  ;;  %v7101_v19 = vld [vmem:[#allocation83_spill] sm:$0xff] }
 0x2f1   : > { %v2029_v38 = vmul.f32 %v7096_v27, %v1113_v11  ;;  %v7098_v16 = vsub.f32 1.0, %v7097_v31  ;;  %v3323_v40 = vmin.f32 %v3003_v18, 1.0  ;;  %v2876_v56 = vmul.f32 %v7099_v30, %v2716_v37  ;;  %v7106_v31 = vld [vmem:[#allocation106_spill] sm:$0xff] }
 0x2f2   : > { %v3291_v54 = vadd.f32 %v3259_v29, %v3195_v28  ;;  %v2780_v41 = vmul.f32 %v7094_v25, %v2604_v34  ;;  %v2908_v39 = vmul.f32 %v7100_v26, %v2716_v37  ;;  %v3387_v48 = vmin.f32 %v3163_v6, 1.0 }
 0x2f3   : > { %v2125_v10 = vmul.f32 %v7098_v16, %v1113_v11  ;;  %v3036_v8 = vmul.f32 %v7099_v30, %v2748_v55  ;;  %v3068_v2 = vmul.f32 %v7100_v26, %v2748_v55  ;;  %3355 = vst [vmem:[%s5615_s13 + $0x40] sm:$0xff] %v3323_v40  ;;  %v2061_v1 = vadd.f32 %v4407_v14, %v2029_v38 }
 0x2f4   : > { %v3452_v42 = vmin.f32 %v3291_v54, 1.0  ;;  %v2940_v28 = vmul.f32 1.05, %v2908_v39  ;;  %v3196_v9 = vmul.f32 %v7099_v30, %v2780_v41  ;;  %v3228_v15 = vmul.f32 %v7100_v26, %v2780_v41  ;;  %3900 = vst [vmem:[%s5615_s13 + $0x140] sm:$0xff] %v3387_v48  ;;  %v4409_v54 = vld [vmem:[%s4880_s14 + $0x250] sm:$0xff] }
 0x2f5   : > { %v3100_v24 = vmul.f32 1.03, %v3068_v2  ;;  %v2157_v22 = vadd.f32 %v4408_v51, %v2125_v10  ;;  %v7102_v43 = vsub.f32 1.05, %v7101_v19  ;;  %v7103_v32 = vsub.f32 1.0, %v5378_v0  ;;  %v4410_v10 = vld [vmem:[%s4880_s14 + $0x58] sm:$0xff] }
 0x2f6   : > { %3932 = vst [vmem:[%s5615_s13 + $0x240] sm:$0xff] %v3452_v42  ;;  %v2972_v34 = vmin.f32 %v2940_v28, 1.0  ;;  %v3260_v25 = vmin.f32 %v3228_v15, 1.0  ;;  %v2317_v37 = vmul.f32 %v5434_v46, %v2061_v1  ;;  %v7105_v27 = vsub.f32 1.0, %v7104_v53  ;;  %v4411_v0 = vld [vmem:[%s4880_s14 + $0x158] sm:$0xff]  ;;  %v7107_v48 = vld [vmem:[#allocation98_spill] sm:$0xff] }
 0x2f7   : > { %v2221_v29 = vmul.f32 %v7102_v43, %v1113_v11  ;;  %v2030_v18 = vmul.f32 %v7103_v32, %v1114_v12  ;;  %v3132_v6 = vmin.f32 %v3100_v24, 1.0  ;;  %v2445_v16 = vmul.f32 %v7106_v31, %v2157_v22  ;;  %v7109_v28 = vld [vmem:[#allocation93_spill] sm:$0xff]  ;;  %v7111_v51 = vld [vmem:[#allocation94_spill] sm:$0xff]  ;;  %v7112_v32 = vld [vmem:[#allocation99_spill] sm:$0xff] }
 0x2f8   : > { %v2126_v38 = vmul.f32 %v7105_v27, %v1114_v12  ;;  %v3004_v41 = vadd.f32 %v2972_v34, %v2876_v56  ;;  %v3292_v11 = vadd.f32 %v3260_v25, %v3196_v9  ;;  %v2349_v30 = vmin.f32 %v2317_v37, 1.0  ;;  %v7113_v34 = vld [vmem:[#allocation97_spill] sm:$0xff]  ;;  %v7115_v31 = vld [vmem:[#allocation100_spill] sm:$0xff] }
 0x2f9   : > { %v2253_v55 = vadd.f32 %v4409_v54, %v2221_v29  ;;  %v2062_v40 = vadd.f32 %v4410_v10, %v2030_v18  ;;  %v3164_v39 = vadd.f32 %v3132_v6, %v3036_v8  ;;  %v2477_v46 = vmin.f32 %v2445_v16, 1.0  ;;  %v4412_v29 = vld [vmem:[%s4880_s14 + $0x258] sm:$0xff] }
 0x2fa   : > { %v2158_v26 = vadd.f32 %v4411_v0, %v2126_v38  ;;  %v7108_v42 = vsub.f32 1.0, %v7107_v48  ;;  %v7110_v15 = vsub.f32 1.05, %v7109_v28  ;;  %v3324_v1 = vmin.f32 %v3004_v41, 1.0  ;;  %v7118_v28 = vld [vmem:[#allocation95_spill] sm:$0xff] }
 0x2fb   : > { %v3453_v24 = vmin.f32 %v3292_v11, 1.0  ;;  %v2717_v56 = vmul.f32 %v7111_v51, %v2349_v30  ;;  %v2318_v9 = vmul.f32 %v5449_v60, %v2062_v40  ;;  %v3388_v22 = vmin.f32 %v3164_v39, 1.0 }
 0x2fc   : > { %v2573_v2 = vmul.f32 %v7108_v42, %v2253_v55  ;;  %v2222_v14 = vmul.f32 %v7110_v15, %v1114_v12  ;;  %v2749_v43 = vmul.f32 %v7111_v51, %v2477_v46  ;;  %3356 = vst [vmem:[%s5615_s13 + $0x48] sm:$0xff] %v3324_v1  ;;  %v2446_v37 = vmul.f32 %v5451_v61, %v2158_v26  ;;  %v7116_v26 = vld [vmem:[#allocation103_spill] sm:$0xff]  ;;  %v7117_v46 = vld [vmem:[#allocation102_spill] sm:$0xff] }
 0x2fd   : > { %3933 = vst [vmem:[%s5615_s13 + $0x248] sm:$0xff] %v3453_v24  ;;  %v2877_v18 = vmul.f32 %v7112_v32, %v2717_v56  ;;  %v2909_v25 = vmul.f32 %v7113_v34, %v2717_v56  ;;  %v2350_v12 = vmin.f32 %v2318_v9, 1.0  ;;  %3901 = vst [vmem:[%s5615_s13 + $0x148] sm:$0xff] %v3388_v22  ;;  %v7114_v38 = vsub.f32 1.0, %v5441_v45 }
 0x2fe   : > { %v2605_v19 = vmin.f32 %v2573_v2, 1.0  ;;  %v2254_v8 = vadd.f32 %v4412_v29, %v2222_v14  ;;  %v3037_v60 = vmul.f32 %v7112_v32, %v2749_v43  ;;  %v3069_v27 = vmul.f32 %v7113_v34, %v2749_v43 }
 0x2ff   : > { %v2941_v54 = vmul.f32 1.05, %v2909_v25  ;;  %v2478_v55 = vmin.f32 %v2446_v37, 1.0  ;;  %v2718_v16 = vmul.f32 %v7115_v31, %v2350_v12  ;;  %v1115_v10 = vmul.f32 0.2, %v5635_v50  ;;  %v7120_v37 = vld [vmem:[#allocation96_spill] sm:$0xff] }
 0x300   : > { %v2781_v53 = vmul.f32 %v7111_v51, %v2605_v19  ;;  %v2574_v6 = vmul.f32 %v7114_v38, %v2254_v8  ;;  %v3101_v40 = vmul.f32 1.03, %v3069_v27  ;;  %v7119_v50 = vsub.f32 1.0, %v7118_v28 }
 0x301   : > { %v2973_v30 = vmin.f32 %v2941_v54, 1.0  ;;  %v2750_v0 = vmul.f32 %v7115_v31, %v2478_v55  ;;  %v2878_v39 = vmul.f32 %v7116_v26, %v2718_v16  ;;  %v2910_v45 = vmul.f32 %v7117_v46, %v2718_v16 }
 0x302   : > { %v3197_v41 = vmul.f32 %v7112_v32, %v2781_v53  ;;  %v3229_v61 = vmul.f32 %v7113_v34, %v2781_v53  ;;  %v2606_v11 = vmin.f32 %v2574_v6, 1.0  ;;  %v3133_v48 = vmin.f32 %v3101_v40, 1.0  ;;  %v4413_v32 = vld [vmem:[%s4880_s14 + $0x60] sm:$0xff]  ;;  %v7122_v6 = vld [vmem:[#allocation101_spill] sm:$0xff] }
 0x303   : > { %v2031_v15 = vmul.f32 %v7119_v50, %v1115_v10  ;;  %v3005_v14 = vadd.f32 %v2973_v30, %v2877_v18  ;;  %v2942_v1 = vmul.f32 1.05, %v2910_v45  ;;  %v3038_v24 = vmul.f32 %v7116_v26, %v2750_v0  ;;  %v4414_v40 = vld [vmem:[%s4880_s14 + $0x160] sm:$0xff] }
 0x304   : > { %v3261_v42 = vmin.f32 %v3229_v61, 1.0  ;;  %v2782_v2 = vmul.f32 %v7115_v31, %v2606_v11  ;;  %v3070_v51 = vmul.f32 %v7117_v46, %v2750_v0  ;;  %v3165_v56 = vadd.f32 %v3133_v48, %v3037_v60 }
 0x305   : > { %v3325_v43 = vmin.f32 %v3005_v14, 1.0  ;;  %v2974_v29 = vmin.f32 %v2942_v1, 1.0  ;;  %v2063_v18 = vadd.f32 %v4413_v32, %v2031_v15  ;;  %v7121_v53 = vsub.f32 1.0, %v7120_v37  ;;  %v7128_v15 = vld [vmem:[#allocation109_spill] sm:$0xff] }
 0x306   : > { %v3293_v9 = vadd.f32 %v3261_v42, %v3197_v41  ;;  %v3198_v22 = vmul.f32 %v7116_v26, %v2782_v2  ;;  %v3230_v19 = vmul.f32 %v7117_v46, %v2782_v2  ;;  %v3102_v8 = vmul.f32 1.03, %v3070_v51  ;;  %v4415_v26 = vld [vmem:[%s4880_s14 + $0x260] sm:$0xff]  ;;  %v7129_v1 = vld [vmem:[#allocation105_spill] sm:$0xff] }
 0x307   : > { %v3389_v34 = vmin.f32 %v3165_v56, 1.0  ;;  %v2127_v60 = vmul.f32 %v7121_v53, %v1115_v10  ;;  %3357 = vst [vmem:[%s5615_s13 + $0x50] sm:$0xff] %v3325_v43  ;;  %v3006_v27 = vadd.f32 %v2974_v29, %v2878_v39  ;;  %v7123_v54 = vsub.f32 1.05, %v7122_v6  ;;  %v7125_v42 = vld [vmem:[#allocation104_spill] sm:$0xff]  ;;  %v4418_v32 = vld [vmem:[%s4880_s14 + $0x268] sm:$0xff] }
 0x308   : > { %v3454_v25 = vmin.f32 %v3293_v9, 1.0  ;;  %v3262_v12 = vmin.f32 %v3230_v19, 1.0  ;;  %v3134_v38 = vmin.f32 %v3102_v8, 1.0  ;;  %v2319_v31 = vmul.f32 %v5510_v63, %v2063_v18  ;;  %v7131_v8 = vld [vmem:[#allocation111_spill] sm:$0xff]  ;;  %v5930_v53 = vpop.f32.mrb[21].mxu1  ;;  %v7133_v6 = vld [vmem:[#allocation108_spill] sm:$0xff] }
 0x309   : > { %v2223_v55 = vmul.f32 %v7123_v54, %v1115_v10  ;;  %3902 = vst [vmem:[%s5615_s13 + $0x150] sm:$0xff] %v3389_v34  ;;  %v2159_v41 = vadd.f32 %v4414_v40, %v2127_v60  ;;  %v1116_v61 = vmul.f32 0.2, %v5645_v21  ;;  %v5905_v11 = vmul.f32 0.2, %v5649_v4 }
 0x30a   : > { %3934 = vst [vmem:[%s5615_s13 + $0x250] sm:$0xff] %v3454_v25  ;;  %v3294_v16 = vadd.f32 %v3262_v12, %v3198_v22  ;;  %v3166_v30 = vadd.f32 %v3134_v38, %v3038_v24  ;;  %v3326_v0 = vmin.f32 %v3006_v27, 1.0  ;;  %v2351_v39 = vmin.f32 %v2319_v31, 1.0 }
 0x30b   : > { %v2255_v10 = vadd.f32 %v4415_v26, %v2223_v55  ;;  %v2447_v46 = vmul.f32 %v5512_v36, %v2159_v41  ;;  %v7124_v45 = vsub.f32 1.0, %v5422_v58  ;;  %v7126_v21 = vsub.f32 1.0, %v7125_v42  ;;  %v4416_v36 = vld [vmem:[%s4880_s14 + $0x68] sm:$0xff]  ;;  %v7136_v42 = vld [vmem:[#allocation110_spill] sm:$0xff] }
 0x30c   : > { %v3455_v63 = vmin.f32 %v3294_v16, 1.0  ;;  %3358 = vst [vmem:[%s5615_s13 + $0x58] sm:$0xff] %v3326_v0  ;;  %v3390_v4 = vmin.f32 %v3166_v30, 1.0  ;;  %v7127_v28 = vsub.f32 1.0, %v5488_v17  ;;  %v2719_v14 = vmul.f32 %v7128_v15, %v2351_v39  ;;  %v4417_v58 = vld [vmem:[%s4880_s14 + $0x168] sm:$0xff]  ;;  %v4419_v39 = vld [vmem:[%s4880_s14 + $0x70] sm:$0xff] }
 0x30d   : > { %v2032_v48 = vmul.f32 %v7124_v45, %v1116_v61  ;;  %v2128_v2 = vmul.f32 %v7126_v21, %v1116_v61  ;;  %v7130_v24 = vsub.f32 1.05, %v7129_v1  ;;  %v2479_v56 = vmin.f32 %v2447_v46, 1.0  ;;  %v7135_v26 = vld [vmem:[#allocation113_spill] sm:$0xff] }
 0x30e   : > { %v2575_v50 = vmul.f32 %v7127_v28, %v2255_v10  ;;  %3935 = vst [vmem:[%s5615_s13 + $0x258] sm:$0xff] %v3455_v63  ;;  %v1643_v19 = vadd.f32 0.5, %v5627_v44  ;;  %3903 = vst [vmem:[%s5615_s13 + $0x158] sm:$0xff] %v3390_v4  ;;  %v2879_v29 = vmul.f32 %v5476_v52, %v2719_v14  ;;  %v2911_v17 = vmul.f32 %v7131_v8, %v2719_v14 }
 0x30f   : > { %v2224_v51 = vmul.f32 %v7130_v24, %v1116_v61  ;;  %v2064_v9 = vadd.f32 %v4416_v36, %v2032_v48  ;;  %v2160_v22 = vadd.f32 %v4417_v58, %v2128_v2  ;;  %v2751_v34 = vmul.f32 %v7128_v15, %v2479_v56  ;;  %v5949_v2 = vpop.f32.mrb[22].mxu1 }
 0x310   : > { %v2607_v43 = vmin.f32 %v2575_v50, 1.0  ;;  %v1675_v37 = vmul.f32 0.1, %v1643_v19  ;;  %v2943_v60 = vmul.f32 1.05, %v2911_v17  ;;  %v7132_v27 = vsub.f32 1.0, %v5501_v5 }
 0x311   : > { %v2256_v18 = vadd.f32 %v4418_v32, %v2224_v51  ;;  %v2320_v25 = vmul.f32 %v5515_v35, %v2064_v9  ;;  %v2448_v12 = vmul.f32 %v5521_v20, %v2160_v22  ;;  %v7134_v54 = vsub.f32 1.0, %v7133_v6  ;;  %v7138_v50 = vld [vmem:[#allocation115_spill] sm:$0xff]  ;;  %v4420_v22 = vld [vmem:[%s4880_s14 + $0x170] sm:$0xff] }
 0x312   : > { %v2783_v44 = vmul.f32 %v7128_v15, %v2607_v43  ;;  %v3039_v31 = vmul.f32 %v5476_v52, %v2751_v34  ;;  %v3071_v35 = vmul.f32 %v7131_v8, %v2751_v34  ;;  %v2975_v40 = vmin.f32 %v2943_v60, 1.0  ;;  %v4421_v60 = vld [vmem:[%s4880_s14 + $0x270] sm:$0xff] }
 0x313   : > { %v2576_v38 = vmul.f32 %v7132_v27, %v2256_v18  ;;  %v2033_v55 = vmul.f32 %v7134_v54, %v5905_v11  ;;  %v2352_v16 = vmin.f32 %v2320_v25, 1.0  ;;  %v2480_v20 = vmin.f32 %v2448_v12, 1.0 }
 0x314   : > { %v3199_v41 = vmul.f32 %v5476_v52, %v2783_v44  ;;  %v3231_v61 = vmul.f32 %v7131_v8, %v2783_v44  ;;  %v3103_v0 = vmul.f32 1.03, %v3071_v35  ;;  %v3007_v46 = vadd.f32 %v2975_v40, %v2879_v29  ;;  %v7139_v8 = vld [vmem:[#allocation112_spill] sm:$0xff] }
 0x315   : > { %v2608_v30 = vmin.f32 %v2576_v38, 1.0  ;;  %v2720_v5 = vmul.f32 %v7135_v26, %v2352_v16  ;;  %v2752_v10 = vmul.f32 %v7135_v26, %v2480_v20  ;;  %v2065_v63 = vadd.f32 %v4419_v39, %v2033_v55 }
 0x316   : > { %v3263_v45 = vmin.f32 %v3231_v61, 1.0  ;;  %v7137_v21 = vsub.f32 1.0, %v7136_v42  ;;  %v3135_v4 = vmin.f32 %v3103_v0, 1.0  ;;  %v3327_v24 = vmin.f32 %v3007_v46, 1.0  ;;  %v7141_v0 = vld [vmem:[#allocation119_spill] sm:$0xff] }
 0x317   : > { %v2784_v48 = vmul.f32 %v7135_v26, %v2608_v30  ;;  %v2880_v28 = vmul.f32 %v5492_v13, %v2720_v5  ;;  %v2912_v15 = vmul.f32 %v7138_v50, %v2720_v5  ;;  %v3040_v14 = vmul.f32 %v5492_v13, %v2752_v10  ;;  %v7142_v5 = vld [vmem:[#allocation120_spill] sm:$0xff] }
 0x318   : > { %v2129_v52 = vmul.f32 %v7137_v21, %v5905_v11  ;;  %v3295_v1 = vadd.f32 %v3263_v45, %v3199_v41  ;;  %v3072_v51 = vmul.f32 %v7138_v50, %v2752_v10  ;;  %v3167_v36 = vadd.f32 %v3135_v4, %v3039_v31  ;;  %3359 = vst [vmem:[%s5615_s13 + $0x60] sm:$0xff] %v3327_v24  ;;  %v7147_v21 = vld [vmem:[#allocation118_spill] sm:$0xff] }
 0x319   : > { %v3200_v56 = vmul.f32 %v5492_v13, %v2784_v48  ;;  %v2944_v9 = vmul.f32 1.05, %v2912_v15  ;;  %v3232_v58 = vmul.f32 %v7138_v50, %v2784_v48  ;;  %v7140_v17 = vsub.f32 1.05, %v7139_v8  ;;  %v7145_v48 = vld [vmem:[#allocation117_spill] sm:$0xff] }
 0x31a   : > { %v2161_v19 = vadd.f32 %v4420_v22, %v2129_v52  ;;  %v3456_v43 = vmin.f32 %v3295_v1, 1.0  ;;  %v3104_v29 = vmul.f32 1.03, %v3072_v51  ;;  %v2289_v18 = vadd.f32 1.0, %v1675_v37  ;;  %v7149_v50 = vld [vmem:[#allocation121_spill] sm:$0xff]  ;;  %v4422_v1 = vld [vmem:[%s4901_s25 + $0x38] sm:$0xff] }
 0x31b   : > { %v2225_v32 = vmul.f32 %v7140_v17, %v5905_v11  ;;  %v3391_v34 = vmin.f32 %v3167_v36, 1.0  ;;  %v2976_v25 = vmin.f32 %v2944_v9, 1.0  ;;  %v3264_v12 = vmin.f32 %v3232_v58, 1.0  ;;  %v4423_v58 = vld [vmem:[%s4880_s14 + $0x78] sm:$0xff] }
 0x31c   : > { %v2385_v13 = vmul.f32 0.3, %v1675_v37  ;;  %3936 = vst [vmem:[%s5615_s13 + $0x260] sm:$0xff] %v3456_v43  ;;  %v3136_v44 = vmin.f32 %v3104_v29, 1.0  ;;  %v2321_v38 = vmul.f32 %v2289_v18, %v2065_v63  ;;  %v2513_v6 = vmul.f32 0.2, %v1675_v37 }
 0x31d   : > { %v2257_v27 = vadd.f32 %v4421_v60, %v2225_v32  ;;  %3904 = vst [vmem:[%s5615_s13 + $0x160] sm:$0xff] %v3391_v34  ;;  %v3008_v54 = vadd.f32 %v2976_v25, %v2880_v28  ;;  %v3296_v55 = vadd.f32 %v3264_v12, %v3200_v56  ;;  %v1118_v35 = vmul.f32 0.2, %v5654_v33  ;;  %v7143_v63 = vld [vmem:[#allocation116_spill] sm:$0xff]  ;;  %v7150_v56 = vld [vmem:[#allocation122_spill] sm:$0xff]  ;;  %v4424_v32 = vld [vmem:[%s4880_s14 + $0x178] sm:$0xff] }
 0x31e   : > { %v2417_v31 = vadd.f32 1.0, %v2385_v13  ;;  %v3168_v11 = vadd.f32 %v3136_v44, %v3040_v14  ;;  %v2353_v16 = vmin.f32 %v2321_v38, 1.0  ;;  %v2545_v20 = vsub.f32 1.0, %v2513_v6  ;;  %v4425_v34 = vld [vmem:[%s4880_s14 + $0x278] sm:$0xff] }
 0x31f   : > { %v1612_v40 = vmul.f32 0.5, %v5578_v57  ;;  %v3328_v41 = vmin.f32 %v3008_v54, 1.0  ;;  %v3457_v61 = vmin.f32 %v3296_v55, 1.0  ;;  %4283 = vrsqrt.f32 %v7141_v0 }
 0x320   : > { %v2449_v30 = vmul.f32 %v2417_v31, %v2161_v19  ;;  %v3392_v37 = vmin.f32 %v3168_v11, 1.0  ;;  %v2577_v26 = vmul.f32 %v2545_v20, %v2257_v27  ;;  %v2721_v10 = vmul.f32 %v7142_v5, %v2353_v16 }
 0x321   : > { %v1644_v39 = vadd.f32 0.5, %v1612_v40  ;;  %3360 = vst [vmem:[%s5615_s13 + $0x68] sm:$0xff] %v3328_v41  ;;  %3937 = vst [vmem:[%s5615_s13 + $0x268] sm:$0xff] %v3457_v61  ;;  %v7144_v46 = vsub.f32 1.0, %v7143_v63  ;;  %v7146_v57 = vsub.f32 1.0, %v7145_v48  ;;  %v2658_v24 = vunpack.c.h.bf16 %v4422_v1 }
 0x322   : > { %v2481_v33 = vmin.f32 %v2449_v30, 1.0  ;;  %v7148_v52 = vsub.f32 1.05, %v7147_v21  ;;  %3905 = vst [vmem:[%s5615_s13 + $0x168] sm:$0xff] %v3392_v37  ;;  %v2609_v28 = vmin.f32 %v2577_v26, 1.0  ;;  %v2913_v15 = vmul.f32 %v7149_v50, %v2721_v10 }
 0x323   : > { %v2034_v45 = vmul.f32 %v7144_v46, %v1118_v35  ;;  %v2130_v42 = vmul.f32 %v7146_v57, %v1118_v35  ;;  %v1676_v14 = vmul.f32 0.1, %v1644_v39  ;;  %v2881_v36 = vmul.f32 %v7150_v56, %v2721_v10  ;;  %v5994_v46 = vpop.f32.mrb[23].mxu1 }
 0x324   : > { %v2226_v4 = vmul.f32 %v7148_v52, %v1118_v35  ;;  %v2753_v51 = vmul.f32 %v7142_v5, %v2481_v33  ;;  %v1872_v9 = vmul.f32 0.15, %v5569_v62  ;;  %v2785_v19 = vmul.f32 %v7142_v5, %v2609_v28  ;;  %v7151_v5 = vld [vmem:[#allocation114_spill] sm:$0xff] }
 0x325   : > { %v2066_v22 = vadd.f32 %v4423_v58, %v2034_v45  ;;  %v2945_v43 = vmul.f32 1.05, %v2913_v15  ;;  %v2290_v29 = vadd.f32 1.0, %v1676_v14  ;;  %v2386_v8 = vmul.f32 0.3, %v1676_v14 }
 0x326   : > { %v3073_v17 = vmul.f32 %v7149_v50, %v2753_v51  ;;  %v2162_v18 = vadd.f32 %v4424_v32, %v2130_v42  ;;  %v2258_v25 = vadd.f32 %v4425_v34, %v2226_v4  ;;  %v2514_v12 = vmul.f32 0.2, %v1676_v14 }
 0x327   : > { %v2977_v13 = vmin.f32 %v2945_v43, 1.0  ;;  %v3233_v44 = vmul.f32 %v7149_v50, %v2785_v19  ;;  %v2322_v60 = vmul.f32 %v2290_v29, %v2066_v22  ;;  %v2690_v27 = vsub.f32 1.0, %v2658_v24  ;;  %v7152_v50 = vld [vmem:[#allocation107_spill] sm:$0xff]  ;;  %v7153_v24 = vld [vmem:[#allocation24_spill] sm:$0xff] }
 0x328   : > { %v3105_v62 = vmul.f32 1.03, %v3073_v17  ;;  %v3201_v38 = vmul.f32 %v7150_v56, %v2785_v19  ;;  %v2418_v6 = vadd.f32 1.0, %v2386_v8  ;;  %v2546_v54 = vsub.f32 1.0, %v2514_v12  ;;  %v7154_v17 = vld [vmem:[#allocation28_spill] sm:$0xff] }
 0x329   : > { %v3009_v55 = vadd.f32 %v2977_v13, %v2881_v36  ;;  %v3265_v31 = vmin.f32 %v3233_v44, 1.0  ;;  %v2354_v35 = vmin.f32 %v2322_v60, 1.0  ;;  %v2818_v11 = vadd.f32 1.0, %v1872_v9  ;;  %v4284_v16 = vpop.eup %4283  ;;  %v7155_v60 = vld [vmem:[#allocation25_spill] sm:$0xff] }
 0x32a   : > { %v3041_v20 = vmul.f32 %v7150_v56, %v2753_v51  ;;  %v3137_v40 = vmin.f32 %v3105_v62, 1.0  ;;  %v2450_v41 = vmul.f32 %v2418_v6, %v2162_v18  ;;  %v2578_v61 = vmul.f32 %v2546_v54, %v2258_v25  ;;  %v1905_v54 = vld [vmem:[%s4880_s14 + $0x80] sm:$0xff] }
 0x32b   : > { %v3297_v30 = vadd.f32 %v3265_v31, %v3201_v38  ;;  %v3329_v37 = vmin.f32 %v3009_v55, 1.0  ;;  %v2722_v26 = vmul.f32 %v2690_v27, %v2354_v35  ;;  %v1390_v10 = vmul.f32 %v5560_v47, %v7151_v5  ;;  %v3844_v31 = vld [vmem:[%s4880_s14 + $0x180] sm:$0xff] }
 0x32c   : > { %v3169_v39 = vadd.f32 %v3137_v40, %v3041_v20  ;;  %v2482_v33 = vmin.f32 %v2450_v41, 1.0  ;;  %v2610_v63 = vmin.f32 %v2578_v61, 1.0  ;;  %vm1391_vm0 = vcmp.eq.f32.partialorder %v7151_v5, inf  ;;  %v7156_v40 = vld [vmem:[#allocation29_spill] sm:$0xff] }
 0x32d   : > { %3361 = vst [vmem:[%s5615_s13 + $0x70] sm:$0xff] %v3329_v37  ;;  %v3458_v45 = vmin.f32 %v3297_v30, 1.0  ;;  %v2850_v48 = vsub.f32 1.0, %v1872_v9  ;;  %v2914_v57 = vmul.f32 %v2818_v11, %v2722_v26  ;;  %v1392_v42 = vsel %vm1391_vm0, %v7151_v5, %v1390_v10 }
 0x32e   : > { %v3393_v21 = vmin.f32 %v3169_v39, 1.0  ;;  %v2754_v52 = vmul.f32 %v2690_v27, %v2482_v33  ;;  %v2786_v4 = vmul.f32 %v2690_v27, %v2610_v63  ;;  %vm1393_vm1 = vcmp.eq.f32.partialorder %v7151_v5, 0.0  ;;  %v1906_v39 = vld [vmem:[%s4880_s14 + $0x88] sm:$0xff]  ;;  %v6020_v33 = vpop.f32.mrb[24].mxu1 }
 0x32f   : > { %3938 = vst [vmem:[%s5615_s13 + $0x270] sm:$0xff] %v3458_v45  ;;  %v2946_v47 = vmul.f32 1.05, %v2914_v57  ;;  %v1394_v28 = vand.u32 2147483648, %v7151_v5  ;;  %v3820_v15 = vadd.f32 0.25, %v7152_v50  ;;  %v1146_v51 = vadd.s32 72, %v7153_v24 }
 0x330   : > { %3906 = vst [vmem:[%s5615_s13 + $0x170] sm:$0xff] %v3393_v21  ;;  %v3074_v14 = vmul.f32 %v2818_v11, %v2754_v52  ;;  %v3234_v1 = vmul.f32 %v2818_v11, %v2786_v4  ;;  %v2882_v56 = vmul.f32 %v2850_v48, %v2722_v26  ;;  %v3202_v19 = vmul.f32 %v2850_v48, %v2786_v4  ;;  %v3876_v11 = vld [vmem:[%s4880_s14 + $0x280] sm:$0xff]  ;;  %v3845_v57 = vld [vmem:[%s4880_s14 + $0x188] sm:$0xff] }
 0x331   : > { %v2978_v36 = vmin.f32 %v2946_v47, 1.0  ;;  %v1395_v9 = vsel %vm1393_vm1, %v1394_v28, %v1392_v42  ;;  %v1721_v58 = vmul.f32 %v3820_v15, %v3820_v15  ;;  %v3042_v18 = vmul.f32 %v2850_v48, %v2754_v52  ;;  %v3877_v42 = vld [vmem:[%s4880_s14 + $0x288] sm:$0xff]  ;;  %v2635_v4 = vld [vmem:[%s4901_s25 + $0x40] sm:$0xff] }
 0x332   : > { %v3106_v22 = vmul.f32 1.03, %v3074_v14  ;;  %v3266_v43 = vmin.f32 %v3234_v1, 1.0  ;;  %v1517_v29 = vmul.f32 -2.0, %v1395_v9  ;;  %v1163_v27 = vadd.s32 %v7155_v60, %v1146_v51 }
 0x333   : > { %v3010_v8 = vadd.f32 %v2978_v36, %v2882_v56  ;;  %v1745_v32 = vadd.f32 %v1721_v58, %v7154_v17  ;;  %v1397_v35 = vmul.f32 %v4284_v16, %v7141_v0  ;;  %vm1398_vm2 = vcmp.eq.f32.partialorder %v7141_v0, inf }
 0x334   : > { %v3138_v34 = vmin.f32 %v3106_v22, 1.0  ;;  %v3298_v25 = vadd.f32 %v3266_v43, %v3202_v19  ;;  %v1565_v12 = vmul.f32 1.442695, %v1517_v29  ;;  %vm1400_vm3 = vcmp.eq.f32.partialorder %v7141_v0, 0.0 }
 0x335   : > { %v3330_v13 = vmin.f32 %v3010_v8, 1.0  ;;  %v1777_v44 = vmul.f32 -1.3888888, %v1745_v32  ;;  %v1401_v20 = vand.u32 2147483648, %v7141_v0  ;;  %v1746_v41 = vadd.f32 %v1721_v58, %v7156_v40  ;;  %v7157_v8 = vld [vmem:[#allocation26_spill] sm:$0xff] }
 0x336   : > { %v3170_v62 = vadd.f32 %v3138_v34, %v3042_v18  ;;  %v3459_v38 = vmin.f32 %v3298_v25, 1.0  ;;  %4285 = vpow2.f32 %v1565_v12  ;;  %v1179_v61 = vcvt.s32.f32 %v1163_v27  ;;  %v7158_v18 = vld [vmem:[#allocation27_spill] sm:$0xff] }
 0x337   : > { %3362 = vst [vmem:[%s5615_s13 + $0x78] sm:$0xff] %v3330_v13  ;;  %v1825_v6 = vmul.f32 1.442695, %v1777_v44  ;;  %v1119_v30 = vmul.f32 0.2, %v5671_v3  ;;  %v2003_v37 = vsub.f32 1.0, %v1905_v54  ;;  %v1399_v16 = vsel %vm1398_vm2, %v7141_v0, %v1397_v35 }
 0x338   : > { %v3394_v55 = vmin.f32 %v3170_v62, 1.0  ;;  %3939 = vst [vmem:[%s5615_s13 + $0x278] sm:$0xff] %v3459_v38  ;;  %v2099_v26 = vsub.f32 1.0, %v3844_v31  ;;  %v1402_v5 = vsel %vm1400_vm3, %v1401_v20, %v1399_v16  ;;  %v1778_v10 = vmul.f32 -1.3888888, %v1746_v41 }
 0x339   : > { %4287 = vpow2.f32 %v1825_v6  ;;  %v2195_v63 = vsub.f32 1.05, %v3876_v11  ;;  %v1518_v45 = vmul.f32 -2.0, %v1402_v5  ;;  %v1200_v21 = vmul.f32 0.007843138, %v1179_v61 }
 0x33a   : > { %3907 = vst [vmem:[%s5615_s13 + $0x178] sm:$0xff] %v3394_v55  ;;  %v1827_v48 = vmul.f32 1.442695, %v1778_v10  ;;  %v2035_v52 = vmul.f32 %v2003_v37, %v1119_v30  ;;  %v1120_v47 = vmul.f32 0.2, %v5678_v49  ;;  %v2004_v28 = vsub.f32 1.0, %v1906_v39 }
 0x33b   : > { %v1567_v3 = vmul.f32 1.442695, %v1518_v45  ;;  %v2131_v50 = vmul.f32 %v2099_v26, %v1119_v30  ;;  %v3801_v0 = vadd.f32 -1.0, %v1200_v21  ;;  %v2227_v14 = vmul.f32 %v2195_v63, %v1119_v30  ;;  %v6045_v30 = vld [vmem:[%s4880_s14 + $0x190] sm:$0xff] }
 0x33c   : > { %4289 = vpow2.f32 %v1827_v48  ;;  %v2100_v1 = vsub.f32 1.0, %v3845_v57  ;;  %v2196_v51 = vsub.f32 1.05, %v3877_v42  ;;  %v2659_v36 = vunpack.c.l.bf16 %v2635_v4 }
 0x33d   : > { %4291 = vpow2.f32 %v1567_v3  ;;  %v1238_v9 = vmul.f32 %v3801_v0, %v3801_v0  ;;  %v3821_v58 = vadd.f32 0.25, %v3801_v0  ;;  %v2067_v22 = vadd.f32 %v2035_v52, %v1905_v54  ;;  %v6037_v54 = vld [vmem:[%s4880_s14 + $0x90] sm:$0xff] }
 0x33e   : > { %v2036_v19 = vmul.f32 %v2004_v28, %v1120_v47  ;;  %v2660_v43 = vunpack.c.h.bf16 %v2635_v4  ;;  %v2163_v12 = vadd.f32 %v3844_v31, %v2131_v50  ;;  %v2259_v13 = vadd.f32 %v3876_v11, %v2227_v14 }
 0x33f   : > { %v6027_v32 = vadd.f32 %v1238_v9, %v7157_v8  ;;  %v6030_v34 = vadd.f32 %v1238_v9, %v7158_v18  ;;  %v1722_v25 = vmul.f32 %v3821_v58, %v3821_v58  ;;  %v2132_v44 = vmul.f32 %v2100_v1, %v1120_v47 }
 0x340   : > { %v4286_v15 = vpop.eup %4285  ;;  %v2228_v27 = vmul.f32 %v2196_v51, %v1120_v47  ;;  %v2691_v38 = vsub.f32 1.0, %v2659_v36  ;;  %v6033_v6 = vmul.f32 0.2, %v5708_v23  ;;  %v6039_v35 = vadd.f32 %v2036_v19, %v1906_v39 }
 0x341   : > { %v1613_v56 = vmul.f32 0.5, %v4286_v15  ;;  %4293 = vrsqrt.f32 %v6027_v32  ;;  %v6041_v20 = vsub.f32 1.0, %v2660_v43  ;;  %v1747_v31 = vadd.f32 %v1722_v25, %v7154_v17 }
 0x342   : > { %4295 = vrsqrt.f32 %v6030_v34  ;;  %v6048_v23 = vadd.f32 %v3845_v57, %v2132_v44  ;;  %v6050_v37 = vadd.f32 %v3877_v42, %v2228_v27  ;;  %v2005_v26 = vsub.f32 1.0, %v6037_v54 }
 0x343   : > { %v4288_v29 = vpop.eup %4287  ;;  %v1645_v49 = vadd.f32 0.5, %v1613_v56  ;;  %v1779_v16 = vmul.f32 -1.3888888, %v1747_v31  ;;  %v1748_v45 = vadd.f32 %v1722_v25, %v7156_v40  ;;  %vm1405_vm4 = vcmp.eq.f32.partialorder %v6027_v32, inf }
 0x344   : > { %v1873_v55 = vmul.f32 0.15, %v4288_v29  ;;  %v2101_v57 = vsub.f32 1.0, %v6045_v30  ;;  %vm1407_vm5 = vcmp.eq.f32.partialorder %v6027_v32, 0.0  ;;  %v1408_v56 = vand.u32 2147483648, %v6027_v32 }
 0x345   : > { %v1677_v62 = vmul.f32 0.1, %v1645_v49  ;;  %v1829_v50 = vmul.f32 1.442695, %v1779_v16  ;;  %v1780_v0 = vmul.f32 -1.3888888, %v1748_v45 }
 0x346   : > { %v4290_v5 = vpop.eup %4289  ;;  %v2819_v21 = vadd.f32 1.0, %v1873_v55  ;;  %v2851_v28 = vsub.f32 1.0, %v1873_v55  ;;  %vm1412_vm6 = vcmp.eq.f32.partialorder %v6030_v34, inf  ;;  %v1415_v36 = vand.u32 2147483648, %v6030_v34  ;;  %v6065_v55 = vpop.f32.mrb[25].mxu1 }
 0x347   : > { %v2291_v41 = vadd.f32 1.0, %v1677_v62  ;;  %v2387_v11 = vmul.f32 0.3, %v1677_v62  ;;  %v2515_v61 = vmul.f32 0.2, %v1677_v62  ;;  %v4292_v48 = vpop.eup %4291  ;;  %4297 = vpow2.f32 %v1829_v50 }
 0x348   : > { %v6054_v52 = vmul.f32 0.15, %v4290_v5  ;;  %v1614_v3 = vmul.f32 0.5, %v4292_v48  ;;  %v1831_v9 = vmul.f32 1.442695, %v1780_v0  ;;  %vm1414_vm7 = vcmp.eq.f32.partialorder %v6030_v34, 0.0 }
 0x349   : > { %v2323_v10 = vmul.f32 %v2291_v41, %v2067_v22  ;;  %v2419_v39 = vadd.f32 1.0, %v2387_v11  ;;  %v2547_v63 = vsub.f32 1.0, %v2515_v61 }
 0x34a   : > { %v1646_v51 = vadd.f32 0.5, %v1614_v3  ;;  %v2820_v29 = vadd.f32 1.0, %v6054_v52  ;;  %4299 = vpow2.f32 %v1831_v9 }
 0x34b   : > { %v2355_v4 = vmin.f32 %v2323_v10, 1.0  ;;  %v2451_v42 = vmul.f32 %v2419_v39, %v2163_v12  ;;  %v2579_v47 = vmul.f32 %v2547_v63, %v2259_v13  ;;  %v4294_v58 = vpop.eup %4293 }
 0x34c   : > { %v1678_v25 = vmul.f32 0.1, %v1646_v51  ;;  %v1404_v12 = vmul.f32 %v4294_v58, %v6027_v32  ;;  %v4296_v13 = vpop.eup %4295  ;;  %v6080_v58 = vpop.f32.mrb[26].mxu1 }
 0x34d   : > { %v2483_v15 = vmin.f32 %v2451_v42, 1.0  ;;  %v2611_v14 = vmin.f32 %v2579_v47, 1.0  ;;  %v2723_v1 = vmul.f32 %v2691_v38, %v2355_v4  ;;  %v1411_v10 = vmul.f32 %v4296_v13, %v6030_v34  ;;  %v1908_v13 = vld [vmem:[%s4880_s14 + $0x98] sm:$0xff] }
 0x34e   : > { %v2292_v41 = vadd.f32 1.0, %v1678_v25  ;;  %v2516_v11 = vmul.f32 0.2, %v1678_v25  ;;  %v1406_v5 = vsel %vm1405_vm4, %v6027_v32, %v1404_v12 }
 0x34f   : > { %v2755_v22 = vmul.f32 %v2691_v38, %v2483_v15  ;;  %v2787_v19 = vmul.f32 %v2691_v38, %v2611_v14  ;;  %v2915_v43 = vmul.f32 %v2819_v21, %v2723_v1  ;;  %v2883_v49 = vmul.f32 %v2851_v28, %v2723_v1 }
 0x350   : > { %v2388_v38 = vmul.f32 0.3, %v1678_v25  ;;  %v2324_v63 = vmul.f32 %v2292_v41, %v6039_v35  ;;  %v2548_v48 = vsub.f32 1.0, %v2516_v11  ;;  %v1409_v47 = vsel %vm1407_vm5, %v1408_v56, %v1406_v5  ;;  %v3879_v5 = vld [vmem:[%s4880_s14 + $0x298] sm:$0xff] }
 0x351   : > { %v2947_v44 = vmul.f32 1.05, %v2915_v43  ;;  %v3075_v27 = vmul.f32 %v2819_v21, %v2755_v22  ;;  %v3203_v62 = vmul.f32 %v2851_v28, %v2787_v19  ;;  %v3235_v31 = vmul.f32 %v2819_v21, %v2787_v19  ;;  %v4298_v19 = vpop.eup %4297 }
 0x352   : > { %v2420_v45 = vadd.f32 1.0, %v2388_v38  ;;  %v3043_v42 = vmul.f32 %v2851_v28, %v2755_v22  ;;  %v2356_v50 = vmin.f32 %v2324_v63, 1.0  ;;  %v2580_v15 = vmul.f32 %v2548_v48, %v6050_v37  ;;  %v3878_v22 = vld [vmem:[%s4880_s14 + $0x290] sm:$0xff] }
 0x353   : > { %v2979_v61 = vmin.f32 %v2947_v44, 1.0  ;;  %v3107_v16 = vmul.f32 1.03, %v3075_v27  ;;  %v3267_v39 = vmin.f32 %v3235_v31, 1.0  ;;  %v1519_v35 = vmul.f32 -2.0, %v1409_v47  ;;  %v3847_v31 = vld [vmem:[%s4880_s14 + $0x198] sm:$0xff] }
 0x354   : > { %v2452_v0 = vmul.f32 %v2420_v45, %v6048_v23  ;;  %v1413_v28 = vsel %vm1412_vm6, %v6030_v34, %v1411_v10  ;;  %v2612_v32 = vmin.f32 %v2580_v15, 1.0  ;;  %v2724_v56 = vmul.f32 %v6041_v20, %v2356_v50  ;;  %v4300_v44 = vpop.eup %4299  ;;  %v2636_v45 = vld [vmem:[%s4901_s25 + $0x48] sm:$0xff] }
 0x355   : > { %v3011_v4 = vadd.f32 %v2979_v61, %v2883_v49  ;;  %v3139_v21 = vmin.f32 %v3107_v16, 1.0  ;;  %v3299_v3 = vadd.f32 %v3267_v39, %v3203_v62  ;;  %v1569_v37 = vmul.f32 1.442695, %v1519_v35 }
 0x356   : > { %v2484_v9 = vmin.f32 %v2452_v0, 1.0  ;;  %v2788_v49 = vmul.f32 %v6041_v20, %v2612_v32  ;;  %v2852_v25 = vsub.f32 1.0, %v6054_v52  ;;  %v2916_v12 = vmul.f32 %v2820_v29, %v2724_v56 }
 0x357   : > { %v3171_v14 = vadd.f32 %v3139_v21, %v3043_v42  ;;  %v3331_v1 = vmin.f32 %v3011_v4, 1.0  ;;  %v3460_v51 = vmin.f32 %v3299_v3, 1.0  ;;  %4301 = vpow2.f32 %v1569_v37 }
 0x358   : > { %v2756_v43 = vmul.f32 %v6041_v20, %v2484_v9  ;;  %v2037_v27 = vmul.f32 %v2005_v26, %v6033_v6  ;;  %v1416_v62 = vsel %vm1414_vm7, %v1415_v36, %v1413_v28  ;;  %v2948_v20 = vmul.f32 1.05, %v2916_v12 }
 0x359   : > { %3363 = vst [vmem:[%s5615_s13 + $0x80] sm:$0xff] %v3331_v1  ;;  %v3395_v23 = vmin.f32 %v3171_v14, 1.0  ;;  %3940 = vst [vmem:[%s5615_s13 + $0x280] sm:$0xff] %v3460_v51  ;;  %v2133_v52 = vmul.f32 %v2101_v57, %v6033_v6  ;;  %v2197_v38 = vsub.f32 1.05, %v3878_v22  ;;  %v3236_v11 = vmul.f32 %v2820_v29, %v2788_v49 }
 0x35a   : > { %v3076_v41 = vmul.f32 %v2820_v29, %v2756_v43  ;;  %v1122_v61 = vmul.f32 0.2, %v5802_v59  ;;  %v1520_v16 = vmul.f32 -2.0, %v1416_v62  ;;  %v2006_v10 = vsub.f32 1.0, %v1908_v13 }
 0x35b   : > { %3908 = vst [vmem:[%s5615_s13 + $0x180] sm:$0xff] %v3395_v23  ;;  %v2884_v26 = vmul.f32 %v2852_v25, %v2724_v56  ;;  %v2980_v39 = vmin.f32 %v2948_v20, 1.0  ;;  %v2102_v34 = vsub.f32 1.0, %v3847_v31  ;;  %v3204_v36 = vmul.f32 %v2852_v25, %v2788_v49 }
 0x35c   : > { %v3108_v63 = vmul.f32 1.03, %v3076_v41  ;;  %v3268_v48 = vmin.f32 %v3236_v11, 1.0  ;;  %v1571_v4 = vmul.f32 1.442695, %v1520_v16  ;;  %v1147_v42 = vadd.s32 80, %v7153_v24 }
 0x35d   : > { %v3012_v21 = vadd.f32 %v2980_v39, %v2884_v26  ;;  %v3044_v57 = vmul.f32 %v2852_v25, %v2756_v43  ;;  %v2198_v29 = vsub.f32 1.05, %v3879_v5  ;;  %v2661_v59 = vunpack.c.l.bf16 %v2636_v45  ;;  %v6141_v39 = vld [vmem:[%s4880_s14 + $0xa8] sm:$0xff] }
 0x35e   : > { %v3140_v47 = vmin.f32 %v3108_v63, 1.0  ;;  %v3300_v3 = vadd.f32 %v3268_v48, %v3204_v36  ;;  %4303 = vpow2.f32 %v1571_v4  ;;  %v1164_v50 = vadd.s32 %v7155_v60, %v1147_v42  ;;  %v6144_v63 = vld [vmem:[%s4880_s14 + $0x1a8] sm:$0xff] }
 0x35f   : > { %v3332_v15 = vmin.f32 %v3012_v21, 1.0  ;;  %v2229_v14 = vmul.f32 %v2197_v38, %v6033_v6  ;;  %v2038_v1 = vmul.f32 %v2006_v10, %v1122_v61  ;;  %v1875_v28 = vmul.f32 0.15, %v4298_v19 }
 0x360   : > { %v3172_v0 = vadd.f32 %v3140_v47, %v3044_v57  ;;  %v3461_v35 = vmin.f32 %v3300_v3, 1.0  ;;  %v2134_v51 = vmul.f32 %v2102_v34, %v1122_v61  ;;  %v1180_v9 = vcvt.s32.f32 %v1164_v50 }
 0x361   : > { %3364 = vst [vmem:[%s5615_s13 + $0x88] sm:$0xff] %v3332_v15  ;;  %v1876_v56 = vmul.f32 0.15, %v4300_v44  ;;  %v2230_v23 = vmul.f32 %v2198_v29, %v1122_v61  ;;  %v2662_v37 = vunpack.c.h.bf16 %v2636_v45  ;;  %v4302_v43 = vpop.eup %4301  ;;  %v2069_v49 = vadd.f32 %v2037_v27, %v6037_v54  ;;  %v6121_v61 = vld [vmem:[%s4880_s14 + $0xa0] sm:$0xff] }
 0x362   : > { %v3396_v32 = vmin.f32 %v3172_v0, 1.0  ;;  %3941 = vst [vmem:[%s5615_s13 + $0x288] sm:$0xff] %v3461_v35  ;;  %v2165_v6 = vadd.f32 %v6045_v30, %v2133_v52  ;;  %v1201_v25 = vmul.f32 0.007843138, %v1180_v9  ;;  %v1615_v12 = vmul.f32 0.5, %v4302_v43  ;;  %v6124_v54 = vld [vmem:[%s4880_s14 + $0x1a0] sm:$0xff] }
 0x363   : > { %v2261_v19 = vadd.f32 %v3878_v22, %v2229_v14  ;;  %v2693_v62 = vsub.f32 1.0, %v2661_v59  ;;  %v6112_v20 = vadd.f32 %v2038_v1, %v1908_v13  ;;  %v6114_v44 = vadd.f32 1.0, %v1875_v28  ;;  %v6127_v30 = vld [vmem:[%s4880_s14 + $0x2a0] sm:$0xff] }
 0x364   : > { %3909 = vst [vmem:[%s5615_s13 + $0x188] sm:$0xff] %v3396_v32  ;;  %v6116_v41 = vsub.f32 1.0, %v1875_v28  ;;  %v6118_v38 = vadd.f32 %v3847_v31, %v2134_v51  ;;  %v3802_v11 = vadd.f32 -1.0, %v1201_v25  ;;  %v1647_v27 = vadd.f32 0.5, %v1615_v12 }
 0x365   : > { %v6129_v22 = vadd.f32 %v3879_v5, %v2230_v23  ;;  %v6131_v13 = vsub.f32 1.0, %v2662_v37  ;;  %v6133_v52 = vadd.f32 1.0, %v1876_v56  ;;  %v6135_v16 = vsub.f32 1.0, %v1876_v56 }
 0x366   : > { %v6138_v10 = vmul.f32 0.2, %v5835_v7  ;;  %v1239_v31 = vmul.f32 %v3802_v11, %v3802_v11  ;;  %v3822_v26 = vadd.f32 0.25, %v3802_v11  ;;  %v1679_v45 = vmul.f32 0.1, %v1647_v27 }
 0x367   : > { %v2007_v34 = vsub.f32 1.0, %v6121_v61  ;;  %v2103_v5 = vsub.f32 1.0, %v6124_v54  ;;  %v2199_v36 = vsub.f32 1.05, %v6127_v30  ;;  %v1148_v21 = vadd.s32 88, %v7153_v24 }
 0x368   : > { %v4304_v48 = vpop.eup %4303  ;;  %v6150_v4 = vadd.f32 %v1239_v31, %v7157_v8  ;;  %v6153_v7 = vadd.f32 %v1239_v31, %v7158_v18  ;;  %v1723_v42 = vmul.f32 %v3822_v26, %v3822_v26  ;;  %v2293_v57 = vadd.f32 1.0, %v1679_v45 }
 0x369   : > { %v2389_v47 = vmul.f32 0.3, %v1679_v45  ;;  %v2517_v29 = vmul.f32 0.2, %v1679_v45  ;;  %v1616_v3 = vmul.f32 0.5, %v4304_v48  ;;  %v2008_v50 = vsub.f32 1.0, %v6141_v39 }
 0x36a   : > { %4305 = vrsqrt.f32 %v6150_v4  ;;  %v6158_v59 = vmul.f32 0.2, %v5930_v53  ;;  %v2104_v0 = vsub.f32 1.0, %v6144_v63  ;;  %v2325_v15 = vmul.f32 %v2293_v57, %v2069_v49 }
 0x36b   : > { %v2421_v14 = vadd.f32 1.0, %v2389_v47  ;;  %v2549_v1 = vsub.f32 1.0, %v2517_v29  ;;  %v1648_v35 = vadd.f32 0.5, %v1616_v3  ;;  %vm1419_vm8 = vcmp.eq.f32.partialorder %v6150_v4, inf }
 0x36c   : > { %v1749_v28 = vadd.f32 %v1723_v42, %v7154_v17  ;;  %4307 = vrsqrt.f32 %v6153_v7  ;;  %v6166_v51 = vadd.s32 %v7155_v60, %v1148_v21  ;;  %v2357_v9 = vmin.f32 %v2325_v15, 1.0 }
 0x36d   : > { %v2453_v53 = vmul.f32 %v2421_v14, %v2165_v6  ;;  %v2581_v32 = vmul.f32 %v2549_v1, %v2261_v19  ;;  %v1680_v56 = vmul.f32 0.1, %v1648_v35  ;;  %vm1421_vm9 = vcmp.eq.f32.partialorder %v6150_v4, 0.0 }
 0x36e   : > { %v1422_v23 = vand.u32 2147483648, %v6150_v4  ;;  %v1781_v37 = vmul.f32 -1.3888888, %v1749_v28  ;;  %v1429_v43 = vand.u32 2147483648, %v6153_v7  ;;  %v2725_v12 = vmul.f32 %v2693_v62, %v2357_v9 }
 0x36f   : > { %v2485_v49 = vmin.f32 %v2453_v53, 1.0  ;;  %v2613_v25 = vmin.f32 %v2581_v32, 1.0  ;;  %v2294_v11 = vadd.f32 1.0, %v1680_v56  ;;  %v2390_v27 = vmul.f32 0.3, %v1680_v56 }
 0x370   : > { %v2518_v31 = vmul.f32 0.2, %v1680_v56  ;;  %v1833_v26 = vmul.f32 1.442695, %v1781_v37  ;;  %v1750_v45 = vadd.f32 %v1723_v42, %v7156_v40  ;;  %v2917_v19 = vmul.f32 %v6114_v44, %v2725_v12  ;;  %v6185_v56 = vpop.f32.mrb[27].mxu1 }
 0x371   : > { %v2757_v48 = vmul.f32 %v2693_v62, %v2485_v49  ;;  %v2789_v6 = vmul.f32 %v2693_v62, %v2613_v25  ;;  %vm1426_vm10 = vcmp.eq.f32.partialorder %v6153_v7, inf  ;;  %v1181_v21 = vcvt.s32.f32 %v6166_v51 }
 0x372   : > { %v2885_v57 = vmul.f32 %v6116_v41, %v2725_v12  ;;  %v2326_v47 = vmul.f32 %v2294_v11, %v6112_v20  ;;  %v2422_v29 = vadd.f32 1.0, %v2390_v27  ;;  %v2550_v3 = vsub.f32 1.0, %v2518_v31 }
 0x373   : > { %v2949_v15 = vmul.f32 1.05, %v2917_v19  ;;  %v3045_v14 = vmul.f32 %v6116_v41, %v2757_v48  ;;  %v3077_v1 = vmul.f32 %v6114_v44, %v2757_v48  ;;  %4309 = vpow2.f32 %v1833_v26 }
 0x374   : > { %vm1428_vm11 = vcmp.eq.f32.partialorder %v6153_v7, 0.0  ;;  %v4306_v62 = vpop.eup %4305  ;;  %v3237_v42 = vmul.f32 %v6114_v44, %v2789_v6  ;;  %v2358_v35 = vmin.f32 %v2326_v47, 1.0  ;;  %v2454_v28 = vmul.f32 %v2422_v29, %v6118_v38 }
 0x375   : > { %v2582_v51 = vmul.f32 %v2550_v3, %v6129_v22  ;;  %v2981_v9 = vmin.f32 %v2949_v15, 1.0  ;;  %v3109_v20 = vmul.f32 1.03, %v3077_v1  ;;  %v3205_v53 = vmul.f32 %v6116_v41, %v2789_v6 }
 0x376   : > { %v1418_v32 = vmul.f32 %v4306_v62, %v6150_v4  ;;  %v4308_v37 = vpop.eup %4307  ;;  %v3269_v49 = vmin.f32 %v3237_v42, 1.0  ;;  %v2486_v25 = vmin.f32 %v2454_v28, 1.0  ;;  %v2726_v11 = vmul.f32 %v6131_v13, %v2358_v35  ;;  %v6203_v42 = vld [vmem:[%s4880_s14 + $0x2a8] sm:$0xff] }
 0x377   : > { %v2614_v12 = vmin.f32 %v2582_v51, 1.0  ;;  %v3013_v44 = vadd.f32 %v2981_v9, %v2885_v57  ;;  %v3141_v27 = vmin.f32 %v3109_v20, 1.0  ;;  %v1782_v22 = vmul.f32 -1.3888888, %v1750_v45 }
 0x378   : > { %v1420_v38 = vsel %vm1419_vm8, %v6150_v4, %v1418_v32  ;;  %v3301_v31 = vadd.f32 %v3269_v49, %v3205_v53  ;;  %v2758_v41 = vmul.f32 %v6131_v13, %v2486_v25  ;;  %v1425_v48 = vmul.f32 %v4308_v37, %v6153_v7  ;;  %v1911_v25 = vld [vmem:[%s4880_s14 + $0xb0] sm:$0xff] }
 0x379   : > { %v2790_v26 = vmul.f32 %v6131_v13, %v2614_v12  ;;  %v3173_v6 = vadd.f32 %v3141_v27, %v3045_v14  ;;  %v3333_v19 = vmin.f32 %v3013_v44, 1.0  ;;  %v2918_v57 = vmul.f32 %v6133_v52, %v2726_v11  ;;  %v6216_v12 = vpop.f32.mrb[28].mxu1 }
 0x37a   : > { %v1423_v47 = vsel %vm1421_vm9, %v1422_v23, %v1420_v38  ;;  %v3462_v29 = vmin.f32 %v3301_v31, 1.0  ;;  %v2886_v45 = vmul.f32 %v6135_v16, %v2726_v11  ;;  %v3046_v3 = vmul.f32 %v6135_v16, %v2758_v41  ;;  %v2637_v31 = vld [vmem:[%s4901_s25 + $0x50] sm:$0xff] }
 0x37b   : > { %v3078_v15 = vmul.f32 %v6133_v52, %v2758_v41  ;;  %3365 = vst [vmem:[%s5615_s13 + $0x90] sm:$0xff] %v3333_v19  ;;  %v3397_v13 = vmin.f32 %v3173_v6, 1.0  ;;  %v2950_v1 = vmul.f32 1.05, %v2918_v57  ;;  %v3238_v62 = vmul.f32 %v6133_v52, %v2790_v26 }
 0x37c   : > { %v1521_v14 = vmul.f32 -2.0, %v1423_v47  ;;  %3942 = vst [vmem:[%s5615_s13 + $0x290] sm:$0xff] %v3462_v29  ;;  %v1427_v23 = vsel %vm1426_vm10, %v6153_v7, %v1425_v48  ;;  %v1835_v35 = vmul.f32 1.442695, %v1782_v22  ;;  %v1202_v28 = vmul.f32 0.007843138, %v1181_v21 }
 0x37d   : > { %v3110_v4 = vmul.f32 1.03, %v3078_v15  ;;  %v4310_v51 = vpop.eup %4309  ;;  %3910 = vst [vmem:[%s5615_s13 + $0x190] sm:$0xff] %v3397_v13  ;;  %v2982_v9 = vmin.f32 %v2950_v1, 1.0  ;;  %v3206_v20 = vmul.f32 %v6135_v16, %v2790_v26  ;;  %v3270_v53 = vmin.f32 %v3238_v62, 1.0  ;;  %v6245_v1 = vld [vmem:[%s4880_s14 + $0x1b0] sm:$0xff] }
 0x37e   : > { %v1573_v32 = vmul.f32 1.442695, %v1521_v14  ;;  %v1430_v37 = vsel %vm1428_vm11, %v1429_v43, %v1427_v23  ;;  %4311 = vpow2.f32 %v1835_v35  ;;  %v3803_v49 = vadd.f32 -1.0, %v1202_v28  ;;  %v6264_v28 = vld [vmem:[%s4880_s14 + $0x2b0] sm:$0xff] }
 0x37f   : > { %v3142_v52 = vmin.f32 %v3110_v4, 1.0  ;;  %v3014_v21 = vadd.f32 %v2982_v9, %v2886_v45  ;;  %v3302_v11 = vadd.f32 %v3270_v53, %v3206_v20  ;;  %v2200_v16 = vsub.f32 1.05, %v6203_v42 }
 0x380   : > { %4313 = vpow2.f32 %v1573_v32  ;;  %v1522_v27 = vmul.f32 -2.0, %v1430_v37  ;;  %v6220_v38 = vmul.f32 0.2, %v5949_v2  ;;  %v1240_v7 = vmul.f32 %v3803_v49, %v3803_v49 }
 0x381   : > { %v3174_v44 = vadd.f32 %v3142_v52, %v3046_v3  ;;  %v3334_v43 = vmin.f32 %v3014_v21, 1.0  ;;  %v3463_v22 = vmin.f32 %v3302_v11, 1.0  ;;  %v3823_v41 = vadd.f32 0.25, %v3803_v49  ;;  %v6290_v21 = vld [vmem:[%s4880_s14 + $0xb8] sm:$0xff] }
 0x382   : > { %v2009_v26 = vsub.f32 1.0, %v1911_v25  ;;  %v1575_v6 = vmul.f32 1.442695, %v1522_v27  ;;  %v6224_v19 = vadd.f32 %v1240_v7, %v7157_v8  ;;  %v6227_v57 = vadd.f32 %v1240_v7, %v7158_v18 }
 0x383   : > { %v3398_v48 = vmin.f32 %v3174_v44, 1.0  ;;  %3366 = vst [vmem:[%s5615_s13 + $0x98] sm:$0xff] %v3334_v43  ;;  %3943 = vst [vmem:[%s5615_s13 + $0x298] sm:$0xff] %v3463_v22  ;;  %v2039_v2 = vmul.f32 %v2007_v34, %v6138_v10  ;;  %v2135_v47 = vmul.f32 %v2103_v5, %v6138_v10  ;;  %v2231_v29 = vmul.f32 %v2199_v36, %v6138_v10  ;;  %v6296_v44 = vld [vmem:[%s4880_s14 + $0x1b8] sm:$0xff] }
 0x384   : > { %v1724_v45 = vmul.f32 %v3823_v41, %v3823_v41  ;;  %v2663_v3 = vunpack.c.l.bf16 %v2637_v31  ;;  %4315 = vpow2.f32 %v1575_v6  ;;  %v2040_v15 = vmul.f32 %v2008_v50, %v6158_v59 }
 0x385   : > { %3911 = vst [vmem:[%s5615_s13 + $0x198] sm:$0xff] %v3398_v48  ;;  %v2664_v13 = vunpack.c.h.bf16 %v2637_v31  ;;  %v2136_v34 = vmul.f32 %v2104_v0, %v6158_v59  ;;  %v2232_v5 = vmul.f32 %v2200_v16, %v6158_v59  ;;  %4317 = vrsqrt.f32 %v6224_v19 }
 0x386   : > { %v1751_v10 = vadd.f32 %v1724_v45, %v7154_v17  ;;  %v1877_v36 = vmul.f32 0.15, %v4310_v51  ;;  %v2041_v62 = vmul.f32 %v2009_v26, %v6220_v38  ;;  %4319 = vrsqrt.f32 %v6227_v57 }
 0x387   : > { %v2071_v50 = vadd.f32 %v2039_v2, %v6121_v61  ;;  %v2105_v14 = vsub.f32 1.0, %v6245_v1  ;;  %v2167_v23 = vadd.f32 %v6124_v54, %v2135_v47  ;;  %v2263_v0 = vadd.f32 %v6127_v30, %v2231_v29  ;;  %v6276_v30 = vld [vmem:[%s4901_s25 + $0x58] sm:$0xff]  ;;  %v6310_v29 = vpop.f32.mrb[29].mxu1 }
 0x388   : > { %v4312_v4 = vpop.eup %4311  ;;  %v6259_v59 = vsub.f32 1.0, %v2663_v3  ;;  %v6261_v35 = vsub.f32 1.0, %v2664_v13  ;;  %v6267_v9 = vadd.f32 %v2040_v15, %v6141_v39  ;;  %v6270_v61 = vadd.f32 %v6144_v63, %v2136_v34 }
 0x389   : > { %v6273_v20 = vadd.f32 %v6203_v42, %v2232_v5  ;;  %v1783_v54 = vmul.f32 -1.3888888, %v1751_v10  ;;  %v6278_v32 = vadd.f32 1.0, %v1877_v36  ;;  %v6280_v52 = vsub.f32 1.0, %v1877_v36 }
 0x38a   : > { %v4314_v51 = vpop.eup %4313  ;;  %v6282_v37 = vadd.f32 %v2041_v62, %v1911_v25  ;;  %v1878_v49 = vmul.f32 0.15, %v4312_v4  ;;  %v6285_v39 = vmul.f32 %v2105_v14, %v6220_v38  ;;  %v2201_v63 = vsub.f32 1.05, %v6264_v28 }
 0x38b   : > { %v1617_v53 = vmul.f32 0.5, %v4314_v51  ;;  %v1752_v42 = vadd.f32 %v1724_v45, %v7156_v40  ;;  %vm1433_vm12 = vcmp.eq.f32.partialorder %v6224_v19, inf  ;;  %vm1435_vm13 = vcmp.eq.f32.partialorder %v6224_v19, 0.0 }
 0x38c   : > { %v2665_v16 = vunpack.c.l.bf16 %v6276_v30  ;;  %v1436_v25 = vand.u32 2147483648, %v6224_v19  ;;  %v1837_v27 = vmul.f32 1.442695, %v1783_v54  ;;  %v6300_v7 = vmul.f32 0.2, %v5994_v46 }
 0x38d   : > { %v1649_v11 = vadd.f32 0.5, %v1617_v53  ;;  %v1149_v43 = vadd.s32 96, %v7153_v24  ;;  %vm1440_vm14 = vcmp.eq.f32.partialorder %v6227_v57, inf  ;;  %v1443_v41 = vand.u32 2147483648, %v6227_v57 }
 0x38e   : > { %v4316_v22 = vpop.eup %4315  ;;  %v2010_v26 = vsub.f32 1.0, %v6290_v21  ;;  %v6306_v2 = vadd.f32 1.0, %v1878_v49  ;;  %vm1442_vm15 = vcmp.eq.f32.partialorder %v6227_v57, 0.0  ;;  %v1784_v47 = vmul.f32 -1.3888888, %v1752_v42 }
 0x38f   : > { %v1681_v31 = vmul.f32 0.1, %v1649_v11  ;;  %v4318_v48 = vpop.eup %4317  ;;  %v1618_v6 = vmul.f32 0.5, %v4316_v22  ;;  %v2106_v46 = vsub.f32 1.0, %v6296_v44  ;;  %v6313_v10 = vsub.f32 1.0, %v1878_v49 }
 0x390   : > { %v4320_v45 = vpop.eup %4319  ;;  %v1432_v34 = vmul.f32 %v4318_v48, %v6224_v19  ;;  %4321 = vpow2.f32 %v1837_v27  ;;  %v1166_v36 = vadd.s32 %v7155_v60, %v1149_v43  ;;  %v1839_v11 = vmul.f32 1.442695, %v1784_v47 }
 0x391   : > { %v2295_v3 = vadd.f32 1.0, %v1681_v31  ;;  %v2391_v15 = vmul.f32 0.3, %v1681_v31  ;;  %v2519_v13 = vmul.f32 0.2, %v1681_v31  ;;  %v1650_v5 = vadd.f32 0.5, %v1618_v6 }
 0x392   : > { %v1434_v51 = vsel %vm1433_vm12, %v6224_v19, %v1432_v34  ;;  %v1439_v42 = vmul.f32 %v4320_v45, %v6227_v57  ;;  %v1182_v6 = vcvt.s32.f32 %v1166_v36  ;;  %4323 = vpow2.f32 %v1839_v11 }
 0x393   : > { %v2327_v62 = vmul.f32 %v2295_v3, %v2071_v50  ;;  %v2423_v14 = vadd.f32 1.0, %v2391_v15  ;;  %v2551_v4 = vsub.f32 1.0, %v2519_v13  ;;  %v1682_v54 = vmul.f32 0.1, %v1650_v5 }
 0x394   : > { %v1437_v53 = vsel %vm1435_vm13, %v1436_v25, %v1434_v51  ;;  %v1441_v47 = vsel %vm1440_vm14, %v6227_v57, %v1439_v42 }
 0x395   : > { %v2359_v22 = vmin.f32 %v2327_v62, 1.0  ;;  %v2455_v49 = vmul.f32 %v2423_v14, %v2167_v23  ;;  %v2583_v31 = vmul.f32 %v2551_v4, %v2263_v0  ;;  %v1523_v27 = vmul.f32 -2.0, %v1437_v53  ;;  %v6335_v53 = vpop.f32.mrb[30].mxu1 }
 0x396   : > { %v2296_v48 = vadd.f32 1.0, %v1682_v54  ;;  %v2392_v43 = vmul.f32 0.3, %v1682_v54  ;;  %v2520_v50 = vmul.f32 0.2, %v1682_v54  ;;  %v1444_v51 = vsel %vm1442_vm15, %v1443_v41, %v1441_v47 }
 0x397   : > { %v2487_v3 = vmin.f32 %v2455_v49, 1.0  ;;  %v2615_v15 = vmin.f32 %v2583_v31, 1.0  ;;  %v2727_v13 = vmul.f32 %v6259_v59, %v2359_v22  ;;  %v1577_v34 = vmul.f32 1.442695, %v1523_v27 }
 0x398   : > { %v2328_v5 = vmul.f32 %v2296_v48, %v6267_v9  ;;  %v2424_v19 = vadd.f32 1.0, %v2392_v43  ;;  %v2552_v25 = vsub.f32 1.0, %v2520_v50  ;;  %v1203_v54 = vmul.f32 0.007843138, %v1182_v6 }
 0x399   : > { %v2759_v23 = vmul.f32 %v6259_v59, %v2487_v3  ;;  %v2791_v0 = vmul.f32 %v6259_v59, %v2615_v15  ;;  %v2919_v45 = vmul.f32 %v6278_v32, %v2727_v13  ;;  %4325 = vpow2.f32 %v1577_v34 }
 0x39a   : > { %v2360_v36 = vmin.f32 %v2328_v5, 1.0  ;;  %v2456_v62 = vmul.f32 %v2424_v19, %v6270_v61  ;;  %v2584_v14 = vmul.f32 %v2552_v25, %v6273_v20  ;;  %v6337_v42 = vpop.eup %4321  ;;  %v2887_v20 = vmul.f32 %v6280_v52, %v2727_v13 }
 0x39b   : > { %v2951_v9 = vmul.f32 1.05, %v2919_v45  ;;  %v3079_v4 = vmul.f32 %v6278_v32, %v2759_v23  ;;  %v3239_v59 = vmul.f32 %v6278_v32, %v2791_v0  ;;  %v3047_v31 = vmul.f32 %v6280_v52, %v2759_v23 }
 0x39c   : > { %v2488_v11 = vmin.f32 %v2456_v62, 1.0  ;;  %v2616_v22 = vmin.f32 %v2584_v14, 1.0  ;;  %v2728_v61 = vmul.f32 %v6261_v35, %v2360_v36  ;;  %v3207_v57 = vmul.f32 %v6280_v52, %v2791_v0  ;;  %v4324_v36 = vpop.eup %4323 }
 0x39d   : > { %v2983_v49 = vmin.f32 %v2951_v9, 1.0  ;;  %v3111_v27 = vmul.f32 1.03, %v3079_v4  ;;  %v3271_v41 = vmin.f32 %v3239_v59, 1.0  ;;  %v1524_v3 = vmul.f32 -2.0, %v1444_v51  ;;  %v3883_v51 = vld [vmem:[%s4880_s14 + $0x2b8] sm:$0xff] }
 0x39e   : > { %v2760_v48 = vmul.f32 %v6261_v35, %v2488_v11  ;;  %v2792_v43 = vmul.f32 %v6261_v35, %v2616_v22  ;;  %v2920_v32 = vmul.f32 %v6306_v2, %v2728_v61  ;;  %v2888_v13 = vmul.f32 %v6313_v10, %v2728_v61 }
 0x39f   : > { %v3015_v50 = vadd.f32 %v2983_v49, %v2887_v20  ;;  %v3143_v6 = vmin.f32 %v3111_v27, 1.0  ;;  %v3303_v15 = vadd.f32 %v3271_v41, %v3207_v57  ;;  %v1579_v0 = vmul.f32 1.442695, %v1524_v3 }
 0x3a0   : > { %v3048_v34 = vmul.f32 %v6313_v10, %v2760_v48  ;;  %v3080_v5 = vmul.f32 %v6306_v2, %v2760_v48  ;;  %v2952_v25 = vmul.f32 1.05, %v2920_v32  ;;  %v3240_v35 = vmul.f32 %v6306_v2, %v2792_v43 }
 0x3a1   : > { %v3175_v52 = vadd.f32 %v3143_v6, %v3047_v31  ;;  %v3335_v19 = vmin.f32 %v3015_v50, 1.0  ;;  %v3464_v47 = vmin.f32 %v3303_v15, 1.0  ;;  %v3804_v45 = vadd.f32 -1.0, %v1203_v54 }
 0x3a2   : > { %v3112_v23 = vmul.f32 1.03, %v3080_v5  ;;  %v2984_v14 = vmin.f32 %v2952_v25, 1.0  ;;  %v3208_v9 = vmul.f32 %v6313_v10, %v2792_v43  ;;  %v3272_v4 = vmin.f32 %v3240_v35, 1.0 }
 0x3a3   : > { %3367 = vst [vmem:[%s5615_s13 + $0xa0] sm:$0xff] %v3335_v19  ;;  %v3399_v62 = vmin.f32 %v3175_v52, 1.0  ;;  %v4326_v59 = vpop.eup %4325  ;;  %3944 = vst [vmem:[%s5615_s13 + $0x2a0] sm:$0xff] %v3464_v47  ;;  %4327 = vpow2.f32 %v1579_v0  ;;  %v1241_v22 = vmul.f32 %v3804_v45, %v3804_v45  ;;  %v3824_v61 = vadd.f32 0.25, %v3804_v45 }
 0x3a4   : > { %v3144_v11 = vmin.f32 %v3112_v23, 1.0  ;;  %v3016_v2 = vadd.f32 %v2984_v14, %v2888_v13  ;;  %v3304_v20 = vadd.f32 %v3272_v4, %v3208_v9  ;;  %v1619_v54 = vmul.f32 0.5, %v4326_v59 }
 0x3a5   : > { %3912 = vst [vmem:[%s5615_s13 + $0x1a0] sm:$0xff] %v3399_v62  ;;  %v2233_v49 = vmul.f32 %v2201_v63, %v6220_v38  ;;  %v2202_v10 = vsub.f32 1.05, %v3883_v51  ;;  %v6360_v27 = vadd.f32 %v1241_v22, %v7157_v8  ;;  %v6363_v57 = vadd.f32 %v1241_v22, %v7158_v18 }
 0x3a6   : > { %v3176_v31 = vadd.f32 %v3144_v11, %v3048_v34  ;;  %v3336_v41 = vmin.f32 %v3016_v2, 1.0  ;;  %v3465_v48 = vmin.f32 %v3304_v20, 1.0  ;;  %v1651_v43 = vadd.f32 0.5, %v1619_v54 }
 0x3a7   : > { %v1725_v50 = vmul.f32 %v3824_v61, %v3824_v61  ;;  %v2042_v32 = vmul.f32 %v2010_v26, %v6300_v7  ;;  %v2138_v38 = vmul.f32 %v2106_v46, %v6300_v7  ;;  %4329 = vrsqrt.f32 %v6360_v27 }
 0x3a8   : > { %v3400_v6 = vmin.f32 %v3176_v31, 1.0  ;;  %3368 = vst [vmem:[%s5615_s13 + $0xa8] sm:$0xff] %v3336_v41  ;;  %3945 = vst [vmem:[%s5615_s13 + $0x2a8] sm:$0xff] %v3465_v48  ;;  %v1683_v63 = vmul.f32 0.1, %v1651_v43  ;;  %v2169_v3 = vadd.f32 %v6245_v1, %v6285_v39  ;;  %v2697_v15 = vsub.f32 1.0, %v2665_v16 }
 0x3a9   : > { %v1753_v13 = vadd.f32 %v1725_v50, %v7154_v17  ;;  %v1879_v26 = vmul.f32 0.15, %v6337_v42  ;;  %v2234_v34 = vmul.f32 %v2202_v10, %v6300_v7  ;;  %v2666_v46 = vunpack.c.h.bf16 %v6276_v30 }
 0x3aa   : > { %3913 = vst [vmem:[%s5615_s13 + $0x1a8] sm:$0xff] %v3400_v6  ;;  %4331 = vrsqrt.f32 %v6363_v57  ;;  %v2265_v5 = vadd.f32 %v6264_v28, %v2233_v49  ;;  %v2297_v52 = vadd.f32 1.0, %v1683_v63  ;;  %v2393_v19 = vmul.f32 0.3, %v1683_v63 }
 0x3ab   : > { %v2521_v25 = vmul.f32 0.2, %v1683_v63  ;;  %v6385_v1 = vmul.f32 0.15, %v4324_v36  ;;  %v2074_v39 = vadd.f32 %v2042_v32, %v6290_v21  ;;  %v2170_v16 = vadd.f32 %v6296_v44, %v2138_v38  ;;  %v6403_v63 = vpop.f32.mrb[31].mxu1 }
 0x3ac   : > { %v1785_v35 = vmul.f32 -1.3888888, %v1753_v13  ;;  %v2329_v42 = vmul.f32 %v2297_v52, %v6282_v37  ;;  %v2425_v47 = vadd.f32 1.0, %v2393_v19  ;;  %v1754_v30 = vadd.f32 %v1725_v50, %v7156_v40 }
 0x3ad   : > { %v2553_v7 = vsub.f32 1.0, %v2521_v25  ;;  %v4328_v23 = vpop.eup %4327  ;;  %v2825_v0 = vadd.f32 1.0, %v1879_v26  ;;  %v2857_v45 = vsub.f32 1.0, %v1879_v26  ;;  %v2266_v28 = vadd.f32 %v3883_v51, %v2234_v34 }
 0x3ae   : > { %v6391_v62 = vsub.f32 1.0, %v2666_v46  ;;  %v2361_v14 = vmin.f32 %v2329_v42, 1.0  ;;  %v2457_v36 = vmul.f32 %v2425_v47, %v2169_v3  ;;  %v1620_v4 = vmul.f32 0.5, %v4328_v23 }
 0x3af   : > { %v2585_v9 = vmul.f32 %v2553_v7, %v2265_v5  ;;  %v6394_v21 = vadd.f32 1.0, %v6385_v1  ;;  %vm1447_vm0 = vcmp.eq.f32.partialorder %v6360_v27, inf  ;;  %v1841_v37 = vmul.f32 1.442695, %v1785_v35 }
 0x3b0   : > { %v1786_v44 = vmul.f32 -1.3888888, %v1754_v30  ;;  %v2489_v59 = vmin.f32 %v2457_v36, 1.0  ;;  %v2729_v22 = vmul.f32 %v2697_v15, %v2361_v14  ;;  %v1652_v61 = vadd.f32 0.5, %v1620_v4  ;;  %v6412_v4 = vld [vmem:[%s4901_s25 + $0x60] sm:$0xff] }
 0x3b1   : > { %v2617_v11 = vmin.f32 %v2585_v9, 1.0  ;;  %v4330_v2 = vpop.eup %4329  ;;  %vm1449_vm1 = vcmp.eq.f32.partialorder %v6360_v27, 0.0  ;;  %v1450_v51 = vand.u32 2147483648, %v6360_v27  ;;  %vm1454_vm2 = vcmp.eq.f32.partialorder %v6363_v57, inf }
 0x3b2   : > { %v1843_v20 = vmul.f32 1.442695, %v1786_v44  ;;  %v2761_v54 = vmul.f32 %v2697_v15, %v2489_v59  ;;  %v2921_v31 = vmul.f32 %v2825_v0, %v2729_v22  ;;  %v1457_v10 = vand.u32 2147483648, %v6363_v57 }
 0x3b3   : > { %v2793_v49 = vmul.f32 %v2697_v15, %v2617_v11  ;;  %v2889_v48 = vmul.f32 %v2857_v45, %v2729_v22  ;;  %v1684_v43 = vmul.f32 0.1, %v1652_v61  ;;  %v1446_v50 = vmul.f32 %v4330_v2, %v6360_v27  ;;  %v3852_v2 = vld [vmem:[%s4880_s14 + $0x1c0] sm:$0xff] }
 0x3b4   : > { %v4332_v41 = vpop.eup %4331  ;;  %4333 = vpow2.f32 %v1841_v37  ;;  %vm1456_vm3 = vcmp.eq.f32.partialorder %v6363_v57, 0.0  ;;  %v2953_v6 = vmul.f32 1.05, %v2921_v31  ;;  %v3081_v32 = vmul.f32 %v2825_v0, %v2761_v54 }
 0x3b5   : > { %v3209_v38 = vmul.f32 %v2857_v45, %v2793_v49  ;;  %4335 = vpow2.f32 %v1843_v20  ;;  %v3241_v3 = vmul.f32 %v2825_v0, %v2793_v49  ;;  %v2298_v13 = vadd.f32 1.0, %v1684_v43 }
 0x3b6   : > { %v2394_v15 = vmul.f32 0.3, %v1684_v43  ;;  %v2522_v26 = vmul.f32 0.2, %v1684_v43  ;;  %v2985_v34 = vmin.f32 %v2953_v6, 1.0  ;;  %v1448_v5 = vsel %vm1447_vm0, %v6360_v27, %v1446_v50  ;;  %v1914_v43 = vld [vmem:[%s4880_s14 + $0xc8] sm:$0xff] }
 0x3b7   : > { %v3113_v46 = vmul.f32 1.03, %v3081_v32  ;;  %v1453_v52 = vmul.f32 %v4332_v41, %v6363_v57  ;;  %v3273_v19 = vmin.f32 %v3241_v3, 1.0  ;;  %v2330_v25 = vmul.f32 %v2298_v13, %v2074_v39  ;;  %v3853_v3 = vld [vmem:[%s4880_s14 + $0x1c8] sm:$0xff] }
 0x3b8   : > { %v2426_v35 = vadd.f32 1.0, %v2394_v15  ;;  %v2554_v42 = vsub.f32 1.0, %v2522_v26  ;;  %v3017_v47 = vadd.f32 %v2985_v34, %v2889_v48  ;;  %v3049_v7 = vmul.f32 %v2857_v45, %v2761_v54 }
 0x3b9   : > { %v3145_v30 = vmin.f32 %v3113_v46, 1.0  ;;  %v1451_v23 = vsel %vm1449_vm1, %v1450_v51, %v1448_v5  ;;  %v3305_v0 = vadd.f32 %v3273_v19, %v3209_v38  ;;  %v2362_v14 = vmin.f32 %v2330_v25, 1.0  ;;  %v6424_v51 = vld [vmem:[%s4880_s14 + $0x2c0] sm:$0xff]  ;;  %v3885_v5 = vld [vmem:[%s4880_s14 + $0x2c8] sm:$0xff] }
 0x3ba   : > { %v2458_v36 = vmul.f32 %v2426_v35, %v2170_v16  ;;  %v2586_v9 = vmul.f32 %v2554_v42, %v2266_v28  ;;  %v3337_v39 = vmin.f32 %v3017_v47, 1.0  ;;  %v1525_v44 = vmul.f32 -2.0, %v1451_v23  ;;  %v6419_v16 = vld [vmem:[%s4880_s14 + $0xc0] sm:$0xff] }
 0x3bb   : > { %v3177_v37 = vadd.f32 %v3145_v30, %v3049_v7  ;;  %v1455_v45 = vsel %vm1454_vm2, %v6363_v57, %v1453_v52  ;;  %v3466_v59 = vmin.f32 %v3305_v0, 1.0  ;;  %v2730_v22 = vmul.f32 %v6391_v62, %v2362_v14 }
 0x3bc   : > { %v2490_v27 = vmin.f32 %v2458_v36, 1.0  ;;  %v2618_v11 = vmin.f32 %v2586_v9, 1.0  ;;  %3369 = vst [vmem:[%s5615_s13 + $0xb0] sm:$0xff] %v3337_v39  ;;  %v1581_v61 = vmul.f32 1.442695, %v1525_v44  ;;  %v2667_v20 = vunpack.c.l.bf16 %v6412_v4 }
 0x3bd   : > { %v3401_v28 = vmin.f32 %v3177_v37, 1.0  ;;  %3946 = vst [vmem:[%s5615_s13 + $0x2b0] sm:$0xff] %v3466_v59  ;;  %v2858_v41 = vsub.f32 1.0, %v6385_v1  ;;  %v2922_v48 = vmul.f32 %v6394_v21, %v2730_v22  ;;  %v1127_v6 = vmul.f32 0.2, %v6020_v33 }
 0x3be   : > { %v4334_v54 = vpop.eup %4333  ;;  %v2762_v49 = vmul.f32 %v6391_v62, %v2490_v27  ;;  %v2794_v31 = vmul.f32 %v6391_v62, %v2618_v11  ;;  %4337 = vpow2.f32 %v1581_v61  ;;  %v2011_v32 = vsub.f32 1.0, %v6419_v16 }
 0x3bf   : > { %v4336_v50 = vpop.eup %4335  ;;  %3914 = vst [vmem:[%s5615_s13 + $0x1b0] sm:$0xff] %v3401_v28  ;;  %v1458_v38 = vsel %vm1456_vm3, %v1457_v10, %v1455_v45  ;;  %v2954_v13 = vmul.f32 1.05, %v2922_v48  ;;  %v2107_v15 = vsub.f32 1.0, %v3852_v2  ;;  %v2203_v1 = vsub.f32 1.05, %v6424_v51 }
 0x3c0   : > { %v3082_v62 = vmul.f32 %v6394_v21, %v2762_v49  ;;  %v3242_v26 = vmul.f32 %v6394_v21, %v2794_v31  ;;  %v1128_v34 = vmul.f32 0.2, %v6065_v55  ;;  %v1526_v46 = vmul.f32 -2.0, %v1458_v38 }
 0x3c1   : > { %v2012_v33 = vsub.f32 1.0, %v1914_v43  ;;  %v2890_v52 = vmul.f32 %v2858_v41, %v2730_v22  ;;  %v2986_v19 = vmin.f32 %v2954_v13, 1.0  ;;  %v2108_v35 = vsub.f32 1.0, %v3853_v3 }
 0x3c2   : > { %v3114_v25 = vmul.f32 1.03, %v3082_v62  ;;  %v3210_v57 = vmul.f32 %v2858_v41, %v2794_v31  ;;  %v3274_v10 = vmin.f32 %v3242_v26, 1.0  ;;  %v1583_v42 = vmul.f32 1.442695, %v1526_v46 }
 0x3c3   : > { %v1150_v47 = vadd.s32 104, %v7153_v24  ;;  %v3018_v7 = vadd.f32 %v2986_v19, %v2890_v52  ;;  %v3050_v30 = vmul.f32 %v2858_v41, %v2762_v49  ;;  %v2204_v0 = vsub.f32 1.05, %v3885_v5 }
 0x3c4   : > { %v3146_v23 = vmin.f32 %v3114_v25, 1.0  ;;  %v3306_v21 = vadd.f32 %v3274_v10, %v3210_v57  ;;  %v2043_v14 = vmul.f32 %v2011_v32, %v1127_v6  ;;  %4339 = vpow2.f32 %v1583_v42 }
 0x3c5   : > { %v1167_v55 = vadd.s32 %v7155_v60, %v1150_v47  ;;  %v3338_v9 = vmin.f32 %v3018_v7, 1.0  ;;  %v2139_v37 = vmul.f32 %v2107_v15, %v1127_v6  ;;  %v2235_v39 = vmul.f32 %v2203_v1, %v1127_v6  ;;  %v6455_v1 = vld [vmem:[%s4880_s14 + $0xd0] sm:$0xff] }
 0x3c6   : > { %v3178_v36 = vadd.f32 %v3146_v23, %v3050_v30  ;;  %v3467_v44 = vmin.f32 %v3306_v21, 1.0  ;;  %v2044_v45 = vmul.f32 %v2012_v33, %v1128_v34  ;;  %v2140_v59 = vmul.f32 %v2108_v35, %v1128_v34 }
 0x3c7   : > { %v1183_v27 = vcvt.s32.f32 %v1167_v55  ;;  %3370 = vst [vmem:[%s5615_s13 + $0xb8] sm:$0xff] %v3338_v9  ;;  %v1881_v22 = vmul.f32 0.15, %v4334_v54  ;;  %v2236_v28 = vmul.f32 %v2204_v0, %v1128_v34  ;;  %v1882_v49 = vmul.f32 0.15, %v4336_v50 }
 0x3c8   : > { %v3402_v11 = vmin.f32 %v3178_v36, 1.0  ;;  %v4338_v61 = vpop.eup %4337  ;;  %3947 = vst [vmem:[%s5615_s13 + $0x2b8] sm:$0xff] %v3467_v44  ;;  %v2668_v31 = vunpack.c.h.bf16 %v6412_v4  ;;  %v2075_v32 = vadd.f32 %v2043_v14, %v6419_v16  ;;  %v2171_v6 = vadd.f32 %v3852_v2, %v2139_v37 }
 0x3c9   : > { %v1204_v41 = vmul.f32 0.007843138, %v1183_v27  ;;  %v1621_v48 = vmul.f32 0.5, %v4338_v61  ;;  %v2699_v38 = vsub.f32 1.0, %v2667_v20  ;;  %v2267_v13 = vadd.f32 %v6424_v51, %v2235_v39  ;;  %v6468_v51 = vld [vmem:[%s4880_s14 + $0x1d0] sm:$0xff] }
 0x3ca   : > { %3915 = vst [vmem:[%s5615_s13 + $0x1b8] sm:$0xff] %v3402_v11  ;;  %v2076_v62 = vadd.f32 %v2044_v45, %v1914_v43  ;;  %v6452_v54 = vadd.f32 %v3853_v3, %v2140_v59  ;;  %v6457_v26 = vadd.f32 1.0, %v1881_v22  ;;  %v6459_v4 = vsub.f32 1.0, %v1881_v22  ;;  %v6471_v43 = vld [vmem:[%s4880_s14 + $0x2d0] sm:$0xff] }
 0x3cb   : > { %v3805_v15 = vadd.f32 -1.0, %v1204_v41  ;;  %v1653_v50 = vadd.f32 0.5, %v1621_v48  ;;  %v6461_v34 = vadd.f32 %v3885_v5, %v2236_v28  ;;  %v6463_v16 = vsub.f32 1.0, %v2668_v31 }
 0x3cc   : > { %v6465_v2 = vadd.f32 1.0, %v1882_v49  ;;  %v6473_v33 = vsub.f32 1.0, %v1882_v49  ;;  %v6476_v52 = vmul.f32 0.2, %v6080_v58  ;;  %v2013_v19 = vsub.f32 1.0, %v6455_v1 }
 0x3cd   : > { %v1242_v20 = vmul.f32 %v3805_v15, %v3805_v15  ;;  %v3825_v46 = vadd.f32 0.25, %v3805_v15  ;;  %v1685_v3 = vmul.f32 0.1, %v1653_v50  ;;  %v1151_v10 = vadd.s32 112, %v7153_v24 }
 0x3ce   : > { %v4340_v5 = vpop.eup %4339  ;;  %v2109_v58 = vsub.f32 1.0, %v6468_v51  ;;  %v2205_v23 = vsub.f32 1.05, %v6471_v43  ;;  %v6490_v0 = vmul.f32 0.2, %v6185_v56 }
 0x3cf   : > { %v6480_v25 = vadd.f32 %v1242_v20, %v7157_v8  ;;  %v6483_v35 = vadd.f32 %v1242_v20, %v7158_v18  ;;  %v1726_v57 = vmul.f32 %v3825_v46, %v3825_v46  ;;  %v2299_v42 = vadd.f32 1.0, %v1685_v3 }
 0x3d0   : > { %v2395_v47 = vmul.f32 0.3, %v1685_v3  ;;  %v2523_v7 = vmul.f32 0.2, %v1685_v3  ;;  %v1622_v30 = vmul.f32 0.5, %v4340_v5  ;;  %v6496_v37 = vadd.s32 %v7155_v60, %v1151_v10 }
 0x3d1   : > { %4341 = vrsqrt.f32 %v6480_v25  ;;  %v2331_v21 = vmul.f32 %v2299_v42, %v2075_v32  ;;  %vm1461_vm4 = vcmp.eq.f32.partialorder %v6480_v25, inf  ;;  %v1755_v9 = vadd.f32 %v1726_v57, %v7154_v17 }
 0x3d2   : > { %v2427_v14 = vadd.f32 1.0, %v2395_v47  ;;  %v2555_v55 = vsub.f32 1.0, %v2523_v7  ;;  %v1654_v36 = vadd.f32 0.5, %v1622_v30  ;;  %4343 = vrsqrt.f32 %v6483_v35 }
 0x3d3   : > { %v2363_v39 = vmin.f32 %v2331_v21, 1.0  ;;  %vm1463_vm5 = vcmp.eq.f32.partialorder %v6480_v25, 0.0  ;;  %v1464_v56 = vand.u32 2147483648, %v6480_v25  ;;  %v1787_v27 = vmul.f32 -1.3888888, %v1755_v9 }
 0x3d4   : > { %v2459_v44 = vmul.f32 %v2427_v14, %v2171_v6  ;;  %v2587_v45 = vmul.f32 %v2555_v55, %v2267_v13  ;;  %v1686_v59 = vmul.f32 0.1, %v1654_v36  ;;  %v1471_v11 = vand.u32 2147483648, %v6483_v35 }
 0x3d5   : > { %v2731_v61 = vmul.f32 %v2699_v38, %v2363_v39  ;;  %v1845_v48 = vmul.f32 1.442695, %v1787_v27  ;;  %v1756_v32 = vadd.f32 %v1726_v57, %v7156_v40  ;;  %vm1468_vm6 = vcmp.eq.f32.partialorder %v6483_v35, inf }
 0x3d6   : > { %v2491_v22 = vmin.f32 %v2459_v44, 1.0  ;;  %v2619_v28 = vmin.f32 %v2587_v45, 1.0  ;;  %v2300_v49 = vadd.f32 1.0, %v1686_v59  ;;  %v2396_v31 = vmul.f32 0.3, %v1686_v59 }
 0x3d7   : > { %v2524_v41 = vmul.f32 0.2, %v1686_v59  ;;  %v2923_v13 = vmul.f32 %v6457_v26, %v2731_v61  ;;  %v1184_v50 = vcvt.s32.f32 %v6496_v37  ;;  %v2891_v20 = vmul.f32 %v6459_v4, %v2731_v61 }
 0x3d8   : > { %v2763_v15 = vmul.f32 %v2699_v38, %v2491_v22  ;;  %v2795_v6 = vmul.f32 %v2699_v38, %v2619_v28  ;;  %v2332_v46 = vmul.f32 %v2300_v49, %v2076_v62  ;;  %v2428_v3 = vadd.f32 1.0, %v2396_v31 }
 0x3d9   : > { %v2556_v5 = vsub.f32 1.0, %v2524_v41  ;;  %v2955_v10 = vmul.f32 1.05, %v2923_v13  ;;  %4345 = vpow2.f32 %v1845_v48  ;;  %vm1470_vm7 = vcmp.eq.f32.partialorder %v6483_v35, 0.0 }
 0x3da   : > { %v3051_v42 = vmul.f32 %v6459_v4, %v2763_v15  ;;  %v3083_v47 = vmul.f32 %v6457_v26, %v2763_v15  ;;  %v3243_v57 = vmul.f32 %v6457_v26, %v2795_v6  ;;  %v2364_v7 = vmin.f32 %v2332_v46, 1.0 }
 0x3db   : > { %v4342_v38 = vpop.eup %4341  ;;  %v2460_v30 = vmul.f32 %v2428_v3, %v6452_v54  ;;  %v2588_v21 = vmul.f32 %v2556_v5, %v6461_v34  ;;  %v2987_v14 = vmin.f32 %v2955_v10, 1.0  ;;  %v3211_v55 = vmul.f32 %v6459_v4, %v2795_v6  ;;  %v6530_v3 = vld [vmem:[%s4880_s14 + $0xd8] sm:$0xff] }
 0x3dc   : > { %v3115_v62 = vmul.f32 1.03, %v3083_v47  ;;  %v1460_v36 = vmul.f32 %v4342_v38, %v6480_v25  ;;  %v4344_v9 = vpop.eup %4343  ;;  %v3275_v37 = vmin.f32 %v3243_v57, 1.0  ;;  %v2732_v45 = vmul.f32 %v6463_v16, %v2364_v7 }
 0x3dd   : > { %v2492_v39 = vmin.f32 %v2460_v30, 1.0  ;;  %v2620_v44 = vmin.f32 %v2588_v21, 1.0  ;;  %v3019_v59 = vadd.f32 %v2987_v14, %v2891_v20  ;;  %v1788_v34 = vmul.f32 -1.3888888, %v1756_v32  ;;  %v3887_v14 = vld [vmem:[%s4880_s14 + $0x2d8] sm:$0xff] }
 0x3de   : > { %v3147_v26 = vmin.f32 %v3115_v62, 1.0  ;;  %v1462_v54 = vsel %vm1461_vm4, %v6480_v25, %v1460_v36  ;;  %v3307_v27 = vadd.f32 %v3275_v37, %v3211_v55  ;;  %v1467_v28 = vmul.f32 %v4344_v9, %v6483_v35 }
 0x3df   : > { %v2764_v22 = vmul.f32 %v6463_v16, %v2492_v39  ;;  %v2796_v4 = vmul.f32 %v6463_v16, %v2620_v44  ;;  %v3339_v49 = vmin.f32 %v3019_v59, 1.0  ;;  %v2924_v31 = vmul.f32 %v6465_v2, %v2732_v45 }
 0x3e0   : > { %v3179_v61 = vadd.f32 %v3147_v26, %v3051_v42  ;;  %v1465_v41 = vsel %vm1463_vm5, %v1464_v56, %v1462_v54  ;;  %v3468_v48 = vmin.f32 %v3307_v27, 1.0  ;;  %v2892_v32 = vmul.f32 %v6473_v33, %v2732_v45  ;;  %v2640_v26 = vld [vmem:[%s4901_s25 + $0x68] sm:$0xff] }
 0x3e1   : > { %v3052_v15 = vmul.f32 %v6473_v33, %v2764_v22  ;;  %v3084_v6 = vmul.f32 %v6465_v2, %v2764_v22  ;;  %3371 = vst [vmem:[%s5615_s13 + $0xc0] sm:$0xff] %v3339_v49  ;;  %v2956_v13 = vmul.f32 1.05, %v2924_v31  ;;  %v3244_v20 = vmul.f32 %v6465_v2, %v2796_v4  ;;  %v3855_v2 = vld [vmem:[%s4880_s14 + $0x1d8] sm:$0xff]  ;;  %v6565_v49 = vld [vmem:[%s4880_s14 + $0xe0] sm:$0xff] }
 0x3e2   : > { %v3403_v16 = vmin.f32 %v3179_v61, 1.0  ;;  %v1527_v46 = vmul.f32 -2.0, %v1465_v41  ;;  %3948 = vst [vmem:[%s5615_s13 + $0x2c0] sm:$0xff] %v3468_v48  ;;  %v1469_v56 = vsel %vm1468_vm6, %v6483_v35, %v1467_v28  ;;  %v1847_v5 = vmul.f32 1.442695, %v1788_v34 }
 0x3e3   : > { %v3116_v25 = vmul.f32 1.03, %v3084_v6  ;;  %v1205_v10 = vmul.f32 0.007843138, %v1184_v50  ;;  %v4346_v42 = vpop.eup %4345  ;;  %v2988_v47 = vmin.f32 %v2956_v13, 1.0  ;;  %v3212_v38 = vmul.f32 %v6473_v33, %v2796_v4 }
 0x3e4   : > { %3916 = vst [vmem:[%s5615_s13 + $0x1c0] sm:$0xff] %v3403_v16  ;;  %v3276_v57 = vmin.f32 %v3244_v20, 1.0  ;;  %v1585_v7 = vmul.f32 1.442695, %v1527_v46  ;;  %v1472_v21 = vsel %vm1470_vm7, %v1471_v11, %v1469_v56  ;;  %4347 = vpow2.f32 %v1847_v5 }
 0x3e5   : > { %v3148_v30 = vmin.f32 %v3116_v25, 1.0  ;;  %v3806_v62 = vadd.f32 -1.0, %v1205_v10  ;;  %v3020_v55 = vadd.f32 %v2988_v47, %v2892_v32  ;;  %v2014_v33 = vsub.f32 1.0, %v6530_v3  ;;  %v6570_v32 = vld [vmem:[%s4880_s14 + $0x1e0] sm:$0xff] }
 0x3e6   : > { %v3308_v50 = vadd.f32 %v3276_v57, %v3212_v38  ;;  %4349 = vpow2.f32 %v1585_v7  ;;  %v1528_v9 = vmul.f32 -2.0, %v1472_v21  ;;  %v2110_v37 = vsub.f32 1.0, %v3855_v2 }
 0x3e7   : > { %v3180_v36 = vadd.f32 %v3148_v30, %v3052_v15  ;;  %v1243_v39 = vmul.f32 %v3806_v62, %v3806_v62  ;;  %v3340_v44 = vmin.f32 %v3020_v55, 1.0  ;;  %v2206_v35 = vsub.f32 1.05, %v3887_v14 }
 0x3e8   : > { %v3469_v45 = vmin.f32 %v3308_v50, 1.0  ;;  %v3826_v11 = vadd.f32 0.25, %v3806_v62  ;;  %v1587_v54 = vmul.f32 1.442695, %v1528_v9  ;;  %v2045_v4 = vmul.f32 %v2013_v19, %v6476_v52 }
 0x3e9   : > { %v3404_v59 = vmin.f32 %v3180_v36, 1.0  ;;  %v6547_v34 = vadd.f32 %v1243_v39, %v7157_v8  ;;  %v6550_v27 = vadd.f32 %v1243_v39, %v7158_v18  ;;  %3372 = vst [vmem:[%s5615_s13 + $0xc8] sm:$0xff] %v3340_v44  ;;  %v2141_v28 = vmul.f32 %v2109_v58, %v6476_v52 }
 0x3ea   : > { %3949 = vst [vmem:[%s5615_s13 + $0x2c8] sm:$0xff] %v3469_v45  ;;  %v1727_v22 = vmul.f32 %v3826_v11, %v3826_v11  ;;  %v2237_v61 = vmul.f32 %v2205_v23, %v6476_v52  ;;  %4351 = vpow2.f32 %v1587_v54  ;;  %v2669_v31 = vunpack.c.l.bf16 %v2640_v26 }
 0x3eb   : > { %3917 = vst [vmem:[%s5615_s13 + $0x1c8] sm:$0xff] %v3404_v59  ;;  %v2670_v41 = vunpack.c.h.bf16 %v2640_v26  ;;  %4353 = vrsqrt.f32 %v6547_v34  ;;  %v2046_v19 = vmul.f32 %v2014_v33, %v6490_v0  ;;  %v2142_v58 = vmul.f32 %v2110_v37, %v6490_v0 }
 0x3ec   : > { %v1757_v48 = vadd.f32 %v1727_v22, %v7154_v17  ;;  %v2238_v15 = vmul.f32 %v2206_v35, %v6490_v0  ;;  %4355 = vrsqrt.f32 %v6550_v27  ;;  %v1883_v52 = vmul.f32 0.15, %v4346_v42  ;;  %v6589_v42 = vld [vmem:[%s4880_s14 + $0x2e0] sm:$0xff] }
 0x3ed   : > { %v6577_v23 = vmul.f32 0.2, %v6216_v12  ;;  %v2015_v6 = vsub.f32 1.0, %v6565_v49  ;;  %v2077_v13 = vadd.f32 %v2045_v4, %v6455_v1  ;;  %v2173_v20 = vadd.f32 %v6468_v51, %v2141_v28 }
 0x3ee   : > { %v4348_v16 = vpop.eup %4347  ;;  %v2111_v46 = vsub.f32 1.0, %v6570_v32  ;;  %v2269_v56 = vadd.f32 %v6471_v43, %v2237_v61  ;;  %v6584_v5 = vsub.f32 1.0, %v2669_v31  ;;  %v6586_v0 = vsub.f32 1.0, %v2670_v41 }
 0x3ef   : > { %v1789_v10 = vmul.f32 -1.3888888, %v1757_v48  ;;  %v2078_v47 = vadd.f32 %v2046_v19, %v6530_v3  ;;  %v6592_v38 = vadd.f32 %v3855_v2, %v2142_v58  ;;  %v6594_v1 = vadd.f32 %v3887_v14, %v2238_v15 }
 0x3f0   : > { %v4350_v25 = vpop.eup %4349  ;;  %v6596_v51 = vadd.f32 1.0, %v1883_v52  ;;  %v1884_v57 = vmul.f32 0.15, %v4348_v16  ;;  %v6599_v7 = vmul.f32 %v2015_v6, %v6577_v23  ;;  %v1758_v43 = vadd.f32 %v1727_v22, %v7156_v40 }
 0x3f1   : > { %v1623_v12 = vmul.f32 0.5, %v4350_v25  ;;  %v6602_v21 = vsub.f32 1.0, %v1883_v52  ;;  %v6605_v62 = vmul.f32 %v2111_v46, %v6577_v23  ;;  %v2207_v3 = vsub.f32 1.05, %v6589_v42 }
 0x3f2   : > { %vm1475_vm8 = vcmp.eq.f32.partialorder %v6547_v34, inf  ;;  %vm1477_vm9 = vcmp.eq.f32.partialorder %v6547_v34, 0.0  ;;  %v1849_v2 = vmul.f32 1.442695, %v1789_v10  ;;  %v1152_v14 = vadd.s32 120, %v7153_v24 }
 0x3f3   : > { %v1655_v30 = vadd.f32 0.5, %v1623_v12  ;;  %v1478_v33 = vand.u32 2147483648, %v6547_v34  ;;  %v6613_v36 = vmul.f32 0.2, %v6310_v29  ;;  %vm1482_vm10 = vcmp.eq.f32.partialorder %v6550_v27, inf }
 0x3f4   : > { %v4352_v55 = vpop.eup %4351  ;;  %v6616_v39 = vadd.f32 1.0, %v1884_v57  ;;  %vm1484_vm11 = vcmp.eq.f32.partialorder %v6550_v27, 0.0  ;;  %v1485_v44 = vand.u32 2147483648, %v6550_v27  ;;  %v1790_v45 = vmul.f32 -1.3888888, %v1758_v43 }
 0x3f5   : > { %v1687_v50 = vmul.f32 0.1, %v1655_v30  ;;  %v4354_v9 = vpop.eup %4353  ;;  %v1624_v37 = vmul.f32 0.5, %v4352_v55  ;;  %v6621_v29 = vsub.f32 1.0, %v1884_v57  ;;  %4357 = vpow2.f32 %v1849_v2 }
 0x3f6   : > { %v4356_v35 = vpop.eup %4355  ;;  %v1474_v26 = vmul.f32 %v4354_v9, %v6547_v34  ;;  %v1169_v22 = vadd.s32 %v7155_v60, %v1152_v14  ;;  %v1851_v58 = vmul.f32 1.442695, %v1790_v45 }
 0x3f7   : > { %v2301_v24 = vadd.f32 1.0, %v1687_v50  ;;  %v2397_v11 = vmul.f32 0.3, %v1687_v50  ;;  %v2525_v59 = vmul.f32 0.2, %v1687_v50  ;;  %v1656_v54 = vadd.f32 0.5, %v1624_v37 }
 0x3f8   : > { %v1476_v31 = vsel %vm1475_vm8, %v6547_v34, %v1474_v26  ;;  %v1481_v19 = vmul.f32 %v4356_v35, %v6550_v27  ;;  %v1185_v25 = vcvt.s32.f32 %v1169_v22  ;;  %4359 = vpow2.f32 %v1851_v58 }
 0x3f9   : > { %v2333_v4 = vmul.f32 %v2301_v24, %v2077_v13  ;;  %v2429_v28 = vadd.f32 1.0, %v2397_v11  ;;  %v2557_v61 = vsub.f32 1.0, %v2525_v59  ;;  %v1688_v41 = vmul.f32 0.1, %v1656_v54 }
 0x3fa   : > { %v1479_v48 = vsel %vm1477_vm9, %v1478_v33, %v1476_v31  ;;  %v1483_v14 = vsel %vm1482_vm10, %v6550_v27, %v1481_v19  ;;  %v1206_v35 = vmul.f32 0.007843138, %v1185_v25 }
 0x3fb   : > { %v2365_v15 = vmin.f32 %v2333_v4, 1.0  ;;  %v2461_v52 = vmul.f32 %v2429_v28, %v2173_v20  ;;  %v2589_v6 = vmul.f32 %v2557_v61, %v2269_v56  ;;  %v1529_v16 = vmul.f32 -2.0, %v1479_v48  ;;  %v6649_v4 = vld [vmem:[%s4880_s14 + $0xe8] sm:$0xff] }
 0x3fc   : > { %v2302_v46 = vadd.f32 1.0, %v1688_v41  ;;  %v2398_v60 = vmul.f32 0.3, %v1688_v41  ;;  %v2526_v13 = vmul.f32 0.2, %v1688_v41  ;;  %v1486_v45 = vsel %vm1484_vm11, %v1485_v44, %v1483_v14 }
 0x3fd   : > { %v2493_v10 = vmin.f32 %v2461_v52, 1.0  ;;  %v2621_v12 = vmin.f32 %v2589_v6, 1.0  ;;  %v2733_v57 = vmul.f32 %v6584_v5, %v2365_v15  ;;  %v1589_v43 = vmul.f32 1.442695, %v1529_v16 }
 0x3fe   : > { %v2334_v30 = vmul.f32 %v2302_v46, %v2078_v47  ;;  %v2430_v2 = vadd.f32 1.0, %v2398_v60  ;;  %v2558_v34 = vsub.f32 1.0, %v2526_v13  ;;  %v1530_v48 = vmul.f32 -2.0, %v1486_v45 }
 0x3ff   : > { %v2765_v20 = vmul.f32 %v6584_v5, %v2493_v10  ;;  %v2797_v56 = vmul.f32 %v6584_v5, %v2621_v12  ;;  %v2925_v55 = vmul.f32 %v6596_v51, %v2733_v57  ;;  %4361 = vpow2.f32 %v1589_v43  ;;  %v6642_v24 = vpop.eup %4357 }
 0x400   : > { %v2366_v50 = vmin.f32 %v2334_v30, 1.0  ;;  %v2462_v33 = vmul.f32 %v2430_v2, %v6592_v38  ;;  %v2590_v9 = vmul.f32 %v2558_v34, %v6594_v1  ;;  %v2893_v38 = vmul.f32 %v6602_v21, %v2733_v57 }
 0x401   : > { %v2957_v47 = vmul.f32 1.05, %v2925_v55  ;;  %v3085_v37 = vmul.f32 %v6596_v51, %v2765_v20  ;;  %v3245_v5 = vmul.f32 %v6596_v51, %v2797_v56  ;;  %v3053_v1 = vmul.f32 %v6602_v21, %v2765_v20 }
 0x402   : > { %v2494_v11 = vmin.f32 %v2462_v33, 1.0  ;;  %v2622_v59 = vmin.f32 %v2590_v9, 1.0  ;;  %v2734_v26 = vmul.f32 %v6586_v0, %v2366_v50  ;;  %v3213_v27 = vmul.f32 %v6602_v21, %v2797_v56  ;;  %v4360_v12 = vpop.eup %4359  ;;  %v3889_v33 = vld [vmem:[%s4880_s14 + $0x2e8] sm:$0xff] }
 0x403   : > { %v2989_v54 = vmin.f32 %v2957_v47, 1.0  ;;  %v3117_v22 = vmul.f32 1.03, %v3085_v37  ;;  %v3277_v44 = vmin.f32 %v3245_v5, 1.0  ;;  %v2016_v52 = vsub.f32 1.0, %v6649_v4  ;;  %v2641_v37 = vld [vmem:[%s4901_s25 + $0x70] sm:$0xff] }
 0x404   : > { %v2766_v28 = vmul.f32 %v6586_v0, %v2494_v11  ;;  %v2798_v51 = vmul.f32 %v6586_v0, %v2622_v59  ;;  %v2926_v41 = vmul.f32 %v6616_v39, %v2734_v26  ;;  %v2894_v58 = vmul.f32 %v6621_v29, %v2734_v26  ;;  %v3857_v0 = vld [vmem:[%s4880_s14 + $0x1e8] sm:$0xff] }
 0x405   : > { %v3021_v61 = vadd.f32 %v2989_v54, %v2893_v38  ;;  %v3149_v31 = vmin.f32 %v3117_v22, 1.0  ;;  %v3309_v19 = vadd.f32 %v3277_v44, %v3213_v27  ;;  %v1591_v25 = vmul.f32 1.442695, %v1530_v48 }
 0x406   : > { %v3086_v15 = vmul.f32 %v6616_v39, %v2766_v28  ;;  %v2958_v16 = vmul.f32 1.05, %v2926_v41  ;;  %v3246_v46 = vmul.f32 %v6616_v39, %v2798_v51  ;;  %v3807_v10 = vadd.f32 -1.0, %v1206_v35 }
 0x407   : > { %v3181_v21 = vadd.f32 %v3149_v31, %v3053_v1  ;;  %v3341_v6 = vmin.f32 %v3021_v61, 1.0  ;;  %v3470_v60 = vmin.f32 %v3309_v19, 1.0  ;;  %v3214_v30 = vmul.f32 %v6621_v29, %v2798_v51 }
 0x408   : > { %v3118_v13 = vmul.f32 1.03, %v3086_v15  ;;  %v2990_v43 = vmin.f32 %v2958_v16, 1.0  ;;  %v3278_v2 = vmin.f32 %v3246_v46, 1.0  ;;  %v3054_v14 = vmul.f32 %v6621_v29, %v2766_v28 }
 0x409   : > { %3373 = vst [vmem:[%s5615_s13 + $0xd0] sm:$0xff] %v3341_v6  ;;  %v3405_v57 = vmin.f32 %v3181_v21, 1.0  ;;  %v4362_v34 = vpop.eup %4361  ;;  %3950 = vst [vmem:[%s5615_s13 + $0x2d0] sm:$0xff] %v3470_v60  ;;  %4363 = vpow2.f32 %v1591_v25  ;;  %v1244_v20 = vmul.f32 %v3807_v10, %v3807_v10  ;;  %v2112_v9 = vsub.f32 1.0, %v3857_v0 }
 0x40a   : > { %v3150_v39 = vmin.f32 %v3118_v13, 1.0  ;;  %v3022_v56 = vadd.f32 %v2990_v43, %v2894_v58  ;;  %v3310_v55 = vadd.f32 %v3278_v2, %v3214_v30  ;;  %v1625_v50 = vmul.f32 0.5, %v4362_v34 }
 0x40b   : > { %3918 = vst [vmem:[%s5615_s13 + $0x1d0] sm:$0xff] %v3405_v57  ;;  %v6668_v45 = vadd.f32 %v1244_v20, %v7157_v8  ;;  %v6671_v35 = vadd.f32 %v1244_v20, %v7158_v18  ;;  %v3827_v29 = vadd.f32 0.25, %v3807_v10  ;;  %v2239_v26 = vmul.f32 %v2207_v3, %v6577_v23 }
 0x40c   : > { %v3182_v47 = vadd.f32 %v3150_v39, %v3054_v14  ;;  %v3342_v5 = vmin.f32 %v3022_v56, 1.0  ;;  %v3471_v11 = vmin.f32 %v3310_v55, 1.0  ;;  %v1657_v59 = vadd.f32 0.5, %v1625_v50 }
 0x40d   : > { %v2079_v54 = vadd.f32 %v6599_v7, %v6565_v49  ;;  %v2208_v1 = vsub.f32 1.05, %v3889_v33  ;;  %4365 = vrsqrt.f32 %v6668_v45  ;;  %v2175_v18 = vadd.f32 %v6570_v32, %v6605_v62 }
 0x40e   : > { %v3406_v38 = vmin.f32 %v3182_v47, 1.0  ;;  %3374 = vst [vmem:[%s5615_s13 + $0xd8] sm:$0xff] %v3342_v5  ;;  %3951 = vst [vmem:[%s5615_s13 + $0x2d8] sm:$0xff] %v3471_v11  ;;  %v1689_v8 = vmul.f32 0.1, %v1657_v59  ;;  %v2671_v22 = vunpack.c.l.bf16 %v2641_v37  ;;  %v2048_v27 = vmul.f32 %v2016_v52, %v6613_v36 }
 0x40f   : > { %v1885_v44 = vmul.f32 0.15, %v6642_v24  ;;  %v2144_v23 = vmul.f32 %v2112_v9, %v6613_v36  ;;  %v1728_v3 = vmul.f32 %v3827_v29, %v3827_v29  ;;  %4367 = vrsqrt.f32 %v6671_v35 }
 0x410   : > { %3919 = vst [vmem:[%s5615_s13 + $0x1d8] sm:$0xff] %v3406_v38  ;;  %v2271_v49 = vadd.f32 %v6589_v42, %v2239_v26  ;;  %v2303_v7 = vadd.f32 1.0, %v1689_v8  ;;  %v2399_v28 = vmul.f32 0.3, %v1689_v8  ;;  %v2527_v51 = vmul.f32 0.2, %v1689_v8 }
 0x411   : > { %v6689_v61 = vmul.f32 0.15, %v4360_v12  ;;  %v2240_v32 = vmul.f32 %v2208_v1, %v6613_v36  ;;  %v2672_v62 = vunpack.c.h.bf16 %v2641_v37  ;;  %v2703_v19 = vsub.f32 1.0, %v2671_v22 }
 0x412   : > { %v2335_v31 = vmul.f32 %v2303_v7, %v2079_v54  ;;  %v2431_v41 = vadd.f32 1.0, %v2399_v28  ;;  %v2559_v48 = vsub.f32 1.0, %v2527_v51  ;;  %v2831_v58 = vadd.f32 1.0, %v1885_v44 }
 0x413   : > { %v4364_v24 = vpop.eup %4363  ;;  %v2080_v15 = vadd.f32 %v2048_v27, %v6649_v4  ;;  %v2176_v52 = vadd.f32 %v3857_v0, %v2144_v23  ;;  %v1759_v21 = vadd.f32 %v1728_v3, %v7154_v17  ;;  %v2863_v60 = vsub.f32 1.0, %v1885_v44 }
 0x414   : > { %v2367_v42 = vmin.f32 %v2335_v31, 1.0  ;;  %v2463_v6 = vmul.f32 %v2431_v41, %v2175_v18  ;;  %v2591_v16 = vmul.f32 %v2559_v48, %v2271_v49  ;;  %v1626_v46 = vmul.f32 0.5, %v4364_v24 }
 0x415   : > { %v2272_v13 = vadd.f32 %v3889_v33, %v2240_v32  ;;  %v2704_v25 = vsub.f32 1.0, %v2672_v62  ;;  %v6695_v36 = vadd.f32 1.0, %v6689_v61  ;;  %vm1489_vm12 = vcmp.eq.f32.partialorder %v6668_v45, inf }
 0x416   : > { %v2495_v10 = vmin.f32 %v2463_v6, 1.0  ;;  %v2623_v12 = vmin.f32 %v2591_v16, 1.0  ;;  %v2735_v57 = vmul.f32 %v2703_v19, %v2367_v42  ;;  %v1658_v43 = vadd.f32 0.5, %v1626_v46 }
 0x417   : > { %v4366_v30 = vpop.eup %4365  ;;  %vm1491_vm13 = vcmp.eq.f32.partialorder %v6668_v45, 0.0  ;;  %v1492_v17 = vand.u32 2147483648, %v6668_v45  ;;  %vm1496_vm14 = vcmp.eq.f32.partialorder %v6671_v35, inf  ;;  %v1791_v34 = vmul.f32 -1.3888888, %v1759_v21 }
 0x418   : > { %v2767_v4 = vmul.f32 %v2703_v19, %v2495_v10  ;;  %v2799_v0 = vmul.f32 %v2703_v19, %v2623_v12  ;;  %v2927_v2 = vmul.f32 %v2831_v58, %v2735_v57  ;;  %v1690_v39 = vmul.f32 0.1, %v1658_v43 }
 0x419   : > { %v4368_v14 = vpop.eup %4367  ;;  %v1488_v20 = vmul.f32 %v4366_v30, %v6668_v45  ;;  %vm1498_vm15 = vcmp.eq.f32.partialorder %v6671_v35, 0.0  ;;  %v1499_v56 = vand.u32 2147483648, %v6671_v35  ;;  %v1760_v55 = vadd.f32 %v1728_v3, %v7156_v40 }
 0x41a   : > { %v2895_v50 = vmul.f32 %v2863_v60, %v2735_v57  ;;  %v2959_v33 = vmul.f32 1.05, %v2927_v2  ;;  %v3087_v9 = vmul.f32 %v2831_v58, %v2767_v4  ;;  %v3215_v47 = vmul.f32 %v2863_v60, %v2799_v0 }
 0x41b   : > { %v3247_v37 = vmul.f32 %v2831_v58, %v2799_v0  ;;  %v2304_v29 = vadd.f32 1.0, %v1690_v39  ;;  %v2400_v5 = vmul.f32 0.3, %v1690_v39  ;;  %v2528_v11 = vmul.f32 0.2, %v1690_v39 }
 0x41c   : > { %v2991_v59 = vmin.f32 %v2959_v33, 1.0  ;;  %v3119_v26 = vmul.f32 1.03, %v3087_v9  ;;  %v1490_v38 = vsel %vm1489_vm12, %v6668_v45, %v1488_v20  ;;  %v1495_v54 = vmul.f32 %v4368_v14, %v6671_v35  ;;  %v3890_v14 = vld [vmem:[%s4880_s14 + $0x2f0] sm:$0xff] }
 0x41d   : > { %v3279_v1 = vmin.f32 %v3247_v37, 1.0  ;;  %v2336_v8 = vmul.f32 %v2304_v29, %v2080_v15  ;;  %v2432_v18 = vadd.f32 1.0, %v2400_v5  ;;  %v2560_v40 = vsub.f32 1.0, %v2528_v11 }
 0x41e   : > { %v3023_v22 = vadd.f32 %v2991_v59, %v2895_v50  ;;  %v3055_v27 = vmul.f32 %v2863_v60, %v2767_v4  ;;  %v3151_v44 = vmin.f32 %v3119_v26, 1.0  ;;  %v1493_v23 = vsel %vm1491_vm13, %v1492_v17, %v1490_v38  ;;  %v1919_v17 = vld [vmem:[%s4880_s14 + $0xf0] sm:$0xff]  ;;  %v2642_v59 = vld [vmem:[%s4901_s25 + $0x78] sm:$0xff] }
 0x41f   : > { %v3311_v3 = vadd.f32 %v3279_v1, %v3215_v47  ;;  %v2368_v49 = vmin.f32 %v2336_v8, 1.0  ;;  %v2464_v7 = vmul.f32 %v2432_v18, %v2176_v52  ;;  %v2592_v28 = vmul.f32 %v2560_v40, %v2272_v13  ;;  %v3858_v4 = vld [vmem:[%s4880_s14 + $0x1f0] sm:$0xff]  ;;  %v1920_v26 = vld [vmem:[%s4880_s14 + $0xf8] sm:$0xff] }
 0x420   : > { %v3183_v51 = vadd.f32 %v3151_v44, %v3055_v27  ;;  %v3343_v32 = vmin.f32 %v3023_v22, 1.0  ;;  %v1531_v62 = vmul.f32 -2.0, %v1493_v23  ;;  %v1497_v31 = vsel %vm1496_vm14, %v6671_v35, %v1495_v54  ;;  %v3859_v8 = vld [vmem:[%s4880_s14 + $0x1f8] sm:$0xff] }
 0x421   : > { %v3472_v41 = vmin.f32 %v3311_v3, 1.0  ;;  %v2496_v48 = vmin.f32 %v2464_v7, 1.0  ;;  %v2624_v19 = vmin.f32 %v2592_v28, 1.0  ;;  %v2736_v24 = vmul.f32 %v2704_v25, %v2368_v49  ;;  %v3891_v18 = vld [vmem:[%s4880_s14 + $0x2f8] sm:$0xff] }
 0x422   : > { %3375 = vst [vmem:[%s5615_s13 + $0xe0] sm:$0xff] %v3343_v32  ;;  %v3407_v45 = vmin.f32 %v3183_v51, 1.0  ;;  %v2864_v58 = vsub.f32 1.0, %v6689_v61  ;;  %v1593_v15 = vmul.f32 1.442695, %v1531_v62  ;;  %v1500_v16 = vsel %vm1498_vm15, %v1499_v56, %v1497_v31 }
 0x423   : > { %3952 = vst [vmem:[%s5615_s13 + $0x2e0] sm:$0xff] %v3472_v41  ;;  %v2768_v52 = vmul.f32 %v2704_v25, %v2496_v48  ;;  %v2800_v21 = vmul.f32 %v2704_v25, %v2624_v19  ;;  %v2928_v42 = vmul.f32 %v6695_v36, %v2736_v24  ;;  %v1853_v6 = vmul.f32 1.442695, %v1791_v34 }
 0x424   : > { %3920 = vst [vmem:[%s5615_s13 + $0x1e0] sm:$0xff] %v3407_v45  ;;  %4369 = vpow2.f32 %v1593_v15  ;;  %v1792_v13 = vmul.f32 -1.3888888, %v1760_v55  ;;  %v1532_v10 = vmul.f32 -2.0, %v1500_v16  ;;  %v2896_v12 = vmul.f32 %v2864_v58, %v2736_v24 }
 0x425   : > { %v2960_v46 = vmul.f32 1.05, %v2928_v42  ;;  %v3088_v60 = vmul.f32 %v6695_v36, %v2768_v52  ;;  %v3248_v61 = vmul.f32 %v6695_v36, %v2800_v21  ;;  %4371 = vpow2.f32 %v1853_v6 }
 0x426   : > { %v3216_v43 = vmul.f32 %v2864_v58, %v2800_v21  ;;  %v1595_v0 = vmul.f32 1.442695, %v1532_v10  ;;  %v3056_v2 = vmul.f32 %v2864_v58, %v2768_v52  ;;  %v1855_v39 = vmul.f32 1.442695, %v1792_v13 }
 0x427   : > { %v2992_v25 = vmin.f32 %v2960_v46, 1.0  ;;  %v3120_v57 = vmul.f32 1.03, %v3088_v60  ;;  %v3280_v30 = vmin.f32 %v3248_v61, 1.0  ;;  %v1133_v36 = vmul.f32 0.2, %v6335_v53 }
 0x428   : > { %4373 = vpow2.f32 %v1595_v0  ;;  %v2017_v50 = vsub.f32 1.0, %v1919_v17  ;;  %v2113_v33 = vsub.f32 1.0, %v3858_v4  ;;  %v2209_v47 = vsub.f32 1.05, %v3890_v14 }
 0x429   : > { %v3024_v35 = vadd.f32 %v2992_v25, %v2896_v12  ;;  %v3152_v34 = vmin.f32 %v3120_v57, 1.0  ;;  %v3312_v20 = vadd.f32 %v3280_v30, %v3216_v43  ;;  %4375 = vpow2.f32 %v1855_v39 }
 0x42a   : > { %v2049_v11 = vmul.f32 %v2017_v50, %v1133_v36  ;;  %v2145_v53 = vmul.f32 %v2113_v33, %v1133_v36  ;;  %v2241_v38 = vmul.f32 %v2209_v47, %v1133_v36  ;;  %v2673_v40 = vunpack.c.l.bf16 %v2642_v59 }
 0x42b   : > { %v3184_v56 = vadd.f32 %v3152_v34, %v3056_v2  ;;  %v3344_v55 = vmin.f32 %v3024_v35, 1.0  ;;  %v3473_v9 = vmin.f32 %v3312_v20, 1.0  ;;  %v1134_v22 = vmul.f32 0.2, %v6403_v63 }
 0x42c   : > { %v2018_v27 = vsub.f32 1.0, %v1920_v26  ;;  %v2081_v23 = vadd.f32 %v2049_v11, %v1919_v17  ;;  %v2177_v3 = vadd.f32 %v3858_v4, %v2145_v53  ;;  %v2273_v28 = vadd.f32 %v3890_v14, %v2241_v38 }
 0x42d   : > { %3376 = vst [vmem:[%s5615_s13 + $0xe8] sm:$0xff] %v3344_v55  ;;  %v3408_v37 = vmin.f32 %v3184_v56, 1.0  ;;  %3953 = vst [vmem:[%s5615_s13 + $0x2e8] sm:$0xff] %v3473_v9  ;;  %v2114_v51 = vsub.f32 1.0, %v3859_v8  ;;  %v2210_v32 = vsub.f32 1.05, %v3891_v18  ;;  %v2674_v12 = vunpack.c.h.bf16 %v2642_v59 }
 0x42e   : > { %v4370_v29 = vpop.eup %4369  ;;  %v2705_v19 = vsub.f32 1.0, %v2673_v40  ;;  %v2050_v24 = vmul.f32 %v2018_v27, %v1134_v22 }
 0x42f   : > { %3921 = vst [vmem:[%s5615_s13 + $0x1e8] sm:$0xff] %v3408_v37  ;;  %v1627_v5 = vmul.f32 0.5, %v4370_v29  ;;  %v4372_v54 = vpop.eup %4371  ;;  %v2146_v42 = vmul.f32 %v2114_v51, %v1134_v22  ;;  %v2242_v6 = vmul.f32 %v2210_v32, %v1134_v22  ;;  %v2706_v55 = vsub.f32 1.0, %v2674_v12 }
 0x430   : > { %v1887_v7 = vmul.f32 0.15, %v4372_v54  ;;  %v2082_v10 = vadd.f32 %v2050_v24, %v1920_v26 }
 0x431   : > { %v1659_v1 = vadd.f32 0.5, %v1627_v5  ;;  %v2178_v17 = vadd.f32 %v3859_v8, %v2146_v42  ;;  %v2274_v4 = vadd.f32 %v3891_v18, %v2242_v6 }
 0x432   : > { %v4374_v49 = vpop.eup %4373  ;;  %v2833_v21 = vadd.f32 1.0, %v1887_v7  ;;  %v2865_v14 = vsub.f32 1.0, %v1887_v7 }
 0x433   : > { %v1691_v44 = vmul.f32 0.1, %v1659_v1  ;;  %v1628_v48 = vmul.f32 0.5, %v4374_v49  ;;  %v4376_v45 = vpop.eup %4375 }
 0x434   : > { %v1888_v61 = vmul.f32 0.15, %v4376_v45 }
 0x435   : > { %v2305_v62 = vadd.f32 1.0, %v1691_v44  ;;  %v2401_v31 = vmul.f32 0.3, %v1691_v44  ;;  %v2529_v41 = vmul.f32 0.2, %v1691_v44  ;;  %v1660_v63 = vadd.f32 0.5, %v1628_v48 }
 0x436   : > { %v2834_v9 = vadd.f32 1.0, %v1888_v61  ;;  %v2866_v7 = vsub.f32 1.0, %v1888_v61 }
 0x437   : > { %v2337_v58 = vmul.f32 %v2305_v62, %v2081_v23  ;;  %v2433_v15 = vadd.f32 1.0, %v2401_v31  ;;  %v2561_v52 = vsub.f32 1.0, %v2529_v41  ;;  %v1692_v13 = vmul.f32 0.1, %v1660_v63 }
 0x439   : > { %v2369_v16 = vmin.f32 %v2337_v58, 1.0  ;;  %v2465_v46 = vmul.f32 %v2433_v15, %v2177_v3  ;;  %v2593_v60 = vmul.f32 %v2561_v52, %v2273_v28  ;;  %v2306_v30 = vadd.f32 1.0, %v1692_v13 }
 0x43a   : > { %v2402_v0 = vmul.f32 0.3, %v1692_v13  ;;  %v2530_v35 = vmul.f32 0.2, %v1692_v13 }
 0x43b   : > { %v2497_v25 = vmin.f32 %v2465_v46, 1.0  ;;  %v2625_v57 = vmin.f32 %v2593_v60, 1.0  ;;  %v2737_v43 = vmul.f32 %v2705_v19, %v2369_v16  ;;  %v2338_v20 = vmul.f32 %v2306_v30, %v2082_v10 }
 0x43c   : > { %v2434_v36 = vadd.f32 1.0, %v2402_v0  ;;  %v2562_v56 = vsub.f32 1.0, %v2530_v35 }
 0x43d   : > { %v2769_v2 = vmul.f32 %v2705_v19, %v2497_v25  ;;  %v2801_v34 = vmul.f32 %v2705_v19, %v2625_v57  ;;  %v2929_v39 = vmul.f32 %v2833_v21, %v2737_v43  ;;  %v2370_v37 = vmin.f32 %v2338_v20, 1.0 }
 0x43e   : > { %v2466_v29 = vmul.f32 %v2434_v36, %v2178_v17  ;;  %v2594_v5 = vmul.f32 %v2562_v56, %v2274_v4  ;;  %v2897_v11 = vmul.f32 %v2865_v14, %v2737_v43 }
 0x43f   : > { %v2961_v50 = vmul.f32 1.05, %v2929_v39  ;;  %v3089_v33 = vmul.f32 %v2833_v21, %v2769_v2  ;;  %v3249_v47 = vmul.f32 %v2833_v21, %v2801_v34  ;;  %v3217_v26 = vmul.f32 %v2865_v14, %v2801_v34 }
 0x440   : > { %v2498_v54 = vmin.f32 %v2466_v29, 1.0  ;;  %v2626_v1 = vmin.f32 %v2594_v5, 1.0  ;;  %v2738_v8 = vmul.f32 %v2706_v55, %v2370_v37  ;;  %v3057_v40 = vmul.f32 %v2865_v14, %v2769_v2 }
 0x441   : > { %v2993_v53 = vmin.f32 %v2961_v50, 1.0  ;;  %v3121_v59 = vmul.f32 1.03, %v3089_v33  ;;  %v3281_v38 = vmin.f32 %v3249_v47, 1.0 }
 0x442   : > { %v2770_v44 = vmul.f32 %v2706_v55, %v2498_v54  ;;  %v2802_v23 = vmul.f32 %v2706_v55, %v2626_v1  ;;  %v2930_v28 = vmul.f32 %v2834_v9, %v2738_v8  ;;  %v2898_v19 = vmul.f32 %v2866_v7, %v2738_v8 }
 0x443   : > { %v3025_v18 = vadd.f32 %v2993_v53, %v2897_v11  ;;  %v3153_v22 = vmin.f32 %v3121_v59, 1.0  ;;  %v3313_v27 = vadd.f32 %v3281_v38, %v3217_v26 }
 0x444   : > { %v3090_v32 = vmul.f32 %v2834_v9, %v2770_v44  ;;  %v2962_v31 = vmul.f32 1.05, %v2930_v28  ;;  %v3250_v41 = vmul.f32 %v2834_v9, %v2802_v23  ;;  %v3218_v45 = vmul.f32 %v2866_v7, %v2802_v23 }
 0x445   : > { %v3185_v3 = vadd.f32 %v3153_v22, %v3057_v40  ;;  %v3345_v49 = vmin.f32 %v3025_v18, 1.0  ;;  %v3474_v51 = vmin.f32 %v3313_v27, 1.0  ;;  %v3058_v15 = vmul.f32 %v2866_v7, %v2770_v44 }
 0x446   : > { %v3122_v48 = vmul.f32 1.03, %v3090_v32  ;;  %v2994_v24 = vmin.f32 %v2962_v31, 1.0  ;;  %v3282_v58 = vmin.f32 %v3250_v41, 1.0 }
 0x447   : > { %3377 = vst [vmem:[%s5615_s13 + $0xf0] sm:$0xff] %v3345_v49  ;;  %v3409_v62 = vmin.f32 %v3185_v3, 1.0  ;;  %3954 = vst [vmem:[%s5615_s13 + $0x2f0] sm:$0xff] %v3474_v51 }
 0x448   : > { %v3154_v52 = vmin.f32 %v3122_v48, 1.0  ;;  %v3026_v63 = vadd.f32 %v2994_v24, %v2898_v19  ;;  %v3314_v21 = vadd.f32 %v3282_v58, %v3218_v45 }
 0x449   : > { %3922 = vst [vmem:[%s5615_s13 + $0x1f0] sm:$0xff] %v3409_v62 }
 0x44a   : > { %v3186_v42 = vadd.f32 %v3154_v52, %v3058_v15  ;;  %v3346_v6 = vmin.f32 %v3026_v63, 1.0  ;;  %v3475_v16 = vmin.f32 %v3314_v21, 1.0 }
 0x44c   : > { %v3410_v46 = vmin.f32 %v3186_v42, 1.0  ;;  %3378 = vst [vmem:[%s5615_s13 + $0xf8] sm:$0xff] %v3346_v6  ;;  %3955 = vst [vmem:[%s5615_s13 + $0x2f8] sm:$0xff] %v3475_v16 }
 0x44e   : > { %3923 = vst [vmem:[%s5615_s13 + $0x1f8] sm:$0xff] %v3410_v46 }
 0x44f   : > { %s3968_s26 = sshll.u32 %s4664_s22, 12  ;;  %s3540_s12 = sshll.u32 %s5615_s13, 4  ;;  %s3541_s12 = int_to_ptr.vmem [resolvable:$true] %s3540_s12 }
 0x450   : > { %s3523_s9 = scalar_lea.hbm %s6784_s5, %s3968_s26  ;;  %s4607_s8 = smov 4096  }
 0x451   : > { %p7159_p5 = scmp.ne.s32.totalorder %s6886_s30, 0  ;;  %s4608_s23 = smov 8192  }
 0x452   : > { %s4609_s28 = smov 16   ;;  %s4610_s27 = smov 256  }
 0x453   : > { %3992 = sst [smem:[#allocation15]] (%p7159_p5), %s4607_s8  ;;  %s4611_s22 = smov [#allocation14]  }
 0x454   : > { %3993 = sst [smem:[#allocation15 + $0x1]] (%p7159_p5), %s4608_s23  ;;  %s4612_s14 = smov 0  }
 0x455   : > { %3994 = sst [smem:[#allocation15 + $0x2]] (%p7159_p5), %s4609_s28 }
 0x456   : > { %3995 = sst [smem:[#allocation15 + $0x3]] (%p7159_p5), %s4610_s27 }
 0x457   : > { %3996 = sst [smem:[#allocation15 + $0x4]] (%p7159_p5), %s4610_s27 }
 0x458   : > { %3997 = sst [smem:[#allocation15 + $0x5]] (%p7159_p5), %s4609_s28 }
 0x459   : > { %3998 = dma.general (%p7159_p5), %s3541_s12, 12288, %s3523_s9, %s3510_s10, %s4611_s22, [#allocation15], %s4612_s14, 0  }
 0x45a PF: > { %s3568_s7 = sand.u32 1, %s4580_s18   ;;  %p7160_p11 = scmp.ne.s32.totalorder %s6887_s6, 0 }
 0x45b   : > { %s3569_s17 = scalar_lea.sflag [#allocation4], %s3568_s7 }
 0x45c   : > { %p4008_p12 = pnand %p3692_p4, %p7160_p11 }
 0x45e   : > { %4575 = dma.done.wait (!%p4008_p12), %s3569_s17, 12288  }
 0x45f   : > { %4577 = vsyncadd (!%p4008_p12), %s3569_s17, 4294955008  ;;  %s7161_s16 = sld [smem:[#allocation23_spill]]  ;;  %p22_p6 = scmp.ge.s32.totalorder %s4668_s24, 4  }
 0x460   : > { %s7162_s18 = smov %s4584_s19  ;;  %s7163_s19 = smov %s4588_s20 }
 0x461   : > { %s7165_s21 = smov %s4668_s24  ;;  %24 = sbr.rel (!%p22_p6) target bundleno = 8 (0x8), region = 131 }
 0x465   : > { %s7164_s20 = smov %s7161_s16 }
 0x468   :  { %3574 = vsyncpa [#allocation3], 1 }
 0x469   :  { %3576 = vsyncpa [#allocation3 + $0x1], 1 }
 0x46a   :  { %3577 = vsyncpa [#allocation6], 1 }
 0x46b   :  { %3579 = vsyncpa [#allocation6 + $0x1], 1 }
 0x46c   :  { %3580 = vsyncpa [#allocation9], 1 }
 0x46d   :  { %3581 = vsyncpa [#allocation4], 1 }
 0x46e   :  { %3583 = vsyncpa [#allocation4 + $0x1], 1 }

</bundles_post_ra>
